<compile_context>
chip_gen: v7x
topology: tpu7x:2x2x1
jax: 0.10.0
libtpu: 0.0.40
codegen_flags: <defaults>
</compile_context>

<pallas_src>
import functools

import numpy as np

import jax
import jax.numpy as jnp
from jax.experimental import pallas as pl
from jax.experimental.pallas import tpu as pltpu

_LANES = 128   # TPU lane width (last dim)
_SUB = 16      # bf16 packed sublane granularity (row-block alignment)

_CONV_CFG = [
    # (Cout, kernel, stride, pad) -- matches the PyTorch nn.Sequential
    (32, 8, 4, 2),
    (64, 6, 3, 1),
    (128, 4, 2, 1),
    (128, 3, 1, 1),
]


def _round_up(x, m):
    return ((x + m - 1) // m) * m


def _plan(input_shape):
    """Static per-layer geometry derived from the input shape."""
    c, h, w = input_shape
    plan = []
    cin, hh, ww = c, h, w
    for cout, k, s, pad in _CONV_CFG:
        ho = (hh + 2 * pad - k) // s + 1
        wo = (ww + 2 * pad - k) // s + 1
        plan.append(dict(cin=cin, cout=cout, k=k, s=s, pad=pad,
                         hin=hh, win=ww, hout=ho, wout=wo))
        cin, hh, ww = cout, ho, wo
    return plan


# ----------------------------------------------------------------------------
# The single fused kernel: conv1 GEMM -> (gather + per-tap GEMM) x3 -> FC head.
# All operands are 2-D, all slices are static and 16-row aligned ref slices.
# ----------------------------------------------------------------------------
def _fused_kernel(p1_ref, w1_ref, b1_ref,
                  g2_ref, w2_ref, b2_ref,
                  g3_ref, w3_ref, b3_ref,
                  g4_ref, w4_ref, b4_ref,
                  g5_ref, wf1_ref, bf1_ref,
                  wf2_ref, bf2_ref,
                  wf3_ref, bf3_ref,
                  wf4_ref, bf4_ref,
                  o_ref, *,
                  conv_taps, conv_rpt, conv_cin, fc_npos, fc_rpt, fc_cin):
    f32, bf16 = jnp.float32, jnp.bfloat16

    # conv1: plain GEMM on the pre-gathered patches; BN scale folded into W,
    # shift = beta + (bias - mean) * scale; f32 accumulate + epilogue.
    y = jnp.dot(p1_ref[...], w1_ref[...], preferred_element_type=f32)
    y = jnp.maximum(y + b1_ref[...], 0.0).astype(bf16)          # (M1, 32)

    # conv2..conv4: per-tap accumulation.  For each tap t, a constant 0/1
    # gather matrix block selects (with zero rows for padded positions) the
    # input pixels of that tap, then a (rows, Cin) @ (Cin, Cout) GEMM
    # accumulates into the layer output.  Conv zero-padding is realised by
    # all-zero gather rows; no strided loads, transposes or reshapes.
    for (g_ref, w_ref, b_ref, ntap, rpt, cin) in (
            (g2_ref, w2_ref, b2_ref, conv_taps[0], conv_rpt[0], conv_cin[0]),
            (g3_ref, w3_ref, b3_ref, conv_taps[1], conv_rpt[1], conv_cin[1]),
            (g4_ref, w4_ref, b4_ref, conv_taps[2], conv_rpt[2], conv_cin[2])):
        acc = None
        for t in range(ntap):
            pt = jnp.dot(g_ref[t * rpt:(t + 1) * rpt, :], y,
                         preferred_element_type=f32).astype(bf16)
            term = jnp.dot(pt, w_ref[t * cin:(t + 1) * cin, :],
                           preferred_element_type=f32)
            acc = term if acc is None else acc + term
        y = jnp.maximum(acc + b_ref[...], 0.0).astype(bf16)

    # fc1: PyTorch's NCHW .view() flatten order is folded into per-spatial-
    # position weight row blocks; a tiny gather matrix pulls each valid
    # spatial row of y into row 0 of a 16-row block (Dropout = identity).
    acc = None
    for p_ in range(fc_npos):
        pt = jnp.dot(g5_ref[p_ * fc_rpt:(p_ + 1) * fc_rpt, :], y,
                     preferred_element_type=f32).astype(bf16)
        term = jnp.dot(pt, wf1_ref[p_ * fc_cin:(p_ + 1) * fc_cin, :],
                       preferred_element_type=f32)
        acc = term if acc is None else acc + term
    h = jnp.maximum(acc + bf1_ref[...], 0.0).astype(bf16)        # (16, 1024)

    h = jnp.maximum(jnp.dot(h, wf2_ref[...], preferred_element_type=f32)
                    + bf2_ref[...], 0.0).astype(bf16)            # (16, 512)
    h = jnp.maximum(jnp.dot(h, wf3_ref[...], preferred_element_type=f32)
                    + bf3_ref[...], 0.0).astype(bf16)            # (16, 256)
    o_ref[...] = (jnp.dot(h, wf4_ref[...], preferred_element_type=f32)
                  + bf4_ref[...])                                # (16, 128) f32


# ----------------------------------------------------------------------------
# Forward-pass wrapper: conv1 im2col (XLA, pre-kernel) + one pallas_call.
# ----------------------------------------------------------------------------
def _cost(plan, n, patches, weights, a_pad, fc_rpt):
    L1, L2, L3, L4 = plan
    m1 = L1["hout"] * L1["wout"]
    f = 2 * m1 * (L1["k"] ** 2 * L1["cin"]) * L1["cout"]
    prev_rows, prev_c = m1, L1["cout"]
    for L in (L2, L3, L4):
        rpt = _round_up(L["hout"] * L["wout"], _SUB)
        ntap = L["k"] ** 2
        f += ntap * 2 * rpt * prev_rows * prev_c          # gather dots
        f += ntap * 2 * rpt * L["cin"] * L["cout"]        # tap dots
        prev_rows, prev_c = rpt, L["cout"]
    npos = L4["hout"] * L4["wout"]
    f += npos * (2 * fc_rpt * prev_rows * prev_c + 2 * fc_rpt * prev_c * 1024)
    f += 2 * fc_rpt * (1024 * 512 + 512 * 256 + 256 * a_pad)
    flops = n * f
    bytes_accessed = (patches.size * 2
                      + sum(int(np.prod(w.shape)) * w.dtype.itemsize
                            for w in weights)
                      + n * fc_rpt * a_pad * 4)
    return int(flops), int(bytes_accessed)


def qnetwork_forward(packed, x, *, input_shape, num_actions):
    """x: (N, C, H, W) float32 (same interface as the PyTorch module)."""
    plan = _plan(input_shape)
    L1, L2, L3, L4 = plan
    n = x.shape[0]
    k, s, pad = L1["k"], L1["s"], L1["pad"]
    ho, wo, cin = L1["hout"], L1["wout"], L1["cin"]
    m1 = ho * wo
    k1 = k * k * cin

    # NCHW -> NHWC + bf16 cast + conv1 im2col.  The raw input exists before
    # the kernel, so this is one small fused XLA gather (~256 KB here).
    xh = jnp.transpose(x, (0, 2, 3, 1)).astype(jnp.bfloat16)
    xp = jnp.pad(xh, ((0, 0), (pad, pad), (pad, pad), (0, 0)))
    cols = [xp[:, i:i + s * ho:s, j:j + s * wo:s, :]
            for i in range(k) for j in range(k)]
    patches = jnp.stack(cols, axis=3).reshape(n * m1, k1)        # (N*M1, K1)

    conv_taps = (L2["k"] ** 2, L3["k"] ** 2, L4["k"] ** 2)
    conv_rpt = tuple(_round_up(L["hout"] * L["wout"], _SUB) for L in (L2, L3, L4))
    conv_cin = (L2["cin"], L3["cin"], L4["cin"])
    fc_npos = L4["hout"] * L4["wout"]
    fc_rpt = _SUB
    fc_cin = L4["cout"]
    a_pad = packed["wf4"].shape[1]

    weight_names = ("w1", "b1", "g2", "w2", "b2", "g3", "w3", "b3",
                    "g4", "w4", "b4", "g5", "wf1", "bf1", "wf2", "bf2",
                    "wf3", "bf3", "wf4", "bf4")
    weights = [packed[nm] for nm in weight_names]

    kernel = functools.partial(
        _fused_kernel, conv_taps=conv_taps, conv_rpt=conv_rpt,
        conv_cin=conv_cin, fc_npos=fc_npos, fc_rpt=fc_rpt, fc_cin=fc_cin)

    # Per-image blocks for the patches / output; whole-array constant blocks
    # for the weights (fetched once, stay resident across the batch grid).
    in_specs = [pl.BlockSpec((m1, k1), lambda i: (i, 0))]
    in_specs += [pl.BlockSpec(w.shape, lambda i: (0, 0)) for w in weights]
    out_specs = pl.BlockSpec((fc_rpt, a_pad), lambda i: (i, 0))

    flops, bytes_accessed = _cost(plan, n, patches, weights, a_pad, fc_rpt)

    q = pl.pallas_call(
        kernel,
        out_shape=jax.ShapeDtypeStruct((n * fc_rpt, a_pad), jnp.float32),
        grid=(n,),
        in_specs=in_specs,
        out_specs=out_specs,
        compiler_params=pltpu.CompilerParams(
            dimension_semantics=("parallel",),        # v7x: split batch on 2 TCs
            vmem_limit_bytes=32 * 1024 * 1024),       # safe on v5e/v6e/v7x
        cost_estimate=pl.CostEstimate(
            flops=flops, transcendentals=0, bytes_accessed=bytes_accessed),
    )(patches, *weights)

    # Row 0 of each 16-row block holds the real sample; padded action lanes
    # are exactly zero (zero-padded fc4 columns / bias).
    return q.reshape(n, fc_rpt, a_pad)[:, 0, :num_actions]


# ----------------------------------------------------------------------------
# One-time parameter packing (BN fold, tap ordering, gather matrices, bf16).
# ----------------------------------------------------------------------------
def _gather_matrix(h_in, w_in, k, s, pad, in_cols, rpt):
    """0/1 matrix: row (tap*rpt + out_pos) selects input pixel column of that
    tap (all-zero row when the tap falls into conv zero-padding)."""
    h_out = (h_in + 2 * pad - k) // s + 1
    w_out = (w_in + 2 * pad - k) // s + 1
    g = np.zeros((k * k * rpt, in_cols), np.float32)
    for ki in range(k):
        for kj in range(k):
            t = ki * k + kj
            for oh in range(h_out):
                for ow in range(w_out):
                    ih = oh * s + ki - pad
                    iw = ow * s + kj - pad
                    if 0 <= ih < h_in and 0 <= iw < w_in:
                        g[t * rpt + oh * w_out + ow, ih * w_in + iw] = 1.0
    return g


def _fold_bn_conv(p, eps):
    scale = np.asarray(p["gamma"], np.float32) / np.sqrt(
        np.asarray(p["var"], np.float32) + eps)
    w = np.asarray(p["weight"], np.float32) * scale[:, None, None, None]
    w = np.transpose(w, (2, 3, 1, 0))           # (kh, kw, cin, cout)
    w = w.reshape(-1, w.shape[-1])              # rows ordered (ki, kj, ci)
    shift = (np.asarray(p["beta"], np.float32)
             + (np.asarray(p["bias"], np.float32)
                - np.asarray(p["mean"], np.float32)) * scale)
    return w, shift.reshape(1, -1)


def pack_params(raw, input_shape, num_actions, eps=1e-5):
    plan = _plan(input_shape)
    packed = {}

    # conv1: direct GEMM weight.
    w, b = _fold_bn_conv(raw["conv"][0], eps)
    packed["w1"] = jnp.asarray(w, jnp.bfloat16)
    packed["b1"] = jnp.asarray(b, jnp.float32)
    prev_rows = plan[0]["hout"] * plan[0]["wout"]

    # conv2..conv4: gather matrix + per-tap weights.
    for li in (1, 2, 3):
        L = plan[li]
        rpt = _round_up(L["hout"] * L["wout"], _SUB)
        g = _gather_matrix(L["hin"], L["win"], L["k"], L["s"], L["pad"],
                           prev_rows, rpt)
        w, b = _fold_bn_conv(raw["conv"][li], eps)
        packed[f"g{li + 1}"] = jnp.asarray(g, jnp.bfloat16)
        packed[f"w{li + 1}"] = jnp.asarray(w, jnp.bfloat16)
        packed[f"b{li + 1}"] = jnp.asarray(b, jnp.float32)
        prev_rows = rpt

    # fc1: spatial-position gather + weight rows reordered from PyTorch's
    # NCHW flatten (c*npos + p) to (p*cout + c) blocks.
    L4 = plan[3]
    npos = L4["hout"] * L4["wout"]
    cout4 = L4["cout"]
    g5 = np.zeros((npos * _SUB, prev_rows), np.float32)
    for p_ in range(npos):
        g5[p_ * _SUB, p_] = 1.0
    packed["g5"] = jnp.asarray(g5, jnp.bfloat16)

    fw = np.asarray(raw["fc"][0]["weight"], np.float32)           # (1024, C*npos)
    fw = fw.reshape(fw.shape[0], cout4, npos)                     # (out, c, p)
    fw = np.transpose(fw, (2, 1, 0)).reshape(npos * cout4, -1)    # (p*C + c, out)
    packed["wf1"] = jnp.asarray(fw, jnp.bfloat16)
    packed["bf1"] = jnp.asarray(
        np.asarray(raw["fc"][0]["bias"], np.float32).reshape(1, -1), jnp.float32)

    for i, nm in ((1, "f2"), (2, "f3")):
        packed[f"w{nm}"] = jnp.asarray(
            np.asarray(raw["fc"][i]["weight"], np.float32).T, jnp.bfloat16)
        packed[f"b{nm}"] = jnp.asarray(
            np.asarray(raw["fc"][i]["bias"], np.float32).reshape(1, -1),
            jnp.float32)

    a_pad = _round_up(num_actions, _LANES)
    w4 = np.asarray(raw["fc"][3]["weight"], np.float32).T         # (256, A)
    w4 = np.pad(w4, ((0, 0), (0, a_pad - num_actions)))
    b4 = np.pad(np.asarray(raw["fc"][3]["bias"], np.float32),
                (0, a_pad - num_actions))
    packed["wf4"] = jnp.asarray(w4, jnp.bfloat16)
    packed["bf4"] = jnp.asarray(b4.reshape(1, -1), jnp.float32)
    return packed


# ----------------------------------------------------------------------------
# Synthetic PyTorch-layout parameters + pure-JAX f32 reference.
# ----------------------------------------------------------------------------
def init_params(key, input_shape, num_actions):
    plan = _plan(input_shape)
    params = {"conv": [], "fc": []}
    cin = input_shape[0]
    for cout, k, _, _ in _CONV_CFG:
        key, k1, k2, k3, k4, k5, k6 = jax.random.split(key, 7)
        fan_in = cin * k * k
        params["conv"].append(dict(
            weight=jax.random.normal(k1, (cout, cin, k, k), jnp.float32)
                   * jnp.sqrt(2.0 / fan_in),
            bias=0.05 * jax.random.normal(k2, (cout,), jnp.float32),
            gamma=1.0 + 0.1 * jax.random.normal(k3, (cout,), jnp.float32),
            beta=0.05 * jax.random.normal(k4, (cout,), jnp.float32),
            mean=0.05 * jax.random.normal(k5, (cout,), jnp.float32),
            var=1.0 + 0.2 * jax.random.uniform(k6, (cout,), jnp.float32),
        ))
        cin = cout
    L4 = plan[3]
    linear_input_size = L4["cout"] * L4["hout"] * L4["wout"]
    dims = [linear_input_size, 1024, 512, 256, num_actions]
    for i in range(4):
        key, k1, k2 = jax.random.split(key, 3)
        params["fc"].append(dict(
            weight=jax.random.normal(k1, (dims[i + 1], dims[i]), jnp.float32)
                   * jnp.sqrt(2.0 / dims[i]),
            bias=0.05 * jax.random.normal(k2, (dims[i + 1],), jnp.float32),
        ))
    return params


def reference_forward(raw, x, num_actions, eps=1e-5):
    """Eval-mode reference matching the PyTorch module (f32, pure JAX)."""
    y = x.astype(jnp.float32)
    for p_, (cout, k, s, pad) in zip(raw["conv"], _CONV_CFG):
        y = jax.lax.conv_general_dilated(
            y, p_["weight"], window_strides=(s, s),
            padding=[(pad, pad), (pad, pad)],
            dimension_numbers=("NCHW", "OIHW", "NCHW"))
        y = y + p_["bias"][None, :, None, None]
        scale = p_["gamma"] / jnp.sqrt(p_["var"] + eps)
        y = ((y - p_["mean"][None, :, None, None]) * scale[None, :, None, None]
             + p_["beta"][None, :, None, None])
        y = jnp.maximum(y, 0.0)
    y = y.reshape(y.shape[0], -1)
    for i, lp in enumerate(raw["fc"]):
        y = y @ lp["weight"].T + lp["bias"][None, :]
        if i < 3:
            y = jnp.maximum(y, 0.0)
    return y[:, :num_actions]


if __name__ == "__main__":
    key = jax.random.PRNGKey(0)
    input_shape = (4, 64, 64)   # (c, h, w): smallest spatial size that survives
                                # the stride-4/3/2/1 conv stack (-> 16, 5, 2, 2)
    num_actions = 6
    batch = 2

    pkey, xkey = jax.random.split(key)
    raw = init_params(pkey, input_shape, num_actions)
    packed = pack_params(raw, input_shape, num_actions)   # one-time prep, outside jit
    x = jax.random.normal(xkey, (batch,) + input_shape, jnp.float32)

    fwd = jax.jit(functools.partial(qnetwork_forward,
                                    input_shape=input_shape,
                                    num_actions=num_actions))
    q = jax.block_until_ready(fwd(packed, x))
    assert q.shape == (batch, num_actions), q.shape
    assert bool(jnp.all(jnp.isfinite(q)))

    # Loose tolerance vs the f32 reference (kernel uses bf16 MXU operands).
    ref = reference_forward(raw, x, num_actions)
    err = float(jnp.max(jnp.abs(q - ref))
                / jnp.maximum(jnp.max(jnp.abs(ref)), 1e-3))
    assert err < 0.1, f"numerical mismatch: rel err {err}"
    print("KERNEL_OK")
</pallas_src>

<mosaic_0001>
module attributes {stable_mosaic.version = 11 : i64} {
  func.func @_fused_kernel(%arg0: i32, %arg1: memref<256x256xbf16, #tpu.memory_space<vmem>>, %arg2: memref<256x32xbf16, #tpu.memory_space<vmem>>, %arg3: memref<1x32xf32, #tpu.memory_space<vmem>>, %arg4: memref<1152x256xbf16, #tpu.memory_space<vmem>>, %arg5: memref<1152x64xbf16, #tpu.memory_space<vmem>>, %arg6: memref<1x64xf32, #tpu.memory_space<vmem>>, %arg7: memref<256x32xbf16, #tpu.memory_space<vmem>>, %arg8: memref<1024x128xbf16, #tpu.memory_space<vmem>>, %arg9: memref<1x128xf32, #tpu.memory_space<vmem>>, %arg10: memref<144x16xbf16, #tpu.memory_space<vmem>>, %arg11: memref<1152x128xbf16, #tpu.memory_space<vmem>>, %arg12: memref<1x128xf32, #tpu.memory_space<vmem>>, %arg13: memref<64x16xbf16, #tpu.memory_space<vmem>>, %arg14: memref<512x1024xbf16, #tpu.memory_space<vmem>>, %arg15: memref<1x1024xf32, #tpu.memory_space<vmem>>, %arg16: memref<1024x512xbf16, #tpu.memory_space<vmem>>, %arg17: memref<1x512xf32, #tpu.memory_space<vmem>>, %arg18: memref<512x256xbf16, #tpu.memory_space<vmem>>, %arg19: memref<1x256xf32, #tpu.memory_space<vmem>>, %arg20: memref<256x128xbf16, #tpu.memory_space<vmem>>, %arg21: memref<1x128xf32, #tpu.memory_space<vmem>>, %arg22: memref<16x128xf32, #tpu.memory_space<vmem>>) attributes {dimension_semantics = [#tpu.dimension_semantics<parallel>], iteration_bounds = array<i64: 2>, scalar_prefetch = 0 : i64, scratch_operands = 0 : i64, tpu.core_type = #tpu.core_type<tc>, window_params = [{transform_indices = @transform_0, window_bounds = array<i64: 256, 256>}, {pipeline_mode = #tpu.pipeline_mode<synchronous>, transform_indices = @transform_1, window_bounds = array<i64: 256, 32>}, {pipeline_mode = #tpu.pipeline_mode<synchronous>, transform_indices = @transform_2, window_bounds = array<i64: 1, 32>}, {pipeline_mode = #tpu.pipeline_mode<synchronous>, transform_indices = @transform_3, window_bounds = array<i64: 1152, 256>}, {pipeline_mode = #tpu.pipeline_mode<synchronous>, transform_indices = @transform_4, window_bounds = array<i64: 1152, 64>}, {pipeline_mode = #tpu.pipeline_mode<synchronous>, transform_indices = @transform_5, window_bounds = array<i64: 1, 64>}, {pipeline_mode = #tpu.pipeline_mode<synchronous>, transform_indices = @transform_6, window_bounds = array<i64: 256, 32>}, {pipeline_mode = #tpu.pipeline_mode<synchronous>, transform_indices = @transform_7, window_bounds = array<i64: 1024, 128>}, {pipeline_mode = #tpu.pipeline_mode<synchronous>, transform_indices = @transform_8, window_bounds = array<i64: 1, 128>}, {pipeline_mode = #tpu.pipeline_mode<synchronous>, transform_indices = @transform_9, window_bounds = array<i64: 144, 16>}, {pipeline_mode = #tpu.pipeline_mode<synchronous>, transform_indices = @transform_10, window_bounds = array<i64: 1152, 128>}, {pipeline_mode = #tpu.pipeline_mode<synchronous>, transform_indices = @transform_11, window_bounds = array<i64: 1, 128>}, {pipeline_mode = #tpu.pipeline_mode<synchronous>, transform_indices = @transform_12, window_bounds = array<i64: 64, 16>}, {pipeline_mode = #tpu.pipeline_mode<synchronous>, transform_indices = @transform_13, window_bounds = array<i64: 512, 1024>}, {pipeline_mode = #tpu.pipeline_mode<synchronous>, transform_indices = @transform_14, window_bounds = array<i64: 1, 1024>}, {pipeline_mode = #tpu.pipeline_mode<synchronous>, transform_indices = @transform_15, window_bounds = array<i64: 1024, 512>}, {pipeline_mode = #tpu.pipeline_mode<synchronous>, transform_indices = @transform_16, window_bounds = array<i64: 1, 512>}, {pipeline_mode = #tpu.pipeline_mode<synchronous>, transform_indices = @transform_17, window_bounds = array<i64: 512, 256>}, {pipeline_mode = #tpu.pipeline_mode<synchronous>, transform_indices = @transform_18, window_bounds = array<i64: 1, 256>}, {pipeline_mode = #tpu.pipeline_mode<synchronous>, transform_indices = @transform_19, window_bounds = array<i64: 256, 128>}, {pipeline_mode = #tpu.pipeline_mode<synchronous>, transform_indices = @transform_20, window_bounds = array<i64: 1, 128>}, {transform_indices = @transform_21, window_bounds = array<i64: 16, 128>}]} {
    %c0 = arith.constant 0 : index
    %c0_0 = arith.constant 0 : index
    %0 = vector.load %arg1[%c0, %c0_0] : memref<256x256xbf16, #tpu.memory_space<vmem>>, vector<256x256xbf16>
    %c0_1 = arith.constant 0 : index
    %c0_2 = arith.constant 0 : index
    %1 = vector.load %arg2[%c0_1, %c0_2] : memref<256x32xbf16, #tpu.memory_space<vmem>>, vector<256x32xbf16>
    %cst = arith.constant dense<0.000000e+00> : vector<256x32xf32>
    %2 = tpu.matmul %0, %1, %cst {dimension_numbers = #tpu.dot_dimension_numbers<[1], [0], [0], [1], [0, 0, 1, 1], [], []>} : vector<256x256xbf16>, vector<256x32xbf16>, vector<256x32xf32> -> vector<256x32xf32>
    %c0_3 = arith.constant 0 : index
    %c0_4 = arith.constant 0 : index
    %3 = vector.load %arg3[%c0_3, %c0_4] : memref<1x32xf32, #tpu.memory_space<vmem>>, vector<1x32xf32>
    %4 = vector.broadcast %3 : vector<1x32xf32> to vector<256x32xf32>
    %5 = arith.addf %2, %4 : vector<256x32xf32>
    %cst_5 = arith.constant 0.000000e+00 : f32
    %6 = vector.broadcast %cst_5 : f32 to vector<256x32xf32>
    %7 = arith.maximumf %5, %6 : vector<256x32xf32>
    %8 = arith.truncf %7 : vector<256x32xf32> to vector<256x32xbf16>
    %c0_6 = arith.constant 0 : index
    %c0_7 = arith.constant 0 : index
    %9 = vector.load %arg4[%c0_6, %c0_7] : memref<1152x256xbf16, #tpu.memory_space<vmem>>, vector<32x256xbf16>
    %cst_8 = arith.constant dense<0.000000e+00> : vector<32x32xf32>
    %10 = tpu.matmul %9, %8, %cst_8 {dimension_numbers = #tpu.dot_dimension_numbers<[1], [0], [0], [1], [0, 0, 1, 1], [], []>} : vector<32x256xbf16>, vector<256x32xbf16>, vector<32x32xf32> -> vector<32x32xf32>
    %11 = arith.truncf %10 : vector<32x32xf32> to vector<32x32xbf16>
    %c0_9 = arith.constant 0 : index
    %c0_10 = arith.constant 0 : index
    %12 = vector.load %arg5[%c0_9, %c0_10] : memref<1152x64xbf16, #tpu.memory_space<vmem>>, vector<32x64xbf16>
    %cst_11 = arith.constant dense<0.000000e+00> : vector<32x64xf32>
    %13 = tpu.matmul %11, %12, %cst_11 {dimension_numbers = #tpu.dot_dimension_numbers<[1], [0], [0], [1], [0, 0, 1, 1], [], []>} : vector<32x32xbf16>, vector<32x64xbf16>, vector<32x64xf32> -> vector<32x64xf32>
    %c32 = arith.constant 32 : index
    %c0_12 = arith.constant 0 : index
    %14 = vector.load %arg4[%c32, %c0_12] : memref<1152x256xbf16, #tpu.memory_space<vmem>>, vector<32x256xbf16>
    %cst_13 = arith.constant dense<0.000000e+00> : vector<32x32xf32>
    %15 = tpu.matmul %14, %8, %cst_13 {dimension_numbers = #tpu.dot_dimension_numbers<[1], [0], [0], [1], [0, 0, 1, 1], [], []>} : vector<32x256xbf16>, vector<256x32xbf16>, vector<32x32xf32> -> vector<32x32xf32>
    %16 = arith.truncf %15 : vector<32x32xf32> to vector<32x32xbf16>
    %c32_14 = arith.constant 32 : index
    %c0_15 = arith.constant 0 : index
    %17 = vector.load %arg5[%c32_14, %c0_15] : memref<1152x64xbf16, #tpu.memory_space<vmem>>, vector<32x64xbf16>
    %cst_16 = arith.constant dense<0.000000e+00> : vector<32x64xf32>
    %18 = tpu.matmul %16, %17, %cst_16 {dimension_numbers = #tpu.dot_dimension_numbers<[1], [0], [0], [1], [0, 0, 1, 1], [], []>} : vector<32x32xbf16>, vector<32x64xbf16>, vector<32x64xf32> -> vector<32x64xf32>
    %19 = arith.addf %13, %18 : vector<32x64xf32>
    %c64 = arith.constant 64 : index
    %c0_17 = arith.constant 0 : index
    %20 = vector.load %arg4[%c64, %c0_17] : memref<1152x256xbf16, #tpu.memory_space<vmem>>, vector<32x256xbf16>
    %cst_18 = arith.constant dense<0.000000e+00> : vector<32x32xf32>
    %21 = tpu.matmul %20, %8, %cst_18 {dimension_numbers = #tpu.dot_dimension_numbers<[1], [0], [0], [1], [0, 0, 1, 1], [], []>} : vector<32x256xbf16>, vector<256x32xbf16>, vector<32x32xf32> -> vector<32x32xf32>
    %22 = arith.truncf %21 : vector<32x32xf32> to vector<32x32xbf16>
    %c64_19 = arith.constant 64 : index
    %c0_20 = arith.constant 0 : index
    %23 = vector.load %arg5[%c64_19, %c0_20] : memref<1152x64xbf16, #tpu.memory_space<vmem>>, vector<32x64xbf16>
    %cst_21 = arith.constant dense<0.000000e+00> : vector<32x64xf32>
    %24 = tpu.matmul %22, %23, %cst_21 {dimension_numbers = #tpu.dot_dimension_numbers<[1], [0], [0], [1], [0, 0, 1, 1], [], []>} : vector<32x32xbf16>, vector<32x64xbf16>, vector<32x64xf32> -> vector<32x64xf32>
    %25 = arith.addf %19, %24 : vector<32x64xf32>
    %c96 = arith.constant 96 : index
    %c0_22 = arith.constant 0 : index
    %26 = vector.load %arg4[%c96, %c0_22] : memref<1152x256xbf16, #tpu.memory_space<vmem>>, vector<32x256xbf16>
    %cst_23 = arith.constant dense<0.000000e+00> : vector<32x32xf32>
    %27 = tpu.matmul %26, %8, %cst_23 {dimension_numbers = #tpu.dot_dimension_numbers<[1], [0], [0], [1], [0, 0, 1, 1], [], []>} : vector<32x256xbf16>, vector<256x32xbf16>, vector<32x32xf32> -> vector<32x32xf32>
    %28 = arith.truncf %27 : vector<32x32xf32> to vector<32x32xbf16>
    %c96_24 = arith.constant 96 : index
    %c0_25 = arith.constant 0 : index
    %29 = vector.load %arg5[%c96_24, %c0_25] : memref<1152x64xbf16, #tpu.memory_space<vmem>>, vector<32x64xbf16>
    %cst_26 = arith.constant dense<0.000000e+00> : vector<32x64xf32>
    %30 = tpu.matmul %28, %29, %cst_26 {dimension_numbers = #tpu.dot_dimension_numbers<[1], [0], [0], [1], [0, 0, 1, 1], [], []>} : vector<32x32xbf16>, vector<32x64xbf16>, vector<32x64xf32> -> vector<32x64xf32>
    %31 = arith.addf %25, %30 : vector<32x64xf32>
    %c128 = arith.constant 128 : index
    %c0_27 = arith.constant 0 : index
    %32 = vector.load %arg4[%c128, %c0_27] : memref<1152x256xbf16, #tpu.memory_space<vmem>>, vector<32x256xbf16>
    %cst_28 = arith.constant dense<0.000000e+00> : vector<32x32xf32>
    %33 = tpu.matmul %32, %8, %cst_28 {dimension_numbers = #tpu.dot_dimension_numbers<[1], [0], [0], [1], [0, 0, 1, 1], [], []>} : vector<32x256xbf16>, vector<256x32xbf16>, vector<32x32xf32> -> vector<32x32xf32>
    %34 = arith.truncf %33 : vector<32x32xf32> to vector<32x32xbf16>
    %c128_29 = arith.constant 128 : index
    %c0_30 = arith.constant 0 : index
    %35 = vector.load %arg5[%c128_29, %c0_30] : memref<1152x64xbf16, #tpu.memory_space<vmem>>, vector<32x64xbf16>
    %cst_31 = arith.constant dense<0.000000e+00> : vector<32x64xf32>
    %36 = tpu.matmul %34, %35, %cst_31 {dimension_numbers = #tpu.dot_dimension_numbers<[1], [0], [0], [1], [0, 0, 1, 1], [], []>} : vector<32x32xbf16>, vector<32x64xbf16>, vector<32x64xf32> -> vector<32x64xf32>
    %37 = arith.addf %31, %36 : vector<32x64xf32>
    %c160 = arith.constant 160 : index
    %c0_32 = arith.constant 0 : index
    %38 = vector.load %arg4[%c160, %c0_32] : memref<1152x256xbf16, #tpu.memory_space<vmem>>, vector<32x256xbf16>
    %cst_33 = arith.constant dense<0.000000e+00> : vector<32x32xf32>
    %39 = tpu.matmul %38, %8, %cst_33 {dimension_numbers = #tpu.dot_dimension_numbers<[1], [0], [0], [1], [0, 0, 1, 1], [], []>} : vector<32x256xbf16>, vector<256x32xbf16>, vector<32x32xf32> -> vector<32x32xf32>
    %40 = arith.truncf %39 : vector<32x32xf32> to vector<32x32xbf16>
    %c160_34 = arith.constant 160 : index
    %c0_35 = arith.constant 0 : index
    %41 = vector.load %arg5[%c160_34, %c0_35] : memref<1152x64xbf16, #tpu.memory_space<vmem>>, vector<32x64xbf16>
    %cst_36 = arith.constant dense<0.000000e+00> : vector<32x64xf32>
    %42 = tpu.matmul %40, %41, %cst_36 {dimension_numbers = #tpu.dot_dimension_numbers<[1], [0], [0], [1], [0, 0, 1, 1], [], []>} : vector<32x32xbf16>, vector<32x64xbf16>, vector<32x64xf32> -> vector<32x64xf32>
    %43 = arith.addf %37, %42 : vector<32x64xf32>
    %c192 = arith.constant 192 : index
    %c0_37 = arith.constant 0 : index
    %44 = vector.load %arg4[%c192, %c0_37] : memref<1152x256xbf16, #tpu.memory_space<vmem>>, vector<32x256xbf16>
    %cst_38 = arith.constant dense<0.000000e+00> : vector<32x32xf32>
    %45 = tpu.matmul %44, %8, %cst_38 {dimension_numbers = #tpu.dot_dimension_numbers<[1], [0], [0], [1], [0, 0, 1, 1], [], []>} : vector<32x256xbf16>, vector<256x32xbf16>, vector<32x32xf32> -> vector<32x32xf32>
    %46 = arith.truncf %45 : vector<32x32xf32> to vector<32x32xbf16>
    %c192_39 = arith.constant 192 : index
    %c0_40 = arith.constant 0 : index
    %47 = vector.load %arg5[%c192_39, %c0_40] : memref<1152x64xbf16, #tpu.memory_space<vmem>>, vector<32x64xbf16>
    %cst_41 = arith.constant dense<0.000000e+00> : vector<32x64xf32>
    %48 = tpu.matmul %46, %47, %cst_41 {dimension_numbers = #tpu.dot_dimension_numbers<[1], [0], [0], [1], [0, 0, 1, 1], [], []>} : vector<32x32xbf16>, vector<32x64xbf16>, vector<32x64xf32> -> vector<32x64xf32>
    %49 = arith.addf %43, %48 : vector<32x64xf32>
    %c224 = arith.constant 224 : index
    %c0_42 = arith.constant 0 : index
    %50 = vector.load %arg4[%c224, %c0_42] : memref<1152x256xbf16, #tpu.memory_space<vmem>>, vector<32x256xbf16>
    %cst_43 = arith.constant dense<0.000000e+00> : vector<32x32xf32>
    %51 = tpu.matmul %50, %8, %cst_43 {dimension_numbers = #tpu.dot_dimension_numbers<[1], [0], [0], [1], [0, 0, 1, 1], [], []>} : vector<32x256xbf16>, vector<256x32xbf16>, vector<32x32xf32> -> vector<32x32xf32>
    %52 = arith.truncf %51 : vector<32x32xf32> to vector<32x32xbf16>
    %c224_44 = arith.constant 224 : index
    %c0_45 = arith.constant 0 : index
    %53 = vector.load %arg5[%c224_44, %c0_45] : memref<1152x64xbf16, #tpu.memory_space<vmem>>, vector<32x64xbf16>
    %cst_46 = arith.constant dense<0.000000e+00> : vector<32x64xf32>
    %54 = tpu.matmul %52, %53, %cst_46 {dimension_numbers = #tpu.dot_dimension_numbers<[1], [0], [0], [1], [0, 0, 1, 1], [], []>} : vector<32x32xbf16>, vector<32x64xbf16>, vector<32x64xf32> -> vector<32x64xf32>
    %55 = arith.addf %49, %54 : vector<32x64xf32>
    %c256 = arith.constant 256 : index
    %c0_47 = arith.constant 0 : index
    %56 = vector.load %arg4[%c256, %c0_47] : memref<1152x256xbf16, #tpu.memory_space<vmem>>, vector<32x256xbf16>
    %cst_48 = arith.constant dense<0.000000e+00> : vector<32x32xf32>
    %57 = tpu.matmul %56, %8, %cst_48 {dimension_numbers = #tpu.dot_dimension_numbers<[1], [0], [0], [1], [0, 0, 1, 1], [], []>} : vector<32x256xbf16>, vector<256x32xbf16>, vector<32x32xf32> -> vector<32x32xf32>
    %58 = arith.truncf %57 : vector<32x32xf32> to vector<32x32xbf16>
    %c256_49 = arith.constant 256 : index
    %c0_50 = arith.constant 0 : index
    %59 = vector.load %arg5[%c256_49, %c0_50] : memref<1152x64xbf16, #tpu.memory_space<vmem>>, vector<32x64xbf16>
    %cst_51 = arith.constant dense<0.000000e+00> : vector<32x64xf32>
    %60 = tpu.matmul %58, %59, %cst_51 {dimension_numbers = #tpu.dot_dimension_numbers<[1], [0], [0], [1], [0, 0, 1, 1], [], []>} : vector<32x32xbf16>, vector<32x64xbf16>, vector<32x64xf32> -> vector<32x64xf32>
    %61 = arith.addf %55, %60 : vector<32x64xf32>
    %c288 = arith.constant 288 : index
    %c0_52 = arith.constant 0 : index
    %62 = vector.load %arg4[%c288, %c0_52] : memref<1152x256xbf16, #tpu.memory_space<vmem>>, vector<32x256xbf16>
    %cst_53 = arith.constant dense<0.000000e+00> : vector<32x32xf32>
    %63 = tpu.matmul %62, %8, %cst_53 {dimension_numbers = #tpu.dot_dimension_numbers<[1], [0], [0], [1], [0, 0, 1, 1], [], []>} : vector<32x256xbf16>, vector<256x32xbf16>, vector<32x32xf32> -> vector<32x32xf32>
    %64 = arith.truncf %63 : vector<32x32xf32> to vector<32x32xbf16>
    %c288_54 = arith.constant 288 : index
    %c0_55 = arith.constant 0 : index
    %65 = vector.load %arg5[%c288_54, %c0_55] : memref<1152x64xbf16, #tpu.memory_space<vmem>>, vector<32x64xbf16>
    %cst_56 = arith.constant dense<0.000000e+00> : vector<32x64xf32>
    %66 = tpu.matmul %64, %65, %cst_56 {dimension_numbers = #tpu.dot_dimension_numbers<[1], [0], [0], [1], [0, 0, 1, 1], [], []>} : vector<32x32xbf16>, vector<32x64xbf16>, vector<32x64xf32> -> vector<32x64xf32>
    %67 = arith.addf %61, %66 : vector<32x64xf32>
    %c320 = arith.constant 320 : index
    %c0_57 = arith.constant 0 : index
    %68 = vector.load %arg4[%c320, %c0_57] : memref<1152x256xbf16, #tpu.memory_space<vmem>>, vector<32x256xbf16>
    %cst_58 = arith.constant dense<0.000000e+00> : vector<32x32xf32>
    %69 = tpu.matmul %68, %8, %cst_58 {dimension_numbers = #tpu.dot_dimension_numbers<[1], [0], [0], [1], [0, 0, 1, 1], [], []>} : vector<32x256xbf16>, vector<256x32xbf16>, vector<32x32xf32> -> vector<32x32xf32>
    %70 = arith.truncf %69 : vector<32x32xf32> to vector<32x32xbf16>
    %c320_59 = arith.constant 320 : index
    %c0_60 = arith.constant 0 : index
    %71 = vector.load %arg5[%c320_59, %c0_60] : memref<1152x64xbf16, #tpu.memory_space<vmem>>, vector<32x64xbf16>
    %cst_61 = arith.constant dense<0.000000e+00> : vector<32x64xf32>
    %72 = tpu.matmul %70, %71, %cst_61 {dimension_numbers = #tpu.dot_dimension_numbers<[1], [0], [0], [1], [0, 0, 1, 1], [], []>} : vector<32x32xbf16>, vector<32x64xbf16>, vector<32x64xf32> -> vector<32x64xf32>
    %73 = arith.addf %67, %72 : vector<32x64xf32>
    %c352 = arith.constant 352 : index
    %c0_62 = arith.constant 0 : index
    %74 = vector.load %arg4[%c352, %c0_62] : memref<1152x256xbf16, #tpu.memory_space<vmem>>, vector<32x256xbf16>
    %cst_63 = arith.constant dense<0.000000e+00> : vector<32x32xf32>
    %75 = tpu.matmul %74, %8, %cst_63 {dimension_numbers = #tpu.dot_dimension_numbers<[1], [0], [0], [1], [0, 0, 1, 1], [], []>} : vector<32x256xbf16>, vector<256x32xbf16>, vector<32x32xf32> -> vector<32x32xf32>
    %76 = arith.truncf %75 : vector<32x32xf32> to vector<32x32xbf16>
    %c352_64 = arith.constant 352 : index
    %c0_65 = arith.constant 0 : index
    %77 = vector.load %arg5[%c352_64, %c0_65] : memref<1152x64xbf16, #tpu.memory_space<vmem>>, vector<32x64xbf16>
    %cst_66 = arith.constant dense<0.000000e+00> : vector<32x64xf32>
    %78 = tpu.matmul %76, %77, %cst_66 {dimension_numbers = #tpu.dot_dimension_numbers<[1], [0], [0], [1], [0, 0, 1, 1], [], []>} : vector<32x32xbf16>, vector<32x64xbf16>, vector<32x64xf32> -> vector<32x64xf32>
    %79 = arith.addf %73, %78 : vector<32x64xf32>
    %c384 = arith.constant 384 : index
    %c0_67 = arith.constant 0 : index
    %80 = vector.load %arg4[%c384, %c0_67] : memref<1152x256xbf16, #tpu.memory_space<vmem>>, vector<32x256xbf16>
    %cst_68 = arith.constant dense<0.000000e+00> : vector<32x32xf32>
    %81 = tpu.matmul %80, %8, %cst_68 {dimension_numbers = #tpu.dot_dimension_numbers<[1], [0], [0], [1], [0, 0, 1, 1], [], []>} : vector<32x256xbf16>, vector<256x32xbf16>, vector<32x32xf32> -> vector<32x32xf32>
    %82 = arith.truncf %81 : vector<32x32xf32> to vector<32x32xbf16>
    %c384_69 = arith.constant 384 : index
    %c0_70 = arith.constant 0 : index
    %83 = vector.load %arg5[%c384_69, %c0_70] : memref<1152x64xbf16, #tpu.memory_space<vmem>>, vector<32x64xbf16>
    %cst_71 = arith.constant dense<0.000000e+00> : vector<32x64xf32>
    %84 = tpu.matmul %82, %83, %cst_71 {dimension_numbers = #tpu.dot_dimension_numbers<[1], [0], [0], [1], [0, 0, 1, 1], [], []>} : vector<32x32xbf16>, vector<32x64xbf16>, vector<32x64xf32> -> vector<32x64xf32>
    %85 = arith.addf %79, %84 : vector<32x64xf32>
    %c416 = arith.constant 416 : index
    %c0_72 = arith.constant 0 : index
    %86 = vector.load %arg4[%c416, %c0_72] : memref<1152x256xbf16, #tpu.memory_space<vmem>>, vector<32x256xbf16>
    %cst_73 = arith.constant dense<0.000000e+00> : vector<32x32xf32>
    %87 = tpu.matmul %86, %8, %cst_73 {dimension_numbers = #tpu.dot_dimension_numbers<[1], [0], [0], [1], [0, 0, 1, 1], [], []>} : vector<32x256xbf16>, vector<256x32xbf16>, vector<32x32xf32> -> vector<32x32xf32>
    %88 = arith.truncf %87 : vector<32x32xf32> to vector<32x32xbf16>
    %c416_74 = arith.constant 416 : index
    %c0_75 = arith.constant 0 : index
    %89 = vector.load %arg5[%c416_74, %c0_75] : memref<1152x64xbf16, #tpu.memory_space<vmem>>, vector<32x64xbf16>
    %cst_76 = arith.constant dense<0.000000e+00> : vector<32x64xf32>
    %90 = tpu.matmul %88, %89, %cst_76 {dimension_numbers = #tpu.dot_dimension_numbers<[1], [0], [0], [1], [0, 0, 1, 1], [], []>} : vector<32x32xbf16>, vector<32x64xbf16>, vector<32x64xf32> -> vector<32x64xf32>
    %91 = arith.addf %85, %90 : vector<32x64xf32>
    %c448 = arith.constant 448 : index
    %c0_77 = arith.constant 0 : index
    %92 = vector.load %arg4[%c448, %c0_77] : memref<1152x256xbf16, #tpu.memory_space<vmem>>, vector<32x256xbf16>
    %cst_78 = arith.constant dense<0.000000e+00> : vector<32x32xf32>
    %93 = tpu.matmul %92, %8, %cst_78 {dimension_numbers = #tpu.dot_dimension_numbers<[1], [0], [0], [1], [0, 0, 1, 1], [], []>} : vector<32x256xbf16>, vector<256x32xbf16>, vector<32x32xf32> -> vector<32x32xf32>
    %94 = arith.truncf %93 : vector<32x32xf32> to vector<32x32xbf16>
    %c448_79 = arith.constant 448 : index
    %c0_80 = arith.constant 0 : index
    %95 = vector.load %arg5[%c448_79, %c0_80] : memref<1152x64xbf16, #tpu.memory_space<vmem>>, vector<32x64xbf16>
    %cst_81 = arith.constant dense<0.000000e+00> : vector<32x64xf32>
    %96 = tpu.matmul %94, %95, %cst_81 {dimension_numbers = #tpu.dot_dimension_numbers<[1], [0], [0], [1], [0, 0, 1, 1], [], []>} : vector<32x32xbf16>, vector<32x64xbf16>, vector<32x64xf32> -> vector<32x64xf32>
    %97 = arith.addf %91, %96 : vector<32x64xf32>
    %c480 = arith.constant 480 : index
    %c0_82 = arith.constant 0 : index
    %98 = vector.load %arg4[%c480, %c0_82] : memref<1152x256xbf16, #tpu.memory_space<vmem>>, vector<32x256xbf16>
    %cst_83 = arith.constant dense<0.000000e+00> : vector<32x32xf32>
    %99 = tpu.matmul %98, %8, %cst_83 {dimension_numbers = #tpu.dot_dimension_numbers<[1], [0], [0], [1], [0, 0, 1, 1], [], []>} : vector<32x256xbf16>, vector<256x32xbf16>, vector<32x32xf32> -> vector<32x32xf32>
    %100 = arith.truncf %99 : vector<32x32xf32> to vector<32x32xbf16>
    %c480_84 = arith.constant 480 : index
    %c0_85 = arith.constant 0 : index
    %101 = vector.load %arg5[%c480_84, %c0_85] : memref<1152x64xbf16, #tpu.memory_space<vmem>>, vector<32x64xbf16>
    %cst_86 = arith.constant dense<0.000000e+00> : vector<32x64xf32>
    %102 = tpu.matmul %100, %101, %cst_86 {dimension_numbers = #tpu.dot_dimension_numbers<[1], [0], [0], [1], [0, 0, 1, 1], [], []>} : vector<32x32xbf16>, vector<32x64xbf16>, vector<32x64xf32> -> vector<32x64xf32>
    %103 = arith.addf %97, %102 : vector<32x64xf32>
    %c512 = arith.constant 512 : index
    %c0_87 = arith.constant 0 : index
    %104 = vector.load %arg4[%c512, %c0_87] : memref<1152x256xbf16, #tpu.memory_space<vmem>>, vector<32x256xbf16>
    %cst_88 = arith.constant dense<0.000000e+00> : vector<32x32xf32>
    %105 = tpu.matmul %104, %8, %cst_88 {dimension_numbers = #tpu.dot_dimension_numbers<[1], [0], [0], [1], [0, 0, 1, 1], [], []>} : vector<32x256xbf16>, vector<256x32xbf16>, vector<32x32xf32> -> vector<32x32xf32>
    %106 = arith.truncf %105 : vector<32x32xf32> to vector<32x32xbf16>
    %c512_89 = arith.constant 512 : index
    %c0_90 = arith.constant 0 : index
    %107 = vector.load %arg5[%c512_89, %c0_90] : memref<1152x64xbf16, #tpu.memory_space<vmem>>, vector<32x64xbf16>
    %cst_91 = arith.constant dense<0.000000e+00> : vector<32x64xf32>
    %108 = tpu.matmul %106, %107, %cst_91 {dimension_numbers = #tpu.dot_dimension_numbers<[1], [0], [0], [1], [0, 0, 1, 1], [], []>} : vector<32x32xbf16>, vector<32x64xbf16>, vector<32x64xf32> -> vector<32x64xf32>
    %109 = arith.addf %103, %108 : vector<32x64xf32>
    %c544 = arith.constant 544 : index
    %c0_92 = arith.constant 0 : index
    %110 = vector.load %arg4[%c544, %c0_92] : memref<1152x256xbf16, #tpu.memory_space<vmem>>, vector<32x256xbf16>
    %cst_93 = arith.constant dense<0.000000e+00> : vector<32x32xf32>
    %111 = tpu.matmul %110, %8, %cst_93 {dimension_numbers = #tpu.dot_dimension_numbers<[1], [0], [0], [1], [0, 0, 1, 1], [], []>} : vector<32x256xbf16>, vector<256x32xbf16>, vector<32x32xf32> -> vector<32x32xf32>
    %112 = arith.truncf %111 : vector<32x32xf32> to vector<32x32xbf16>
    %c544_94 = arith.constant 544 : index
    %c0_95 = arith.constant 0 : index
    %113 = vector.load %arg5[%c544_94, %c0_95] : memref<1152x64xbf16, #tpu.memory_space<vmem>>, vector<32x64xbf16>
    %cst_96 = arith.constant dense<0.000000e+00> : vector<32x64xf32>
    %114 = tpu.matmul %112, %113, %cst_96 {dimension_numbers = #tpu.dot_dimension_numbers<[1], [0], [0], [1], [0, 0, 1, 1], [], []>} : vector<32x32xbf16>, vector<32x64xbf16>, vector<32x64xf32> -> vector<32x64xf32>
    %115 = arith.addf %109, %114 : vector<32x64xf32>
    %c576 = arith.constant 576 : index
    %c0_97 = arith.constant 0 : index
    %116 = vector.load %arg4[%c576, %c0_97] : memref<1152x256xbf16, #tpu.memory_space<vmem>>, vector<32x256xbf16>
    %cst_98 = arith.constant dense<0.000000e+00> : vector<32x32xf32>
    %117 = tpu.matmul %116, %8, %cst_98 {dimension_numbers = #tpu.dot_dimension_numbers<[1], [0], [0], [1], [0, 0, 1, 1], [], []>} : vector<32x256xbf16>, vector<256x32xbf16>, vector<32x32xf32> -> vector<32x32xf32>
    %118 = arith.truncf %117 : vector<32x32xf32> to vector<32x32xbf16>
    %c576_99 = arith.constant 576 : index
    %c0_100 = arith.constant 0 : index
    %119 = vector.load %arg5[%c576_99, %c0_100] : memref<1152x64xbf16, #tpu.memory_space<vmem>>, vector<32x64xbf16>
    %cst_101 = arith.constant dense<0.000000e+00> : vector<32x64xf32>
    %120 = tpu.matmul %118, %119, %cst_101 {dimension_numbers = #tpu.dot_dimension_numbers<[1], [0], [0], [1], [0, 0, 1, 1], [], []>} : vector<32x32xbf16>, vector<32x64xbf16>, vector<32x64xf32> -> vector<32x64xf32>
    %121 = arith.addf %115, %120 : vector<32x64xf32>
    %c608 = arith.constant 608 : index
    %c0_102 = arith.constant 0 : index
    %122 = vector.load %arg4[%c608, %c0_102] : memref<1152x256xbf16, #tpu.memory_space<vmem>>, vector<32x256xbf16>
    %cst_103 = arith.constant dense<0.000000e+00> : vector<32x32xf32>
    %123 = tpu.matmul %122, %8, %cst_103 {dimension_numbers = #tpu.dot_dimension_numbers<[1], [0], [0], [1], [0, 0, 1, 1], [], []>} : vector<32x256xbf16>, vector<256x32xbf16>, vector<32x32xf32> -> vector<32x32xf32>
    %124 = arith.truncf %123 : vector<32x32xf32> to vector<32x32xbf16>
    %c608_104 = arith.constant 608 : index
    %c0_105 = arith.constant 0 : index
    %125 = vector.load %arg5[%c608_104, %c0_105] : memref<1152x64xbf16, #tpu.memory_space<vmem>>, vector<32x64xbf16>
    %cst_106 = arith.constant dense<0.000000e+00> : vector<32x64xf32>
    %126 = tpu.matmul %124, %125, %cst_106 {dimension_numbers = #tpu.dot_dimension_numbers<[1], [0], [0], [1], [0, 0, 1, 1], [], []>} : vector<32x32xbf16>, vector<32x64xbf16>, vector<32x64xf32> -> vector<32x64xf32>
    %127 = arith.addf %121, %126 : vector<32x64xf32>
    %c640 = arith.constant 640 : index
    %c0_107 = arith.constant 0 : index
    %128 = vector.load %arg4[%c640, %c0_107] : memref<1152x256xbf16, #tpu.memory_space<vmem>>, vector<32x256xbf16>
    %cst_108 = arith.constant dense<0.000000e+00> : vector<32x32xf32>
    %129 = tpu.matmul %128, %8, %cst_108 {dimension_numbers = #tpu.dot_dimension_numbers<[1], [0], [0], [1], [0, 0, 1, 1], [], []>} : vector<32x256xbf16>, vector<256x32xbf16>, vector<32x32xf32> -> vector<32x32xf32>
    %130 = arith.truncf %129 : vector<32x32xf32> to vector<32x32xbf16>
    %c640_109 = arith.constant 640 : index
    %c0_110 = arith.constant 0 : index
    %131 = vector.load %arg5[%c640_109, %c0_110] : memref<1152x64xbf16, #tpu.memory_space<vmem>>, vector<32x64xbf16>
    %cst_111 = arith.constant dense<0.000000e+00> : vector<32x64xf32>
    %132 = tpu.matmul %130, %131, %cst_111 {dimension_numbers = #tpu.dot_dimension_numbers<[1], [0], [0], [1], [0, 0, 1, 1], [], []>} : vector<32x32xbf16>, vector<32x64xbf16>, vector<32x64xf32> -> vector<32x64xf32>
    %133 = arith.addf %127, %132 : vector<32x64xf32>
    %c672 = arith.constant 672 : index
    %c0_112 = arith.constant 0 : index
    %134 = vector.load %arg4[%c672, %c0_112] : memref<1152x256xbf16, #tpu.memory_space<vmem>>, vector<32x256xbf16>
    %cst_113 = arith.constant dense<0.000000e+00> : vector<32x32xf32>
    %135 = tpu.matmul %134, %8, %cst_113 {dimension_numbers = #tpu.dot_dimension_numbers<[1], [0], [0], [1], [0, 0, 1, 1], [], []>} : vector<32x256xbf16>, vector<256x32xbf16>, vector<32x32xf32> -> vector<32x32xf32>
    %136 = arith.truncf %135 : vector<32x32xf32> to vector<32x32xbf16>
    %c672_114 = arith.constant 672 : index
    %c0_115 = arith.constant 0 : index
    %137 = vector.load %arg5[%c672_114, %c0_115] : memref<1152x64xbf16, #tpu.memory_space<vmem>>, vector<32x64xbf16>
    %cst_116 = arith.constant dense<0.000000e+00> : vector<32x64xf32>
    %138 = tpu.matmul %136, %137, %cst_116 {dimension_numbers = #tpu.dot_dimension_numbers<[1], [0], [0], [1], [0, 0, 1, 1], [], []>} : vector<32x32xbf16>, vector<32x64xbf16>, vector<32x64xf32> -> vector<32x64xf32>
    %139 = arith.addf %133, %138 : vector<32x64xf32>
    %c704 = arith.constant 704 : index
    %c0_117 = arith.constant 0 : index
    %140 = vector.load %arg4[%c704, %c0_117] : memref<1152x256xbf16, #tpu.memory_space<vmem>>, vector<32x256xbf16>
    %cst_118 = arith.constant dense<0.000000e+00> : vector<32x32xf32>
    %141 = tpu.matmul %140, %8, %cst_118 {dimension_numbers = #tpu.dot_dimension_numbers<[1], [0], [0], [1], [0, 0, 1, 1], [], []>} : vector<32x256xbf16>, vector<256x32xbf16>, vector<32x32xf32> -> vector<32x32xf32>
    %142 = arith.truncf %141 : vector<32x32xf32> to vector<32x32xbf16>
    %c704_119 = arith.constant 704 : index
    %c0_120 = arith.constant 0 : index
    %143 = vector.load %arg5[%c704_119, %c0_120] : memref<1152x64xbf16, #tpu.memory_space<vmem>>, vector<32x64xbf16>
    %cst_121 = arith.constant dense<0.000000e+00> : vector<32x64xf32>
    %144 = tpu.matmul %142, %143, %cst_121 {dimension_numbers = #tpu.dot_dimension_numbers<[1], [0], [0], [1], [0, 0, 1, 1], [], []>} : vector<32x32xbf16>, vector<32x64xbf16>, vector<32x64xf32> -> vector<32x64xf32>
    %145 = arith.addf %139, %144 : vector<32x64xf32>
    %c736 = arith.constant 736 : index
    %c0_122 = arith.constant 0 : index
    %146 = vector.load %arg4[%c736, %c0_122] : memref<1152x256xbf16, #tpu.memory_space<vmem>>, vector<32x256xbf16>
    %cst_123 = arith.constant dense<0.000000e+00> : vector<32x32xf32>
    %147 = tpu.matmul %146, %8, %cst_123 {dimension_numbers = #tpu.dot_dimension_numbers<[1], [0], [0], [1], [0, 0, 1, 1], [], []>} : vector<32x256xbf16>, vector<256x32xbf16>, vector<32x32xf32> -> vector<32x32xf32>
    %148 = arith.truncf %147 : vector<32x32xf32> to vector<32x32xbf16>
    %c736_124 = arith.constant 736 : index
    %c0_125 = arith.constant 0 : index
    %149 = vector.load %arg5[%c736_124, %c0_125] : memref<1152x64xbf16, #tpu.memory_space<vmem>>, vector<32x64xbf16>
    %cst_126 = arith.constant dense<0.000000e+00> : vector<32x64xf32>
    %150 = tpu.matmul %148, %149, %cst_126 {dimension_numbers = #tpu.dot_dimension_numbers<[1], [0], [0], [1], [0, 0, 1, 1], [], []>} : vector<32x32xbf16>, vector<32x64xbf16>, vector<32x64xf32> -> vector<32x64xf32>
    %151 = arith.addf %145, %150 : vector<32x64xf32>
    %c768 = arith.constant 768 : index
    %c0_127 = arith.constant 0 : index
    %152 = vector.load %arg4[%c768, %c0_127] : memref<1152x256xbf16, #tpu.memory_space<vmem>>, vector<32x256xbf16>
    %cst_128 = arith.constant dense<0.000000e+00> : vector<32x32xf32>
    %153 = tpu.matmul %152, %8, %cst_128 {dimension_numbers = #tpu.dot_dimension_numbers<[1], [0], [0], [1], [0, 0, 1, 1], [], []>} : vector<32x256xbf16>, vector<256x32xbf16>, vector<32x32xf32> -> vector<32x32xf32>
    %154 = arith.truncf %153 : vector<32x32xf32> to vector<32x32xbf16>
    %c768_129 = arith.constant 768 : index
    %c0_130 = arith.constant 0 : index
    %155 = vector.load %arg5[%c768_129, %c0_130] : memref<1152x64xbf16, #tpu.memory_space<vmem>>, vector<32x64xbf16>
    %cst_131 = arith.constant dense<0.000000e+00> : vector<32x64xf32>
    %156 = tpu.matmul %154, %155, %cst_131 {dimension_numbers = #tpu.dot_dimension_numbers<[1], [0], [0], [1], [0, 0, 1, 1], [], []>} : vector<32x32xbf16>, vector<32x64xbf16>, vector<32x64xf32> -> vector<32x64xf32>
    %157 = arith.addf %151, %156 : vector<32x64xf32>
    %c800 = arith.constant 800 : index
    %c0_132 = arith.constant 0 : index
    %158 = vector.load %arg4[%c800, %c0_132] : memref<1152x256xbf16, #tpu.memory_space<vmem>>, vector<32x256xbf16>
    %cst_133 = arith.constant dense<0.000000e+00> : vector<32x32xf32>
    %159 = tpu.matmul %158, %8, %cst_133 {dimension_numbers = #tpu.dot_dimension_numbers<[1], [0], [0], [1], [0, 0, 1, 1], [], []>} : vector<32x256xbf16>, vector<256x32xbf16>, vector<32x32xf32> -> vector<32x32xf32>
    %160 = arith.truncf %159 : vector<32x32xf32> to vector<32x32xbf16>
    %c800_134 = arith.constant 800 : index
    %c0_135 = arith.constant 0 : index
    %161 = vector.load %arg5[%c800_134, %c0_135] : memref<1152x64xbf16, #tpu.memory_space<vmem>>, vector<32x64xbf16>
    %cst_136 = arith.constant dense<0.000000e+00> : vector<32x64xf32>
    %162 = tpu.matmul %160, %161, %cst_136 {dimension_numbers = #tpu.dot_dimension_numbers<[1], [0], [0], [1], [0, 0, 1, 1], [], []>} : vector<32x32xbf16>, vector<32x64xbf16>, vector<32x64xf32> -> vector<32x64xf32>
    %163 = arith.addf %157, %162 : vector<32x64xf32>
    %c832 = arith.constant 832 : index
    %c0_137 = arith.constant 0 : index
    %164 = vector.load %arg4[%c832, %c0_137] : memref<1152x256xbf16, #tpu.memory_space<vmem>>, vector<32x256xbf16>
    %cst_138 = arith.constant dense<0.000000e+00> : vector<32x32xf32>
    %165 = tpu.matmul %164, %8, %cst_138 {dimension_numbers = #tpu.dot_dimension_numbers<[1], [0], [0], [1], [0, 0, 1, 1], [], []>} : vector<32x256xbf16>, vector<256x32xbf16>, vector<32x32xf32> -> vector<32x32xf32>
    %166 = arith.truncf %165 : vector<32x32xf32> to vector<32x32xbf16>
    %c832_139 = arith.constant 832 : index
    %c0_140 = arith.constant 0 : index
    %167 = vector.load %arg5[%c832_139, %c0_140] : memref<1152x64xbf16, #tpu.memory_space<vmem>>, vector<32x64xbf16>
    %cst_141 = arith.constant dense<0.000000e+00> : vector<32x64xf32>
    %168 = tpu.matmul %166, %167, %cst_141 {dimension_numbers = #tpu.dot_dimension_numbers<[1], [0], [0], [1], [0, 0, 1, 1], [], []>} : vector<32x32xbf16>, vector<32x64xbf16>, vector<32x64xf32> -> vector<32x64xf32>
    %169 = arith.addf %163, %168 : vector<32x64xf32>
    %c864 = arith.constant 864 : index
    %c0_142 = arith.constant 0 : index
    %170 = vector.load %arg4[%c864, %c0_142] : memref<1152x256xbf16, #tpu.memory_space<vmem>>, vector<32x256xbf16>
    %cst_143 = arith.constant dense<0.000000e+00> : vector<32x32xf32>
    %171 = tpu.matmul %170, %8, %cst_143 {dimension_numbers = #tpu.dot_dimension_numbers<[1], [0], [0], [1], [0, 0, 1, 1], [], []>} : vector<32x256xbf16>, vector<256x32xbf16>, vector<32x32xf32> -> vector<32x32xf32>
    %172 = arith.truncf %171 : vector<32x32xf32> to vector<32x32xbf16>
    %c864_144 = arith.constant 864 : index
    %c0_145 = arith.constant 0 : index
    %173 = vector.load %arg5[%c864_144, %c0_145] : memref<1152x64xbf16, #tpu.memory_space<vmem>>, vector<32x64xbf16>
    %cst_146 = arith.constant dense<0.000000e+00> : vector<32x64xf32>
    %174 = tpu.matmul %172, %173, %cst_146 {dimension_numbers = #tpu.dot_dimension_numbers<[1], [0], [0], [1], [0, 0, 1, 1], [], []>} : vector<32x32xbf16>, vector<32x64xbf16>, vector<32x64xf32> -> vector<32x64xf32>
    %175 = arith.addf %169, %174 : vector<32x64xf32>
    %c896 = arith.constant 896 : index
    %c0_147 = arith.constant 0 : index
    %176 = vector.load %arg4[%c896, %c0_147] : memref<1152x256xbf16, #tpu.memory_space<vmem>>, vector<32x256xbf16>
    %cst_148 = arith.constant dense<0.000000e+00> : vector<32x32xf32>
    %177 = tpu.matmul %176, %8, %cst_148 {dimension_numbers = #tpu.dot_dimension_numbers<[1], [0], [0], [1], [0, 0, 1, 1], [], []>} : vector<32x256xbf16>, vector<256x32xbf16>, vector<32x32xf32> -> vector<32x32xf32>
    %178 = arith.truncf %177 : vector<32x32xf32> to vector<32x32xbf16>
    %c896_149 = arith.constant 896 : index
    %c0_150 = arith.constant 0 : index
    %179 = vector.load %arg5[%c896_149, %c0_150] : memref<1152x64xbf16, #tpu.memory_space<vmem>>, vector<32x64xbf16>
    %cst_151 = arith.constant dense<0.000000e+00> : vector<32x64xf32>
    %180 = tpu.matmul %178, %179, %cst_151 {dimension_numbers = #tpu.dot_dimension_numbers<[1], [0], [0], [1], [0, 0, 1, 1], [], []>} : vector<32x32xbf16>, vector<32x64xbf16>, vector<32x64xf32> -> vector<32x64xf32>
    %181 = arith.addf %175, %180 : vector<32x64xf32>
    %c928 = arith.constant 928 : index
    %c0_152 = arith.constant 0 : index
    %182 = vector.load %arg4[%c928, %c0_152] : memref<1152x256xbf16, #tpu.memory_space<vmem>>, vector<32x256xbf16>
    %cst_153 = arith.constant dense<0.000000e+00> : vector<32x32xf32>
    %183 = tpu.matmul %182, %8, %cst_153 {dimension_numbers = #tpu.dot_dimension_numbers<[1], [0], [0], [1], [0, 0, 1, 1], [], []>} : vector<32x256xbf16>, vector<256x32xbf16>, vector<32x32xf32> -> vector<32x32xf32>
    %184 = arith.truncf %183 : vector<32x32xf32> to vector<32x32xbf16>
    %c928_154 = arith.constant 928 : index
    %c0_155 = arith.constant 0 : index
    %185 = vector.load %arg5[%c928_154, %c0_155] : memref<1152x64xbf16, #tpu.memory_space<vmem>>, vector<32x64xbf16>
    %cst_156 = arith.constant dense<0.000000e+00> : vector<32x64xf32>
    %186 = tpu.matmul %184, %185, %cst_156 {dimension_numbers = #tpu.dot_dimension_numbers<[1], [0], [0], [1], [0, 0, 1, 1], [], []>} : vector<32x32xbf16>, vector<32x64xbf16>, vector<32x64xf32> -> vector<32x64xf32>
    %187 = arith.addf %181, %186 : vector<32x64xf32>
    %c960 = arith.constant 960 : index
    %c0_157 = arith.constant 0 : index
    %188 = vector.load %arg4[%c960, %c0_157] : memref<1152x256xbf16, #tpu.memory_space<vmem>>, vector<32x256xbf16>
    %cst_158 = arith.constant dense<0.000000e+00> : vector<32x32xf32>
    %189 = tpu.matmul %188, %8, %cst_158 {dimension_numbers = #tpu.dot_dimension_numbers<[1], [0], [0], [1], [0, 0, 1, 1], [], []>} : vector<32x256xbf16>, vector<256x32xbf16>, vector<32x32xf32> -> vector<32x32xf32>
    %190 = arith.truncf %189 : vector<32x32xf32> to vector<32x32xbf16>
    %c960_159 = arith.constant 960 : index
    %c0_160 = arith.constant 0 : index
    %191 = vector.load %arg5[%c960_159, %c0_160] : memref<1152x64xbf16, #tpu.memory_space<vmem>>, vector<32x64xbf16>
    %cst_161 = arith.constant dense<0.000000e+00> : vector<32x64xf32>
    %192 = tpu.matmul %190, %191, %cst_161 {dimension_numbers = #tpu.dot_dimension_numbers<[1], [0], [0], [1], [0, 0, 1, 1], [], []>} : vector<32x32xbf16>, vector<32x64xbf16>, vector<32x64xf32> -> vector<32x64xf32>
    %193 = arith.addf %187, %192 : vector<32x64xf32>
    %c992 = arith.constant 992 : index
    %c0_162 = arith.constant 0 : index
    %194 = vector.load %arg4[%c992, %c0_162] : memref<1152x256xbf16, #tpu.memory_space<vmem>>, vector<32x256xbf16>
    %cst_163 = arith.constant dense<0.000000e+00> : vector<32x32xf32>
    %195 = tpu.matmul %194, %8, %cst_163 {dimension_numbers = #tpu.dot_dimension_numbers<[1], [0], [0], [1], [0, 0, 1, 1], [], []>} : vector<32x256xbf16>, vector<256x32xbf16>, vector<32x32xf32> -> vector<32x32xf32>
    %196 = arith.truncf %195 : vector<32x32xf32> to vector<32x32xbf16>
    %c992_164 = arith.constant 992 : index
    %c0_165 = arith.constant 0 : index
    %197 = vector.load %arg5[%c992_164, %c0_165] : memref<1152x64xbf16, #tpu.memory_space<vmem>>, vector<32x64xbf16>
    %cst_166 = arith.constant dense<0.000000e+00> : vector<32x64xf32>
    %198 = tpu.matmul %196, %197, %cst_166 {dimension_numbers = #tpu.dot_dimension_numbers<[1], [0], [0], [1], [0, 0, 1, 1], [], []>} : vector<32x32xbf16>, vector<32x64xbf16>, vector<32x64xf32> -> vector<32x64xf32>
    %199 = arith.addf %193, %198 : vector<32x64xf32>
    %c1024 = arith.constant 1024 : index
    %c0_167 = arith.constant 0 : index
    %200 = vector.load %arg4[%c1024, %c0_167] : memref<1152x256xbf16, #tpu.memory_space<vmem>>, vector<32x256xbf16>
    %cst_168 = arith.constant dense<0.000000e+00> : vector<32x32xf32>
    %201 = tpu.matmul %200, %8, %cst_168 {dimension_numbers = #tpu.dot_dimension_numbers<[1], [0], [0], [1], [0, 0, 1, 1], [], []>} : vector<32x256xbf16>, vector<256x32xbf16>, vector<32x32xf32> -> vector<32x32xf32>
    %202 = arith.truncf %201 : vector<32x32xf32> to vector<32x32xbf16>
    %c1024_169 = arith.constant 1024 : index
    %c0_170 = arith.constant 0 : index
    %203 = vector.load %arg5[%c1024_169, %c0_170] : memref<1152x64xbf16, #tpu.memory_space<vmem>>, vector<32x64xbf16>
    %cst_171 = arith.constant dense<0.000000e+00> : vector<32x64xf32>
    %204 = tpu.matmul %202, %203, %cst_171 {dimension_numbers = #tpu.dot_dimension_numbers<[1], [0], [0], [1], [0, 0, 1, 1], [], []>} : vector<32x32xbf16>, vector<32x64xbf16>, vector<32x64xf32> -> vector<32x64xf32>
    %205 = arith.addf %199, %204 : vector<32x64xf32>
    %c1056 = arith.constant 1056 : index
    %c0_172 = arith.constant 0 : index
    %206 = vector.load %arg4[%c1056, %c0_172] : memref<1152x256xbf16, #tpu.memory_space<vmem>>, vector<32x256xbf16>
    %cst_173 = arith.constant dense<0.000000e+00> : vector<32x32xf32>
    %207 = tpu.matmul %206, %8, %cst_173 {dimension_numbers = #tpu.dot_dimension_numbers<[1], [0], [0], [1], [0, 0, 1, 1], [], []>} : vector<32x256xbf16>, vector<256x32xbf16>, vector<32x32xf32> -> vector<32x32xf32>
    %208 = arith.truncf %207 : vector<32x32xf32> to vector<32x32xbf16>
    %c1056_174 = arith.constant 1056 : index
    %c0_175 = arith.constant 0 : index
    %209 = vector.load %arg5[%c1056_174, %c0_175] : memref<1152x64xbf16, #tpu.memory_space<vmem>>, vector<32x64xbf16>
    %cst_176 = arith.constant dense<0.000000e+00> : vector<32x64xf32>
    %210 = tpu.matmul %208, %209, %cst_176 {dimension_numbers = #tpu.dot_dimension_numbers<[1], [0], [0], [1], [0, 0, 1, 1], [], []>} : vector<32x32xbf16>, vector<32x64xbf16>, vector<32x64xf32> -> vector<32x64xf32>
    %211 = arith.addf %205, %210 : vector<32x64xf32>
    %c1088 = arith.constant 1088 : index
    %c0_177 = arith.constant 0 : index
    %212 = vector.load %arg4[%c1088, %c0_177] : memref<1152x256xbf16, #tpu.memory_space<vmem>>, vector<32x256xbf16>
    %cst_178 = arith.constant dense<0.000000e+00> : vector<32x32xf32>
    %213 = tpu.matmul %212, %8, %cst_178 {dimension_numbers = #tpu.dot_dimension_numbers<[1], [0], [0], [1], [0, 0, 1, 1], [], []>} : vector<32x256xbf16>, vector<256x32xbf16>, vector<32x32xf32> -> vector<32x32xf32>
    %214 = arith.truncf %213 : vector<32x32xf32> to vector<32x32xbf16>
    %c1088_179 = arith.constant 1088 : index
    %c0_180 = arith.constant 0 : index
    %215 = vector.load %arg5[%c1088_179, %c0_180] : memref<1152x64xbf16, #tpu.memory_space<vmem>>, vector<32x64xbf16>
    %cst_181 = arith.constant dense<0.000000e+00> : vector<32x64xf32>
    %216 = tpu.matmul %214, %215, %cst_181 {dimension_numbers = #tpu.dot_dimension_numbers<[1], [0], [0], [1], [0, 0, 1, 1], [], []>} : vector<32x32xbf16>, vector<32x64xbf16>, vector<32x64xf32> -> vector<32x64xf32>
    %217 = arith.addf %211, %216 : vector<32x64xf32>
    %c1120 = arith.constant 1120 : index
    %c0_182 = arith.constant 0 : index
    %218 = vector.load %arg4[%c1120, %c0_182] : memref<1152x256xbf16, #tpu.memory_space<vmem>>, vector<32x256xbf16>
    %cst_183 = arith.constant dense<0.000000e+00> : vector<32x32xf32>
    %219 = tpu.matmul %218, %8, %cst_183 {dimension_numbers = #tpu.dot_dimension_numbers<[1], [0], [0], [1], [0, 0, 1, 1], [], []>} : vector<32x256xbf16>, vector<256x32xbf16>, vector<32x32xf32> -> vector<32x32xf32>
    %220 = arith.truncf %219 : vector<32x32xf32> to vector<32x32xbf16>
    %c1120_184 = arith.constant 1120 : index
    %c0_185 = arith.constant 0 : index
    %221 = vector.load %arg5[%c1120_184, %c0_185] : memref<1152x64xbf16, #tpu.memory_space<vmem>>, vector<32x64xbf16>
    %cst_186 = arith.constant dense<0.000000e+00> : vector<32x64xf32>
    %222 = tpu.matmul %220, %221, %cst_186 {dimension_numbers = #tpu.dot_dimension_numbers<[1], [0], [0], [1], [0, 0, 1, 1], [], []>} : vector<32x32xbf16>, vector<32x64xbf16>, vector<32x64xf32> -> vector<32x64xf32>
    %223 = arith.addf %217, %222 : vector<32x64xf32>
    %c0_187 = arith.constant 0 : index
    %c0_188 = arith.constant 0 : index
    %224 = vector.load %arg6[%c0_187, %c0_188] : memref<1x64xf32, #tpu.memory_space<vmem>>, vector<1x64xf32>
    %225 = vector.broadcast %224 : vector<1x64xf32> to vector<32x64xf32>
    %226 = arith.addf %223, %225 : vector<32x64xf32>
    %cst_189 = arith.constant 0.000000e+00 : f32
    %227 = vector.broadcast %cst_189 : f32 to vector<32x64xf32>
    %228 = arith.maximumf %226, %227 : vector<32x64xf32>
    %229 = arith.truncf %228 : vector<32x64xf32> to vector<32x64xbf16>
    %c0_190 = arith.constant 0 : index
    %c0_191 = arith.constant 0 : index
    %230 = vector.load %arg7[%c0_190, %c0_191] : memref<256x32xbf16, #tpu.memory_space<vmem>>, vector<16x32xbf16>
    %cst_192 = arith.constant dense<0.000000e+00> : vector<16x64xf32>
    %231 = tpu.matmul %230, %229, %cst_192 {dimension_numbers = #tpu.dot_dimension_numbers<[1], [0], [0], [1], [0, 0, 1, 1], [], []>} : vector<16x32xbf16>, vector<32x64xbf16>, vector<16x64xf32> -> vector<16x64xf32>
    %232 = arith.truncf %231 : vector<16x64xf32> to vector<16x64xbf16>
    %c0_193 = arith.constant 0 : index
    %c0_194 = arith.constant 0 : index
    %233 = vector.load %arg8[%c0_193, %c0_194] : memref<1024x128xbf16, #tpu.memory_space<vmem>>, vector<64x128xbf16>
    %cst_195 = arith.constant dense<0.000000e+00> : vector<16x128xf32>
    %234 = tpu.matmul %232, %233, %cst_195 {dimension_numbers = #tpu.dot_dimension_numbers<[1], [0], [0], [1], [0, 0, 1, 1], [], []>} : vector<16x64xbf16>, vector<64x128xbf16>, vector<16x128xf32> -> vector<16x128xf32>
    %c16 = arith.constant 16 : index
    %c0_196 = arith.constant 0 : index
    %235 = vector.load %arg7[%c16, %c0_196] : memref<256x32xbf16, #tpu.memory_space<vmem>>, vector<16x32xbf16>
    %cst_197 = arith.constant dense<0.000000e+00> : vector<16x64xf32>
    %236 = tpu.matmul %235, %229, %cst_197 {dimension_numbers = #tpu.dot_dimension_numbers<[1], [0], [0], [1], [0, 0, 1, 1], [], []>} : vector<16x32xbf16>, vector<32x64xbf16>, vector<16x64xf32> -> vector<16x64xf32>
    %237 = arith.truncf %236 : vector<16x64xf32> to vector<16x64xbf16>
    %c64_198 = arith.constant 64 : index
    %c0_199 = arith.constant 0 : index
    %238 = vector.load %arg8[%c64_198, %c0_199] : memref<1024x128xbf16, #tpu.memory_space<vmem>>, vector<64x128xbf16>
    %cst_200 = arith.constant dense<0.000000e+00> : vector<16x128xf32>
    %239 = tpu.matmul %237, %238, %cst_200 {dimension_numbers = #tpu.dot_dimension_numbers<[1], [0], [0], [1], [0, 0, 1, 1], [], []>} : vector<16x64xbf16>, vector<64x128xbf16>, vector<16x128xf32> -> vector<16x128xf32>
    %240 = arith.addf %234, %239 : vector<16x128xf32>
    %c32_201 = arith.constant 32 : index
    %c0_202 = arith.constant 0 : index
    %241 = vector.load %arg7[%c32_201, %c0_202] : memref<256x32xbf16, #tpu.memory_space<vmem>>, vector<16x32xbf16>
    %cst_203 = arith.constant dense<0.000000e+00> : vector<16x64xf32>
    %242 = tpu.matmul %241, %229, %cst_203 {dimension_numbers = #tpu.dot_dimension_numbers<[1], [0], [0], [1], [0, 0, 1, 1], [], []>} : vector<16x32xbf16>, vector<32x64xbf16>, vector<16x64xf32> -> vector<16x64xf32>
    %243 = arith.truncf %242 : vector<16x64xf32> to vector<16x64xbf16>
    %c128_204 = arith.constant 128 : index
    %c0_205 = arith.constant 0 : index
    %244 = vector.load %arg8[%c128_204, %c0_205] : memref<1024x128xbf16, #tpu.memory_space<vmem>>, vector<64x128xbf16>
    %cst_206 = arith.constant dense<0.000000e+00> : vector<16x128xf32>
    %245 = tpu.matmul %243, %244, %cst_206 {dimension_numbers = #tpu.dot_dimension_numbers<[1], [0], [0], [1], [0, 0, 1, 1], [], []>} : vector<16x64xbf16>, vector<64x128xbf16>, vector<16x128xf32> -> vector<16x128xf32>
    %246 = arith.addf %240, %245 : vector<16x128xf32>
    %c48 = arith.constant 48 : index
    %c0_207 = arith.constant 0 : index
    %247 = vector.load %arg7[%c48, %c0_207] : memref<256x32xbf16, #tpu.memory_space<vmem>>, vector<16x32xbf16>
    %cst_208 = arith.constant dense<0.000000e+00> : vector<16x64xf32>
    %248 = tpu.matmul %247, %229, %cst_208 {dimension_numbers = #tpu.dot_dimension_numbers<[1], [0], [0], [1], [0, 0, 1, 1], [], []>} : vector<16x32xbf16>, vector<32x64xbf16>, vector<16x64xf32> -> vector<16x64xf32>
    %249 = arith.truncf %248 : vector<16x64xf32> to vector<16x64xbf16>
    %c192_209 = arith.constant 192 : index
    %c0_210 = arith.constant 0 : index
    %250 = vector.load %arg8[%c192_209, %c0_210] : memref<1024x128xbf16, #tpu.memory_space<vmem>>, vector<64x128xbf16>
    %cst_211 = arith.constant dense<0.000000e+00> : vector<16x128xf32>
    %251 = tpu.matmul %249, %250, %cst_211 {dimension_numbers = #tpu.dot_dimension_numbers<[1], [0], [0], [1], [0, 0, 1, 1], [], []>} : vector<16x64xbf16>, vector<64x128xbf16>, vector<16x128xf32> -> vector<16x128xf32>
    %252 = arith.addf %246, %251 : vector<16x128xf32>
    %c64_212 = arith.constant 64 : index
    %c0_213 = arith.constant 0 : index
    %253 = vector.load %arg7[%c64_212, %c0_213] : memref<256x32xbf16, #tpu.memory_space<vmem>>, vector<16x32xbf16>
    %cst_214 = arith.constant dense<0.000000e+00> : vector<16x64xf32>
    %254 = tpu.matmul %253, %229, %cst_214 {dimension_numbers = #tpu.dot_dimension_numbers<[1], [0], [0], [1], [0, 0, 1, 1], [], []>} : vector<16x32xbf16>, vector<32x64xbf16>, vector<16x64xf32> -> vector<16x64xf32>
    %255 = arith.truncf %254 : vector<16x64xf32> to vector<16x64xbf16>
    %c256_215 = arith.constant 256 : index
    %c0_216 = arith.constant 0 : index
    %256 = vector.load %arg8[%c256_215, %c0_216] : memref<1024x128xbf16, #tpu.memory_space<vmem>>, vector<64x128xbf16>
    %cst_217 = arith.constant dense<0.000000e+00> : vector<16x128xf32>
    %257 = tpu.matmul %255, %256, %cst_217 {dimension_numbers = #tpu.dot_dimension_numbers<[1], [0], [0], [1], [0, 0, 1, 1], [], []>} : vector<16x64xbf16>, vector<64x128xbf16>, vector<16x128xf32> -> vector<16x128xf32>
    %258 = arith.addf %252, %257 : vector<16x128xf32>
    %c80 = arith.constant 80 : index
    %c0_218 = arith.constant 0 : index
    %259 = vector.load %arg7[%c80, %c0_218] : memref<256x32xbf16, #tpu.memory_space<vmem>>, vector<16x32xbf16>
    %cst_219 = arith.constant dense<0.000000e+00> : vector<16x64xf32>
    %260 = tpu.matmul %259, %229, %cst_219 {dimension_numbers = #tpu.dot_dimension_numbers<[1], [0], [0], [1], [0, 0, 1, 1], [], []>} : vector<16x32xbf16>, vector<32x64xbf16>, vector<16x64xf32> -> vector<16x64xf32>
    %261 = arith.truncf %260 : vector<16x64xf32> to vector<16x64xbf16>
    %c320_220 = arith.constant 320 : index
    %c0_221 = arith.constant 0 : index
    %262 = vector.load %arg8[%c320_220, %c0_221] : memref<1024x128xbf16, #tpu.memory_space<vmem>>, vector<64x128xbf16>
    %cst_222 = arith.constant dense<0.000000e+00> : vector<16x128xf32>
    %263 = tpu.matmul %261, %262, %cst_222 {dimension_numbers = #tpu.dot_dimension_numbers<[1], [0], [0], [1], [0, 0, 1, 1], [], []>} : vector<16x64xbf16>, vector<64x128xbf16>, vector<16x128xf32> -> vector<16x128xf32>
    %264 = arith.addf %258, %263 : vector<16x128xf32>
    %c96_223 = arith.constant 96 : index
    %c0_224 = arith.constant 0 : index
    %265 = vector.load %arg7[%c96_223, %c0_224] : memref<256x32xbf16, #tpu.memory_space<vmem>>, vector<16x32xbf16>
    %cst_225 = arith.constant dense<0.000000e+00> : vector<16x64xf32>
    %266 = tpu.matmul %265, %229, %cst_225 {dimension_numbers = #tpu.dot_dimension_numbers<[1], [0], [0], [1], [0, 0, 1, 1], [], []>} : vector<16x32xbf16>, vector<32x64xbf16>, vector<16x64xf32> -> vector<16x64xf32>
    %267 = arith.truncf %266 : vector<16x64xf32> to vector<16x64xbf16>
    %c384_226 = arith.constant 384 : index
    %c0_227 = arith.constant 0 : index
    %268 = vector.load %arg8[%c384_226, %c0_227] : memref<1024x128xbf16, #tpu.memory_space<vmem>>, vector<64x128xbf16>
    %cst_228 = arith.constant dense<0.000000e+00> : vector<16x128xf32>
    %269 = tpu.matmul %267, %268, %cst_228 {dimension_numbers = #tpu.dot_dimension_numbers<[1], [0], [0], [1], [0, 0, 1, 1], [], []>} : vector<16x64xbf16>, vector<64x128xbf16>, vector<16x128xf32> -> vector<16x128xf32>
    %270 = arith.addf %264, %269 : vector<16x128xf32>
    %c112 = arith.constant 112 : index
    %c0_229 = arith.constant 0 : index
    %271 = vector.load %arg7[%c112, %c0_229] : memref<256x32xbf16, #tpu.memory_space<vmem>>, vector<16x32xbf16>
    %cst_230 = arith.constant dense<0.000000e+00> : vector<16x64xf32>
    %272 = tpu.matmul %271, %229, %cst_230 {dimension_numbers = #tpu.dot_dimension_numbers<[1], [0], [0], [1], [0, 0, 1, 1], [], []>} : vector<16x32xbf16>, vector<32x64xbf16>, vector<16x64xf32> -> vector<16x64xf32>
    %273 = arith.truncf %272 : vector<16x64xf32> to vector<16x64xbf16>
    %c448_231 = arith.constant 448 : index
    %c0_232 = arith.constant 0 : index
    %274 = vector.load %arg8[%c448_231, %c0_232] : memref<1024x128xbf16, #tpu.memory_space<vmem>>, vector<64x128xbf16>
    %cst_233 = arith.constant dense<0.000000e+00> : vector<16x128xf32>
    %275 = tpu.matmul %273, %274, %cst_233 {dimension_numbers = #tpu.dot_dimension_numbers<[1], [0], [0], [1], [0, 0, 1, 1], [], []>} : vector<16x64xbf16>, vector<64x128xbf16>, vector<16x128xf32> -> vector<16x128xf32>
    %276 = arith.addf %270, %275 : vector<16x128xf32>
    %c128_234 = arith.constant 128 : index
    %c0_235 = arith.constant 0 : index
    %277 = vector.load %arg7[%c128_234, %c0_235] : memref<256x32xbf16, #tpu.memory_space<vmem>>, vector<16x32xbf16>
    %cst_236 = arith.constant dense<0.000000e+00> : vector<16x64xf32>
    %278 = tpu.matmul %277, %229, %cst_236 {dimension_numbers = #tpu.dot_dimension_numbers<[1], [0], [0], [1], [0, 0, 1, 1], [], []>} : vector<16x32xbf16>, vector<32x64xbf16>, vector<16x64xf32> -> vector<16x64xf32>
    %279 = arith.truncf %278 : vector<16x64xf32> to vector<16x64xbf16>
    %c512_237 = arith.constant 512 : index
    %c0_238 = arith.constant 0 : index
    %280 = vector.load %arg8[%c512_237, %c0_238] : memref<1024x128xbf16, #tpu.memory_space<vmem>>, vector<64x128xbf16>
    %cst_239 = arith.constant dense<0.000000e+00> : vector<16x128xf32>
    %281 = tpu.matmul %279, %280, %cst_239 {dimension_numbers = #tpu.dot_dimension_numbers<[1], [0], [0], [1], [0, 0, 1, 1], [], []>} : vector<16x64xbf16>, vector<64x128xbf16>, vector<16x128xf32> -> vector<16x128xf32>
    %282 = arith.addf %276, %281 : vector<16x128xf32>
    %c144 = arith.constant 144 : index
    %c0_240 = arith.constant 0 : index
    %283 = vector.load %arg7[%c144, %c0_240] : memref<256x32xbf16, #tpu.memory_space<vmem>>, vector<16x32xbf16>
    %cst_241 = arith.constant dense<0.000000e+00> : vector<16x64xf32>
    %284 = tpu.matmul %283, %229, %cst_241 {dimension_numbers = #tpu.dot_dimension_numbers<[1], [0], [0], [1], [0, 0, 1, 1], [], []>} : vector<16x32xbf16>, vector<32x64xbf16>, vector<16x64xf32> -> vector<16x64xf32>
    %285 = arith.truncf %284 : vector<16x64xf32> to vector<16x64xbf16>
    %c576_242 = arith.constant 576 : index
    %c0_243 = arith.constant 0 : index
    %286 = vector.load %arg8[%c576_242, %c0_243] : memref<1024x128xbf16, #tpu.memory_space<vmem>>, vector<64x128xbf16>
    %cst_244 = arith.constant dense<0.000000e+00> : vector<16x128xf32>
    %287 = tpu.matmul %285, %286, %cst_244 {dimension_numbers = #tpu.dot_dimension_numbers<[1], [0], [0], [1], [0, 0, 1, 1], [], []>} : vector<16x64xbf16>, vector<64x128xbf16>, vector<16x128xf32> -> vector<16x128xf32>
    %288 = arith.addf %282, %287 : vector<16x128xf32>
    %c160_245 = arith.constant 160 : index
    %c0_246 = arith.constant 0 : index
    %289 = vector.load %arg7[%c160_245, %c0_246] : memref<256x32xbf16, #tpu.memory_space<vmem>>, vector<16x32xbf16>
    %cst_247 = arith.constant dense<0.000000e+00> : vector<16x64xf32>
    %290 = tpu.matmul %289, %229, %cst_247 {dimension_numbers = #tpu.dot_dimension_numbers<[1], [0], [0], [1], [0, 0, 1, 1], [], []>} : vector<16x32xbf16>, vector<32x64xbf16>, vector<16x64xf32> -> vector<16x64xf32>
    %291 = arith.truncf %290 : vector<16x64xf32> to vector<16x64xbf16>
    %c640_248 = arith.constant 640 : index
    %c0_249 = arith.constant 0 : index
    %292 = vector.load %arg8[%c640_248, %c0_249] : memref<1024x128xbf16, #tpu.memory_space<vmem>>, vector<64x128xbf16>
    %cst_250 = arith.constant dense<0.000000e+00> : vector<16x128xf32>
    %293 = tpu.matmul %291, %292, %cst_250 {dimension_numbers = #tpu.dot_dimension_numbers<[1], [0], [0], [1], [0, 0, 1, 1], [], []>} : vector<16x64xbf16>, vector<64x128xbf16>, vector<16x128xf32> -> vector<16x128xf32>
    %294 = arith.addf %288, %293 : vector<16x128xf32>
    %c176 = arith.constant 176 : index
    %c0_251 = arith.constant 0 : index
    %295 = vector.load %arg7[%c176, %c0_251] : memref<256x32xbf16, #tpu.memory_space<vmem>>, vector<16x32xbf16>
    %cst_252 = arith.constant dense<0.000000e+00> : vector<16x64xf32>
    %296 = tpu.matmul %295, %229, %cst_252 {dimension_numbers = #tpu.dot_dimension_numbers<[1], [0], [0], [1], [0, 0, 1, 1], [], []>} : vector<16x32xbf16>, vector<32x64xbf16>, vector<16x64xf32> -> vector<16x64xf32>
    %297 = arith.truncf %296 : vector<16x64xf32> to vector<16x64xbf16>
    %c704_253 = arith.constant 704 : index
    %c0_254 = arith.constant 0 : index
    %298 = vector.load %arg8[%c704_253, %c0_254] : memref<1024x128xbf16, #tpu.memory_space<vmem>>, vector<64x128xbf16>
    %cst_255 = arith.constant dense<0.000000e+00> : vector<16x128xf32>
    %299 = tpu.matmul %297, %298, %cst_255 {dimension_numbers = #tpu.dot_dimension_numbers<[1], [0], [0], [1], [0, 0, 1, 1], [], []>} : vector<16x64xbf16>, vector<64x128xbf16>, vector<16x128xf32> -> vector<16x128xf32>
    %300 = arith.addf %294, %299 : vector<16x128xf32>
    %c192_256 = arith.constant 192 : index
    %c0_257 = arith.constant 0 : index
    %301 = vector.load %arg7[%c192_256, %c0_257] : memref<256x32xbf16, #tpu.memory_space<vmem>>, vector<16x32xbf16>
    %cst_258 = arith.constant dense<0.000000e+00> : vector<16x64xf32>
    %302 = tpu.matmul %301, %229, %cst_258 {dimension_numbers = #tpu.dot_dimension_numbers<[1], [0], [0], [1], [0, 0, 1, 1], [], []>} : vector<16x32xbf16>, vector<32x64xbf16>, vector<16x64xf32> -> vector<16x64xf32>
    %303 = arith.truncf %302 : vector<16x64xf32> to vector<16x64xbf16>
    %c768_259 = arith.constant 768 : index
    %c0_260 = arith.constant 0 : index
    %304 = vector.load %arg8[%c768_259, %c0_260] : memref<1024x128xbf16, #tpu.memory_space<vmem>>, vector<64x128xbf16>
    %cst_261 = arith.constant dense<0.000000e+00> : vector<16x128xf32>
    %305 = tpu.matmul %303, %304, %cst_261 {dimension_numbers = #tpu.dot_dimension_numbers<[1], [0], [0], [1], [0, 0, 1, 1], [], []>} : vector<16x64xbf16>, vector<64x128xbf16>, vector<16x128xf32> -> vector<16x128xf32>
    %306 = arith.addf %300, %305 : vector<16x128xf32>
    %c208 = arith.constant 208 : index
    %c0_262 = arith.constant 0 : index
    %307 = vector.load %arg7[%c208, %c0_262] : memref<256x32xbf16, #tpu.memory_space<vmem>>, vector<16x32xbf16>
    %cst_263 = arith.constant dense<0.000000e+00> : vector<16x64xf32>
    %308 = tpu.matmul %307, %229, %cst_263 {dimension_numbers = #tpu.dot_dimension_numbers<[1], [0], [0], [1], [0, 0, 1, 1], [], []>} : vector<16x32xbf16>, vector<32x64xbf16>, vector<16x64xf32> -> vector<16x64xf32>
    %309 = arith.truncf %308 : vector<16x64xf32> to vector<16x64xbf16>
    %c832_264 = arith.constant 832 : index
    %c0_265 = arith.constant 0 : index
    %310 = vector.load %arg8[%c832_264, %c0_265] : memref<1024x128xbf16, #tpu.memory_space<vmem>>, vector<64x128xbf16>
    %cst_266 = arith.constant dense<0.000000e+00> : vector<16x128xf32>
    %311 = tpu.matmul %309, %310, %cst_266 {dimension_numbers = #tpu.dot_dimension_numbers<[1], [0], [0], [1], [0, 0, 1, 1], [], []>} : vector<16x64xbf16>, vector<64x128xbf16>, vector<16x128xf32> -> vector<16x128xf32>
    %312 = arith.addf %306, %311 : vector<16x128xf32>
    %c224_267 = arith.constant 224 : index
    %c0_268 = arith.constant 0 : index
    %313 = vector.load %arg7[%c224_267, %c0_268] : memref<256x32xbf16, #tpu.memory_space<vmem>>, vector<16x32xbf16>
    %cst_269 = arith.constant dense<0.000000e+00> : vector<16x64xf32>
    %314 = tpu.matmul %313, %229, %cst_269 {dimension_numbers = #tpu.dot_dimension_numbers<[1], [0], [0], [1], [0, 0, 1, 1], [], []>} : vector<16x32xbf16>, vector<32x64xbf16>, vector<16x64xf32> -> vector<16x64xf32>
    %315 = arith.truncf %314 : vector<16x64xf32> to vector<16x64xbf16>
    %c896_270 = arith.constant 896 : index
    %c0_271 = arith.constant 0 : index
    %316 = vector.load %arg8[%c896_270, %c0_271] : memref<1024x128xbf16, #tpu.memory_space<vmem>>, vector<64x128xbf16>
    %cst_272 = arith.constant dense<0.000000e+00> : vector<16x128xf32>
    %317 = tpu.matmul %315, %316, %cst_272 {dimension_numbers = #tpu.dot_dimension_numbers<[1], [0], [0], [1], [0, 0, 1, 1], [], []>} : vector<16x64xbf16>, vector<64x128xbf16>, vector<16x128xf32> -> vector<16x128xf32>
    %318 = arith.addf %312, %317 : vector<16x128xf32>
    %c240 = arith.constant 240 : index
    %c0_273 = arith.constant 0 : index
    %319 = vector.load %arg7[%c240, %c0_273] : memref<256x32xbf16, #tpu.memory_space<vmem>>, vector<16x32xbf16>
    %cst_274 = arith.constant dense<0.000000e+00> : vector<16x64xf32>
    %320 = tpu.matmul %319, %229, %cst_274 {dimension_numbers = #tpu.dot_dimension_numbers<[1], [0], [0], [1], [0, 0, 1, 1], [], []>} : vector<16x32xbf16>, vector<32x64xbf16>, vector<16x64xf32> -> vector<16x64xf32>
    %321 = arith.truncf %320 : vector<16x64xf32> to vector<16x64xbf16>
    %c960_275 = arith.constant 960 : index
    %c0_276 = arith.constant 0 : index
    %322 = vector.load %arg8[%c960_275, %c0_276] : memref<1024x128xbf16, #tpu.memory_space<vmem>>, vector<64x128xbf16>
    %cst_277 = arith.constant dense<0.000000e+00> : vector<16x128xf32>
    %323 = tpu.matmul %321, %322, %cst_277 {dimension_numbers = #tpu.dot_dimension_numbers<[1], [0], [0], [1], [0, 0, 1, 1], [], []>} : vector<16x64xbf16>, vector<64x128xbf16>, vector<16x128xf32> -> vector<16x128xf32>
    %324 = arith.addf %318, %323 : vector<16x128xf32>
    %c0_278 = arith.constant 0 : index
    %c0_279 = arith.constant 0 : index
    %325 = vector.load %arg9[%c0_278, %c0_279] : memref<1x128xf32, #tpu.memory_space<vmem>>, vector<1x128xf32>
    %326 = vector.broadcast %325 : vector<1x128xf32> to vector<16x128xf32>
    %327 = arith.addf %324, %326 : vector<16x128xf32>
    %cst_280 = arith.constant 0.000000e+00 : f32
    %328 = vector.broadcast %cst_280 : f32 to vector<16x128xf32>
    %329 = arith.maximumf %327, %328 : vector<16x128xf32>
    %330 = arith.truncf %329 : vector<16x128xf32> to vector<16x128xbf16>
    %c0_281 = arith.constant 0 : index
    %c0_282 = arith.constant 0 : index
    %331 = vector.load %arg10[%c0_281, %c0_282] : memref<144x16xbf16, #tpu.memory_space<vmem>>, vector<16x16xbf16>
    %cst_283 = arith.constant dense<0.000000e+00> : vector<16x128xf32>
    %332 = tpu.matmul %331, %330, %cst_283 {dimension_numbers = #tpu.dot_dimension_numbers<[1], [0], [0], [1], [0, 0, 1, 1], [], []>} : vector<16x16xbf16>, vector<16x128xbf16>, vector<16x128xf32> -> vector<16x128xf32>
    %333 = arith.truncf %332 : vector<16x128xf32> to vector<16x128xbf16>
    %c0_284 = arith.constant 0 : index
    %c0_285 = arith.constant 0 : index
    %334 = vector.load %arg11[%c0_284, %c0_285] : memref<1152x128xbf16, #tpu.memory_space<vmem>>, vector<128x128xbf16>
    %cst_286 = arith.constant dense<0.000000e+00> : vector<16x128xf32>
    %335 = tpu.matmul %333, %334, %cst_286 {dimension_numbers = #tpu.dot_dimension_numbers<[1], [0], [0], [1], [0, 0, 1, 1], [], []>} : vector<16x128xbf16>, vector<128x128xbf16>, vector<16x128xf32> -> vector<16x128xf32>
    %c16_287 = arith.constant 16 : index
    %c0_288 = arith.constant 0 : index
    %336 = vector.load %arg10[%c16_287, %c0_288] : memref<144x16xbf16, #tpu.memory_space<vmem>>, vector<16x16xbf16>
    %cst_289 = arith.constant dense<0.000000e+00> : vector<16x128xf32>
    %337 = tpu.matmul %336, %330, %cst_289 {dimension_numbers = #tpu.dot_dimension_numbers<[1], [0], [0], [1], [0, 0, 1, 1], [], []>} : vector<16x16xbf16>, vector<16x128xbf16>, vector<16x128xf32> -> vector<16x128xf32>
    %338 = arith.truncf %337 : vector<16x128xf32> to vector<16x128xbf16>
    %c128_290 = arith.constant 128 : index
    %c0_291 = arith.constant 0 : index
    %339 = vector.load %arg11[%c128_290, %c0_291] : memref<1152x128xbf16, #tpu.memory_space<vmem>>, vector<128x128xbf16>
    %cst_292 = arith.constant dense<0.000000e+00> : vector<16x128xf32>
    %340 = tpu.matmul %338, %339, %cst_292 {dimension_numbers = #tpu.dot_dimension_numbers<[1], [0], [0], [1], [0, 0, 1, 1], [], []>} : vector<16x128xbf16>, vector<128x128xbf16>, vector<16x128xf32> -> vector<16x128xf32>
    %341 = arith.addf %335, %340 : vector<16x128xf32>
    %c32_293 = arith.constant 32 : index
    %c0_294 = arith.constant 0 : index
    %342 = vector.load %arg10[%c32_293, %c0_294] : memref<144x16xbf16, #tpu.memory_space<vmem>>, vector<16x16xbf16>
    %cst_295 = arith.constant dense<0.000000e+00> : vector<16x128xf32>
    %343 = tpu.matmul %342, %330, %cst_295 {dimension_numbers = #tpu.dot_dimension_numbers<[1], [0], [0], [1], [0, 0, 1, 1], [], []>} : vector<16x16xbf16>, vector<16x128xbf16>, vector<16x128xf32> -> vector<16x128xf32>
    %344 = arith.truncf %343 : vector<16x128xf32> to vector<16x128xbf16>
    %c256_296 = arith.constant 256 : index
    %c0_297 = arith.constant 0 : index
    %345 = vector.load %arg11[%c256_296, %c0_297] : memref<1152x128xbf16, #tpu.memory_space<vmem>>, vector<128x128xbf16>
    %cst_298 = arith.constant dense<0.000000e+00> : vector<16x128xf32>
    %346 = tpu.matmul %344, %345, %cst_298 {dimension_numbers = #tpu.dot_dimension_numbers<[1], [0], [0], [1], [0, 0, 1, 1], [], []>} : vector<16x128xbf16>, vector<128x128xbf16>, vector<16x128xf32> -> vector<16x128xf32>
    %347 = arith.addf %341, %346 : vector<16x128xf32>
    %c48_299 = arith.constant 48 : index
    %c0_300 = arith.constant 0 : index
    %348 = vector.load %arg10[%c48_299, %c0_300] : memref<144x16xbf16, #tpu.memory_space<vmem>>, vector<16x16xbf16>
    %cst_301 = arith.constant dense<0.000000e+00> : vector<16x128xf32>
    %349 = tpu.matmul %348, %330, %cst_301 {dimension_numbers = #tpu.dot_dimension_numbers<[1], [0], [0], [1], [0, 0, 1, 1], [], []>} : vector<16x16xbf16>, vector<16x128xbf16>, vector<16x128xf32> -> vector<16x128xf32>
    %350 = arith.truncf %349 : vector<16x128xf32> to vector<16x128xbf16>
    %c384_302 = arith.constant 384 : index
    %c0_303 = arith.constant 0 : index
    %351 = vector.load %arg11[%c384_302, %c0_303] : memref<1152x128xbf16, #tpu.memory_space<vmem>>, vector<128x128xbf16>
    %cst_304 = arith.constant dense<0.000000e+00> : vector<16x128xf32>
    %352 = tpu.matmul %350, %351, %cst_304 {dimension_numbers = #tpu.dot_dimension_numbers<[1], [0], [0], [1], [0, 0, 1, 1], [], []>} : vector<16x128xbf16>, vector<128x128xbf16>, vector<16x128xf32> -> vector<16x128xf32>
    %353 = arith.addf %347, %352 : vector<16x128xf32>
    %c64_305 = arith.constant 64 : index
    %c0_306 = arith.constant 0 : index
    %354 = vector.load %arg10[%c64_305, %c0_306] : memref<144x16xbf16, #tpu.memory_space<vmem>>, vector<16x16xbf16>
    %cst_307 = arith.constant dense<0.000000e+00> : vector<16x128xf32>
    %355 = tpu.matmul %354, %330, %cst_307 {dimension_numbers = #tpu.dot_dimension_numbers<[1], [0], [0], [1], [0, 0, 1, 1], [], []>} : vector<16x16xbf16>, vector<16x128xbf16>, vector<16x128xf32> -> vector<16x128xf32>
    %356 = arith.truncf %355 : vector<16x128xf32> to vector<16x128xbf16>
    %c512_308 = arith.constant 512 : index
    %c0_309 = arith.constant 0 : index
    %357 = vector.load %arg11[%c512_308, %c0_309] : memref<1152x128xbf16, #tpu.memory_space<vmem>>, vector<128x128xbf16>
    %cst_310 = arith.constant dense<0.000000e+00> : vector<16x128xf32>
    %358 = tpu.matmul %356, %357, %cst_310 {dimension_numbers = #tpu.dot_dimension_numbers<[1], [0], [0], [1], [0, 0, 1, 1], [], []>} : vector<16x128xbf16>, vector<128x128xbf16>, vector<16x128xf32> -> vector<16x128xf32>
    %359 = arith.addf %353, %358 : vector<16x128xf32>
    %c80_311 = arith.constant 80 : index
    %c0_312 = arith.constant 0 : index
    %360 = vector.load %arg10[%c80_311, %c0_312] : memref<144x16xbf16, #tpu.memory_space<vmem>>, vector<16x16xbf16>
    %cst_313 = arith.constant dense<0.000000e+00> : vector<16x128xf32>
    %361 = tpu.matmul %360, %330, %cst_313 {dimension_numbers = #tpu.dot_dimension_numbers<[1], [0], [0], [1], [0, 0, 1, 1], [], []>} : vector<16x16xbf16>, vector<16x128xbf16>, vector<16x128xf32> -> vector<16x128xf32>
    %362 = arith.truncf %361 : vector<16x128xf32> to vector<16x128xbf16>
    %c640_314 = arith.constant 640 : index
    %c0_315 = arith.constant 0 : index
    %363 = vector.load %arg11[%c640_314, %c0_315] : memref<1152x128xbf16, #tpu.memory_space<vmem>>, vector<128x128xbf16>
    %cst_316 = arith.constant dense<0.000000e+00> : vector<16x128xf32>
    %364 = tpu.matmul %362, %363, %cst_316 {dimension_numbers = #tpu.dot_dimension_numbers<[1], [0], [0], [1], [0, 0, 1, 1], [], []>} : vector<16x128xbf16>, vector<128x128xbf16>, vector<16x128xf32> -> vector<16x128xf32>
    %365 = arith.addf %359, %364 : vector<16x128xf32>
    %c96_317 = arith.constant 96 : index
    %c0_318 = arith.constant 0 : index
    %366 = vector.load %arg10[%c96_317, %c0_318] : memref<144x16xbf16, #tpu.memory_space<vmem>>, vector<16x16xbf16>
    %cst_319 = arith.constant dense<0.000000e+00> : vector<16x128xf32>
    %367 = tpu.matmul %366, %330, %cst_319 {dimension_numbers = #tpu.dot_dimension_numbers<[1], [0], [0], [1], [0, 0, 1, 1], [], []>} : vector<16x16xbf16>, vector<16x128xbf16>, vector<16x128xf32> -> vector<16x128xf32>
    %368 = arith.truncf %367 : vector<16x128xf32> to vector<16x128xbf16>
    %c768_320 = arith.constant 768 : index
    %c0_321 = arith.constant 0 : index
    %369 = vector.load %arg11[%c768_320, %c0_321] : memref<1152x128xbf16, #tpu.memory_space<vmem>>, vector<128x128xbf16>
    %cst_322 = arith.constant dense<0.000000e+00> : vector<16x128xf32>
    %370 = tpu.matmul %368, %369, %cst_322 {dimension_numbers = #tpu.dot_dimension_numbers<[1], [0], [0], [1], [0, 0, 1, 1], [], []>} : vector<16x128xbf16>, vector<128x128xbf16>, vector<16x128xf32> -> vector<16x128xf32>
    %371 = arith.addf %365, %370 : vector<16x128xf32>
    %c112_323 = arith.constant 112 : index
    %c0_324 = arith.constant 0 : index
    %372 = vector.load %arg10[%c112_323, %c0_324] : memref<144x16xbf16, #tpu.memory_space<vmem>>, vector<16x16xbf16>
    %cst_325 = arith.constant dense<0.000000e+00> : vector<16x128xf32>
    %373 = tpu.matmul %372, %330, %cst_325 {dimension_numbers = #tpu.dot_dimension_numbers<[1], [0], [0], [1], [0, 0, 1, 1], [], []>} : vector<16x16xbf16>, vector<16x128xbf16>, vector<16x128xf32> -> vector<16x128xf32>
    %374 = arith.truncf %373 : vector<16x128xf32> to vector<16x128xbf16>
    %c896_326 = arith.constant 896 : index
    %c0_327 = arith.constant 0 : index
    %375 = vector.load %arg11[%c896_326, %c0_327] : memref<1152x128xbf16, #tpu.memory_space<vmem>>, vector<128x128xbf16>
    %cst_328 = arith.constant dense<0.000000e+00> : vector<16x128xf32>
    %376 = tpu.matmul %374, %375, %cst_328 {dimension_numbers = #tpu.dot_dimension_numbers<[1], [0], [0], [1], [0, 0, 1, 1], [], []>} : vector<16x128xbf16>, vector<128x128xbf16>, vector<16x128xf32> -> vector<16x128xf32>
    %377 = arith.addf %371, %376 : vector<16x128xf32>
    %c128_329 = arith.constant 128 : index
    %c0_330 = arith.constant 0 : index
    %378 = vector.load %arg10[%c128_329, %c0_330] : memref<144x16xbf16, #tpu.memory_space<vmem>>, vector<16x16xbf16>
    %cst_331 = arith.constant dense<0.000000e+00> : vector<16x128xf32>
    %379 = tpu.matmul %378, %330, %cst_331 {dimension_numbers = #tpu.dot_dimension_numbers<[1], [0], [0], [1], [0, 0, 1, 1], [], []>} : vector<16x16xbf16>, vector<16x128xbf16>, vector<16x128xf32> -> vector<16x128xf32>
    %380 = arith.truncf %379 : vector<16x128xf32> to vector<16x128xbf16>
    %c1024_332 = arith.constant 1024 : index
    %c0_333 = arith.constant 0 : index
    %381 = vector.load %arg11[%c1024_332, %c0_333] : memref<1152x128xbf16, #tpu.memory_space<vmem>>, vector<128x128xbf16>
    %cst_334 = arith.constant dense<0.000000e+00> : vector<16x128xf32>
    %382 = tpu.matmul %380, %381, %cst_334 {dimension_numbers = #tpu.dot_dimension_numbers<[1], [0], [0], [1], [0, 0, 1, 1], [], []>} : vector<16x128xbf16>, vector<128x128xbf16>, vector<16x128xf32> -> vector<16x128xf32>
    %383 = arith.addf %377, %382 : vector<16x128xf32>
    %c0_335 = arith.constant 0 : index
    %c0_336 = arith.constant 0 : index
    %384 = vector.load %arg12[%c0_335, %c0_336] : memref<1x128xf32, #tpu.memory_space<vmem>>, vector<1x128xf32>
    %385 = vector.broadcast %384 : vector<1x128xf32> to vector<16x128xf32>
    %386 = arith.addf %383, %385 : vector<16x128xf32>
    %cst_337 = arith.constant 0.000000e+00 : f32
    %387 = vector.broadcast %cst_337 : f32 to vector<16x128xf32>
    %388 = arith.maximumf %386, %387 : vector<16x128xf32>
    %389 = arith.truncf %388 : vector<16x128xf32> to vector<16x128xbf16>
    %c0_338 = arith.constant 0 : index
    %c0_339 = arith.constant 0 : index
    %390 = vector.load %arg13[%c0_338, %c0_339] : memref<64x16xbf16, #tpu.memory_space<vmem>>, vector<16x16xbf16>
    %cst_340 = arith.constant dense<0.000000e+00> : vector<16x128xf32>
    %391 = tpu.matmul %390, %389, %cst_340 {dimension_numbers = #tpu.dot_dimension_numbers<[1], [0], [0], [1], [0, 0, 1, 1], [], []>} : vector<16x16xbf16>, vector<16x128xbf16>, vector<16x128xf32> -> vector<16x128xf32>
    %392 = arith.truncf %391 : vector<16x128xf32> to vector<16x128xbf16>
    %c0_341 = arith.constant 0 : index
    %c0_342 = arith.constant 0 : index
    %393 = vector.load %arg14[%c0_341, %c0_342] : memref<512x1024xbf16, #tpu.memory_space<vmem>>, vector<128x1024xbf16>
    %cst_343 = arith.constant dense<0.000000e+00> : vector<16x1024xf32>
    %394 = tpu.matmul %392, %393, %cst_343 {dimension_numbers = #tpu.dot_dimension_numbers<[1], [0], [0], [1], [0, 0, 1, 1], [], []>} : vector<16x128xbf16>, vector<128x1024xbf16>, vector<16x1024xf32> -> vector<16x1024xf32>
    %c16_344 = arith.constant 16 : index
    %c0_345 = arith.constant 0 : index
    %395 = vector.load %arg13[%c16_344, %c0_345] : memref<64x16xbf16, #tpu.memory_space<vmem>>, vector<16x16xbf16>
    %cst_346 = arith.constant dense<0.000000e+00> : vector<16x128xf32>
    %396 = tpu.matmul %395, %389, %cst_346 {dimension_numbers = #tpu.dot_dimension_numbers<[1], [0], [0], [1], [0, 0, 1, 1], [], []>} : vector<16x16xbf16>, vector<16x128xbf16>, vector<16x128xf32> -> vector<16x128xf32>
    %397 = arith.truncf %396 : vector<16x128xf32> to vector<16x128xbf16>
    %c128_347 = arith.constant 128 : index
    %c0_348 = arith.constant 0 : index
    %398 = vector.load %arg14[%c128_347, %c0_348] : memref<512x1024xbf16, #tpu.memory_space<vmem>>, vector<128x1024xbf16>
    %cst_349 = arith.constant dense<0.000000e+00> : vector<16x1024xf32>
    %399 = tpu.matmul %397, %398, %cst_349 {dimension_numbers = #tpu.dot_dimension_numbers<[1], [0], [0], [1], [0, 0, 1, 1], [], []>} : vector<16x128xbf16>, vector<128x1024xbf16>, vector<16x1024xf32> -> vector<16x1024xf32>
    %400 = arith.addf %394, %399 : vector<16x1024xf32>
    %c32_350 = arith.constant 32 : index
    %c0_351 = arith.constant 0 : index
    %401 = vector.load %arg13[%c32_350, %c0_351] : memref<64x16xbf16, #tpu.memory_space<vmem>>, vector<16x16xbf16>
    %cst_352 = arith.constant dense<0.000000e+00> : vector<16x128xf32>
    %402 = tpu.matmul %401, %389, %cst_352 {dimension_numbers = #tpu.dot_dimension_numbers<[1], [0], [0], [1], [0, 0, 1, 1], [], []>} : vector<16x16xbf16>, vector<16x128xbf16>, vector<16x128xf32> -> vector<16x128xf32>
    %403 = arith.truncf %402 : vector<16x128xf32> to vector<16x128xbf16>
    %c256_353 = arith.constant 256 : index
    %c0_354 = arith.constant 0 : index
    %404 = vector.load %arg14[%c256_353, %c0_354] : memref<512x1024xbf16, #tpu.memory_space<vmem>>, vector<128x1024xbf16>
    %cst_355 = arith.constant dense<0.000000e+00> : vector<16x1024xf32>
    %405 = tpu.matmul %403, %404, %cst_355 {dimension_numbers = #tpu.dot_dimension_numbers<[1], [0], [0], [1], [0, 0, 1, 1], [], []>} : vector<16x128xbf16>, vector<128x1024xbf16>, vector<16x1024xf32> -> vector<16x1024xf32>
    %406 = arith.addf %400, %405 : vector<16x1024xf32>
    %c48_356 = arith.constant 48 : index
    %c0_357 = arith.constant 0 : index
    %407 = vector.load %arg13[%c48_356, %c0_357] : memref<64x16xbf16, #tpu.memory_space<vmem>>, vector<16x16xbf16>
    %cst_358 = arith.constant dense<0.000000e+00> : vector<16x128xf32>
    %408 = tpu.matmul %407, %389, %cst_358 {dimension_numbers = #tpu.dot_dimension_numbers<[1], [0], [0], [1], [0, 0, 1, 1], [], []>} : vector<16x16xbf16>, vector<16x128xbf16>, vector<16x128xf32> -> vector<16x128xf32>
    %409 = arith.truncf %408 : vector<16x128xf32> to vector<16x128xbf16>
    %c384_359 = arith.constant 384 : index
    %c0_360 = arith.constant 0 : index
    %410 = vector.load %arg14[%c384_359, %c0_360] : memref<512x1024xbf16, #tpu.memory_space<vmem>>, vector<128x1024xbf16>
    %cst_361 = arith.constant dense<0.000000e+00> : vector<16x1024xf32>
    %411 = tpu.matmul %409, %410, %cst_361 {dimension_numbers = #tpu.dot_dimension_numbers<[1], [0], [0], [1], [0, 0, 1, 1], [], []>} : vector<16x128xbf16>, vector<128x1024xbf16>, vector<16x1024xf32> -> vector<16x1024xf32>
    %412 = arith.addf %406, %411 : vector<16x1024xf32>
    %c0_362 = arith.constant 0 : index
    %c0_363 = arith.constant 0 : index
    %413 = vector.load %arg15[%c0_362, %c0_363] : memref<1x1024xf32, #tpu.memory_space<vmem>>, vector<1x1024xf32>
    %414 = vector.broadcast %413 : vector<1x1024xf32> to vector<16x1024xf32>
    %415 = arith.addf %412, %414 : vector<16x1024xf32>
    %cst_364 = arith.constant 0.000000e+00 : f32
    %416 = vector.broadcast %cst_364 : f32 to vector<16x1024xf32>
    %417 = arith.maximumf %415, %416 : vector<16x1024xf32>
    %418 = arith.truncf %417 : vector<16x1024xf32> to vector<16x1024xbf16>
    %c0_365 = arith.constant 0 : index
    %c0_366 = arith.constant 0 : index
    %419 = vector.load %arg16[%c0_365, %c0_366] : memref<1024x512xbf16, #tpu.memory_space<vmem>>, vector<1024x512xbf16>
    %cst_367 = arith.constant dense<0.000000e+00> : vector<16x512xf32>
    %420 = tpu.matmul %418, %419, %cst_367 {dimension_numbers = #tpu.dot_dimension_numbers<[1], [0], [0], [1], [0, 0, 1, 1], [], []>} : vector<16x1024xbf16>, vector<1024x512xbf16>, vector<16x512xf32> -> vector<16x512xf32>
    %c0_368 = arith.constant 0 : index
    %c0_369 = arith.constant 0 : index
    %421 = vector.load %arg17[%c0_368, %c0_369] : memref<1x512xf32, #tpu.memory_space<vmem>>, vector<1x512xf32>
    %422 = vector.broadcast %421 : vector<1x512xf32> to vector<16x512xf32>
    %423 = arith.addf %420, %422 : vector<16x512xf32>
    %cst_370 = arith.constant 0.000000e+00 : f32
    %424 = vector.broadcast %cst_370 : f32 to vector<16x512xf32>
    %425 = arith.maximumf %423, %424 : vector<16x512xf32>
    %426 = arith.truncf %425 : vector<16x512xf32> to vector<16x512xbf16>
    %c0_371 = arith.constant 0 : index
    %c0_372 = arith.constant 0 : index
    %427 = vector.load %arg18[%c0_371, %c0_372] : memref<512x256xbf16, #tpu.memory_space<vmem>>, vector<512x256xbf16>
    %cst_373 = arith.constant dense<0.000000e+00> : vector<16x256xf32>
    %428 = tpu.matmul %426, %427, %cst_373 {dimension_numbers = #tpu.dot_dimension_numbers<[1], [0], [0], [1], [0, 0, 1, 1], [], []>} : vector<16x512xbf16>, vector<512x256xbf16>, vector<16x256xf32> -> vector<16x256xf32>
    %c0_374 = arith.constant 0 : index
    %c0_375 = arith.constant 0 : index
    %429 = vector.load %arg19[%c0_374, %c0_375] : memref<1x256xf32, #tpu.memory_space<vmem>>, vector<1x256xf32>
    %430 = vector.broadcast %429 : vector<1x256xf32> to vector<16x256xf32>
    %431 = arith.addf %428, %430 : vector<16x256xf32>
    %cst_376 = arith.constant 0.000000e+00 : f32
    %432 = vector.broadcast %cst_376 : f32 to vector<16x256xf32>
    %433 = arith.maximumf %431, %432 : vector<16x256xf32>
    %434 = arith.truncf %433 : vector<16x256xf32> to vector<16x256xbf16>
    %c0_377 = arith.constant 0 : index
    %c0_378 = arith.constant 0 : index
    %435 = vector.load %arg20[%c0_377, %c0_378] : memref<256x128xbf16, #tpu.memory_space<vmem>>, vector<256x128xbf16>
    %cst_379 = arith.constant dense<0.000000e+00> : vector<16x128xf32>
    %436 = tpu.matmul %434, %435, %cst_379 {dimension_numbers = #tpu.dot_dimension_numbers<[1], [0], [0], [1], [0, 0, 1, 1], [], []>} : vector<16x256xbf16>, vector<256x128xbf16>, vector<16x128xf32> -> vector<16x128xf32>
    %c0_380 = arith.constant 0 : index
    %c0_381 = arith.constant 0 : index
    %437 = vector.load %arg21[%c0_380, %c0_381] : memref<1x128xf32, #tpu.memory_space<vmem>>, vector<1x128xf32>
    %438 = vector.broadcast %437 : vector<1x128xf32> to vector<16x128xf32>
    %439 = arith.addf %436, %438 : vector<16x128xf32>
    %c0_382 = arith.constant 0 : index
    %c0_383 = arith.constant 0 : index
    %440 = vector.load %arg22[%c0_382, %c0_383] : memref<16x128xf32, #tpu.memory_space<vmem>>, vector<16x128xf32>
    tpu.vector_store %arg22[%c0_382, %c0_383], %439 {strides = array<i32>} : memref<16x128xf32, #tpu.memory_space<vmem>>, vector<16x128xf32>,
    return
  }
  func.func @transform_0(%arg0: i32) -> (i32, i32) {
    %c0_i32 = arith.constant 0 : i32
    %c0_i32_0 = arith.constant 0 : i32
    return %arg0, %c0_i32 : i32, i32
  }
  func.func @transform_1(%arg0: i32) -> (i32, i32) {
    %c0_i32 = arith.constant 0 : i32
    %c0_i32_0 = arith.constant 0 : i32
    %c0_i32_1 = arith.constant 0 : i32
    return %c0_i32, %c0_i32_0 : i32, i32
  }
  func.func @transform_2(%arg0: i32) -> (i32, i32) {
    %c0_i32 = arith.constant 0 : i32
    %c0_i32_0 = arith.constant 0 : i32
    %c0_i32_1 = arith.constant 0 : i32
    return %c0_i32, %c0_i32_0 : i32, i32
  }
  func.func @transform_3(%arg0: i32) -> (i32, i32) {
    %c0_i32 = arith.constant 0 : i32
    %c0_i32_0 = arith.constant 0 : i32
    %c0_i32_1 = arith.constant 0 : i32
    return %c0_i32, %c0_i32_0 : i32, i32
  }
  func.func @transform_4(%arg0: i32) -> (i32, i32) {
    %c0_i32 = arith.constant 0 : i32
    %c0_i32_0 = arith.constant 0 : i32
    %c0_i32_1 = arith.constant 0 : i32
    return %c0_i32, %c0_i32_0 : i32, i32
  }
  func.func @transform_5(%arg0: i32) -> (i32, i32) {
    %c0_i32 = arith.constant 0 : i32
    %c0_i32_0 = arith.constant 0 : i32
    %c0_i32_1 = arith.constant 0 : i32
    return %c0_i32, %c0_i32_0 : i32, i32
  }
  func.func @transform_6(%arg0: i32) -> (i32, i32) {
    %c0_i32 = arith.constant 0 : i32
    %c0_i32_0 = arith.constant 0 : i32
    %c0_i32_1 = arith.constant 0 : i32
    return %c0_i32, %c0_i32_0 : i32, i32
  }
  func.func @transform_7(%arg0: i32) -> (i32, i32) {
    %c0_i32 = arith.constant 0 : i32
    %c0_i32_0 = arith.constant 0 : i32
    %c0_i32_1 = arith.constant 0 : i32
    return %c0_i32, %c0_i32_0 : i32, i32
  }
  func.func @transform_8(%arg0: i32) -> (i32, i32) {
    %c0_i32 = arith.constant 0 : i32
    %c0_i32_0 = arith.constant 0 : i32
    %c0_i32_1 = arith.constant 0 : i32
    return %c0_i32, %c0_i32_0 : i32, i32
  }
  func.func @transform_9(%arg0: i32) -> (i32, i32) {
    %c0_i32 = arith.constant 0 : i32
    %c0_i32_0 = arith.constant 0 : i32
    %c0_i32_1 = arith.constant 0 : i32
    return %c0_i32, %c0_i32_0 : i32, i32
  }
  func.func @transform_10(%arg0: i32) -> (i32, i32) {
    %c0_i32 = arith.constant 0 : i32
    %c0_i32_0 = arith.constant 0 : i32
    %c0_i32_1 = arith.constant 0 : i32
    return %c0_i32, %c0_i32_0 : i32, i32
  }
  func.func @transform_11(%arg0: i32) -> (i32, i32) {
    %c0_i32 = arith.constant 0 : i32
    %c0_i32_0 = arith.constant 0 : i32
    %c0_i32_1 = arith.constant 0 : i32
    return %c0_i32, %c0_i32_0 : i32, i32
  }
  func.func @transform_12(%arg0: i32) -> (i32, i32) {
    %c0_i32 = arith.constant 0 : i32
    %c0_i32_0 = arith.constant 0 : i32
    %c0_i32_1 = arith.constant 0 : i32
    return %c0_i32, %c0_i32_0 : i32, i32
  }
  func.func @transform_13(%arg0: i32) -> (i32, i32) {
    %c0_i32 = arith.constant 0 : i32
    %c0_i32_0 = arith.constant 0 : i32
    %c0_i32_1 = arith.constant 0 : i32
    return %c0_i32, %c0_i32_0 : i32, i32
  }
  func.func @transform_14(%arg0: i32) -> (i32, i32) {
    %c0_i32 = arith.constant 0 : i32
    %c0_i32_0 = arith.constant 0 : i32
    %c0_i32_1 = arith.constant 0 : i32
    return %c0_i32, %c0_i32_0 : i32, i32
  }
  func.func @transform_15(%arg0: i32) -> (i32, i32) {
    %c0_i32 = arith.constant 0 : i32
    %c0_i32_0 = arith.constant 0 : i32
    %c0_i32_1 = arith.constant 0 : i32
    return %c0_i32, %c0_i32_0 : i32, i32
  }
  func.func @transform_16(%arg0: i32) -> (i32, i32) {
    %c0_i32 = arith.constant 0 : i32
    %c0_i32_0 = arith.constant 0 : i32
    %c0_i32_1 = arith.constant 0 : i32
    return %c0_i32, %c0_i32_0 : i32, i32
  }
  func.func @transform_17(%arg0: i32) -> (i32, i32) {
    %c0_i32 = arith.constant 0 : i32
    %c0_i32_0 = arith.constant 0 : i32
    %c0_i32_1 = arith.constant 0 : i32
    return %c0_i32, %c0_i32_0 : i32, i32
  }
  func.func @transform_18(%arg0: i32) -> (i32, i32) {
    %c0_i32 = arith.constant 0 : i32
    %c0_i32_0 = arith.constant 0 : i32
    %c0_i32_1 = arith.constant 0 : i32
    return %c0_i32, %c0_i32_0 : i32, i32
  }
  func.func @transform_19(%arg0: i32) -> (i32, i32) {
    %c0_i32 = arith.constant 0 : i32
    %c0_i32_0 = arith.constant 0 : i32
    %c0_i32_1 = arith.constant 0 : i32
    return %c0_i32, %c0_i32_0 : i32, i32
  }
  func.func @transform_20(%arg0: i32) -> (i32, i32) {
    %c0_i32 = arith.constant 0 : i32
    %c0_i32_0 = arith.constant 0 : i32
    %c0_i32_1 = arith.constant 0 : i32
    return %c0_i32, %c0_i32_0 : i32, i32
  }
  func.func @transform_21(%arg0: i32) -> (i32, i32) {
    %c0_i32 = arith.constant 0 : i32
    %c0_i32_0 = arith.constant 0 : i32
    return %arg0, %c0_i32 : i32, i32
  }
}

</mosaic_0001>

<bundles_post_ra>
// kernel: qnetwork_forward.1
= control target key start
LH: loop header
LB: loop body
LE: loop exit
PB: predicated region body
PF: predicated region fallthrough
CT: control target
= control target key end

     0   :  { %s24593_s0 = inlined_call_operand.vmem [shape: bf16[512,256], index: 0, kind: input, shape index: {}]   ;;  %s24594_s1 = inlined_call_operand.vmem [shape: bf16[256,32], index: 1, kind: input, shape index: {}]   ;;  %s24595_s2 = inlined_call_operand.vmem [shape: f32[1,32], index: 2, kind: input, shape index: {}]   ;;  %s24596_s3 = inlined_call_operand.vmem [shape: bf16[1152,256], index: 3, kind: input, shape index: {}]   ;;  %s24597_s4 = inlined_call_operand.vmem [shape: bf16[1152,64], index: 4, kind: input, shape index: {}]   ;;  %s24598_s5 = inlined_call_operand.vmem [shape: f32[1,64], index: 5, kind: input, shape index: {}]   ;;  %s24599_s6 = inlined_call_operand.vmem [shape: bf16[256,32], index: 6, kind: input, shape index: {}]   ;;  %s24600_s7 = inlined_call_operand.vmem [shape: bf16[1024,128], index: 7, kind: input, shape index: {}]   ;;  %s24601_s8 = inlined_call_operand.vmem [shape: f32[1,128], index: 8, kind: input, shape index: {}]   ;;  %s24602_s9 = inlined_call_operand.vmem [shape: bf16[144,16], index: 9, kind: input, shape index: {}]   ;;  %s24603_s10 = inlined_call_operand.vmem [shape: bf16[1152,128], index: 10, kind: input, shape index: {}]   ;;  %s24604_s11 = inlined_call_operand.vmem [shape: f32[1,128], index: 11, kind: input, shape index: {}]   ;;  %s24605_s12 = inlined_call_operand.vmem [shape: bf16[64,16], index: 12, kind: input, shape index: {}]   ;;  %s24606_s13 = inlined_call_operand.vmem [shape: bf16[512,1024], index: 13, kind: input, shape index: {}]   ;;  %s24607_s14 = inlined_call_operand.vmem [shape: f32[1,1024], index: 14, kind: input, shape index: {}]   ;;  %s24608_s15 = inlined_call_operand.vmem [shape: bf16[1024,512], index: 15, kind: input, shape index: {}]   ;;  %s24609_s16 = inlined_call_operand.vmem [shape: f32[1,512], index: 16, kind: input, shape index: {}]   ;;  %s24610_s17 = inlined_call_operand.vmem [shape: bf16[512,256], index: 17, kind: input, shape index: {}]   ;;  %s24611_s18 = inlined_call_operand.vmem [shape: f32[1,256], index: 18, kind: input, shape index: {}]   ;;  %s24612_s19 = inlined_call_operand.vmem [shape: bf16[256,128], index: 19, kind: input, shape index: {}]   ;;  %s24613_s20 = inlined_call_operand.vmem [shape: f32[1,128], index: 20, kind: input, shape index: {}]   ;;  %s24614_s21 = inlined_call_operand.vmem [shape: f32[32,128], index: 21, kind: output, shape index: {}]  }
   0x1   :  { %24620 = sst [smem:[#allocation2_spill]] %s24593_s0 }
   0x2   :  { %24621 = sst [smem:[#allocation3_spill]] %s24594_s1 }
   0x3   :  { %24622 = sst [smem:[#allocation4_spill]] %s24595_s2  ;;  %s20238_s2 = smov 0  }
   0x4   :  { %24623 = sst [smem:[#allocation5_spill]] %s24596_s3 }
   0x5   :  { %24624 = sst [smem:[#allocation6_spill]] %s24597_s4 }
   0x6   :  { %24625 = sst [smem:[#allocation7_spill]] %s24598_s5 }
   0x7 LB: > { %s24619_s25 = sadd.s32 4294967295, %s20123_s2   ;;  %p15325_p0 = scmp.ge.s32.totalorder %s20123_s2, 1  ;;  %s20123_s2 = sphi %s20238_s2, %s31_s2  }
   0x8   : > { %p589_p1 = scmp.lt.s32.totalorder %s20123_s2, 3 }
   0xa   : > { %p590_p2 = pnand %p15325_p0, %p589_p1 }
   0xb   : > { %s24626_s3 = sld [smem:[#allocation3_spill]] (!%p590_p2)  ;;  %s15326_s28 = sshll.u32 (!%p590_p2), %s24619_s25, 5  ;;  %vm1370_vm0 = vcmask (!%p590_p2), 261120   ;;  %vm20126_vm1 = vmmov (!%p590_p2), 0   ;;  %vm6754_vm2 = vcmask (!%p590_p2), 523264   ;;  %vm8706_vm3 = vcmask (!%p590_p2), 130048  }
   0xc   : > { %593 = sbr.rel (%p590_p2) target bundleno = 9315 (0x2463), region = 104  ;;  %p651_p3 = scmp.lt.s32.totalorder (!%p590_p2), %s15326_s28, 63 }
   0xd   : > { %s24627_s24 = sld [smem:[#allocation2_spill]] (!%p590_p2)  ;;  %s24628_s5 = sld [smem:[#allocation4_spill]] (!%p590_p2) }
   0xe   : > { %s24629_s23 = sld [smem:[#allocation5_spill]] (!%p590_p2)  ;;  %s24631_s4 = sld [smem:[#allocation7_spill]] (!%p590_p2) }
   0xf   : > { %s24632_s1 = sadd.s32 (!%p590_p2), 4294967295, %s20123_s2  }
  0x10   : > { %s15329_s27 = sshll.u32 (!%p590_p2), %s24632_s1, 1 }
  0x11   : > { %v19103_v0 = vld [vmem:[%s24626_s3 + $0x40] sm:$0xff] (!%p590_p2)   ;;  %v19105_v2 = vld [vmem:[%s24626_s3 + $0x48] sm:$0xff] (!%p590_p2)   ;;  %v19107_v4 = vld [vmem:[%s24626_s3 + $0x50] sm:$0xff] (!%p590_p2)   ;;  %p658_p4 = scmp.lt.s32.totalorder (!%p590_p2), %s15329_s27, 3 }
  0x12   : > { %v19104_v1 = vld [vmem:[%s24626_s3] sm:$0xff] (!%p590_p2)   ;;  %16477 = vmatprep.subr.bf16.mxu0 (!%p590_p2), %v19103_v0  ;;  %v19106_v3 = vld [vmem:[%s24626_s3 + $0x8] sm:$0xff] (!%p590_p2)   ;;  %v19108_v5 = vld [vmem:[%s24626_s3 + $0x10] sm:$0xff] (!%p590_p2)  }
  0x13   : > { %16478 = vmatpush3.bf16.msra.mxu0 %v19104_v1  ;;  %s24634_s28 = smov (!%p651_p3, %s15326_s28), 63  ;;  %v19109_v6 = vld [vmem:[%s24626_s3 + $0x58] sm:$0xff]   ;;  %v19111_v8 = vld [vmem:[%s24626_s3 + $0x60] sm:$0xff]   ;;  %v19113_v10 = vld [vmem:[%s24626_s3 + $0x68] sm:$0xff]   ;;  %s24636_s27 = smov (!%p658_p4, %s15329_s27), 3 }
  0x14   : > { %16479 = vmatprep.subr.bf16.mxu0 %v19105_v2  ;;  %v19110_v7 = vld [vmem:[%s24626_s3 + $0x18] sm:$0xff]   ;;  %s16476_s30 = sshll.u32 %s24634_s28, 3  ;;  %v19112_v9 = vld [vmem:[%s24626_s3 + $0x20] sm:$0xff]   ;;  %v19114_v12 = vld [vmem:[%s24626_s3 + $0x28] sm:$0xff]   ;;  %s15330_s29 = sshll.u32 %s24636_s27, 3 }
  0x15   : > { %s20278_s26 = scalar_lea.vmem %s24627_s24, %s16476_s30  ;;  %v19115_v13 = vld [vmem:[%s24626_s3 + $0x70] sm:$0xff]   ;;  %v19117_v15 = vld [vmem:[%s24626_s3 + $0x78] sm:$0xff]   ;;  %v20336_v48 = vld [vmem:[%s24628_s5] ss:$0 sm:$0xff]  ;;  %s24630_s24 = sld [smem:[#allocation6_spill]] }
  0x16   : > { %v19121_v11 = vld [vmem:[%s20278_s26 + $0x4] ss:$8 sps:$4 sm:$0xff]   ;;  %v19116_v14 = vld [vmem:[%s24626_s3 + $0x30] sm:$0xff]   ;;  %v19118_v16 = vld [vmem:[%s24626_s3 + $0x38] sm:$0xff]   ;;  %s661_s30 = scalar_lea.vmem %s24614_s21, %s15330_s29 }
  0x17   : > { %16480 = vmatpush3.bf16.msra.mxu0 %v19106_v3  ;;  %1023 = vmatprep.mubr.bf16.mxu0 %v19121_v11  ;;  %v19119_v17 = vld [vmem:[%s20278_s26] ss:$8 sps:$4 sm:$0xff]   ;;  %v19122_v18 = vld [vmem:[%s20278_s26 + $0x14] ss:$8 sps:$4 sm:$0xff]   ;;  %v19124_v19 = vld [vmem:[%s20278_s26 + $0x10] ss:$8 sps:$4 sm:$0xff]  }
  0x18   : > { %16481 = vmatprep.subr.bf16.mxu0 %v19107_v4  ;;  %v19125_v20 = vld [vmem:[%s20278_s26 + $0x24] ss:$8 sps:$4 sm:$0xff]   ;;  %v19127_v21 = vld [vmem:[%s20278_s26 + $0x20] ss:$8 sps:$4 sm:$0xff]   ;;  %v19128_v22 = vld [vmem:[%s20278_s26 + $0x34] ss:$8 sps:$4 sm:$0xff]  }
  0x19   : > { %v19130_v23 = vld [vmem:[%s20278_s26 + $0x30] ss:$8 sps:$4 sm:$0xff]   ;;  %v19131_v24 = vld [vmem:[%s20278_s26 + $0x44] ss:$8 sps:$4 sm:$0xff]   ;;  %v19133_v25 = vld [vmem:[%s20278_s26 + $0x40] ss:$8 sps:$4 sm:$0xff]  }
  0x1a   : > { %v19134_v26 = vld [vmem:[%s20278_s26 + $0x54] ss:$8 sps:$4 sm:$0xff]   ;;  %v19136_v27 = vld [vmem:[%s20278_s26 + $0x50] ss:$8 sps:$4 sm:$0xff]   ;;  %v19137_v28 = vld [vmem:[%s20278_s26 + $0x64] ss:$8 sps:$4 sm:$0xff]  }
  0x1b   : > { %16482 = vmatpush3.bf16.msra.mxu0 %v19108_v5  ;;  %v19139_v29 = vld [vmem:[%s20278_s26 + $0x60] ss:$8 sps:$4 sm:$0xff]   ;;  %v19140_v30 = vld [vmem:[%s20278_s26 + $0x74] ss:$8 sps:$4 sm:$0xff]   ;;  %v19142_v31 = vld [vmem:[%s20278_s26 + $0x70] ss:$8 sps:$4 sm:$0xff]  }
  0x1c   : > { %16483 = vmatprep.subr.bf16.mxu0 %v19109_v6  ;;  %v19143_v32 = vld [vmem:[%s20278_s26 + $0x84] ss:$8 sps:$4 sm:$0xff]   ;;  %v19145_v33 = vld [vmem:[%s20278_s26 + $0x80] ss:$8 sps:$4 sm:$0xff]   ;;  %v19146_v34 = vld [vmem:[%s20278_s26 + $0x94] ss:$8 sps:$4 sm:$0xff]  }
  0x1d   : > { %v19148_v35 = vld [vmem:[%s20278_s26 + $0x90] ss:$8 sps:$4 sm:$0xff]   ;;  %v19149_v36 = vld [vmem:[%s20278_s26 + $0xa4] ss:$8 sps:$4 sm:$0xff]   ;;  %v19151_v37 = vld [vmem:[%s20278_s26 + $0xa0] ss:$8 sps:$4 sm:$0xff]  }
  0x1e   : > { %v19152_v38 = vld [vmem:[%s20278_s26 + $0xb4] ss:$8 sps:$4 sm:$0xff]   ;;  %v19154_v39 = vld [vmem:[%s20278_s26 + $0xb0] ss:$8 sps:$4 sm:$0xff]   ;;  %v19155_v40 = vld [vmem:[%s20278_s26 + $0xc4] ss:$8 sps:$4 sm:$0xff]  }
  0x1f   : > { %16484 = vmatpush3.bf16.msra.mxu0 %v19110_v7  ;;  %v19157_v41 = vld [vmem:[%s20278_s26 + $0xc0] ss:$8 sps:$4 sm:$0xff]   ;;  %v19158_v42 = vld [vmem:[%s20278_s26 + $0xd4] ss:$8 sps:$4 sm:$0xff]   ;;  %v19160_v43 = vld [vmem:[%s20278_s26 + $0xd0] ss:$8 sps:$4 sm:$0xff]  }
  0x20   : > { %16485 = vmatprep.subr.bf16.mxu0 %v19111_v8  ;;  %v19161_v44 = vld [vmem:[%s20278_s26 + $0xe4] ss:$8 sps:$4 sm:$0xff]   ;;  %v19163_v45 = vld [vmem:[%s20278_s26 + $0xe0] ss:$8 sps:$4 sm:$0xff]   ;;  %v19164_v46 = vld [vmem:[%s20278_s26 + $0xf4] ss:$8 sps:$4 sm:$0xff]  }
  0x21   : > { %v19166_v47 = vld [vmem:[%s20278_s26 + $0xf0] ss:$8 sps:$4 sm:$0xff]   ;;  %v19169_v56 = vld [vmem:[%s24629_s23 + $0x4] ss:$8 sps:$4 sm:$0xff]  }
  0x22   : > { %1256 = vmatprep.mubr.bf16.mxu1 %v19169_v56  ;;  %v19172_v58 = vld [vmem:[%s24629_s23 + $0x44] ss:$8 sps:$4 sm:$0xff]  }
  0x23   : > { %16486 = vmatpush3.bf16.msra.mxu0 %v19112_v9 }
  0x24   : > { %16487 = vmatprep.subr.bf16.mxu0 %v19113_v10 }
  0x27   : > { %16488 = vmatpush3.bf16.msra.mxu0 %v19114_v12 }
  0x28   : > { %16489 = vmatprep.subr.bf16.mxu0 %v19115_v13 }
  0x2b   : > { %16490 = vmatpush3.bf16.msra.mxu0 %v19116_v14 }
  0x2c   : > { %16491 = vmatprep.subr.bf16.mxu0 %v19117_v15 }
  0x2f   : > { %16492 = vmatpush3.bf16.msra.mxu0 %v19118_v16 }
  0x32   : > { %1024 = vmatmul.mubr.bf16.vlgmr.msra.gmra.mrb[0].mxu0 %v19119_v17 }
  0x33   : > { %1031 = vmatprep.mubr.bf16.mxu0 %v19122_v18 }
  0x3a   : > { %1032 = vmatmul.mubr.bf16.gmra.mrb[4].mxu0 %v19124_v19 }
  0x3b   : > { %1039 = vmatprep.mubr.bf16.mxu0 %v19125_v20 }
  0x42   : > { %1040 = vmatmul.mubr.bf16.gmra.mrb[8].mxu0 %v19127_v21 }
  0x43   : > { %1047 = vmatprep.mubr.bf16.mxu0 %v19128_v22 }
  0x4a   : > { %1048 = vmatmul.mubr.bf16.gmra.mrb[12].mxu0 %v19130_v23 }
  0x4b   : > { %1055 = vmatprep.mubr.bf16.mxu0 %v19131_v24 }
  0x52   : > { %1056 = vmatmul.mubr.bf16.gmra.mrb[16].mxu0 %v19133_v25 }
  0x53   : > { %1063 = vmatprep.mubr.bf16.mxu0 %v19134_v26 }
  0x5a   : > { %1064 = vmatmul.mubr.bf16.gmra.mrb[20].mxu0 %v19136_v27 }
  0x5b   : > { %1071 = vmatprep.mubr.bf16.mxu0 %v19137_v28 }
  0x62   : > { %1072 = vmatmul.mubr.bf16.gmra.mrb[24].mxu0 %v19139_v29 }
  0x63   : > { %1079 = vmatprep.mubr.bf16.mxu0 %v19140_v30 }
  0x6a   : > { %1080 = vmatmul.mubr.bf16.gmra.mrb[28].mxu0 %v19142_v31 }
  0x6b   : > { %1087 = vmatprep.mubr.bf16.mxu0 %v19143_v32 }
  0x72   : > { %1088 = vmatmul.mubr.bf16.gmra.mrb[32].mxu0 %v19145_v33 }
  0x73   : > { %1095 = vmatprep.mubr.bf16.mxu0 %v19146_v34 }
  0x7a   : > { %1096 = vmatmul.mubr.bf16.gmra.mrb[36].mxu0 %v19148_v35 }
  0x7b   : > { %1103 = vmatprep.mubr.bf16.mxu0 %v19149_v36 }
  0x82   : > { %1104 = vmatmul.mubr.bf16.gmra.mrb[40].mxu0 %v19151_v37 }
  0x83   : > { %1111 = vmatprep.mubr.bf16.mxu0 %v19152_v38 }
  0x8a   : > { %1112 = vmatmul.mubr.bf16.gmra.mrb[44].mxu0 %v19154_v39 }
  0x8b   : > { %1119 = vmatprep.mubr.bf16.mxu0 %v19155_v40 }
  0x92   : > { %1120 = vmatmul.mubr.bf16.gmra.mrb[48].mxu0 %v19157_v41 }
  0x93   : > { %1127 = vmatprep.mubr.bf16.mxu0 %v19158_v42 }
  0x9a   : > { %1128 = vmatmul.mubr.bf16.gmra.mrb[52].mxu0 %v19160_v43 }
  0x9b   : > { %1135 = vmatprep.mubr.bf16.mxu0 %v19161_v44 }
  0xa2   : > { %1136 = vmatmul.mubr.bf16.gmra.mrb[56].mxu0 %v19163_v45 }
  0xa3   : > { %1143 = vmatprep.mubr.bf16.mxu0 %v19164_v46 }
  0xaa   : > { %1144 = vmatmul.mubr.bf16.gmra.mrb[60].mxu0 %v19166_v47 }
  0xab   : > { %1549 = vmatprep.mubr.bf16.mxu0 %v19172_v58 }
 0x105   : > { %v16493_v49 = vpop.f32.mrb[0].mxu0 }
 0x106   : > { %v16494_v50 = vpop.f32.mrb[1].mxu0 }
 0x107   : > { %v16495_v51 = vadd.f32 %v16494_v50, %v16493_v49  ;;  %v16496_v52 = vpop.f32.mrb[2].mxu0 }
 0x108   : > { %v16497_v53 = vpop.f32.mrb[3].mxu0 }
 0x109   : > { %v1026_v54 = vadd.f32 %v16495_v51, %v20336_v48  ;;  %v16498_v55 = vadd.f32 %v16497_v53, %v16496_v52 }
 0x10b   : > { %v1029_v57 = vadd.f32 %v16498_v55, %v20336_v48  ;;  %v1152_v59 = vmax.f32 %v1026_v54, 0.0 }
 0x10d   : > { %v1153_v60 = vmax.f32 %v1029_v57, 0.0  ;;  %v16499_v61 = vpop.f32.mrb[4].mxu0 }
 0x10e   : > { %v16500_v62 = vpop.f32.mrb[5].mxu0 }
 0x10f   : > { %v20346_v63 = vpack.c.bf16 %v1153_v60, %v1152_v59  ;;  %v16501_v0 = vadd.f32 %v16500_v62, %v16499_v61  ;;  %v16502_v1 = vpop.f32.mrb[6].mxu0 }
 0x110   : > { %v16503_v2 = vpop.f32.mrb[7].mxu0 }
 0x111   : > { %v1034_v3 = vadd.f32 %v16501_v0, %v20336_v48  ;;  %v16504_v4 = vadd.f32 %v16503_v2, %v16502_v1 }
 0x113   : > { %v1037_v5 = vadd.f32 %v16504_v4, %v20336_v48  ;;  %v1154_v6 = vmax.f32 %v1034_v3, 0.0 }
 0x115   : > { %v1155_v7 = vmax.f32 %v1037_v5, 0.0  ;;  %v16505_v8 = vpop.f32.mrb[8].mxu0 }
 0x116   : > { %v16506_v9 = vpop.f32.mrb[9].mxu0 }
 0x117   : > { %v20350_v10 = vpack.c.bf16 %v1155_v7, %v1154_v6  ;;  %v16507_v11 = vadd.f32 %v16506_v9, %v16505_v8  ;;  %v16508_v12 = vpop.f32.mrb[10].mxu0 }
 0x118   : > { %v16509_v13 = vpop.f32.mrb[11].mxu0 }
 0x119   : > { %v1042_v14 = vadd.f32 %v16507_v11, %v20336_v48  ;;  %v16510_v15 = vadd.f32 %v16509_v13, %v16508_v12 }
 0x11b   : > { %v1045_v16 = vadd.f32 %v16510_v15, %v20336_v48  ;;  %v1156_v17 = vmax.f32 %v1042_v14, 0.0 }
 0x11d   : > { %v1157_v18 = vmax.f32 %v1045_v16, 0.0  ;;  %v16511_v19 = vpop.f32.mrb[12].mxu0 }
 0x11e   : > { %v16512_v20 = vpop.f32.mrb[13].mxu0 }
 0x11f   : > { %v20354_v21 = vpack.c.bf16 %v1157_v18, %v1156_v17  ;;  %v16513_v22 = vadd.f32 %v16512_v20, %v16511_v19  ;;  %v16514_v23 = vpop.f32.mrb[14].mxu0 }
 0x120   : > { %v16515_v24 = vpop.f32.mrb[15].mxu0 }
 0x121   : > { %v1050_v25 = vadd.f32 %v16513_v22, %v20336_v48  ;;  %v16516_v26 = vadd.f32 %v16515_v24, %v16514_v23 }
 0x123   : > { %v1053_v27 = vadd.f32 %v16516_v26, %v20336_v48  ;;  %v1158_v28 = vmax.f32 %v1050_v25, 0.0 }
 0x125   : > { %v1159_v29 = vmax.f32 %v1053_v27, 0.0  ;;  %v16517_v30 = vpop.f32.mrb[16].mxu0 }
 0x126   : > { %v16518_v31 = vpop.f32.mrb[17].mxu0 }
 0x127   : > { %v20358_v32 = vpack.c.bf16 %v1159_v29, %v1158_v28  ;;  %v16519_v33 = vadd.f32 %v16518_v31, %v16517_v30  ;;  %v16520_v34 = vpop.f32.mrb[18].mxu0 }
 0x128   : > { %v16521_v35 = vpop.f32.mrb[19].mxu0 }
 0x129   : > { %v1058_v36 = vadd.f32 %v16519_v33, %v20336_v48  ;;  %v16522_v37 = vadd.f32 %v16521_v35, %v16520_v34 }
 0x12b   : > { %v1061_v38 = vadd.f32 %v16522_v37, %v20336_v48  ;;  %v1160_v39 = vmax.f32 %v1058_v36, 0.0 }
 0x12d   : > { %v1161_v40 = vmax.f32 %v1061_v38, 0.0  ;;  %v16523_v41 = vpop.f32.mrb[20].mxu0 }
 0x12e   : > { %v16524_v42 = vpop.f32.mrb[21].mxu0 }
 0x12f   : > { %v20362_v43 = vpack.c.bf16 %v1161_v40, %v1160_v39  ;;  %v16525_v44 = vadd.f32 %v16524_v42, %v16523_v41  ;;  %v16526_v45 = vpop.f32.mrb[22].mxu0 }
 0x130   : > { %v16527_v46 = vpop.f32.mrb[23].mxu0 }
 0x131   : > { %v1066_v47 = vadd.f32 %v16525_v44, %v20336_v48  ;;  %v16528_v49 = vadd.f32 %v16527_v46, %v16526_v45 }
 0x133   : > { %v1069_v50 = vadd.f32 %v16528_v49, %v20336_v48  ;;  %v1162_v51 = vmax.f32 %v1066_v47, 0.0 }
 0x135   : > { %v1163_v52 = vmax.f32 %v1069_v50, 0.0  ;;  %v16529_v53 = vpop.f32.mrb[24].mxu0 }
 0x136   : > { %v16530_v54 = vpop.f32.mrb[25].mxu0 }
 0x137   : > { %v20366_v55 = vpack.c.bf16 %v1163_v52, %v1162_v51  ;;  %v16531_v56 = vadd.f32 %v16530_v54, %v16529_v53  ;;  %v16532_v57 = vpop.f32.mrb[26].mxu0 }
 0x138   : > { %v16533_v58 = vpop.f32.mrb[27].mxu0 }
 0x139   : > { %v1074_v59 = vadd.f32 %v16531_v56, %v20336_v48  ;;  %v16534_v60 = vadd.f32 %v16533_v58, %v16532_v57 }
 0x13b   : > { %v1077_v61 = vadd.f32 %v16534_v60, %v20336_v48  ;;  %v1164_v62 = vmax.f32 %v1074_v59, 0.0 }
 0x13d   : > { %v1165_v0 = vmax.f32 %v1077_v61, 0.0  ;;  %v16535_v1 = vpop.f32.mrb[28].mxu0 }
 0x13e   : > { %v16536_v2 = vpop.f32.mrb[29].mxu0 }
 0x13f   : > { %v20370_v3 = vpack.c.bf16 %v1165_v0, %v1164_v62  ;;  %v16537_v4 = vadd.f32 %v16536_v2, %v16535_v1  ;;  %v16538_v5 = vpop.f32.mrb[30].mxu0 }
 0x140   : > { %v16539_v6 = vpop.f32.mrb[31].mxu0 }
 0x141   : > { %v1082_v7 = vadd.f32 %v16537_v4, %v20336_v48  ;;  %v16540_v8 = vadd.f32 %v16539_v6, %v16538_v5 }
 0x143   : > { %v1085_v9 = vadd.f32 %v16540_v8, %v20336_v48  ;;  %v1166_v11 = vmax.f32 %v1082_v7, 0.0 }
 0x145   : > { %v1167_v12 = vmax.f32 %v1085_v9, 0.0  ;;  %v16541_v13 = vpop.f32.mrb[32].mxu0 }
 0x146   : > { %v16542_v14 = vpop.f32.mrb[33].mxu0 }
 0x147   : > { %v20374_v15 = vpack.c.bf16 %v1167_v12, %v1166_v11  ;;  %v16543_v16 = vadd.f32 %v16542_v14, %v16541_v13  ;;  %v16544_v17 = vpop.f32.mrb[34].mxu0 }
 0x148   : > { %v16545_v18 = vpop.f32.mrb[35].mxu0 }
 0x149   : > { %v1090_v19 = vadd.f32 %v16543_v16, %v20336_v48  ;;  %v16546_v20 = vadd.f32 %v16545_v18, %v16544_v17 }
 0x14b   : > { %v1093_v22 = vadd.f32 %v16546_v20, %v20336_v48  ;;  %v1168_v23 = vmax.f32 %v1090_v19, 0.0 }
 0x14d   : > { %v1169_v24 = vmax.f32 %v1093_v22, 0.0  ;;  %v16547_v25 = vpop.f32.mrb[36].mxu0 }
 0x14e   : > { %v16548_v26 = vpop.f32.mrb[37].mxu0 }
 0x14f   : > { %v20378_v27 = vpack.c.bf16 %v1169_v24, %v1168_v23  ;;  %v16549_v28 = vadd.f32 %v16548_v26, %v16547_v25  ;;  %v16550_v29 = vpop.f32.mrb[38].mxu0 }
 0x150   : > { %v16551_v30 = vpop.f32.mrb[39].mxu0 }
 0x151   : > { %v1098_v31 = vadd.f32 %v16549_v28, %v20336_v48  ;;  %v16552_v33 = vadd.f32 %v16551_v30, %v16550_v29  ;;  %16589 = vmatprep.subr.bf16.mxu1 %v20378_v27  ;;  %16653 = vmatprep.subr.bf16.mxu0 %v20378_v27 }
 0x152   : > { %16590 = vmatpush3.bf16.msra.mxu1 %v20346_v63  ;;  %16654 = vmatpush3.bf16.msra.mxu0 %v20346_v63 }
 0x153   : > { %v1101_v34 = vadd.f32 %v16552_v33, %v20336_v48  ;;  %v1170_v35 = vmax.f32 %v1098_v31, 0.0 }
 0x155   : > { %v1171_v36 = vmax.f32 %v1101_v34, 0.0  ;;  %v16553_v37 = vpop.f32.mrb[40].mxu0 }
 0x156   : > { %v16554_v38 = vpop.f32.mrb[41].mxu0 }
 0x157   : > { %v20386_v39 = vpack.c.bf16 %v1171_v36, %v1170_v35  ;;  %v16555_v40 = vadd.f32 %v16554_v38, %v16553_v37  ;;  %v16556_v41 = vpop.f32.mrb[42].mxu0  ;;  %v20116_v36 = vld [vmem:[%s24628_s5] ss:$0 sm:$0xff] }
 0x158   : > { %v16557_v42 = vpop.f32.mrb[43].mxu0 }
 0x159   : > { %v1106_v44 = vadd.f32 %v16555_v40, %v20336_v48  ;;  %v16558_v45 = vadd.f32 %v16557_v42, %v16556_v41  ;;  %16591 = vmatprep.subr.bf16.mxu1 %v20386_v39  ;;  %16655 = vmatprep.subr.bf16.mxu0 %v20386_v39 }
 0x15a   : > { %16592 = vmatpush3.bf16.msra.mxu1 %v20350_v10  ;;  %16656 = vmatpush3.bf16.msra.mxu0 %v20350_v10 }
 0x15b   : > { %v1109_v46 = vadd.f32 %v16558_v45, %v20336_v48  ;;  %v1172_v47 = vmax.f32 %v1106_v44, 0.0 }
 0x15d   : > { %v1173_v49 = vmax.f32 %v1109_v46, 0.0  ;;  %v16559_v50 = vpop.f32.mrb[44].mxu0 }
 0x15e   : > { %v16560_v51 = vpop.f32.mrb[45].mxu0 }
 0x15f   : > { %v20394_v52 = vpack.c.bf16 %v1173_v49, %v1172_v47  ;;  %v16561_v53 = vadd.f32 %v16560_v51, %v16559_v50  ;;  %v16562_v54 = vpop.f32.mrb[46].mxu0 }
 0x160   : > { %v16563_v56 = vpop.f32.mrb[47].mxu0 }
 0x161   : > { %v1114_v57 = vadd.f32 %v16561_v53, %v20336_v48  ;;  %v16564_v58 = vadd.f32 %v16563_v56, %v16562_v54  ;;  %16593 = vmatprep.subr.bf16.mxu1 %v20394_v52  ;;  %16657 = vmatprep.subr.bf16.mxu0 %v20394_v52  ;;  %v19167_v54 = vld [vmem:[%s24629_s23] ss:$8 sps:$4 sm:$0xff]  }
 0x162   : > { %16594 = vmatpush3.bf16.msra.mxu1 %v20354_v21  ;;  %16658 = vmatpush3.bf16.msra.mxu0 %v20354_v21  ;;  %v19170_v56 = vld [vmem:[%s24629_s23 + $0x40] ss:$8 sps:$4 sm:$0xff]  }
 0x163   : > { %v1117_v59 = vadd.f32 %v16564_v58, %v20336_v48  ;;  %v1174_v60 = vmax.f32 %v1114_v57, 0.0  ;;  %v19173_v57 = vld [vmem:[%s24629_s23 + $0x14] ss:$8 sps:$4 sm:$0xff]  }
 0x164   : > { %v19176_v58 = vld [vmem:[%s24629_s23 + $0x54] ss:$8 sps:$4 sm:$0xff]  }
 0x165   : > { %v1175_v61 = vmax.f32 %v1117_v59, 0.0  ;;  %v16565_v62 = vpop.f32.mrb[48].mxu0  ;;  %v19175_v59 = vld [vmem:[%s24629_s23 + $0x10] ss:$8 sps:$4 sm:$0xff]  }
 0x166   : > { %v16566_v0 = vpop.f32.mrb[49].mxu0 }
 0x167   : > { %v20402_v1 = vpack.c.bf16 %v1175_v61, %v1174_v60  ;;  %v16567_v2 = vadd.f32 %v16566_v0, %v16565_v62  ;;  %v16568_v4 = vpop.f32.mrb[50].mxu0  ;;  %v19178_v60 = vld [vmem:[%s24629_s23 + $0x50] ss:$8 sps:$4 sm:$0xff]   ;;  %v19181_v61 = vld [vmem:[%s24629_s23 + $0x24] ss:$8 sps:$4 sm:$0xff]  }
 0x168   : > { %v16569_v5 = vpop.f32.mrb[51].mxu0  ;;  %v19184_v62 = vld [vmem:[%s24629_s23 + $0x64] ss:$8 sps:$4 sm:$0xff]   ;;  %v19179_v0 = vld [vmem:[%s24629_s23 + $0x20] ss:$8 sps:$4 sm:$0xff]  }
 0x169   : > { %v1122_v6 = vadd.f32 %v16567_v2, %v20336_v48  ;;  %v16570_v7 = vadd.f32 %v16569_v5, %v16568_v4  ;;  %16595 = vmatprep.subr.bf16.mxu1 %v20402_v1  ;;  %16659 = vmatprep.subr.bf16.mxu0 %v20402_v1  ;;  %v19182_v2 = vld [vmem:[%s24629_s23 + $0x60] ss:$8 sps:$4 sm:$0xff]   ;;  %v19185_v4 = vld [vmem:[%s24629_s23 + $0x34] ss:$8 sps:$4 sm:$0xff]  }
 0x16a   : > { %16596 = vmatpush3.bf16.msra.mxu1 %v20358_v32  ;;  %16660 = vmatpush3.bf16.msra.mxu0 %v20358_v32  ;;  %v19188_v5 = vld [vmem:[%s24629_s23 + $0x74] ss:$8 sps:$4 sm:$0xff]  }
 0x16b   : > { %v1125_v8 = vadd.f32 %v16570_v7, %v20336_v48  ;;  %v1176_v9 = vmax.f32 %v1122_v6, 0.0  ;;  %v19187_v6 = vld [vmem:[%s24629_s23 + $0x30] ss:$8 sps:$4 sm:$0xff]  }
 0x16c   : > { %v19190_v7 = vld [vmem:[%s24629_s23 + $0x70] ss:$8 sps:$4 sm:$0xff]  }
 0x16d   : > { %v1177_v11 = vmax.f32 %v1125_v8, 0.0  ;;  %v16571_v12 = vpop.f32.mrb[52].mxu0  ;;  %v19193_v8 = vld [vmem:[%s24629_s23 + $0xa4] ss:$8 sps:$4 sm:$0xff]  }
 0x16e   : > { %v16572_v13 = vpop.f32.mrb[53].mxu0 }
 0x16f   : > { %v20410_v14 = vpack.c.bf16 %v1177_v11, %v1176_v9  ;;  %v16573_v16 = vadd.f32 %v16572_v13, %v16571_v12  ;;  %v16574_v17 = vpop.f32.mrb[54].mxu0  ;;  %v19191_v9 = vld [vmem:[%s24629_s23 + $0xa0] ss:$8 sps:$4 sm:$0xff]   ;;  %v19194_v11 = vld [vmem:[%s24629_s23 + $0xb4] ss:$8 sps:$4 sm:$0xff]  }
 0x170   : > { %v16575_v18 = vpop.f32.mrb[55].mxu0  ;;  %v19196_v12 = vld [vmem:[%s24629_s23 + $0xb0] ss:$8 sps:$4 sm:$0xff]   ;;  %v19199_v13 = vld [vmem:[%s24629_s23 + $0xc4] ss:$8 sps:$4 sm:$0xff]  }
 0x171   : > { %v1130_v19 = vadd.f32 %v16573_v16, %v20336_v48  ;;  %v16576_v20 = vadd.f32 %v16575_v18, %v16574_v17  ;;  %16597 = vmatprep.subr.bf16.mxu1 %v20410_v14  ;;  %16661 = vmatprep.subr.bf16.mxu0 %v20410_v14  ;;  %v19197_v16 = vld [vmem:[%s24629_s23 + $0xc0] ss:$8 sps:$4 sm:$0xff]   ;;  %v19200_v17 = vld [vmem:[%s24629_s23 + $0xd4] ss:$8 sps:$4 sm:$0xff]   ;;  %v19202_v18 = vld [vmem:[%s24629_s23 + $0xd0] ss:$8 sps:$4 sm:$0xff]  }
 0x172   : > { %16598 = vmatpush3.bf16.msra.mxu1 %v20362_v43  ;;  %16662 = vmatpush3.bf16.msra.mxu0 %v20362_v43 }
 0x173   : > { %v1133_v22 = vadd.f32 %v16576_v20, %v20336_v48  ;;  %v1178_v23 = vmax.f32 %v1130_v19, 0.0  ;;  %v19205_v19 = vld [vmem:[%s24629_s23 + $0x104] ss:$8 sps:$4 sm:$0xff]   ;;  %v19227_v20 = vld [vmem:[%s24630_s24 + $0x10] sm:$0xff]  }
 0x175   : > { %v1179_v24 = vmax.f32 %v1133_v22, 0.0  ;;  %v16577_v25 = vpop.f32.mrb[56].mxu0  ;;  %v19203_v22 = vld [vmem:[%s24629_s23 + $0x100] ss:$8 sps:$4 sm:$0xff]  }
 0x176   : > { %v16578_v26 = vpop.f32.mrb[57].mxu0 }
 0x177   : > { %v20418_v28 = vpack.c.bf16 %v1179_v24, %v1178_v23  ;;  %v16579_v29 = vadd.f32 %v16578_v26, %v16577_v25  ;;  %v16580_v30 = vpop.f32.mrb[58].mxu0  ;;  %v19206_v23 = vld [vmem:[%s24629_s23 + $0x114] ss:$8 sps:$4 sm:$0xff]   ;;  %v19208_v25 = vld [vmem:[%s24629_s23 + $0x110] ss:$8 sps:$4 sm:$0xff]  }
 0x178   : > { %v16581_v31 = vpop.f32.mrb[59].mxu0  ;;  %v19228_v24 = vld [vmem:[%s24630_s24 + $0x18] sm:$0xff]   ;;  %v19211_v26 = vld [vmem:[%s24629_s23 + $0x124] ss:$8 sps:$4 sm:$0xff]  }
 0x179   : > { %v1138_v33 = vadd.f32 %v16579_v29, %v20336_v48  ;;  %v16582_v34 = vadd.f32 %v16581_v31, %v16580_v30  ;;  %16599 = vmatprep.subr.bf16.mxu1 %v20418_v28  ;;  %16663 = vmatprep.subr.bf16.mxu0 %v20418_v28  ;;  %v20614_v29 = vld [vmem:[%s24630_s24] sm:$0xff]   ;;  %v19212_v31 = vld [vmem:[%s24629_s23 + $0x134] ss:$8 sps:$4 sm:$0xff]  }
 0x17a   : > { %16600 = vmatpush3.bf16.msra.mxu1 %v20366_v55  ;;  %16664 = vmatpush3.bf16.msra.mxu0 %v20366_v55  ;;  %v19209_v30 = vld [vmem:[%s24629_s23 + $0x120] ss:$8 sps:$4 sm:$0xff]  }
 0x17b   : > { %v1180_v35 = vmax.f32 %v1138_v33, 0.0  ;;  %v1141_v37 = vadd.f32 %v20116_v36, %v16582_v34  ;;  %v19214_v33 = vld [vmem:[%s24629_s23 + $0x130] ss:$8 sps:$4 sm:$0xff]   ;;  %v19217_v34 = vld [vmem:[%s24629_s23 + $0x164] ss:$8 sps:$4 sm:$0xff]  }
 0x17d   : > { %v1181_v38 = vmax.f32 %v1141_v37, 0.0  ;;  %v16583_v40 = vpop.f32.mrb[60].mxu0  ;;  %v19220_v37 = vld [vmem:[%s24629_s23 + $0x170] ss:$8 sps:$4 sm:$0xff]  }
 0x17e   : > { %v16584_v41 = vpop.f32.mrb[61].mxu0 }
 0x17f   : > { %v20428_v42 = vpack.c.bf16 %v1181_v38, %v1180_v35  ;;  %v16585_v48 = vadd.f32 %v16584_v41, %v16583_v40  ;;  %v16586_v44 = vpop.f32.mrb[62].mxu0  ;;  %v19215_v35 = vld [vmem:[%s24629_s23 + $0x160] ss:$8 sps:$4 sm:$0xff]   ;;  %v19223_v38 = vld [vmem:[%s24629_s23 + $0x184] ss:$8 sps:$4 sm:$0xff]  }
 0x180   : > { %v16587_v45 = vpop.f32.mrb[63].mxu0 }
 0x181   : > { %v1146_v46 = vadd.f32 %v20116_v36, %v16585_v48  ;;  %v16588_v47 = vadd.f32 %v16587_v45, %v16586_v44  ;;  %16601 = vmatprep.subr.bf16.mxu1 %v20428_v42  ;;  %16665 = vmatprep.subr.bf16.mxu0 %v20428_v42 }
 0x182   : > { %16602 = vmatpush3.bf16.msra.mxu1 %v20370_v3  ;;  %16666 = vmatpush3.bf16.msra.mxu0 %v20370_v3 }
 0x183   : > { %v1149_v49 = vadd.f32 %v20116_v36, %v16588_v47  ;;  %v1182_v50 = vmax.f32 %v1146_v46, 0.0  ;;  %v19218_v36 = vld [vmem:[%s24629_s23 + $0x174] ss:$8 sps:$4 sm:$0xff]  }
 0x185   : > { %v1183_v51 = vmax.f32 %v1149_v49, 0.0 }
 0x187   : > { %v20434_v53 = vpack.c.bf16 %v1183_v51, %v1182_v50 }
 0x189   : > { %16603 = vmatprep.subr.bf16.mxu1 %v20434_v53  ;;  %16667 = vmatprep.subr.bf16.mxu0 %v20434_v53 }
 0x18a   : > { %16604 = vmatpush3.bf16.msra.mxu1 %v20374_v15  ;;  %16668 = vmatpush3.bf16.msra.mxu0 %v20374_v15 }
 0x18b   : > { %16617 = vmatprep.subr.bf16.mxu1 %v20378_v27  ;;  %16685 = vmatprep.subr.bf16.mxu0 %v20378_v27 }
 0x18d   : > { %1257 = vmatmul.mubr.bf16.vlgmr.msra.gmra.mrb[0].mxu1 %v19167_v54  ;;  %1550 = vmatmul.mubr.bf16.vlgmr.msra.gmra.mrb[64].mxu0 %v19170_v56 }
 0x18e   : > { %16618 = vmatpush3.bf16.msra.mxu1 %v20346_v63  ;;  %16686 = vmatpush3.bf16.msra.mxu0 %v20346_v63 }
 0x18f   : > { %16619 = vmatprep.subr.bf16.mxu1 %v20386_v39  ;;  %16687 = vmatprep.subr.bf16.mxu0 %v20386_v39 }
 0x190   : > { %1264 = vmatprep.mubr.bf16.mxu1 %v19173_v57  ;;  %1557 = vmatprep.mubr.bf16.mxu0 %v19176_v58 }
 0x192   : > { %16620 = vmatpush3.bf16.msra.mxu1 %v20350_v10  ;;  %16688 = vmatpush3.bf16.msra.mxu0 %v20350_v10 }
 0x193   : > { %16621 = vmatprep.subr.bf16.mxu1 %v20394_v52  ;;  %16689 = vmatprep.subr.bf16.mxu0 %v20394_v52 }
 0x195   : > { %1265 = vmatmul.mubr.bf16.gmra.mrb[4].mxu1 %v19175_v59  ;;  %1558 = vmatmul.mubr.bf16.gmra.mrb[68].mxu0 %v19178_v60 }
 0x196   : > { %16622 = vmatpush3.bf16.msra.mxu1 %v20354_v21  ;;  %16690 = vmatpush3.bf16.msra.mxu0 %v20354_v21 }
 0x197   : > { %16623 = vmatprep.subr.bf16.mxu1 %v20402_v1  ;;  %16691 = vmatprep.subr.bf16.mxu0 %v20402_v1 }
 0x198   : > { %1335 = vmatprep.mubr.bf16.mxu1 %v19181_v61  ;;  %1699 = vmatprep.mubr.bf16.mxu0 %v19184_v62  ;;  %v19221_v61 = vld [vmem:[%s24629_s23 + $0x180] ss:$8 sps:$4 sm:$0xff]  }
 0x19a   : > { %16624 = vmatpush3.bf16.msra.mxu1 %v20358_v32  ;;  %16692 = vmatpush3.bf16.msra.mxu0 %v20358_v32 }
 0x19b   : > { %16625 = vmatprep.subr.bf16.mxu1 %v20410_v14  ;;  %16693 = vmatprep.subr.bf16.mxu0 %v20410_v14 }
 0x19e   : > { %16626 = vmatpush3.bf16.msra.mxu1 %v20362_v43  ;;  %16694 = vmatpush3.bf16.msra.mxu0 %v20362_v43 }
 0x19f   : > { %16627 = vmatprep.subr.bf16.mxu1 %v20418_v28  ;;  %16695 = vmatprep.subr.bf16.mxu0 %v20418_v28 }
 0x1a2   : > { %16628 = vmatpush3.bf16.msra.mxu1 %v20366_v55  ;;  %16696 = vmatpush3.bf16.msra.mxu0 %v20366_v55 }
 0x1a3   : > { %16629 = vmatprep.subr.bf16.mxu1 %v20428_v42  ;;  %16697 = vmatprep.subr.bf16.mxu0 %v20428_v42 }
 0x1a6   : > { %16630 = vmatpush3.bf16.msra.mxu1 %v20370_v3  ;;  %16698 = vmatpush3.bf16.msra.mxu0 %v20370_v3 }
 0x1a7   : > { %16631 = vmatprep.subr.bf16.mxu1 %v20434_v53  ;;  %16699 = vmatprep.subr.bf16.mxu0 %v20434_v53 }
 0x1aa   : > { %16632 = vmatpush3.bf16.msra.mxu1 %v20374_v15  ;;  %16700 = vmatpush3.bf16.msra.mxu0 %v20374_v15 }
 0x1ab   : > { %16749 = vmatprep.subr.bf16.mxu0 %v20378_v27  ;;  %17998 = vmatprep.subr.bf16.mxu1 %v19227_v20 }
 0x1ad   : > { %1336 = vmatmul.mubr.bf16.vlgmr.msra.gmra.mrb[8].mxu1 %v19179_v0  ;;  %1700 = vmatmul.mubr.bf16.vlgmr.msra.gmra.mrb[72].mxu0 %v19182_v2 }
 0x1ae   : > { %16750 = vmatpush3.bf16.msra.mxu0 %v20346_v63  ;;  %1343 = vmatprep.mubr.bf16.mxu1 %v19185_v4 }
 0x1af   : > { %16751 = vmatprep.subr.bf16.mxu0 %v20386_v39  ;;  %1707 = vmatprep.mubr.bf16.mxu0 %v19188_v5  ;;  %v19224_v5 = vld [vmem:[%s24629_s23 + $0x194] ss:$8 sps:$4 sm:$0xff]  }
 0x1b0   : > { %17999 = vmatpush3.bf16.msra.mxu1 %v19227_v20 }
 0x1b1   : > { %18000 = vmatprep.subr.bf16.mxu1 %v19228_v24 }
 0x1b2   : > { %16752 = vmatpush3.bf16.msra.mxu0 %v20350_v10 }
 0x1b3   : > { %16753 = vmatprep.subr.bf16.mxu0 %v20394_v52 }
 0x1b4   : > { %18001 = vmatpush3.bf16.msra.mxu1 %v19228_v24 }
 0x1b5   : > { %1344 = vmatmul.mubr.bf16.gmra.mrb[12].mxu1 %v19187_v6  ;;  %1708 = vmatmul.mubr.bf16.gmra.mrb[76].mxu0 %v19190_v7 }
 0x1b6   : > { %16754 = vmatpush3.bf16.msra.mxu0 %v20354_v21  ;;  %1999 = vmatprep.mubr.bf16.mxu0 %v19193_v8 }
 0x1b7   : > { %16755 = vmatprep.subr.bf16.mxu0 %v20402_v1  ;;  %18006 = vmatprep.subr.bf16.mxu1 %v20614_v29 }
 0x1ba   : > { %16756 = vmatpush3.bf16.msra.mxu0 %v20358_v32 }
 0x1bb   : > { %16757 = vmatprep.subr.bf16.mxu0 %v20410_v14 }
 0x1be   : > { %16758 = vmatpush3.bf16.msra.mxu0 %v20362_v43 }
 0x1bf   : > { %16759 = vmatprep.subr.bf16.mxu0 %v20418_v28 }
 0x1c2   : > { %16760 = vmatpush3.bf16.msra.mxu0 %v20366_v55 }
 0x1c3   : > { %16761 = vmatprep.subr.bf16.mxu0 %v20428_v42 }
 0x1c6   : > { %16762 = vmatpush3.bf16.msra.mxu0 %v20370_v3 }
 0x1c7   : > { %16763 = vmatprep.subr.bf16.mxu0 %v20434_v53 }
 0x1ca   : > { %16764 = vmatpush3.bf16.msra.mxu0 %v20374_v15 }
 0x1cb   : > { %16781 = vmatprep.subr.bf16.mxu0 %v20378_v27 }
 0x1cd   : > { %2000 = vmatmul.mubr.bf16.vlgmr.msra.gmra.mrb[80].mxu0 %v19191_v9 }
 0x1ce   : > { %16782 = vmatpush3.bf16.msra.mxu0 %v20346_v63  ;;  %2007 = vmatprep.mubr.bf16.mxu0 %v19194_v11 }
 0x1cf   : > { %16783 = vmatprep.subr.bf16.mxu0 %v20386_v39 }
 0x1d2   : > { %16784 = vmatpush3.bf16.msra.mxu0 %v20350_v10 }
 0x1d3   : > { %16785 = vmatprep.subr.bf16.mxu0 %v20394_v52 }
 0x1d5   : > { %2008 = vmatmul.mubr.bf16.gmra.mrb[84].mxu0 %v19196_v12 }
 0x1d6   : > { %16786 = vmatpush3.bf16.msra.mxu0 %v20354_v21  ;;  %2149 = vmatprep.mubr.bf16.mxu0 %v19199_v13 }
 0x1d7   : > { %16787 = vmatprep.subr.bf16.mxu0 %v20402_v1 }
 0x1da   : > { %16788 = vmatpush3.bf16.msra.mxu0 %v20358_v32 }
 0x1db   : > { %16789 = vmatprep.subr.bf16.mxu0 %v20410_v14 }
 0x1de   : > { %16790 = vmatpush3.bf16.msra.mxu0 %v20362_v43 }
 0x1df   : > { %16791 = vmatprep.subr.bf16.mxu0 %v20418_v28 }
 0x1e2   : > { %16792 = vmatpush3.bf16.msra.mxu0 %v20366_v55 }
 0x1e3   : > { %16793 = vmatprep.subr.bf16.mxu0 %v20428_v42 }
 0x1e6   : > { %16794 = vmatpush3.bf16.msra.mxu0 %v20370_v3 }
 0x1e7   : > { %16795 = vmatprep.subr.bf16.mxu0 %v20434_v53 }
 0x1ea   : > { %16796 = vmatpush3.bf16.msra.mxu0 %v20374_v15 }
 0x1eb   : > { %16845 = vmatprep.subr.bf16.mxu0 %v20378_v27 }
 0x1ed   : > { %2150 = vmatmul.mubr.bf16.vlgmr.msra.gmra.mrb[88].mxu0 %v19197_v16 }
 0x1ee   : > { %16846 = vmatpush3.bf16.msra.mxu0 %v20346_v63  ;;  %2157 = vmatprep.mubr.bf16.mxu0 %v19200_v17  ;;  %v19226_v17 = vld [vmem:[%s24629_s23 + $0x190] ss:$8 sps:$4 sm:$0xff]  }
 0x1ef   : > { %16847 = vmatprep.subr.bf16.mxu0 %v20386_v39 }
 0x1f2   : > { %16848 = vmatpush3.bf16.msra.mxu0 %v20350_v10 }
 0x1f3   : > { %16849 = vmatprep.subr.bf16.mxu0 %v20394_v52 }
 0x1f5   : > { %2158 = vmatmul.mubr.bf16.gmra.mrb[92].mxu0 %v19202_v18  ;;  %v19231_v18 = vld [vmem:[%s24629_s23 + $0x1c4] ss:$8 sps:$4 sm:$0xff]  }
 0x1f6   : > { %16850 = vmatpush3.bf16.msra.mxu0 %v20354_v21  ;;  %2449 = vmatprep.mubr.bf16.mxu0 %v19205_v19 }
 0x1f7   : > { %16851 = vmatprep.subr.bf16.mxu0 %v20402_v1 }
 0x1fa   : > { %16852 = vmatpush3.bf16.msra.mxu0 %v20358_v32 }
 0x1fb   : > { %16853 = vmatprep.subr.bf16.mxu0 %v20410_v14 }
 0x1fe   : > { %16854 = vmatpush3.bf16.msra.mxu0 %v20362_v43 }
 0x1ff   : > { %16855 = vmatprep.subr.bf16.mxu0 %v20418_v28 }
 0x202   : > { %16856 = vmatpush3.bf16.msra.mxu0 %v20366_v55 }
 0x203   : > { %16857 = vmatprep.subr.bf16.mxu0 %v20428_v42 }
 0x206   : > { %16858 = vmatpush3.bf16.msra.mxu0 %v20370_v3 }
 0x207   : > { %16859 = vmatprep.subr.bf16.mxu0 %v20434_v53 }
 0x20a   : > { %16860 = vmatpush3.bf16.msra.mxu0 %v20374_v15 }
 0x20b   : > { %16877 = vmatprep.subr.bf16.mxu0 %v20378_v27 }
 0x20d   : > { %2450 = vmatmul.mubr.bf16.vlgmr.msra.gmra.mrb[96].mxu0 %v19203_v22 }
 0x20e   : > { %16878 = vmatpush3.bf16.msra.mxu0 %v20346_v63  ;;  %2457 = vmatprep.mubr.bf16.mxu0 %v19206_v23 }
 0x20f   : > { %16879 = vmatprep.subr.bf16.mxu0 %v20386_v39 }
 0x212   : > { %16880 = vmatpush3.bf16.msra.mxu0 %v20350_v10 }
 0x213   : > { %16881 = vmatprep.subr.bf16.mxu0 %v20394_v52 }
 0x215   : > { %2458 = vmatmul.mubr.bf16.gmra.mrb[100].mxu0 %v19208_v25 }
 0x216   : > { %16882 = vmatpush3.bf16.msra.mxu0 %v20354_v21  ;;  %2599 = vmatprep.mubr.bf16.mxu0 %v19211_v26 }
 0x217   : > { %16883 = vmatprep.subr.bf16.mxu0 %v20402_v1 }
 0x21a   : > { %16884 = vmatpush3.bf16.msra.mxu0 %v20358_v32 }
 0x21b   : > { %16885 = vmatprep.subr.bf16.mxu0 %v20410_v14 }
 0x21e   : > { %16886 = vmatpush3.bf16.msra.mxu0 %v20362_v43 }
 0x21f   : > { %16887 = vmatprep.subr.bf16.mxu0 %v20418_v28 }
 0x222   : > { %16888 = vmatpush3.bf16.msra.mxu0 %v20366_v55 }
 0x223   : > { %16889 = vmatprep.subr.bf16.mxu0 %v20428_v42 }
 0x226   : > { %16890 = vmatpush3.bf16.msra.mxu0 %v20370_v3 }
 0x227   : > { %16891 = vmatprep.subr.bf16.mxu0 %v20434_v53 }
 0x22a   : > { %16892 = vmatpush3.bf16.msra.mxu0 %v20374_v15 }
 0x22b   : > { %16941 = vmatprep.subr.bf16.mxu0 %v20378_v27 }
 0x22d   : > { %2600 = vmatmul.mubr.bf16.vlgmr.msra.gmra.mrb[104].mxu0 %v19209_v30 }
 0x22e   : > { %16942 = vmatpush3.bf16.msra.mxu0 %v20346_v63  ;;  %2607 = vmatprep.mubr.bf16.mxu0 %v19212_v31 }
 0x22f   : > { %16943 = vmatprep.subr.bf16.mxu0 %v20386_v39 }
 0x232   : > { %16944 = vmatpush3.bf16.msra.mxu0 %v20350_v10 }
 0x233   : > { %16945 = vmatprep.subr.bf16.mxu0 %v20394_v52 }
 0x235   : > { %2608 = vmatmul.mubr.bf16.gmra.mrb[108].mxu0 %v19214_v33 }
 0x236   : > { %16946 = vmatpush3.bf16.msra.mxu0 %v20354_v21  ;;  %2899 = vmatprep.mubr.bf16.mxu0 %v19217_v34 }
 0x237   : > { %16947 = vmatprep.subr.bf16.mxu0 %v20402_v1 }
 0x23a   : > { %16948 = vmatpush3.bf16.msra.mxu0 %v20358_v32 }
 0x23b   : > { %16949 = vmatprep.subr.bf16.mxu0 %v20410_v14 }
 0x23e   : > { %16950 = vmatpush3.bf16.msra.mxu0 %v20362_v43 }
 0x23f   : > { %16951 = vmatprep.subr.bf16.mxu0 %v20418_v28 }
 0x242   : > { %16952 = vmatpush3.bf16.msra.mxu0 %v20366_v55 }
 0x243   : > { %16953 = vmatprep.subr.bf16.mxu0 %v20428_v42 }
 0x246   : > { %16954 = vmatpush3.bf16.msra.mxu0 %v20370_v3 }
 0x247   : > { %16955 = vmatprep.subr.bf16.mxu0 %v20434_v53 }
 0x24a   : > { %16956 = vmatpush3.bf16.msra.mxu0 %v20374_v15 }
 0x24b   : > { %16973 = vmatprep.subr.bf16.mxu0 %v20378_v27 }
 0x24d   : > { %2900 = vmatmul.mubr.bf16.vlgmr.msra.gmra.mrb[112].mxu0 %v19215_v35 }
 0x24e   : > { %16974 = vmatpush3.bf16.msra.mxu0 %v20346_v63  ;;  %2907 = vmatprep.mubr.bf16.mxu0 %v19218_v36 }
 0x24f   : > { %16975 = vmatprep.subr.bf16.mxu0 %v20386_v39 }
 0x252   : > { %16976 = vmatpush3.bf16.msra.mxu0 %v20350_v10 }
 0x253   : > { %16977 = vmatprep.subr.bf16.mxu0 %v20394_v52 }
 0x255   : > { %2908 = vmatmul.mubr.bf16.gmra.mrb[116].mxu0 %v19220_v37 }
 0x256   : > { %16978 = vmatpush3.bf16.msra.mxu0 %v20354_v21  ;;  %3049 = vmatprep.mubr.bf16.mxu0 %v19223_v38 }
 0x257   : > { %16979 = vmatprep.subr.bf16.mxu0 %v20402_v1 }
 0x25a   : > { %16980 = vmatpush3.bf16.msra.mxu0 %v20358_v32 }
 0x25b   : > { %16981 = vmatprep.subr.bf16.mxu0 %v20410_v14 }
 0x25e   : > { %16982 = vmatpush3.bf16.msra.mxu0 %v20362_v43 }
 0x25f   : > { %16983 = vmatprep.subr.bf16.mxu0 %v20418_v28 }
 0x260   : > { %v16605_v40 = vpop.f32.mrb[0].mxu1  ;;  %v16669_v41 = vpop.f32.mrb[64].mxu0 }
 0x261   : > { %v16606_v48 = vpop.f32.mrb[1].mxu1  ;;  %v16670_v44 = vpop.f32.mrb[65].mxu0 }
 0x262   : > { %16984 = vmatpush3.bf16.msra.mxu0 %v20366_v55  ;;  %v20681_v45 = vadd.f32 %v16606_v48, %v16605_v40  ;;  %v16608_v46 = vpop.f32.mrb[2].mxu1  ;;  %v20683_v47 = vadd.f32 %v16670_v44, %v16669_v41  ;;  %v16672_v49 = vpop.f32.mrb[66].mxu0  ;;  %v19229_v48 = vld [vmem:[%s24629_s23 + $0x1c0] ss:$8 sps:$4 sm:$0xff]  }
 0x263   : > { %16985 = vmatprep.subr.bf16.mxu0 %v20428_v42  ;;  %v16609_v50 = vpop.f32.mrb[3].mxu1  ;;  %v16673_v51 = vpop.f32.mrb[67].mxu0 }
 0x264   : > { %v20686_v54 = vadd.f32 %v16609_v50, %v16608_v46  ;;  %v20688_v56 = vadd.f32 %v16673_v51, %v16672_v49  ;;  %v19236_v50 = vld [vmem:[%s24629_s23 + $0x1d4] ss:$8 sps:$4 sm:$0xff]  }
 0x266   : > { %16986 = vmatpush3.bf16.msra.mxu0 %v20370_v3  ;;  %v1273_v57 = vpack.c.bf16 %v20686_v54, %v20681_v45  ;;  %v1566_v58 = vpack.c.bf16 %v20688_v56, %v20683_v47  ;;  %v19243_v45 = vld [vmem:[%s24629_s23 + $0x1e4] ss:$8 sps:$4 sm:$0xff]   ;;  %v19239_v54 = vld [vmem:[%s24630_s24 + $0x30] sm:$0xff]   ;;  %v19240_v47 = vld [vmem:[%s24630_s24 + $0x38] sm:$0xff]  }
 0x267   : > { %16987 = vmatprep.subr.bf16.mxu0 %v20434_v53  ;;  %v19241_v56 = vld [vmem:[%s24629_s23 + $0x1e0] ss:$8 sps:$4 sm:$0xff]  }
 0x268   : > { %v16611_v59 = vpop.f32.mrb[4].mxu1  ;;  %v16675_v60 = vpop.f32.mrb[68].mxu0 }
 0x269   : > { %v16612_v62 = vpop.f32.mrb[5].mxu1  ;;  %v16676_v0 = vpop.f32.mrb[69].mxu0 }
 0x26a   : > { %16988 = vmatpush3.bf16.msra.mxu0 %v20374_v15  ;;  %v20700_v2 = vadd.f32 %v16612_v62, %v16611_v59  ;;  %v16614_v4 = vpop.f32.mrb[6].mxu1  ;;  %v20705_v6 = vadd.f32 %v16676_v0, %v16675_v60  ;;  %v16678_v7 = vpop.f32.mrb[70].mxu0 }
 0x26b   : > { %17037 = vmatprep.subr.bf16.mxu0 %v20378_v27  ;;  %v16615_v8 = vpop.f32.mrb[7].mxu1  ;;  %v16679_v9 = vpop.f32.mrb[71].mxu0 }
 0x26c   : > { %v20708_v11 = vadd.f32 %v16615_v8, %v16614_v4  ;;  %v20710_v12 = vadd.f32 %v16679_v9, %v16678_v7  ;;  %v19238_v8 = vld [vmem:[%s24629_s23 + $0x1d0] ss:$8 sps:$4 sm:$0xff]   ;;  %v19234_v9 = vld [vmem:[%s24630_s24 + $0x20] sm:$0xff]  }
 0x26d   : > { %3050 = vmatmul.mubr.bf16.vlgmr.msra.gmra.mrb[120].mxu0 %v19221_v61 }
 0x26e   : > { %17038 = vmatpush3.bf16.msra.mxu0 %v20346_v63  ;;  %v1274_v13 = vpack.c.bf16 %v20708_v11, %v20700_v2  ;;  %3057 = vmatprep.mubr.bf16.mxu0 %v19224_v5  ;;  %v1567_v16 = vpack.c.bf16 %v20710_v12, %v20705_v6  ;;  %v19233_v5 = vld [vmem:[%s24630_s24 + $0x8] sm:$0xff]   ;;  %v19256_v12 = vld [vmem:[%s24629_s23 + $0x234] ss:$8 sps:$4 sm:$0xff]  }
 0x26f   : > { %17039 = vmatprep.subr.bf16.mxu0 %v20386_v39  ;;  %v19249_v2 = vld [vmem:[%s24629_s23 + $0x224] ss:$8 sps:$4 sm:$0xff]   ;;  %v19247_v11 = vld [vmem:[%s24629_s23 + $0x220] ss:$8 sps:$4 sm:$0xff]  }
 0x270   : > { %v19252_v6 = vld [vmem:[%s24629_s23 + $0x84] ss:$8 sps:$4 sm:$0xff]  }
 0x272   : > { %17040 = vmatpush3.bf16.msra.mxu0 %v20350_v10 }
 0x273   : > { %17041 = vmatprep.subr.bf16.mxu0 %v20394_v52 }
 0x275   : > { %3058 = vmatmul.mubr.bf16.gmra.mrb[124].mxu0 %v19226_v17  ;;  %v19258_v17 = vld [vmem:[%s24629_s23 + $0x230] ss:$8 sps:$4 sm:$0xff]  }
 0x276   : > { %17042 = vmatpush3.bf16.msra.mxu0 %v20354_v21  ;;  %3349 = vmatprep.mubr.bf16.mxu0 %v19231_v18  ;;  %v19261_v18 = vld [vmem:[%s24629_s23 + $0x244] ss:$8 sps:$4 sm:$0xff]  }
 0x277   : > { %17043 = vmatprep.subr.bf16.mxu0 %v20402_v1 }
 0x27a   : > { %17044 = vmatpush3.bf16.msra.mxu0 %v20358_v32 }
 0x27b   : > { %17045 = vmatprep.subr.bf16.mxu0 %v20410_v14 }
 0x27e   : > { %17046 = vmatpush3.bf16.msra.mxu0 %v20362_v43 }
 0x27f   : > { %17047 = vmatprep.subr.bf16.mxu0 %v20418_v28 }
 0x280   : > { %v16633_v19 = vpop.f32.mrb[8].mxu1  ;;  %v16701_v20 = vpop.f32.mrb[72].mxu0 }
 0x281   : > { %v16634_v22 = vpop.f32.mrb[9].mxu1  ;;  %v16702_v23 = vpop.f32.mrb[73].mxu0 }
 0x282   : > { %17048 = vmatpush3.bf16.msra.mxu0 %v20366_v55  ;;  %v16635_v24 = vadd.f32 %v16634_v22, %v16633_v19  ;;  %v16636_v25 = vpop.f32.mrb[10].mxu1  ;;  %v20733_v26 = vadd.f32 %v16702_v23, %v16701_v20  ;;  %v16704_v30 = vpop.f32.mrb[74].mxu0  ;;  %v19255_v19 = vld [vmem:[%s24629_s23 + $0x90] ss:$8 sps:$4 sm:$0xff]   ;;  %v19259_v20 = vld [vmem:[%s24629_s23 + $0x240] ss:$8 sps:$4 sm:$0xff]  }
 0x283   : > { %17049 = vmatprep.subr.bf16.mxu0 %v20428_v42  ;;  %v16637_v31 = vpop.f32.mrb[11].mxu1  ;;  %v16705_v33 = vpop.f32.mrb[75].mxu0  ;;  %v19262_v22 = vld [vmem:[%s24629_s23 + $0x254] ss:$8 sps:$4 sm:$0xff]   ;;  %v19264_v23 = vld [vmem:[%s24629_s23 + $0x250] ss:$8 sps:$4 sm:$0xff]  }
 0x284   : > { %v16638_v34 = vadd.f32 %v16637_v31, %v16636_v25  ;;  %v20736_v35 = vadd.f32 %v16705_v33, %v16704_v30  ;;  %v19265_v25 = vld [vmem:[%s24629_s23 + $0x280] ss:$8 sps:$4 sm:$0xff]   ;;  %v19270_v30 = vld [vmem:[%s24629_s23 + $0x290] ss:$8 sps:$4 sm:$0xff]   ;;  %v19273_v31 = vld [vmem:[%s24629_s23 + $0x2a4] ss:$8 sps:$4 sm:$0xff]  }
 0x286   : > { %17050 = vmatpush3.bf16.msra.mxu0 %v20370_v3  ;;  %v1352_v36 = vpack.c.bf16 %v16638_v34, %v16635_v24  ;;  %v1716_v37 = vpack.c.bf16 %v20736_v35, %v20733_v26  ;;  %v19267_v24 = vld [vmem:[%s24629_s23 + $0x284] ss:$8 sps:$4 sm:$0xff]   ;;  %v19268_v26 = vld [vmem:[%s24629_s23 + $0x294] ss:$8 sps:$4 sm:$0xff]  }
 0x287   : > { %17051 = vmatprep.subr.bf16.mxu0 %v20434_v53 }
 0x288   : > { %v16639_v38 = vpop.f32.mrb[12].mxu1  ;;  %18002 = vmatprep.mubr.msk.bf16.mxu1 %vm1370_vm0, %v1352_v36  ;;  %v16707_v40 = vpop.f32.mrb[76].mxu0 }
 0x289   : > { %v16640_v41 = vpop.f32.mrb[13].mxu1  ;;  %v16708_v44 = vpop.f32.mrb[77].mxu0 }
 0x28a   : > { %v16641_v46 = vadd.f32 %v16640_v41, %v16639_v38  ;;  %v16642_v49 = vpop.f32.mrb[14].mxu1  ;;  %17052 = vmatpush3.bf16.msra.mxu0 %v20374_v15  ;;  %v20750_v51 = vadd.f32 %v16708_v44, %v16707_v40  ;;  %v16710_v59 = vpop.f32.mrb[78].mxu0  ;;  %v19271_v41 = vld [vmem:[%s24629_s23 + $0x2a0] ss:$8 sps:$4 sm:$0xff]  }
 0x28b   : > { %v16643_v60 = vpop.f32.mrb[15].mxu1  ;;  %17069 = vmatprep.subr.bf16.mxu0 %v20378_v27  ;;  %v16711_v61 = vpop.f32.mrb[79].mxu0  ;;  %v19298_v44 = vld [vmem:[%s24630_s24 + $0x40] sm:$0xff]  }
 0x28c   : > { %v16644_v62 = vadd.f32 %v16643_v60, %v16642_v49  ;;  %v16712_v0 = vadd.f32 %v16711_v61, %v16710_v59  ;;  %v19299_v49 = vld [vmem:[%s24630_s24 + $0x48] sm:$0xff]   ;;  %v20984_v61 = vld [vmem:[%s24630_s24 + $0x50] sm:$0xff]  }
 0x28d   : > { %3350 = vmatmul.mubr.bf16.vlgmr.msra.gmra.mrb[128].mxu0 %v19229_v48  ;;  %v19274_v48 = vld [vmem:[%s24629_s23 + $0x2b4] ss:$8 sps:$4 sm:$0xff]  }
 0x28e   : > { %v1353_v4 = vpack.c.bf16 %v16644_v62, %v16641_v46  ;;  %17070 = vmatpush3.bf16.msra.mxu0 %v20346_v63  ;;  %3357 = vmatprep.mubr.bf16.mxu0 %v19236_v50  ;;  %v1717_v7 = vpack.c.bf16 %v16712_v0, %v20750_v51  ;;  %v19276_v46 = vld [vmem:[%s24629_s23 + $0x2b0] ss:$8 sps:$4 sm:$0xff]   ;;  %v19279_v50 = vld [vmem:[%s24629_s23 + $0x2e4] ss:$8 sps:$4 sm:$0xff]  }
 0x28f   : > { %17071 = vmatprep.subr.bf16.mxu0 %v20386_v39 }
 0x290   : > { %18003 = vmatmul.mubr.msk.bf16.vlgmr.msra.gmra.mrb[16].mxu1 %vm1370_vm0, %v1353_v4 }
 0x291   : > { %18010 = vmatprep.mubr.msk.bf16.mxu1 %vm1370_vm0, %v1273_v57  ;;  %18007 = vmatpush3.bf16.msra.mxu1 %v20614_v29  ;;  %v19235_v29 = vld [vmem:[%s24630_s24 + $0x28] sm:$0xff]   ;;  %v19244_v57 = vld [vmem:[%s24629_s23 + $0x1f4] ss:$8 sps:$4 sm:$0xff]  }
 0x292   : > { %17072 = vmatpush3.bf16.msra.mxu0 %v20350_v10  ;;  %18008 = vmatprep.subr.bf16.mxu1 %v19233_v5 }
 0x293   : > { %17073 = vmatprep.subr.bf16.mxu0 %v20394_v52 }
 0x295   : > { %18009 = vmatpush3.bf16.msra.mxu1 %v19233_v5  ;;  %3358 = vmatmul.mubr.bf16.gmra.mrb[132].mxu0 %v19238_v8 }
 0x296   : > { %17074 = vmatpush3.bf16.msra.mxu0 %v20354_v21  ;;  %18014 = vmatprep.subr.bf16.mxu1 %v19234_v9 }
 0x297   : > { %17075 = vmatprep.subr.bf16.mxu0 %v20402_v1  ;;  %3499 = vmatprep.mubr.bf16.mxu0 %v19243_v45 }
 0x29a   : > { %17076 = vmatpush3.bf16.msra.mxu0 %v20358_v32 }
 0x29b   : > { %17077 = vmatprep.subr.bf16.mxu0 %v20410_v14 }
 0x29c   : > { %18011 = vmatmul.mubr.msk.bf16.vlgmr.msra.gmra.mrb[16].mxu1 %vm1370_vm0, %v1274_v13  ;;  %v19250_v13 = vld [vmem:[%s24629_s23 + $0x80] ss:$8 sps:$4 sm:$0xff]  }
 0x29d   : > { %18015 = vmatpush3.bf16.msra.mxu1 %v19234_v9  ;;  %18018 = vmatprep.mubr.msk.bf16.mxu1 %vm1370_vm0, %v1566_v58  ;;  %v19246_v58 = vld [vmem:[%s24629_s23 + $0x1f0] ss:$8 sps:$4 sm:$0xff]  }
 0x29e   : > { %17078 = vmatpush3.bf16.msra.mxu0 %v20362_v43  ;;  %18016 = vmatprep.subr.bf16.mxu1 %v19235_v29 }
 0x29f   : > { %17079 = vmatprep.subr.bf16.mxu0 %v20418_v28 }
 0x2a0   : > { %v16765_v33 = vpop.f32.mrb[80].mxu0 }
 0x2a1   : > { %18017 = vmatpush3.bf16.msra.mxu1 %v19235_v29  ;;  %v16766_v34 = vpop.f32.mrb[81].mxu0 }
 0x2a2   : > { %17080 = vmatpush3.bf16.msra.mxu0 %v20366_v55  ;;  %18022 = vmatprep.subr.bf16.mxu1 %v19239_v54  ;;  %v16768_v35 = vpop.f32.mrb[82].mxu0 }
 0x2a3   : > { %17081 = vmatprep.subr.bf16.mxu0 %v20428_v42  ;;  %v16769_v36 = vpop.f32.mrb[83].mxu0 }
 0x2a4   : > { %v20947_v38 = vadd.f32 %v16769_v36, %v16768_v35  ;;  %v19295_v36 = vld [vmem:[%s24629_s23 + $0x360] ss:$8 sps:$4 sm:$0xff]  }
 0x2a6   : > { %17082 = vmatpush3.bf16.msra.mxu0 %v20370_v3 }
 0x2a7   : > { %17083 = vmatprep.subr.bf16.mxu0 %v20434_v53 }
 0x2a8   : > { %18019 = vmatmul.mubr.msk.bf16.vlgmr.msra.gmra.mrb[16].mxu1 %vm1370_vm0, %v1567_v16  ;;  %v19253_v16 = vld [vmem:[%s24629_s23 + $0x94] ss:$8 sps:$4 sm:$0xff]   ;;  %v16771_v51 = vpop.f32.mrb[84].mxu0 }
 0x2a9   : > { %18023 = vmatpush3.bf16.msra.mxu1 %v19239_v54  ;;  %18026 = vmatprep.mubr.msk.bf16.mxu1 %vm1370_vm0, %v1716_v37  ;;  %v20945_v37 = vadd.f32 %v16766_v34, %v16765_v33  ;;  %v16772_v59 = vpop.f32.mrb[85].mxu0 }
 0x2aa   : > { %17084 = vmatpush3.bf16.msra.mxu0 %v20374_v15  ;;  %18024 = vmatprep.subr.bf16.mxu1 %v19240_v47  ;;  %v16774_v60 = vpop.f32.mrb[86].mxu0  ;;  %v20986_v0 = vadd.f32 %v16772_v59, %v16771_v51 }
 0x2ab   : > { %17133 = vmatprep.subr.bf16.mxu0 %v20378_v27  ;;  %v2016_v40 = vpack.c.bf16 %v20947_v38, %v20945_v37  ;;  %v16775_v62 = vpop.f32.mrb[87].mxu0  ;;  %v19303_v37 = vld [vmem:[%s24630_s24 + $0x68] sm:$0xff]  }
 0x2ac   : > { %v20988_v4 = vadd.f32 %v16775_v62, %v16774_v60  ;;  %v19306_v60 = vld [vmem:[%s24629_s23 + $0x370] ss:$8 sps:$4 sm:$0xff]   ;;  %v19307_v38 = vld [vmem:[%s24629_s23 + $0x3a0] ss:$8 sps:$4 sm:$0xff]  }
 0x2ad   : > { %18025 = vmatpush3.bf16.msra.mxu1 %v19240_v47  ;;  %3500 = vmatmul.mubr.bf16.vlgmr.msra.gmra.mrb[136].mxu0 %v19241_v56 }
 0x2ae   : > { %16717 = vmatprep.subr.bf16.mxu1 %v20378_v27  ;;  %17134 = vmatpush3.bf16.msra.mxu0 %v20346_v63  ;;  %v2017_v5 = vpack.c.bf16 %v20988_v4, %v20986_v0  ;;  %v19312_v0 = vld [vmem:[%s24629_s23 + $0x3b0] ss:$8 sps:$4 sm:$0xff]   ;;  %v19318_v4 = vld [vmem:[%s24629_s23 + $0x3c4] ss:$8 sps:$4 sm:$0xff]  }
 0x2af   : > { %17135 = vmatprep.subr.bf16.mxu0 %v20386_v39  ;;  %3507 = vmatprep.mubr.bf16.mxu0 %v19244_v57 }
 0x2b2   : > { %17136 = vmatpush3.bf16.msra.mxu0 %v20350_v10 }
 0x2b3   : > { %17137 = vmatprep.subr.bf16.mxu0 %v20394_v52 }
 0x2b4   : > { %18027 = vmatmul.mubr.msk.bf16.vlgmr.msra.gmra.mrb[16].mxu1 %vm1370_vm0, %v1717_v7 }
 0x2b5   : > { %16718 = vmatpush3.bf16.msra.mxu1 %v20346_v63  ;;  %3508 = vmatmul.mubr.bf16.gmra.mrb[140].mxu0 %v19246_v58 }
 0x2b6   : > { %16719 = vmatprep.subr.bf16.mxu1 %v20386_v39  ;;  %17138 = vmatpush3.bf16.msra.mxu0 %v20354_v21 }
 0x2b7   : > { %17139 = vmatprep.subr.bf16.mxu0 %v20402_v1  ;;  %3799 = vmatprep.mubr.bf16.mxu0 %v19249_v2 }
 0x2b8   : > { %1849 = vmatprep.mubr.bf16.mxu1 %v19252_v6 }
 0x2b9   : > { %16720 = vmatpush3.bf16.msra.mxu1 %v20350_v10 }
 0x2ba   : > { %16721 = vmatprep.subr.bf16.mxu1 %v20394_v52  ;;  %17140 = vmatpush3.bf16.msra.mxu0 %v20358_v32 }
 0x2bb   : > { %17141 = vmatprep.subr.bf16.mxu0 %v20410_v14 }
 0x2bd   : > { %16722 = vmatpush3.bf16.msra.mxu1 %v20354_v21 }
 0x2be   : > { %16723 = vmatprep.subr.bf16.mxu1 %v20402_v1  ;;  %17142 = vmatpush3.bf16.msra.mxu0 %v20362_v43 }
 0x2bf   : > { %17143 = vmatprep.subr.bf16.mxu0 %v20418_v28 }
 0x2c0   : > { %v16797_v7 = vpop.f32.mrb[88].mxu0 }
 0x2c1   : > { %16724 = vmatpush3.bf16.msra.mxu1 %v20358_v32  ;;  %v16798_v8 = vpop.f32.mrb[89].mxu0 }
 0x2c2   : > { %16725 = vmatprep.subr.bf16.mxu1 %v20410_v14  ;;  %17144 = vmatpush3.bf16.msra.mxu0 %v20366_v55  ;;  %v16800_v9 = vpop.f32.mrb[90].mxu0  ;;  %v20997_v29 = vadd.f32 %v16798_v8, %v16797_v7  ;;  %v19309_v7 = vld [vmem:[%s24629_s23 + $0x3a4] ss:$8 sps:$4 sm:$0xff]  }
 0x2c3   : > { %17145 = vmatprep.subr.bf16.mxu0 %v20428_v42  ;;  %v16801_v45 = vpop.f32.mrb[91].mxu0 }
 0x2c4   : > { %v20999_v54 = vadd.f32 %v16801_v45, %v16800_v9  ;;  %v19301_v45 = vld [vmem:[%s24630_s24 + $0x58] sm:$0xff]  }
 0x2c5   : > { %16726 = vmatpush3.bf16.msra.mxu1 %v20362_v43 }
 0x2c6   : > { %16727 = vmatprep.subr.bf16.mxu1 %v20418_v28  ;;  %17146 = vmatpush3.bf16.msra.mxu0 %v20370_v3  ;;  %v2166_v47 = vpack.c.bf16 %v20999_v54, %v20997_v29  ;;  %v19322_v29 = vld [vmem:[%s24629_s23 + $0x3d4] ss:$8 sps:$4 sm:$0xff]   ;;  %v19313_v54 = vld [vmem:[%s24629_s23 + $0xe0] ss:$8 sps:$4 sm:$0xff]  }
 0x2c7   : > { %17147 = vmatprep.subr.bf16.mxu0 %v20434_v53 }
 0x2c8   : > { %v16803_v56 = vpop.f32.mrb[92].mxu0 }
 0x2c9   : > { %16728 = vmatpush3.bf16.msra.mxu1 %v20366_v55  ;;  %v16804_v57 = vpop.f32.mrb[93].mxu0 }
 0x2ca   : > { %16729 = vmatprep.subr.bf16.mxu1 %v20428_v42  ;;  %17148 = vmatpush3.bf16.msra.mxu0 %v20374_v15  ;;  %v16806_v58 = vpop.f32.mrb[94].mxu0  ;;  %v21007_v2 = vadd.f32 %v16804_v57, %v16803_v56  ;;  %v19302_v56 = vld [vmem:[%s24630_s24 + $0x60] sm:$0xff]   ;;  %v19324_v57 = vld [vmem:[%s24629_s23 + $0x3d0] ss:$8 sps:$4 sm:$0xff]  }
 0x2cb   : > { %17165 = vmatprep.subr.bf16.mxu0 %v20378_v27  ;;  %v16807_v6 = vpop.f32.mrb[95].mxu0 }
 0x2cd   : > { %16730 = vmatpush3.bf16.msra.mxu1 %v20370_v3  ;;  %3800 = vmatmul.mubr.bf16.vlgmr.msra.gmra.mrb[144].mxu0 %v19247_v11  ;;  %v19277_v11 = vld [vmem:[%s24629_s23 + $0x2e0] ss:$8 sps:$4 sm:$0xff]  }
 0x2ce   : > { %16731 = vmatprep.subr.bf16.mxu1 %v20434_v53  ;;  %17166 = vmatpush3.bf16.msra.mxu0 %v20346_v63 }
 0x2cf   : > { %17167 = vmatprep.subr.bf16.mxu0 %v20386_v39  ;;  %3807 = vmatprep.mubr.bf16.mxu0 %v19256_v12  ;;  %v21012_v12 = vadd.f32 %v16807_v6, %v16806_v58  ;;  %v19327_v58 = vld [vmem:[%s24629_s23 + $0x404] ss:$8 sps:$4 sm:$0xff]   ;;  %v19325_v6 = vld [vmem:[%s24629_s23 + $0x400] ss:$8 sps:$4 sm:$0xff]  }
 0x2d1   : > { %16732 = vmatpush3.bf16.msra.mxu1 %v20374_v15 }
 0x2d2   : > { %17168 = vmatpush3.bf16.msra.mxu0 %v20350_v10  ;;  %18030 = vmatprep.subr.bf16.mxu1 %v19298_v44 }
 0x2d3   : > { %17169 = vmatprep.subr.bf16.mxu0 %v20394_v52 }
 0x2d4   : > { %1850 = vmatmul.mubr.bf16.vlgmr.msra.gmra.mrb[20].mxu1 %v19250_v13  ;;  %v19280_v13 = vld [vmem:[%s24629_s23 + $0x2f4] ss:$8 sps:$4 sm:$0xff]  }
 0x2d5   : > { %1857 = vmatprep.mubr.bf16.mxu1 %v19253_v16  ;;  %3808 = vmatmul.mubr.bf16.gmra.mrb[148].mxu0 %v19258_v17  ;;  %v2167_v16 = vpack.c.bf16 %v21012_v12, %v21007_v2  ;;  %v19282_v17 = vld [vmem:[%s24629_s23 + $0x2f0] ss:$8 sps:$4 sm:$0xff]  }
 0x2d6   : > { %17170 = vmatpush3.bf16.msra.mxu0 %v20354_v21  ;;  %3949 = vmatprep.mubr.bf16.mxu0 %v19261_v18  ;;  %v19285_v18 = vld [vmem:[%s24629_s23 + $0x304] ss:$8 sps:$4 sm:$0xff]   ;;  %v19321_v2 = vld [vmem:[%s24629_s23 + $0xf0] ss:$8 sps:$4 sm:$0xff]  }
 0x2d7   : > { %17171 = vmatprep.subr.bf16.mxu0 %v20402_v1  ;;  %18031 = vmatpush3.bf16.msra.mxu1 %v19298_v44  ;;  %v19330_v12 = vld [vmem:[%s24629_s23 + $0x410] ss:$8 sps:$4 sm:$0xff]  }
 0x2d8   : > { %18032 = vmatprep.subr.bf16.mxu1 %v19299_v49 }
 0x2da   : > { %17172 = vmatpush3.bf16.msra.mxu0 %v20358_v32 }
 0x2db   : > { %17173 = vmatprep.subr.bf16.mxu0 %v20410_v14  ;;  %18033 = vmatpush3.bf16.msra.mxu1 %v19299_v49 }
 0x2dc   : > { %1858 = vmatmul.mubr.bf16.gmra.mrb[24].mxu1 %v19255_v19  ;;  %18038 = vmatprep.subr.bf16.mxu1 %v20984_v61  ;;  %v19283_v19 = vld [vmem:[%s24629_s23 + $0x300] ss:$8 sps:$4 sm:$0xff]  }
 0x2de   : > { %17174 = vmatpush3.bf16.msra.mxu0 %v20362_v43 }
 0x2df   : > { %17175 = vmatprep.subr.bf16.mxu0 %v20418_v28 }
 0x2e2   : > { %17176 = vmatpush3.bf16.msra.mxu0 %v20366_v55 }
 0x2e3   : > { %17177 = vmatprep.subr.bf16.mxu0 %v20428_v42 }
 0x2e6   : > { %17178 = vmatpush3.bf16.msra.mxu0 %v20370_v3 }
 0x2e7   : > { %17179 = vmatprep.subr.bf16.mxu0 %v20434_v53 }
 0x2ea   : > { %17180 = vmatpush3.bf16.msra.mxu0 %v20374_v15 }
 0x2eb   : > { %17229 = vmatprep.subr.bf16.mxu0 %v20378_v27 }
 0x2ed   : > { %3950 = vmatmul.mubr.bf16.vlgmr.msra.gmra.mrb[152].mxu0 %v19259_v20  ;;  %v19286_v20 = vld [vmem:[%s24629_s23 + $0x314] ss:$8 sps:$4 sm:$0xff]  }
 0x2ee   : > { %17230 = vmatpush3.bf16.msra.mxu0 %v20346_v63  ;;  %3957 = vmatprep.mubr.bf16.mxu0 %v19262_v22  ;;  %v19288_v22 = vld [vmem:[%s24629_s23 + $0x310] ss:$8 sps:$4 sm:$0xff]  }
 0x2ef   : > { %17231 = vmatprep.subr.bf16.mxu0 %v20386_v39 }
 0x2f2   : > { %17232 = vmatpush3.bf16.msra.mxu0 %v20350_v10 }
 0x2f3   : > { %17233 = vmatprep.subr.bf16.mxu0 %v20394_v52 }
 0x2f5   : > { %3958 = vmatmul.mubr.bf16.gmra.mrb[156].mxu0 %v19264_v23  ;;  %v19291_v23 = vld [vmem:[%s24629_s23 + $0x344] ss:$8 sps:$4 sm:$0xff]  }
 0x2f6   : > { %17234 = vmatpush3.bf16.msra.mxu0 %v20354_v21  ;;  %4249 = vmatprep.mubr.bf16.mxu0 %v19267_v24  ;;  %v19289_v24 = vld [vmem:[%s24629_s23 + $0x340] ss:$8 sps:$4 sm:$0xff]  }
 0x2f7   : > { %17235 = vmatprep.subr.bf16.mxu0 %v20402_v1 }
 0x2fa   : > { %17236 = vmatpush3.bf16.msra.mxu0 %v20358_v32 }
 0x2fb   : > { %17237 = vmatprep.subr.bf16.mxu0 %v20410_v14 }
 0x2fe   : > { %17238 = vmatpush3.bf16.msra.mxu0 %v20362_v43 }
 0x2ff   : > { %17239 = vmatprep.subr.bf16.mxu0 %v20418_v28 }
 0x302   : > { %17240 = vmatpush3.bf16.msra.mxu0 %v20366_v55 }
 0x303   : > { %17241 = vmatprep.subr.bf16.mxu0 %v20428_v42 }
 0x306   : > { %17242 = vmatpush3.bf16.msra.mxu0 %v20370_v3 }
 0x307   : > { %17243 = vmatprep.subr.bf16.mxu0 %v20434_v53 }
 0x30a   : > { %17244 = vmatpush3.bf16.msra.mxu0 %v20374_v15 }
 0x30b   : > { %17261 = vmatprep.subr.bf16.mxu0 %v20378_v27 }
 0x30d   : > { %4250 = vmatmul.mubr.bf16.vlgmr.msra.gmra.mrb[160].mxu0 %v19265_v25  ;;  %v19292_v25 = vld [vmem:[%s24629_s23 + $0x354] ss:$8 sps:$4 sm:$0xff]  }
 0x30e   : > { %17262 = vmatpush3.bf16.msra.mxu0 %v20346_v63  ;;  %4257 = vmatprep.mubr.bf16.mxu0 %v19268_v26  ;;  %v19294_v26 = vld [vmem:[%s24629_s23 + $0x350] ss:$8 sps:$4 sm:$0xff]  }
 0x30f   : > { %17263 = vmatprep.subr.bf16.mxu0 %v20386_v39 }
 0x312   : > { %17264 = vmatpush3.bf16.msra.mxu0 %v20350_v10 }
 0x313   : > { %17265 = vmatprep.subr.bf16.mxu0 %v20394_v52 }
 0x315   : > { %4258 = vmatmul.mubr.bf16.gmra.mrb[164].mxu0 %v19270_v30  ;;  %v19297_v30 = vld [vmem:[%s24629_s23 + $0x364] ss:$8 sps:$4 sm:$0xff]  }
 0x316   : > { %17266 = vmatpush3.bf16.msra.mxu0 %v20354_v21  ;;  %4399 = vmatprep.mubr.bf16.mxu0 %v19273_v31 }
 0x317   : > { %17267 = vmatprep.subr.bf16.mxu0 %v20402_v1 }
 0x31a   : > { %17268 = vmatpush3.bf16.msra.mxu0 %v20358_v32 }
 0x31b   : > { %17269 = vmatprep.subr.bf16.mxu0 %v20410_v14 }
 0x31e   : > { %17270 = vmatpush3.bf16.msra.mxu0 %v20362_v43 }
 0x31f   : > { %17271 = vmatprep.subr.bf16.mxu0 %v20418_v28 }
 0x322   : > { %17272 = vmatpush3.bf16.msra.mxu0 %v20366_v55 }
 0x323   : > { %17273 = vmatprep.subr.bf16.mxu0 %v20428_v42 }
 0x326   : > { %17274 = vmatpush3.bf16.msra.mxu0 %v20370_v3 }
 0x327   : > { %17275 = vmatprep.subr.bf16.mxu0 %v20434_v53 }
 0x32a   : > { %17276 = vmatpush3.bf16.msra.mxu0 %v20374_v15 }
 0x32b   : > { %17325 = vmatprep.subr.bf16.mxu0 %v20378_v27 }
 0x32d   : > { %4400 = vmatmul.mubr.bf16.vlgmr.msra.gmra.mrb[168].mxu0 %v19271_v41 }
 0x32e   : > { %17326 = vmatpush3.bf16.msra.mxu0 %v20346_v63  ;;  %4407 = vmatprep.mubr.bf16.mxu0 %v19274_v48  ;;  %v19304_v48 = vld [vmem:[%s24629_s23 + $0x374] ss:$8 sps:$4 sm:$0xff]  }
 0x32f   : > { %17327 = vmatprep.subr.bf16.mxu0 %v20386_v39 }
 0x332   : > { %17328 = vmatpush3.bf16.msra.mxu0 %v20350_v10 }
 0x333   : > { %17329 = vmatprep.subr.bf16.mxu0 %v20394_v52 }
 0x335   : > { %4408 = vmatmul.mubr.bf16.gmra.mrb[172].mxu0 %v19276_v46 }
 0x336   : > { %17330 = vmatpush3.bf16.msra.mxu0 %v20354_v21  ;;  %4699 = vmatprep.mubr.bf16.mxu0 %v19279_v50 }
 0x337   : > { %17331 = vmatprep.subr.bf16.mxu0 %v20402_v1 }
 0x33a   : > { %17332 = vmatpush3.bf16.msra.mxu0 %v20358_v32 }
 0x33b   : > { %17333 = vmatprep.subr.bf16.mxu0 %v20410_v14 }
 0x33e   : > { %17334 = vmatpush3.bf16.msra.mxu0 %v20362_v43 }
 0x33f   : > { %17335 = vmatprep.subr.bf16.mxu0 %v20418_v28 }
 0x342   : > { %17336 = vmatpush3.bf16.msra.mxu0 %v20366_v55 }
 0x343   : > { %17337 = vmatprep.subr.bf16.mxu0 %v20428_v42 }
 0x346   : > { %17338 = vmatpush3.bf16.msra.mxu0 %v20370_v3 }
 0x347   : > { %17339 = vmatprep.subr.bf16.mxu0 %v20434_v53 }
 0x34a   : > { %17340 = vmatpush3.bf16.msra.mxu0 %v20374_v15 }
 0x34b   : > { %17357 = vmatprep.subr.bf16.mxu0 %v20378_v27 }
 0x34d   : > { %4700 = vmatmul.mubr.bf16.vlgmr.msra.gmra.mrb[176].mxu0 %v19277_v11  ;;  %v19328_v11 = vld [vmem:[%s24629_s23 + $0x414] ss:$8 sps:$4 sm:$0xff]  }
 0x34e   : > { %17358 = vmatpush3.bf16.msra.mxu0 %v20346_v63  ;;  %4707 = vmatprep.mubr.bf16.mxu0 %v19280_v13  ;;  %v19333_v13 = vld [vmem:[%s24629_s23 + $0x424] ss:$8 sps:$4 sm:$0xff]  }
 0x34f   : > { %17359 = vmatprep.subr.bf16.mxu0 %v20386_v39 }
 0x352   : > { %17360 = vmatpush3.bf16.msra.mxu0 %v20350_v10 }
 0x353   : > { %17361 = vmatprep.subr.bf16.mxu0 %v20394_v52 }
 0x355   : > { %4708 = vmatmul.mubr.bf16.gmra.mrb[180].mxu0 %v19282_v17  ;;  %v16861_v17 = vpop.f32.mrb[96].mxu0 }
 0x356   : > { %17362 = vmatpush3.bf16.msra.mxu0 %v20354_v21  ;;  %4849 = vmatprep.mubr.bf16.mxu0 %v19285_v18  ;;  %v16862_v18 = vpop.f32.mrb[97].mxu0 }
 0x357   : > { %17363 = vmatprep.subr.bf16.mxu0 %v20402_v1 }
 0x35a   : > { %17364 = vmatpush3.bf16.msra.mxu0 %v20358_v32 }
 0x35b   : > { %17365 = vmatprep.subr.bf16.mxu0 %v20410_v14 }
 0x35e   : > { %17366 = vmatpush3.bf16.msra.mxu0 %v20362_v43 }
 0x35f   : > { %17367 = vmatprep.subr.bf16.mxu0 %v20418_v28 }
 0x362   : > { %17368 = vmatpush3.bf16.msra.mxu0 %v20366_v55 }
 0x363   : > { %17369 = vmatprep.subr.bf16.mxu0 %v20428_v42 }
 0x366   : > { %17370 = vmatpush3.bf16.msra.mxu0 %v20370_v3 }
 0x367   : > { %17371 = vmatprep.subr.bf16.mxu0 %v20434_v53 }
 0x36a   : > { %17372 = vmatpush3.bf16.msra.mxu0 %v20374_v15 }
 0x36b   : > { %17421 = vmatprep.subr.bf16.mxu0 %v20378_v27 }
 0x36d   : > { %4850 = vmatmul.mubr.bf16.vlgmr.msra.gmra.mrb[184].mxu0 %v19283_v19  ;;  %v16864_v19 = vpop.f32.mrb[98].mxu0 }
 0x36e   : > { %17422 = vmatpush3.bf16.msra.mxu0 %v20346_v63  ;;  %4857 = vmatprep.mubr.bf16.mxu0 %v19286_v20  ;;  %v16865_v20 = vpop.f32.mrb[99].mxu0 }
 0x36f   : > { %17423 = vmatprep.subr.bf16.mxu0 %v20386_v39 }
 0x372   : > { %17424 = vmatpush3.bf16.msra.mxu0 %v20350_v10 }
 0x373   : > { %17425 = vmatprep.subr.bf16.mxu0 %v20394_v52 }
 0x375   : > { %4858 = vmatmul.mubr.bf16.gmra.mrb[188].mxu0 %v19288_v22  ;;  %v16863_v22 = vadd.f32 %v16862_v18, %v16861_v17  ;;  %v19342_v17 = vld [vmem:[%s24629_s23 + $0x144] ss:$8 sps:$4 sm:$0xff]   ;;  %v19340_v18 = vld [vmem:[%s24629_s23 + $0x140] ss:$8 sps:$4 sm:$0xff]  }
 0x376   : > { %17426 = vmatpush3.bf16.msra.mxu0 %v20354_v21  ;;  %5149 = vmatprep.mubr.bf16.mxu0 %v19291_v23  ;;  %v16866_v23 = vadd.f32 %v16865_v20, %v16864_v19  ;;  %v19343_v19 = vld [vmem:[%s24629_s23 + $0x154] ss:$8 sps:$4 sm:$0xff]   ;;  %v19345_v20 = vld [vmem:[%s24629_s23 + $0x150] ss:$8 sps:$4 sm:$0xff]  }
 0x377   : > { %17427 = vmatprep.subr.bf16.mxu0 %v20402_v1 }
 0x37a   : > { %17428 = vmatpush3.bf16.msra.mxu0 %v20358_v32 }
 0x37b   : > { %17429 = vmatprep.subr.bf16.mxu0 %v20410_v14 }
 0x37e   : > { %17430 = vmatpush3.bf16.msra.mxu0 %v20362_v43 }
 0x37f   : > { %17431 = vmatprep.subr.bf16.mxu0 %v20418_v28 }
 0x382   : > { %17432 = vmatpush3.bf16.msra.mxu0 %v20366_v55 }
 0x383   : > { %17433 = vmatprep.subr.bf16.mxu0 %v20428_v42 }
 0x386   : > { %17434 = vmatpush3.bf16.msra.mxu0 %v20370_v3 }
 0x387   : > { %17435 = vmatprep.subr.bf16.mxu0 %v20434_v53 }
 0x38a   : > { %17436 = vmatpush3.bf16.msra.mxu0 %v20374_v15 }
 0x38b   : > { %17453 = vmatprep.subr.bf16.mxu0 %v20378_v27 }
 0x38d   : > { %5150 = vmatmul.mubr.bf16.vlgmr.msra.gmra.mrb[192].mxu0 %v19289_v24  ;;  %v2466_v24 = vpack.c.bf16 %v16866_v23, %v16863_v22 }
 0x38e   : > { %17454 = vmatpush3.bf16.msra.mxu0 %v20346_v63  ;;  %5157 = vmatprep.mubr.bf16.mxu0 %v19292_v25  ;;  %v19334_v25 = vld [vmem:[%s24630_s24 + $0x70] sm:$0xff]  }
 0x38f   : > { %17455 = vmatprep.subr.bf16.mxu0 %v20386_v39 }
 0x392   : > { %17456 = vmatpush3.bf16.msra.mxu0 %v20350_v10 }
 0x393   : > { %17457 = vmatprep.subr.bf16.mxu0 %v20394_v52 }
 0x395   : > { %5158 = vmatmul.mubr.bf16.gmra.mrb[196].mxu0 %v19294_v26  ;;  %v19335_v26 = vld [vmem:[%s24630_s24 + $0x78] sm:$0xff]  }
 0x396   : > { %17458 = vmatpush3.bf16.msra.mxu0 %v20354_v21  ;;  %5299 = vmatprep.mubr.bf16.mxu0 %v19297_v30  ;;  %v16867_v30 = vpop.f32.mrb[100].mxu0 }
 0x397   : > { %17459 = vmatprep.subr.bf16.mxu0 %v20402_v1 }
 0x39a   : > { %17460 = vmatpush3.bf16.msra.mxu0 %v20358_v32 }
 0x39b   : > { %17461 = vmatprep.subr.bf16.mxu0 %v20410_v14 }
 0x39e   : > { %17462 = vmatpush3.bf16.msra.mxu0 %v20362_v43 }
 0x39f   : > { %17463 = vmatprep.subr.bf16.mxu0 %v20418_v28 }
 0x3a2   : > { %17464 = vmatpush3.bf16.msra.mxu0 %v20366_v55 }
 0x3a3   : > { %17465 = vmatprep.subr.bf16.mxu0 %v20428_v42 }
 0x3a6   : > { %17466 = vmatpush3.bf16.msra.mxu0 %v20370_v3 }
 0x3a7   : > { %17467 = vmatprep.subr.bf16.mxu0 %v20434_v53  ;;  %v16733_v31 = vpop.f32.mrb[20].mxu1 }
 0x3a8   : > { %v16734_v33 = vpop.f32.mrb[21].mxu1 }
 0x3a9   : > { %v16735_v34 = vadd.f32 %v16734_v33, %v16733_v31  ;;  %v16736_v35 = vpop.f32.mrb[22].mxu1  ;;  %v16868_v31 = vpop.f32.mrb[101].mxu0 }
 0x3aa   : > { %17468 = vmatpush3.bf16.msra.mxu0 %v20374_v15  ;;  %v16737_v41 = vpop.f32.mrb[23].mxu1  ;;  %v16870_v33 = vpop.f32.mrb[102].mxu0 }
 0x3ab   : > { %17517 = vmatprep.subr.bf16.mxu0 %v20378_v27  ;;  %v16738_v44 = vadd.f32 %v16737_v41, %v16736_v35  ;;  %v16871_v35 = vpop.f32.mrb[103].mxu0 }
 0x3ac   : > { %v16872_v41 = vadd.f32 %v16871_v35, %v16870_v33  ;;  %v19346_v33 = vld [vmem:[%s24630_s24 + $0xa0] sm:$0xff]  }
 0x3ad   : > { %v1866_v46 = vpack.c.bf16 %v16738_v44, %v16735_v34  ;;  %5300 = vmatmul.mubr.bf16.vlgmr.msra.gmra.mrb[200].mxu0 %v19295_v36  ;;  %v19336_v34 = vld [vmem:[%s24630_s24 + $0x80] sm:$0xff]   ;;  %v16869_v36 = vadd.f32 %v16868_v31, %v16867_v30  ;;  %v16893_v44 = vpop.f32.mrb[104].mxu0 }
 0x3ae   : > { %17518 = vmatpush3.bf16.msra.mxu0 %v20346_v63  ;;  %5307 = vmatprep.mubr.bf16.mxu0 %v19304_v48 }
 0x3af   : > { %v16739_v49 = vpop.f32.mrb[24].mxu1  ;;  %17519 = vmatprep.subr.bf16.mxu0 %v20386_v39  ;;  %18034 = vmatprep.mubr.msk.bf16.mxu1 %vm1370_vm0, %v1866_v46  ;;  %v2467_v48 = vpack.c.bf16 %v16872_v41, %v16869_v36  ;;  %v16894_v46 = vpop.f32.mrb[105].mxu0 }
 0x3b0   : > { %v16740_v50 = vpop.f32.mrb[25].mxu1 }
 0x3b1   : > { %v16741_v51 = vadd.f32 %v16740_v50, %v16739_v49  ;;  %v16742_v59 = vpop.f32.mrb[26].mxu1  ;;  %v16896_v49 = vpop.f32.mrb[106].mxu0 }
 0x3b2   : > { %v16743_v62 = vpop.f32.mrb[27].mxu1  ;;  %17520 = vmatpush3.bf16.msra.mxu0 %v20350_v10  ;;  %v16897_v50 = vpop.f32.mrb[107].mxu0 }
 0x3b3   : > { %v16744_v8 = vadd.f32 %v16743_v62, %v16742_v59  ;;  %17521 = vmatprep.subr.bf16.mxu0 %v20394_v52  ;;  %v16898_v59 = vadd.f32 %v16897_v50, %v16896_v49  ;;  %v16899_v62 = vpop.f32.mrb[108].mxu0 }
 0x3b5   : > { %v1867_v9 = vpack.c.bf16 %v16744_v8, %v16741_v51  ;;  %5308 = vmatmul.mubr.bf16.gmra.mrb[204].mxu0 %v19306_v60  ;;  %v16895_v51 = vadd.f32 %v16894_v46, %v16893_v44 }
 0x3b6   : > { %17522 = vmatpush3.bf16.msra.mxu0 %v20354_v21  ;;  %5599 = vmatprep.mubr.bf16.mxu0 %v19309_v7  ;;  %v16900_v7 = vpop.f32.mrb[109].mxu0 }
 0x3b7   : > { %18035 = vmatmul.mubr.msk.bf16.vlgmr.msra.gmra.mrb[16].mxu1 %vm1370_vm0, %v1867_v9  ;;  %17523 = vmatprep.subr.bf16.mxu0 %v20402_v1  ;;  %v2616_v60 = vpack.c.bf16 %v16898_v59, %v16895_v51  ;;  %v16902_v8 = vpop.f32.mrb[110].mxu0  ;;  %v16901_v9 = vadd.f32 %v16900_v7, %v16899_v62 }
 0x3b8   : > { %18039 = vmatpush3.bf16.msra.mxu1 %v20984_v61  ;;  %18042 = vmatprep.mubr.msk.bf16.mxu1 %vm1370_vm0, %v2016_v40  ;;  %v19310_v40 = vld [vmem:[%s24629_s23 + $0x3b4] ss:$8 sps:$4 sm:$0xff]   ;;  %v19315_v61 = vld [vmem:[%s24629_s23 + $0xe4] ss:$8 sps:$4 sm:$0xff]  }
 0x3b9   : > { %18040 = vmatprep.subr.bf16.mxu1 %v19301_v45 }
 0x3ba   : > { %17524 = vmatpush3.bf16.msra.mxu0 %v20358_v32 }
 0x3bb   : > { %17525 = vmatprep.subr.bf16.mxu0 %v20410_v14 }
 0x3bc   : > { %18041 = vmatpush3.bf16.msra.mxu1 %v19301_v45  ;;  %v16903_v45 = vpop.f32.mrb[111].mxu0 }
 0x3bd   : > { %18046 = vmatprep.subr.bf16.mxu1 %v19302_v56  ;;  %v16957_v22 = vpop.f32.mrb[112].mxu0 }
 0x3be   : > { %17526 = vmatpush3.bf16.msra.mxu0 %v20362_v43  ;;  %v16958_v23 = vpop.f32.mrb[113].mxu0 }
 0x3bf   : > { %17527 = vmatprep.subr.bf16.mxu0 %v20418_v28 }
 0x3c2   : > { %17528 = vmatpush3.bf16.msra.mxu0 %v20366_v55 }
 0x3c3   : > { %18043 = vmatmul.mubr.msk.bf16.vlgmr.msra.gmra.mrb[16].mxu1 %vm1370_vm0, %v2017_v5  ;;  %17529 = vmatprep.subr.bf16.mxu0 %v20428_v42  ;;  %v19316_v5 = vld [vmem:[%s24629_s23 + $0x3c0] ss:$8 sps:$4 sm:$0xff]  }
 0x3c4   : > { %18047 = vmatpush3.bf16.msra.mxu1 %v19302_v56  ;;  %18050 = vmatprep.mubr.msk.bf16.mxu1 %vm1370_vm0, %v2166_v47  ;;  %v19319_v47 = vld [vmem:[%s24629_s23 + $0xf4] ss:$8 sps:$4 sm:$0xff]   ;;  %v16904_v56 = vadd.f32 %v16903_v45, %v16902_v8 }
 0x3c5   : > { %18048 = vmatprep.subr.bf16.mxu1 %v19303_v37 }
 0x3c6   : > { %17530 = vmatpush3.bf16.msra.mxu0 %v20370_v3 }
 0x3c7   : > { %17531 = vmatprep.subr.bf16.mxu0 %v20434_v53 }
 0x3c8   : > { %18049 = vmatpush3.bf16.msra.mxu1 %v19303_v37  ;;  %v2617_v37 = vpack.c.bf16 %v16904_v56, %v16901_v9 }
 0x3c9   : > { %16813 = vmatprep.subr.bf16.mxu1 %v20378_v27 }
 0x3ca   : > { %17532 = vmatpush3.bf16.msra.mxu0 %v20374_v15 }
 0x3cb   : > { %17549 = vmatprep.subr.bf16.mxu0 %v20378_v27 }
 0x3cd   : > { %5600 = vmatmul.mubr.bf16.vlgmr.msra.gmra.mrb[208].mxu0 %v19307_v38 }
 0x3ce   : > { %17550 = vmatpush3.bf16.msra.mxu0 %v20346_v63  ;;  %5607 = vmatprep.mubr.bf16.mxu0 %v19310_v40 }
 0x3cf   : > { %18051 = vmatmul.mubr.msk.bf16.vlgmr.msra.gmra.mrb[16].mxu1 %vm1370_vm0, %v2167_v16  ;;  %17551 = vmatprep.subr.bf16.mxu0 %v20386_v39  ;;  %v19331_v16 = vld [vmem:[%s24629_s23 + $0x420] ss:$8 sps:$4 sm:$0xff]  }
 0x3d0   : > { %16814 = vmatpush3.bf16.msra.mxu1 %v20346_v63  ;;  %2299 = vmatprep.mubr.bf16.mxu1 %v19315_v61 }
 0x3d1   : > { %16815 = vmatprep.subr.bf16.mxu1 %v20386_v39 }
 0x3d2   : > { %17552 = vmatpush3.bf16.msra.mxu0 %v20350_v10 }
 0x3d3   : > { %17553 = vmatprep.subr.bf16.mxu0 %v20394_v52 }
 0x3d4   : > { %16816 = vmatpush3.bf16.msra.mxu1 %v20350_v10 }
 0x3d5   : > { %16817 = vmatprep.subr.bf16.mxu1 %v20394_v52  ;;  %5608 = vmatmul.mubr.bf16.gmra.mrb[212].mxu0 %v19312_v0 }
 0x3d6   : > { %17554 = vmatpush3.bf16.msra.mxu0 %v20354_v21  ;;  %5749 = vmatprep.mubr.bf16.mxu0 %v19318_v4 }
 0x3d7   : > { %17555 = vmatprep.subr.bf16.mxu0 %v20402_v1 }
 0x3d8   : > { %16818 = vmatpush3.bf16.msra.mxu1 %v20354_v21 }
 0x3d9   : > { %16819 = vmatprep.subr.bf16.mxu1 %v20402_v1 }
 0x3da   : > { %17556 = vmatpush3.bf16.msra.mxu0 %v20358_v32 }
 0x3db   : > { %17557 = vmatprep.subr.bf16.mxu0 %v20410_v14 }
 0x3dc   : > { %16820 = vmatpush3.bf16.msra.mxu1 %v20358_v32 }
 0x3dd   : > { %16821 = vmatprep.subr.bf16.mxu1 %v20410_v14 }
 0x3de   : > { %17558 = vmatpush3.bf16.msra.mxu0 %v20362_v43 }
 0x3df   : > { %17559 = vmatprep.subr.bf16.mxu0 %v20418_v28 }
 0x3e0   : > { %16822 = vmatpush3.bf16.msra.mxu1 %v20362_v43 }
 0x3e1   : > { %16823 = vmatprep.subr.bf16.mxu1 %v20418_v28 }
 0x3e2   : > { %17560 = vmatpush3.bf16.msra.mxu0 %v20366_v55 }
 0x3e3   : > { %17561 = vmatprep.subr.bf16.mxu0 %v20428_v42 }
 0x3e4   : > { %16824 = vmatpush3.bf16.msra.mxu1 %v20366_v55 }
 0x3e5   : > { %16825 = vmatprep.subr.bf16.mxu1 %v20428_v42 }
 0x3e6   : > { %17562 = vmatpush3.bf16.msra.mxu0 %v20370_v3 }
 0x3e7   : > { %17563 = vmatprep.subr.bf16.mxu0 %v20434_v53 }
 0x3e8   : > { %16826 = vmatpush3.bf16.msra.mxu1 %v20370_v3 }
 0x3e9   : > { %16827 = vmatprep.subr.bf16.mxu1 %v20434_v53 }
 0x3ea   : > { %17564 = vmatpush3.bf16.msra.mxu0 %v20374_v15 }
 0x3eb   : > { %17613 = vmatprep.subr.bf16.mxu0 %v20378_v27 }
 0x3ec   : > { %16828 = vmatpush3.bf16.msra.mxu1 %v20374_v15 }
 0x3ed   : > { %5750 = vmatmul.mubr.bf16.vlgmr.msra.gmra.mrb[216].mxu0 %v19316_v5  ;;  %18054 = vmatprep.subr.bf16.mxu1 %v19334_v25 }
 0x3ee   : > { %17614 = vmatpush3.bf16.msra.mxu0 %v20346_v63  ;;  %5757 = vmatprep.mubr.bf16.mxu0 %v19322_v29 }
 0x3ef   : > { %2300 = vmatmul.mubr.bf16.vlgmr.msra.gmra.mrb[28].mxu1 %v19313_v54  ;;  %17615 = vmatprep.subr.bf16.mxu0 %v20386_v39 }
 0x3f0   : > { %2307 = vmatprep.mubr.bf16.mxu1 %v19319_v47  ;;  %18055 = vmatpush3.bf16.msra.mxu1 %v19334_v25 }
 0x3f1   : > { %18056 = vmatprep.subr.bf16.mxu1 %v19335_v26 }
 0x3f2   : > { %17616 = vmatpush3.bf16.msra.mxu0 %v20350_v10 }
 0x3f3   : > { %17617 = vmatprep.subr.bf16.mxu0 %v20394_v52 }
 0x3f4   : > { %18057 = vmatpush3.bf16.msra.mxu1 %v19335_v26  ;;  %v16959_v26 = vadd.f32 %v16958_v23, %v16957_v22  ;;  %v19354_v22 = vld [vmem:[%s24629_s23 + $0x1a4] ss:$8 sps:$4 sm:$0xff]   ;;  %v19352_v23 = vld [vmem:[%s24629_s23 + $0x1a0] ss:$8 sps:$4 sm:$0xff]  }
 0x3f5   : > { %5758 = vmatmul.mubr.bf16.gmra.mrb[220].mxu0 %v19324_v57  ;;  %18062 = vmatprep.subr.bf16.mxu1 %v19336_v34 }
 0x3f6   : > { %17618 = vmatpush3.bf16.msra.mxu0 %v20354_v21  ;;  %6049 = vmatprep.mubr.bf16.mxu0 %v19327_v58 }
 0x3f7   : > { %2308 = vmatmul.mubr.bf16.gmra.mrb[32].mxu1 %v19321_v2  ;;  %17619 = vmatprep.subr.bf16.mxu0 %v20402_v1 }
 0x3fa   : > { %17620 = vmatpush3.bf16.msra.mxu0 %v20358_v32 }
 0x3fb   : > { %17621 = vmatprep.subr.bf16.mxu0 %v20410_v14 }
 0x3fe   : > { %17622 = vmatpush3.bf16.msra.mxu0 %v20362_v43 }
 0x3ff   : > { %17623 = vmatprep.subr.bf16.mxu0 %v20418_v28 }
 0x402   : > { %17624 = vmatpush3.bf16.msra.mxu0 %v20366_v55 }
 0x403   : > { %17625 = vmatprep.subr.bf16.mxu0 %v20428_v42 }
 0x406   : > { %17626 = vmatpush3.bf16.msra.mxu0 %v20370_v3 }
 0x407   : > { %17627 = vmatprep.subr.bf16.mxu0 %v20434_v53 }
 0x40a   : > { %17628 = vmatpush3.bf16.msra.mxu0 %v20374_v15 }
 0x40b   : > { %17645 = vmatprep.subr.bf16.mxu0 %v20378_v27 }
 0x40d   : > { %6050 = vmatmul.mubr.bf16.vlgmr.msra.gmra.mrb[224].mxu0 %v19325_v6 }
 0x40e   : > { %17646 = vmatpush3.bf16.msra.mxu0 %v20346_v63  ;;  %6057 = vmatprep.mubr.bf16.mxu0 %v19328_v11 }
 0x40f   : > { %17647 = vmatprep.subr.bf16.mxu0 %v20386_v39 }
 0x412   : > { %17648 = vmatpush3.bf16.msra.mxu0 %v20350_v10 }
 0x413   : > { %17649 = vmatprep.subr.bf16.mxu0 %v20394_v52 }
 0x415   : > { %6058 = vmatmul.mubr.bf16.gmra.mrb[228].mxu0 %v19330_v12  ;;  %v19337_v12 = vld [vmem:[%s24630_s24 + $0x88] sm:$0xff]  }
 0x416   : > { %17650 = vmatpush3.bf16.msra.mxu0 %v20354_v21  ;;  %6199 = vmatprep.mubr.bf16.mxu0 %v19333_v13  ;;  %v19338_v13 = vld [vmem:[%s24630_s24 + $0x90] sm:$0xff]  }
 0x417   : > { %17651 = vmatprep.subr.bf16.mxu0 %v20402_v1 }
 0x41a   : > { %17652 = vmatpush3.bf16.msra.mxu0 %v20358_v32 }
 0x41b   : > { %17653 = vmatprep.subr.bf16.mxu0 %v20410_v14 }
 0x41e   : > { %17654 = vmatpush3.bf16.msra.mxu0 %v20362_v43 }
 0x41f   : > { %17655 = vmatprep.subr.bf16.mxu0 %v20418_v28 }
 0x422   : > { %17656 = vmatpush3.bf16.msra.mxu0 %v20366_v55 }
 0x423   : > { %17657 = vmatprep.subr.bf16.mxu0 %v20428_v42 }
 0x426   : > { %17658 = vmatpush3.bf16.msra.mxu0 %v20370_v3 }
 0x427   : > { %17659 = vmatprep.subr.bf16.mxu0 %v20434_v53 }
 0x42a   : > { %17660 = vmatpush3.bf16.msra.mxu0 %v20374_v15 }
 0x42b   : > { %17709 = vmatprep.subr.bf16.mxu0 %v20378_v27 }
 0x42d   : > { %6200 = vmatmul.mubr.bf16.vlgmr.msra.gmra.mrb[232].mxu0 %v19331_v16  ;;  %v19339_v16 = vld [vmem:[%s24630_s24 + $0x98] sm:$0xff]  }
 0x42e   : > { %17710 = vmatpush3.bf16.msra.mxu0 %v20346_v63 }
 0x42f   : > { %17711 = vmatprep.subr.bf16.mxu0 %v20386_v39 }
 0x432   : > { %17712 = vmatpush3.bf16.msra.mxu0 %v20350_v10 }
 0x433   : > { %17713 = vmatprep.subr.bf16.mxu0 %v20394_v52 }
 0x436   : > { %17714 = vmatpush3.bf16.msra.mxu0 %v20354_v21 }
 0x437   : > { %17715 = vmatprep.subr.bf16.mxu0 %v20402_v1 }
 0x43a   : > { %17716 = vmatpush3.bf16.msra.mxu0 %v20358_v32 }
 0x43b   : > { %17717 = vmatprep.subr.bf16.mxu0 %v20410_v14 }
 0x43e   : > { %17718 = vmatpush3.bf16.msra.mxu0 %v20362_v43 }
 0x43f   : > { %17719 = vmatprep.subr.bf16.mxu0 %v20418_v28 }
 0x442   : > { %17720 = vmatpush3.bf16.msra.mxu0 %v20366_v55 }
 0x443   : > { %17721 = vmatprep.subr.bf16.mxu0 %v20428_v42 }
 0x446   : > { %17722 = vmatpush3.bf16.msra.mxu0 %v20370_v3 }
 0x447   : > { %17723 = vmatprep.subr.bf16.mxu0 %v20434_v53 }
 0x44a   : > { %17724 = vmatpush3.bf16.msra.mxu0 %v20374_v15 }
 0x4c2   : > { %v16829_v38 = vpop.f32.mrb[28].mxu1 }
 0x4c3   : > { %v16830_v40 = vpop.f32.mrb[29].mxu1 }
 0x4c4   : > { %v16831_v61 = vadd.f32 %v16830_v40, %v16829_v38  ;;  %v16832_v0 = vpop.f32.mrb[30].mxu1 }
 0x4c5   : > { %v16833_v4 = vpop.f32.mrb[31].mxu1 }
 0x4c6   : > { %v16834_v5 = vadd.f32 %v16833_v4, %v16832_v0 }
 0x4c8   : > { %v2316_v29 = vpack.c.bf16 %v16834_v5, %v16831_v61 }
 0x4ca   : > { %v16835_v54 = vpop.f32.mrb[32].mxu1  ;;  %18058 = vmatprep.mubr.msk.bf16.mxu1 %vm1370_vm0, %v2316_v29 }
 0x4cb   : > { %v16836_v47 = vpop.f32.mrb[33].mxu1 }
 0x4cc   : > { %v16837_v57 = vadd.f32 %v16836_v47, %v16835_v54  ;;  %v16838_v58 = vpop.f32.mrb[34].mxu1 }
 0x4cd   : > { %v16839_v2 = vpop.f32.mrb[35].mxu1 }
 0x4ce   : > { %v16840_v6 = vadd.f32 %v16839_v2, %v16838_v58 }
 0x4d0   : > { %v2317_v11 = vpack.c.bf16 %v16840_v6, %v16837_v57 }
 0x4d2   : > { %18059 = vmatmul.mubr.msk.bf16.vlgmr.msra.gmra.mrb[16].mxu1 %vm1370_vm0, %v2317_v11 }
 0x4d3   : > { %18063 = vmatpush3.bf16.msra.mxu1 %v19336_v34  ;;  %18066 = vmatprep.mubr.msk.bf16.mxu1 %vm1370_vm0, %v2466_v24  ;;  %v16960_v24 = vpop.f32.mrb[114].mxu0  ;;  %v19347_v34 = vld [vmem:[%s24630_s24 + $0xa8] sm:$0xff]  }
 0x4d4   : > { %18064 = vmatprep.subr.bf16.mxu1 %v19337_v12  ;;  %v16961_v25 = vpop.f32.mrb[115].mxu0 }
 0x4d5   : > { %v16962_v30 = vadd.f32 %v16961_v25, %v16960_v24  ;;  %v16963_v35 = vpop.f32.mrb[116].mxu0  ;;  %v19355_v24 = vld [vmem:[%s24629_s23 + $0x1b4] ss:$8 sps:$4 sm:$0xff]   ;;  %v19357_v25 = vld [vmem:[%s24629_s23 + $0x1b0] ss:$8 sps:$4 sm:$0xff]  }
 0x4d6   : > { %v16964_v36 = vpop.f32.mrb[117].mxu0 }
 0x4d7   : > { %18065 = vmatpush3.bf16.msra.mxu1 %v19337_v12  ;;  %v2916_v31 = vpack.c.bf16 %v16962_v30, %v16959_v26  ;;  %v16966_v41 = vpop.f32.mrb[118].mxu0  ;;  %v16965_v46 = vadd.f32 %v16964_v36, %v16963_v35 }
 0x4d8   : > { %18070 = vmatprep.subr.bf16.mxu1 %v19338_v13  ;;  %v16967_v44 = vpop.f32.mrb[119].mxu0 }
 0x4d9   : > { %v16968_v49 = vadd.f32 %v16967_v44, %v16966_v41  ;;  %v16989_v51 = vpop.f32.mrb[120].mxu0  ;;  %v19358_v41 = vld [vmem:[%s24630_s24 + $0xd0] sm:$0xff]  }
 0x4da   : > { %v16990_v59 = vpop.f32.mrb[121].mxu0 }
 0x4db   : > { %v2917_v50 = vpack.c.bf16 %v16968_v49, %v16965_v46  ;;  %v16991_v7 = vadd.f32 %v16990_v59, %v16989_v51 }
 0x4de   : > { %18067 = vmatmul.mubr.msk.bf16.vlgmr.msra.gmra.mrb[16].mxu1 %vm1370_vm0, %v2467_v48  ;;  %v19348_v48 = vld [vmem:[%s24630_s24 + $0xb0] sm:$0xff]  }
 0x4df   : > { %18071 = vmatpush3.bf16.msra.mxu1 %v19338_v13  ;;  %18074 = vmatprep.mubr.msk.bf16.mxu1 %vm1370_vm0, %v2616_v60  ;;  %v16992_v60 = vpop.f32.mrb[122].mxu0 }
 0x4e0   : > { %18072 = vmatprep.subr.bf16.mxu1 %v19339_v16  ;;  %v16993_v62 = vpop.f32.mrb[123].mxu0 }
 0x4e1   : > { %v16994_v8 = vadd.f32 %v16993_v62, %v16992_v60  ;;  %v16995_v45 = vpop.f32.mrb[124].mxu0 }
 0x4e2   : > { %v16996_v56 = vpop.f32.mrb[125].mxu0 }
 0x4e3   : > { %18073 = vmatpush3.bf16.msra.mxu1 %v19339_v16  ;;  %v3066_v9 = vpack.c.bf16 %v16994_v8, %v16991_v7  ;;  %v16997_v38 = vadd.f32 %v16996_v56, %v16995_v45 }
 0x4e4   : > { %16909 = vmatprep.subr.bf16.mxu1 %v20378_v27 }
 0x4ea   : > { %18075 = vmatmul.mubr.msk.bf16.vlgmr.msra.gmra.mrb[16].mxu1 %vm1370_vm0, %v2617_v37  ;;  %v16998_v37 = vpop.f32.mrb[126].mxu0 }
 0x4eb   : > { %16910 = vmatpush3.bf16.msra.mxu1 %v20346_v63  ;;  %2749 = vmatprep.mubr.bf16.mxu1 %v19342_v17  ;;  %v16999_v40 = vpop.f32.mrb[127].mxu0 }
 0x4ec   : > { %16911 = vmatprep.subr.bf16.mxu1 %v20386_v39  ;;  %v17000_v61 = vadd.f32 %v16999_v40, %v16998_v37  ;;  %v17053_v26 = vpop.f32.mrb[128].mxu0 }
 0x4ed   : > { %v17054_v30 = vpop.f32.mrb[129].mxu0 }
 0x4ee   : > { %v3067_v0 = vpack.c.bf16 %v17000_v61, %v16997_v38 }
 0x4ef   : > { %16912 = vmatpush3.bf16.msra.mxu1 %v20350_v10 }
 0x4f0   : > { %16913 = vmatprep.subr.bf16.mxu1 %v20394_v52 }
 0x4f3   : > { %16914 = vmatpush3.bf16.msra.mxu1 %v20354_v21 }
 0x4f4   : > { %16915 = vmatprep.subr.bf16.mxu1 %v20402_v1 }
 0x4f7   : > { %16916 = vmatpush3.bf16.msra.mxu1 %v20358_v32 }
 0x4f8   : > { %16917 = vmatprep.subr.bf16.mxu1 %v20410_v14 }
 0x4fb   : > { %16918 = vmatpush3.bf16.msra.mxu1 %v20362_v43 }
 0x4fc   : > { %16919 = vmatprep.subr.bf16.mxu1 %v20418_v28 }
 0x4ff   : > { %16920 = vmatpush3.bf16.msra.mxu1 %v20366_v55 }
 0x500   : > { %16921 = vmatprep.subr.bf16.mxu1 %v20428_v42 }
 0x503   : > { %16922 = vmatpush3.bf16.msra.mxu1 %v20370_v3 }
 0x504   : > { %16923 = vmatprep.subr.bf16.mxu1 %v20434_v53 }
 0x507   : > { %16924 = vmatpush3.bf16.msra.mxu1 %v20374_v15 }
 0x508   : > { %18078 = vmatprep.subr.bf16.mxu1 %v19346_v33 }
 0x50a   : > { %2750 = vmatmul.mubr.bf16.vlgmr.msra.gmra.mrb[36].mxu1 %v19340_v18  ;;  %v19349_v18 = vld [vmem:[%s24630_s24 + $0xb8] sm:$0xff]  }
 0x50b   : > { %2757 = vmatprep.mubr.bf16.mxu1 %v19343_v19  ;;  %18079 = vmatpush3.bf16.msra.mxu1 %v19346_v33  ;;  %v19350_v19 = vld [vmem:[%s24630_s24 + $0xc0] sm:$0xff]  }
 0x50c   : > { %18080 = vmatprep.subr.bf16.mxu1 %v19347_v34 }
 0x50f   : > { %18081 = vmatpush3.bf16.msra.mxu1 %v19347_v34  ;;  %v17055_v34 = vadd.f32 %v17054_v30, %v17053_v26  ;;  %v19366_v26 = vld [vmem:[%s24629_s23 + $0x204] ss:$8 sps:$4 sm:$0xff]   ;;  %v19364_v30 = vld [vmem:[%s24629_s23 + $0x200] ss:$8 sps:$4 sm:$0xff]  }
 0x510   : > { %18086 = vmatprep.subr.bf16.mxu1 %v19348_v48 }
 0x512   : > { %2758 = vmatmul.mubr.bf16.gmra.mrb[40].mxu1 %v19345_v20  ;;  %v19351_v20 = vld [vmem:[%s24630_s24 + $0xc8] sm:$0xff]  }
 0x5dd   : > { %v16925_v4 = vpop.f32.mrb[36].mxu1 }
 0x5de   : > { %v16926_v5 = vpop.f32.mrb[37].mxu1 }
 0x5df   : > { %v16927_v29 = vadd.f32 %v16926_v5, %v16925_v4  ;;  %v16928_v54 = vpop.f32.mrb[38].mxu1 }
 0x5e0   : > { %v16929_v47 = vpop.f32.mrb[39].mxu1 }
 0x5e1   : > { %v16930_v57 = vadd.f32 %v16929_v47, %v16928_v54 }
 0x5e3   : > { %v2766_v58 = vpack.c.bf16 %v16930_v57, %v16927_v29 }
 0x5e5   : > { %v16931_v2 = vpop.f32.mrb[40].mxu1  ;;  %18082 = vmatprep.mubr.msk.bf16.mxu1 %vm1370_vm0, %v2766_v58 }
 0x5e6   : > { %v16932_v6 = vpop.f32.mrb[41].mxu1 }
 0x5e7   : > { %v16933_v11 = vadd.f32 %v16932_v6, %v16931_v2  ;;  %v16934_v12 = vpop.f32.mrb[42].mxu1 }
 0x5e8   : > { %v16935_v13 = vpop.f32.mrb[43].mxu1 }
 0x5e9   : > { %v16936_v16 = vadd.f32 %v16935_v13, %v16934_v12 }
 0x5eb   : > { %v2767_v17 = vpack.c.bf16 %v16936_v16, %v16933_v11 }
 0x5ed   : > { %18083 = vmatmul.mubr.msk.bf16.vlgmr.msra.gmra.mrb[16].mxu1 %vm1370_vm0, %v2767_v17 }
 0x5ee   : > { %18087 = vmatpush3.bf16.msra.mxu1 %v19348_v48  ;;  %18090 = vmatprep.mubr.msk.bf16.mxu1 %vm1370_vm0, %v2916_v31  ;;  %v17056_v31 = vpop.f32.mrb[130].mxu0  ;;  %v19359_v48 = vld [vmem:[%s24630_s24 + $0xd8] sm:$0xff]  }
 0x5ef   : > { %18088 = vmatprep.subr.bf16.mxu1 %v19349_v18  ;;  %v17057_v33 = vpop.f32.mrb[131].mxu0 }
 0x5f0   : > { %v17058_v35 = vadd.f32 %v17057_v33, %v17056_v31  ;;  %v17059_v44 = vpop.f32.mrb[132].mxu0  ;;  %v19367_v31 = vld [vmem:[%s24629_s23 + $0x214] ss:$8 sps:$4 sm:$0xff]   ;;  %v19369_v33 = vld [vmem:[%s24629_s23 + $0x210] ss:$8 sps:$4 sm:$0xff]  }
 0x5f1   : > { %v17060_v46 = vpop.f32.mrb[133].mxu0 }
 0x5f2   : > { %18089 = vmatpush3.bf16.msra.mxu1 %v19349_v18  ;;  %v3366_v36 = vpack.c.bf16 %v17058_v35, %v17055_v34  ;;  %v17062_v49 = vpop.f32.mrb[134].mxu0  ;;  %v17061_v59 = vadd.f32 %v17060_v46, %v17059_v44 }
 0x5f3   : > { %18094 = vmatprep.subr.bf16.mxu1 %v19350_v19  ;;  %v17063_v51 = vpop.f32.mrb[135].mxu0 }
 0x5f4   : > { %v17064_v60 = vadd.f32 %v17063_v51, %v17062_v49  ;;  %v17085_v7 = vpop.f32.mrb[136].mxu0  ;;  %v19370_v49 = vld [vmem:[%s24630_s24 + $0x100] sm:$0xff]  }
 0x5f5   : > { %v17086_v8 = vpop.f32.mrb[137].mxu0 }
 0x5f6   : > { %v3367_v62 = vpack.c.bf16 %v17064_v60, %v17061_v59  ;;  %v17087_v56 = vadd.f32 %v17086_v8, %v17085_v7 }
 0x5f9   : > { %18091 = vmatmul.mubr.msk.bf16.vlgmr.msra.gmra.mrb[16].mxu1 %vm1370_vm0, %v2917_v50  ;;  %v19360_v50 = vld [vmem:[%s24630_s24 + $0xe0] sm:$0xff]  }
 0x5fa   : > { %18095 = vmatpush3.bf16.msra.mxu1 %v19350_v19  ;;  %18098 = vmatprep.mubr.msk.bf16.mxu1 %vm1370_vm0, %v3066_v9  ;;  %v17088_v9 = vpop.f32.mrb[138].mxu0 }
 0x5fb   : > { %18096 = vmatprep.subr.bf16.mxu1 %v19351_v20  ;;  %v17089_v45 = vpop.f32.mrb[139].mxu0 }
 0x5fc   : > { %v17090_v37 = vadd.f32 %v17089_v45, %v17088_v9  ;;  %v17091_v40 = vpop.f32.mrb[140].mxu0 }
 0x5fd   : > { %v17092_v61 = vpop.f32.mrb[141].mxu0 }
 0x5fe   : > { %18097 = vmatpush3.bf16.msra.mxu1 %v19351_v20  ;;  %v3516_v38 = vpack.c.bf16 %v17090_v37, %v17087_v56  ;;  %v17093_v4 = vadd.f32 %v17092_v61, %v17091_v40 }
 0x5ff   : > { %17005 = vmatprep.subr.bf16.mxu1 %v20378_v27 }
 0x605   : > { %18099 = vmatmul.mubr.msk.bf16.vlgmr.msra.gmra.mrb[16].mxu1 %vm1370_vm0, %v3067_v0  ;;  %v17094_v0 = vpop.f32.mrb[142].mxu0 }
 0x606   : > { %17006 = vmatpush3.bf16.msra.mxu1 %v20346_v63  ;;  %3199 = vmatprep.mubr.bf16.mxu1 %v19354_v22  ;;  %v17095_v5 = vpop.f32.mrb[143].mxu0 }
 0x607   : > { %17007 = vmatprep.subr.bf16.mxu1 %v20386_v39  ;;  %v17096_v29 = vadd.f32 %v17095_v5, %v17094_v0  ;;  %v17149_v34 = vpop.f32.mrb[144].mxu0 }
 0x608   : > { %v17150_v35 = vpop.f32.mrb[145].mxu0 }
 0x609   : > { %v3517_v54 = vpack.c.bf16 %v17096_v29, %v17093_v4 }
 0x60a   : > { %17008 = vmatpush3.bf16.msra.mxu1 %v20350_v10 }
 0x60b   : > { %17009 = vmatprep.subr.bf16.mxu1 %v20394_v52 }
 0x60e   : > { %17010 = vmatpush3.bf16.msra.mxu1 %v20354_v21 }
 0x60f   : > { %17011 = vmatprep.subr.bf16.mxu1 %v20402_v1 }
 0x612   : > { %17012 = vmatpush3.bf16.msra.mxu1 %v20358_v32 }
 0x613   : > { %17013 = vmatprep.subr.bf16.mxu1 %v20410_v14 }
 0x616   : > { %17014 = vmatpush3.bf16.msra.mxu1 %v20362_v43 }
 0x617   : > { %17015 = vmatprep.subr.bf16.mxu1 %v20418_v28 }
 0x61a   : > { %17016 = vmatpush3.bf16.msra.mxu1 %v20366_v55 }
 0x61b   : > { %17017 = vmatprep.subr.bf16.mxu1 %v20428_v42 }
 0x61e   : > { %17018 = vmatpush3.bf16.msra.mxu1 %v20370_v3 }
 0x61f   : > { %17019 = vmatprep.subr.bf16.mxu1 %v20434_v53 }
 0x622   : > { %17020 = vmatpush3.bf16.msra.mxu1 %v20374_v15 }
 0x623   : > { %18102 = vmatprep.subr.bf16.mxu1 %v19358_v41 }
 0x625   : > { %3200 = vmatmul.mubr.bf16.vlgmr.msra.gmra.mrb[44].mxu1 %v19352_v23  ;;  %v19361_v23 = vld [vmem:[%s24630_s24 + $0xe8] sm:$0xff]  }
 0x626   : > { %3207 = vmatprep.mubr.bf16.mxu1 %v19355_v24  ;;  %18103 = vmatpush3.bf16.msra.mxu1 %v19358_v41  ;;  %v19362_v24 = vld [vmem:[%s24630_s24 + $0xf0] sm:$0xff]  }
 0x627   : > { %18104 = vmatprep.subr.bf16.mxu1 %v19359_v48 }
 0x62a   : > { %18105 = vmatpush3.bf16.msra.mxu1 %v19359_v48  ;;  %v17151_v48 = vadd.f32 %v17150_v35, %v17149_v34  ;;  %v19378_v34 = vld [vmem:[%s24629_s23 + $0x264] ss:$8 sps:$4 sm:$0xff]   ;;  %v19376_v35 = vld [vmem:[%s24629_s23 + $0x260] ss:$8 sps:$4 sm:$0xff]  }
 0x62b   : > { %18110 = vmatprep.subr.bf16.mxu1 %v19360_v50 }
 0x62d   : > { %3208 = vmatmul.mubr.bf16.gmra.mrb[48].mxu1 %v19357_v25  ;;  %v19363_v25 = vld [vmem:[%s24630_s24 + $0xf8] sm:$0xff]  }
 0x6f8   : > { %v17021_v47 = vpop.f32.mrb[44].mxu1 }
 0x6f9   : > { %v17022_v57 = vpop.f32.mrb[45].mxu1 }
 0x6fa   : > { %v17023_v58 = vadd.f32 %v17022_v57, %v17021_v47  ;;  %v17024_v2 = vpop.f32.mrb[46].mxu1 }
 0x6fb   : > { %v17025_v6 = vpop.f32.mrb[47].mxu1 }
 0x6fc   : > { %v17026_v11 = vadd.f32 %v17025_v6, %v17024_v2 }
 0x6fe   : > { %v3216_v12 = vpack.c.bf16 %v17026_v11, %v17023_v58 }
 0x700   : > { %v17027_v13 = vpop.f32.mrb[48].mxu1  ;;  %18106 = vmatprep.mubr.msk.bf16.mxu1 %vm1370_vm0, %v3216_v12 }
 0x701   : > { %v17028_v16 = vpop.f32.mrb[49].mxu1 }
 0x702   : > { %v17029_v17 = vadd.f32 %v17028_v16, %v17027_v13  ;;  %v17030_v18 = vpop.f32.mrb[50].mxu1 }
 0x703   : > { %v17031_v19 = vpop.f32.mrb[51].mxu1 }
 0x704   : > { %v17032_v20 = vadd.f32 %v17031_v19, %v17030_v18 }
 0x706   : > { %v3217_v22 = vpack.c.bf16 %v17032_v20, %v17029_v17 }
 0x708   : > { %18107 = vmatmul.mubr.msk.bf16.vlgmr.msra.gmra.mrb[16].mxu1 %vm1370_vm0, %v3217_v22 }
 0x709   : > { %18111 = vmatpush3.bf16.msra.mxu1 %v19360_v50  ;;  %18114 = vmatprep.mubr.msk.bf16.mxu1 %vm1370_vm0, %v3366_v36  ;;  %v17152_v36 = vpop.f32.mrb[146].mxu0  ;;  %v19371_v50 = vld [vmem:[%s24630_s24 + $0x108] sm:$0xff]  }
 0x70a   : > { %18112 = vmatprep.subr.bf16.mxu1 %v19361_v23  ;;  %v17153_v41 = vpop.f32.mrb[147].mxu0 }
 0x70b   : > { %v17154_v44 = vadd.f32 %v17153_v41, %v17152_v36  ;;  %v17155_v51 = vpop.f32.mrb[148].mxu0  ;;  %v19379_v36 = vld [vmem:[%s24629_s23 + $0x274] ss:$8 sps:$4 sm:$0xff]   ;;  %v19381_v41 = vld [vmem:[%s24629_s23 + $0x270] ss:$8 sps:$4 sm:$0xff]  }
 0x70c   : > { %v17156_v59 = vpop.f32.mrb[149].mxu0 }
 0x70d   : > { %18113 = vmatpush3.bf16.msra.mxu1 %v19361_v23  ;;  %v3816_v46 = vpack.c.bf16 %v17154_v44, %v17151_v48  ;;  %v17158_v60 = vpop.f32.mrb[150].mxu0  ;;  %v17157_v8 = vadd.f32 %v17156_v59, %v17155_v51 }
 0x70e   : > { %18118 = vmatprep.subr.bf16.mxu1 %v19362_v24  ;;  %v17159_v7 = vpop.f32.mrb[151].mxu0 }
 0x70f   : > { %v17160_v9 = vadd.f32 %v17159_v7, %v17158_v60  ;;  %v17181_v56 = vpop.f32.mrb[152].mxu0  ;;  %v19382_v60 = vld [vmem:[%s24630_s24 + $0x130] sm:$0xff]  }
 0x710   : > { %v17182_v37 = vpop.f32.mrb[153].mxu0 }
 0x711   : > { %v3817_v45 = vpack.c.bf16 %v17160_v9, %v17157_v8  ;;  %v17183_v61 = vadd.f32 %v17182_v37, %v17181_v56 }
 0x714   : > { %18115 = vmatmul.mubr.msk.bf16.vlgmr.msra.gmra.mrb[16].mxu1 %vm1370_vm0, %v3367_v62  ;;  %v19372_v62 = vld [vmem:[%s24630_s24 + $0x110] sm:$0xff]  }
 0x715   : > { %18119 = vmatpush3.bf16.msra.mxu1 %v19362_v24  ;;  %18122 = vmatprep.mubr.msk.bf16.mxu1 %vm1370_vm0, %v3516_v38  ;;  %v17184_v38 = vpop.f32.mrb[154].mxu0 }
 0x716   : > { %18120 = vmatprep.subr.bf16.mxu1 %v19363_v25  ;;  %v17185_v40 = vpop.f32.mrb[155].mxu0 }
 0x717   : > { %v17186_v0 = vadd.f32 %v17185_v40, %v17184_v38  ;;  %v17187_v5 = vpop.f32.mrb[156].mxu0 }
 0x718   : > { %v17188_v29 = vpop.f32.mrb[157].mxu0 }
 0x719   : > { %18121 = vmatpush3.bf16.msra.mxu1 %v19363_v25  ;;  %v3966_v4 = vpack.c.bf16 %v17186_v0, %v17183_v61  ;;  %v17189_v47 = vadd.f32 %v17188_v29, %v17187_v5 }
 0x71a   : > { %17101 = vmatprep.subr.bf16.mxu1 %v20378_v27 }
 0x720   : > { %18123 = vmatmul.mubr.msk.bf16.vlgmr.msra.gmra.mrb[16].mxu1 %vm1370_vm0, %v3517_v54  ;;  %v17190_v54 = vpop.f32.mrb[158].mxu0 }
 0x721   : > { %17102 = vmatpush3.bf16.msra.mxu1 %v20346_v63  ;;  %3649 = vmatprep.mubr.bf16.mxu1 %v19366_v26  ;;  %v17191_v57 = vpop.f32.mrb[159].mxu0 }
 0x722   : > { %17103 = vmatprep.subr.bf16.mxu1 %v20386_v39  ;;  %v17192_v58 = vadd.f32 %v17191_v57, %v17190_v54  ;;  %v17245_v48 = vpop.f32.mrb[160].mxu0 }
 0x723   : > { %v17246_v44 = vpop.f32.mrb[161].mxu0 }
 0x724   : > { %v3967_v2 = vpack.c.bf16 %v17192_v58, %v17189_v47 }
 0x725   : > { %17104 = vmatpush3.bf16.msra.mxu1 %v20350_v10 }
 0x726   : > { %17105 = vmatprep.subr.bf16.mxu1 %v20394_v52 }
 0x729   : > { %17106 = vmatpush3.bf16.msra.mxu1 %v20354_v21 }
 0x72a   : > { %17107 = vmatprep.subr.bf16.mxu1 %v20402_v1 }
 0x72d   : > { %17108 = vmatpush3.bf16.msra.mxu1 %v20358_v32 }
 0x72e   : > { %17109 = vmatprep.subr.bf16.mxu1 %v20410_v14 }
 0x731   : > { %17110 = vmatpush3.bf16.msra.mxu1 %v20362_v43 }
 0x732   : > { %17111 = vmatprep.subr.bf16.mxu1 %v20418_v28 }
 0x735   : > { %17112 = vmatpush3.bf16.msra.mxu1 %v20366_v55 }
 0x736   : > { %17113 = vmatprep.subr.bf16.mxu1 %v20428_v42 }
 0x739   : > { %17114 = vmatpush3.bf16.msra.mxu1 %v20370_v3 }
 0x73a   : > { %17115 = vmatprep.subr.bf16.mxu1 %v20434_v53 }
 0x73d   : > { %17116 = vmatpush3.bf16.msra.mxu1 %v20374_v15 }
 0x73e   : > { %18126 = vmatprep.subr.bf16.mxu1 %v19370_v49 }
 0x740   : > { %3650 = vmatmul.mubr.bf16.vlgmr.msra.gmra.mrb[52].mxu1 %v19364_v30  ;;  %v19373_v30 = vld [vmem:[%s24630_s24 + $0x118] sm:$0xff]  }
 0x741   : > { %3657 = vmatprep.mubr.bf16.mxu1 %v19367_v31  ;;  %18127 = vmatpush3.bf16.msra.mxu1 %v19370_v49  ;;  %v19374_v31 = vld [vmem:[%s24630_s24 + $0x120] sm:$0xff]  }
 0x742   : > { %18128 = vmatprep.subr.bf16.mxu1 %v19371_v50 }
 0x745   : > { %18129 = vmatpush3.bf16.msra.mxu1 %v19371_v50  ;;  %v17247_v50 = vadd.f32 %v17246_v44, %v17245_v48  ;;  %v19390_v48 = vld [vmem:[%s24629_s23 + $0x2c4] ss:$8 sps:$4 sm:$0xff]   ;;  %v19388_v44 = vld [vmem:[%s24629_s23 + $0x2c0] ss:$8 sps:$4 sm:$0xff]  }
 0x746   : > { %18134 = vmatprep.subr.bf16.mxu1 %v19372_v62 }
 0x748   : > { %3658 = vmatmul.mubr.bf16.gmra.mrb[56].mxu1 %v19369_v33  ;;  %v19375_v33 = vld [vmem:[%s24630_s24 + $0x128] sm:$0xff]  }
 0x813   : > { %v17117_v6 = vpop.f32.mrb[52].mxu1 }
 0x814   : > { %v17118_v11 = vpop.f32.mrb[53].mxu1 }
 0x815   : > { %v17119_v12 = vadd.f32 %v17118_v11, %v17117_v6  ;;  %v17120_v13 = vpop.f32.mrb[54].mxu1 }
 0x816   : > { %v17121_v16 = vpop.f32.mrb[55].mxu1 }
 0x817   : > { %v17122_v17 = vadd.f32 %v17121_v16, %v17120_v13 }
 0x819   : > { %v3666_v18 = vpack.c.bf16 %v17122_v17, %v17119_v12 }
 0x81b   : > { %v17123_v19 = vpop.f32.mrb[56].mxu1  ;;  %18130 = vmatprep.mubr.msk.bf16.mxu1 %vm1370_vm0, %v3666_v18 }
 0x81c   : > { %v17124_v20 = vpop.f32.mrb[57].mxu1 }
 0x81d   : > { %v17125_v22 = vadd.f32 %v17124_v20, %v17123_v19  ;;  %v17126_v23 = vpop.f32.mrb[58].mxu1 }
 0x81e   : > { %v17127_v24 = vpop.f32.mrb[59].mxu1 }
 0x81f   : > { %v17128_v25 = vadd.f32 %v17127_v24, %v17126_v23 }
 0x821   : > { %v3667_v26 = vpack.c.bf16 %v17128_v25, %v17125_v22 }
 0x823   : > { %18131 = vmatmul.mubr.msk.bf16.vlgmr.msra.gmra.mrb[16].mxu1 %vm1370_vm0, %v3667_v26 }
 0x824   : > { %18135 = vmatpush3.bf16.msra.mxu1 %v19372_v62  ;;  %18138 = vmatprep.mubr.msk.bf16.mxu1 %vm1370_vm0, %v3816_v46  ;;  %v17248_v46 = vpop.f32.mrb[162].mxu0  ;;  %v19383_v62 = vld [vmem:[%s24630_s24 + $0x138] sm:$0xff]  }
 0x825   : > { %18136 = vmatprep.subr.bf16.mxu1 %v19373_v30  ;;  %v17249_v49 = vpop.f32.mrb[163].mxu0 }
 0x826   : > { %v17250_v51 = vadd.f32 %v17249_v49, %v17248_v46  ;;  %v17251_v7 = vpop.f32.mrb[164].mxu0  ;;  %v19391_v46 = vld [vmem:[%s24629_s23 + $0x2d4] ss:$8 sps:$4 sm:$0xff]   ;;  %v19393_v49 = vld [vmem:[%s24629_s23 + $0x2d0] ss:$8 sps:$4 sm:$0xff]  }
 0x827   : > { %v17252_v8 = vpop.f32.mrb[165].mxu0 }
 0x828   : > { %18137 = vmatpush3.bf16.msra.mxu1 %v19373_v30  ;;  %v4266_v59 = vpack.c.bf16 %v17250_v51, %v17247_v50  ;;  %v17254_v9 = vpop.f32.mrb[166].mxu0  ;;  %v17253_v37 = vadd.f32 %v17252_v8, %v17251_v7 }
 0x829   : > { %18142 = vmatprep.subr.bf16.mxu1 %v19374_v31  ;;  %v17255_v56 = vpop.f32.mrb[167].mxu0 }
 0x82a   : > { %v17256_v38 = vadd.f32 %v17255_v56, %v17254_v9  ;;  %v17277_v61 = vpop.f32.mrb[168].mxu0  ;;  %v19394_v9 = vld [vmem:[%s24630_s24 + $0x160] sm:$0xff]  }
 0x82b   : > { %v17278_v0 = vpop.f32.mrb[169].mxu0 }
 0x82c   : > { %v4267_v40 = vpack.c.bf16 %v17256_v38, %v17253_v37  ;;  %v17279_v29 = vadd.f32 %v17278_v0, %v17277_v61 }
 0x82f   : > { %18139 = vmatmul.mubr.msk.bf16.vlgmr.msra.gmra.mrb[16].mxu1 %vm1370_vm0, %v3817_v45  ;;  %v19384_v45 = vld [vmem:[%s24630_s24 + $0x140] sm:$0xff]  }
 0x830   : > { %18143 = vmatpush3.bf16.msra.mxu1 %v19374_v31  ;;  %18146 = vmatprep.mubr.msk.bf16.mxu1 %vm1370_vm0, %v3966_v4  ;;  %v17280_v4 = vpop.f32.mrb[170].mxu0 }
 0x831   : > { %18144 = vmatprep.subr.bf16.mxu1 %v19375_v33  ;;  %v17281_v5 = vpop.f32.mrb[171].mxu0 }
 0x832   : > { %v17282_v54 = vadd.f32 %v17281_v5, %v17280_v4  ;;  %v17283_v57 = vpop.f32.mrb[172].mxu0 }
 0x833   : > { %v17284_v58 = vpop.f32.mrb[173].mxu0 }
 0x834   : > { %18145 = vmatpush3.bf16.msra.mxu1 %v19375_v33  ;;  %v4416_v47 = vpack.c.bf16 %v17282_v54, %v17279_v29  ;;  %v17285_v6 = vadd.f32 %v17284_v58, %v17283_v57 }
 0x835   : > { %17197 = vmatprep.subr.bf16.mxu1 %v20378_v27 }
 0x83b   : > { %18147 = vmatmul.mubr.msk.bf16.vlgmr.msra.gmra.mrb[16].mxu1 %vm1370_vm0, %v3967_v2  ;;  %v17286_v2 = vpop.f32.mrb[174].mxu0 }
 0x83c   : > { %17198 = vmatpush3.bf16.msra.mxu1 %v20346_v63  ;;  %4099 = vmatprep.mubr.bf16.mxu1 %v19378_v34  ;;  %v17287_v11 = vpop.f32.mrb[175].mxu0 }
 0x83d   : > { %17199 = vmatprep.subr.bf16.mxu1 %v20386_v39  ;;  %v17288_v12 = vadd.f32 %v17287_v11, %v17286_v2  ;;  %v17341_v50 = vpop.f32.mrb[176].mxu0 }
 0x83e   : > { %v17342_v51 = vpop.f32.mrb[177].mxu0 }
 0x83f   : > { %v4417_v13 = vpack.c.bf16 %v17288_v12, %v17285_v6 }
 0x840   : > { %17200 = vmatpush3.bf16.msra.mxu1 %v20350_v10 }
 0x841   : > { %17201 = vmatprep.subr.bf16.mxu1 %v20394_v52 }
 0x844   : > { %17202 = vmatpush3.bf16.msra.mxu1 %v20354_v21 }
 0x845   : > { %17203 = vmatprep.subr.bf16.mxu1 %v20402_v1 }
 0x848   : > { %17204 = vmatpush3.bf16.msra.mxu1 %v20358_v32 }
 0x849   : > { %17205 = vmatprep.subr.bf16.mxu1 %v20410_v14 }
 0x84c   : > { %17206 = vmatpush3.bf16.msra.mxu1 %v20362_v43 }
 0x84d   : > { %17207 = vmatprep.subr.bf16.mxu1 %v20418_v28 }
 0x850   : > { %17208 = vmatpush3.bf16.msra.mxu1 %v20366_v55 }
 0x851   : > { %17209 = vmatprep.subr.bf16.mxu1 %v20428_v42 }
 0x854   : > { %17210 = vmatpush3.bf16.msra.mxu1 %v20370_v3 }
 0x855   : > { %17211 = vmatprep.subr.bf16.mxu1 %v20434_v53 }
 0x858   : > { %17212 = vmatpush3.bf16.msra.mxu1 %v20374_v15 }
 0x859   : > { %18150 = vmatprep.subr.bf16.mxu1 %v19382_v60 }
 0x85b   : > { %4100 = vmatmul.mubr.bf16.vlgmr.msra.gmra.mrb[60].mxu1 %v19376_v35  ;;  %v19385_v35 = vld [vmem:[%s24630_s24 + $0x148] sm:$0xff]  }
 0x85c   : > { %4107 = vmatprep.mubr.bf16.mxu1 %v19379_v36  ;;  %18151 = vmatpush3.bf16.msra.mxu1 %v19382_v60  ;;  %v19386_v36 = vld [vmem:[%s24630_s24 + $0x150] sm:$0xff]  }
 0x85d   : > { %18152 = vmatprep.subr.bf16.mxu1 %v19383_v62 }
 0x860   : > { %18153 = vmatpush3.bf16.msra.mxu1 %v19383_v62  ;;  %v17343_v62 = vadd.f32 %v17342_v51, %v17341_v50  ;;  %v19402_v50 = vld [vmem:[%s24629_s23 + $0x324] ss:$8 sps:$4 sm:$0xff]   ;;  %v19400_v51 = vld [vmem:[%s24629_s23 + $0x320] ss:$8 sps:$4 sm:$0xff]  }
 0x861   : > { %18158 = vmatprep.subr.bf16.mxu1 %v19384_v45 }
 0x863   : > { %4108 = vmatmul.mubr.bf16.gmra.mrb[64].mxu1 %v19381_v41  ;;  %v19387_v41 = vld [vmem:[%s24630_s24 + $0x158] sm:$0xff]  }
 0x92e   : > { %v17213_v16 = vpop.f32.mrb[60].mxu1 }
 0x92f   : > { %v17214_v17 = vpop.f32.mrb[61].mxu1 }
 0x930   : > { %v17215_v18 = vadd.f32 %v17214_v17, %v17213_v16  ;;  %v17216_v19 = vpop.f32.mrb[62].mxu1 }
 0x931   : > { %v17217_v20 = vpop.f32.mrb[63].mxu1 }
 0x932   : > { %v17218_v22 = vadd.f32 %v17217_v20, %v17216_v19 }
 0x934   : > { %v4116_v23 = vpack.c.bf16 %v17218_v22, %v17215_v18 }
 0x936   : > { %v17219_v24 = vpop.f32.mrb[64].mxu1  ;;  %18154 = vmatprep.mubr.msk.bf16.mxu1 %vm1370_vm0, %v4116_v23 }
 0x937   : > { %v17220_v25 = vpop.f32.mrb[65].mxu1 }
 0x938   : > { %v17221_v26 = vadd.f32 %v17220_v25, %v17219_v24  ;;  %v17222_v30 = vpop.f32.mrb[66].mxu1 }
 0x939   : > { %v17223_v31 = vpop.f32.mrb[67].mxu1 }
 0x93a   : > { %v17224_v33 = vadd.f32 %v17223_v31, %v17222_v30 }
 0x93c   : > { %v4117_v34 = vpack.c.bf16 %v17224_v33, %v17221_v26 }
 0x93e   : > { %18155 = vmatmul.mubr.msk.bf16.vlgmr.msra.gmra.mrb[16].mxu1 %vm1370_vm0, %v4117_v34 }
 0x93f   : > { %18159 = vmatpush3.bf16.msra.mxu1 %v19384_v45  ;;  %18162 = vmatprep.mubr.msk.bf16.mxu1 %vm1370_vm0, %v4266_v59  ;;  %v17344_v59 = vpop.f32.mrb[178].mxu0  ;;  %v19395_v45 = vld [vmem:[%s24630_s24 + $0x168] sm:$0xff]  }
 0x940   : > { %18160 = vmatprep.subr.bf16.mxu1 %v19385_v35  ;;  %v17345_v60 = vpop.f32.mrb[179].mxu0 }
 0x941   : > { %v17346_v7 = vadd.f32 %v17345_v60, %v17344_v59  ;;  %v17347_v56 = vpop.f32.mrb[180].mxu0  ;;  %v19403_v59 = vld [vmem:[%s24629_s23 + $0x334] ss:$8 sps:$4 sm:$0xff]   ;;  %v19405_v60 = vld [vmem:[%s24629_s23 + $0x330] ss:$8 sps:$4 sm:$0xff]  }
 0x942   : > { %v17348_v37 = vpop.f32.mrb[181].mxu0 }
 0x943   : > { %18161 = vmatpush3.bf16.msra.mxu1 %v19385_v35  ;;  %v4716_v8 = vpack.c.bf16 %v17346_v7, %v17343_v62  ;;  %v17350_v38 = vpop.f32.mrb[182].mxu0  ;;  %v17349_v0 = vadd.f32 %v17348_v37, %v17347_v56 }
 0x944   : > { %18166 = vmatprep.subr.bf16.mxu1 %v19386_v36  ;;  %v17351_v61 = vpop.f32.mrb[183].mxu0 }
 0x945   : > { %v17352_v4 = vadd.f32 %v17351_v61, %v17350_v38  ;;  %v17373_v29 = vpop.f32.mrb[184].mxu0  ;;  %v19406_v38 = vld [vmem:[%s24630_s24 + $0x190] sm:$0xff]  }
 0x946   : > { %v17374_v54 = vpop.f32.mrb[185].mxu0 }
 0x947   : > { %v4717_v5 = vpack.c.bf16 %v17352_v4, %v17349_v0  ;;  %v17375_v58 = vadd.f32 %v17374_v54, %v17373_v29 }
 0x94a   : > { %18163 = vmatmul.mubr.msk.bf16.vlgmr.msra.gmra.mrb[16].mxu1 %vm1370_vm0, %v4267_v40  ;;  %v19396_v40 = vld [vmem:[%s24630_s24 + $0x170] sm:$0xff]  }
 0x94b   : > { %18167 = vmatpush3.bf16.msra.mxu1 %v19386_v36  ;;  %18170 = vmatprep.mubr.msk.bf16.mxu1 %vm1370_vm0, %v4416_v47  ;;  %v17376_v47 = vpop.f32.mrb[186].mxu0 }
 0x94c   : > { %18168 = vmatprep.subr.bf16.mxu1 %v19387_v41  ;;  %v17377_v57 = vpop.f32.mrb[187].mxu0 }
 0x94d   : > { %v17378_v2 = vadd.f32 %v17377_v57, %v17376_v47  ;;  %v17379_v11 = vpop.f32.mrb[188].mxu0 }
 0x94e   : > { %v17380_v12 = vpop.f32.mrb[189].mxu0 }
 0x94f   : > { %18169 = vmatpush3.bf16.msra.mxu1 %v19387_v41  ;;  %v4866_v6 = vpack.c.bf16 %v17378_v2, %v17375_v58  ;;  %v17381_v16 = vadd.f32 %v17380_v12, %v17379_v11 }
 0x950   : > { %17293 = vmatprep.subr.bf16.mxu1 %v20378_v27 }
 0x956   : > { %18171 = vmatmul.mubr.msk.bf16.vlgmr.msra.gmra.mrb[16].mxu1 %vm1370_vm0, %v4417_v13  ;;  %v17382_v13 = vpop.f32.mrb[190].mxu0 }
 0x957   : > { %17294 = vmatpush3.bf16.msra.mxu1 %v20346_v63  ;;  %4549 = vmatprep.mubr.bf16.mxu1 %v19390_v48  ;;  %v17383_v17 = vpop.f32.mrb[191].mxu0 }
 0x958   : > { %17295 = vmatprep.subr.bf16.mxu1 %v20386_v39  ;;  %v17384_v18 = vadd.f32 %v17383_v17, %v17382_v13  ;;  %v17437_v62 = vpop.f32.mrb[192].mxu0 }
 0x959   : > { %v17438_v7 = vpop.f32.mrb[193].mxu0 }
 0x95a   : > { %v4867_v19 = vpack.c.bf16 %v17384_v18, %v17381_v16 }
 0x95b   : > { %17296 = vmatpush3.bf16.msra.mxu1 %v20350_v10 }
 0x95c   : > { %17297 = vmatprep.subr.bf16.mxu1 %v20394_v52 }
 0x95f   : > { %17298 = vmatpush3.bf16.msra.mxu1 %v20354_v21 }
 0x960   : > { %17299 = vmatprep.subr.bf16.mxu1 %v20402_v1 }
 0x963   : > { %17300 = vmatpush3.bf16.msra.mxu1 %v20358_v32 }
 0x964   : > { %17301 = vmatprep.subr.bf16.mxu1 %v20410_v14 }
 0x967   : > { %17302 = vmatpush3.bf16.msra.mxu1 %v20362_v43 }
 0x968   : > { %17303 = vmatprep.subr.bf16.mxu1 %v20418_v28 }
 0x96b   : > { %17304 = vmatpush3.bf16.msra.mxu1 %v20366_v55 }
 0x96c   : > { %17305 = vmatprep.subr.bf16.mxu1 %v20428_v42 }
 0x96f   : > { %17306 = vmatpush3.bf16.msra.mxu1 %v20370_v3 }
 0x970   : > { %17307 = vmatprep.subr.bf16.mxu1 %v20434_v53 }
 0x973   : > { %17308 = vmatpush3.bf16.msra.mxu1 %v20374_v15 }
 0x974   : > { %18174 = vmatprep.subr.bf16.mxu1 %v19394_v9 }
 0x976   : > { %4550 = vmatmul.mubr.bf16.vlgmr.msra.gmra.mrb[68].mxu1 %v19388_v44  ;;  %v19397_v44 = vld [vmem:[%s24630_s24 + $0x178] sm:$0xff]  }
 0x977   : > { %4557 = vmatprep.mubr.bf16.mxu1 %v19391_v46  ;;  %18175 = vmatpush3.bf16.msra.mxu1 %v19394_v9  ;;  %v19398_v46 = vld [vmem:[%s24630_s24 + $0x180] sm:$0xff]  }
 0x978   : > { %18176 = vmatprep.subr.bf16.mxu1 %v19395_v45 }
 0x97b   : > { %18177 = vmatpush3.bf16.msra.mxu1 %v19395_v45  ;;  %v17439_v45 = vadd.f32 %v17438_v7, %v17437_v62  ;;  %v19414_v62 = vld [vmem:[%s24629_s23 + $0x384] ss:$8 sps:$4 sm:$0xff]   ;;  %v19412_v7 = vld [vmem:[%s24629_s23 + $0x380] ss:$8 sps:$4 sm:$0xff]  }
 0x97c   : > { %18182 = vmatprep.subr.bf16.mxu1 %v19396_v40 }
 0x97e   : > { %4558 = vmatmul.mubr.bf16.gmra.mrb[72].mxu1 %v19393_v49  ;;  %v19399_v49 = vld [vmem:[%s24630_s24 + $0x188] sm:$0xff]  }
 0xa49   : > { %v17309_v20 = vpop.f32.mrb[68].mxu1 }
 0xa4a   : > { %v17310_v22 = vpop.f32.mrb[69].mxu1 }
 0xa4b   : > { %v17311_v23 = vadd.f32 %v17310_v22, %v17309_v20  ;;  %v17312_v24 = vpop.f32.mrb[70].mxu1 }
 0xa4c   : > { %v17313_v25 = vpop.f32.mrb[71].mxu1 }
 0xa4d   : > { %v17314_v26 = vadd.f32 %v17313_v25, %v17312_v24 }
 0xa4f   : > { %v4566_v30 = vpack.c.bf16 %v17314_v26, %v17311_v23 }
 0xa51   : > { %v17315_v31 = vpop.f32.mrb[72].mxu1  ;;  %18178 = vmatprep.mubr.msk.bf16.mxu1 %vm1370_vm0, %v4566_v30 }
 0xa52   : > { %v17316_v33 = vpop.f32.mrb[73].mxu1 }
 0xa53   : > { %v17317_v34 = vadd.f32 %v17316_v33, %v17315_v31  ;;  %v17318_v35 = vpop.f32.mrb[74].mxu1 }
 0xa54   : > { %v17319_v36 = vpop.f32.mrb[75].mxu1 }
 0xa55   : > { %v17320_v41 = vadd.f32 %v17319_v36, %v17318_v35 }
 0xa57   : > { %v4567_v48 = vpack.c.bf16 %v17320_v41, %v17317_v34 }
 0xa59   : > { %18179 = vmatmul.mubr.msk.bf16.vlgmr.msra.gmra.mrb[16].mxu1 %vm1370_vm0, %v4567_v48 }
 0xa5a   : > { %18183 = vmatpush3.bf16.msra.mxu1 %v19396_v40  ;;  %18186 = vmatprep.mubr.msk.bf16.mxu1 %vm1370_vm0, %v4716_v8  ;;  %v17440_v8 = vpop.f32.mrb[194].mxu0  ;;  %v19407_v40 = vld [vmem:[%s24630_s24 + $0x198] sm:$0xff]  }
 0xa5b   : > { %18184 = vmatprep.subr.bf16.mxu1 %v19397_v44  ;;  %v17441_v9 = vpop.f32.mrb[195].mxu0 }
 0xa5c   : > { %v17442_v56 = vadd.f32 %v17441_v9, %v17440_v8  ;;  %v17443_v61 = vpop.f32.mrb[196].mxu0  ;;  %v19415_v8 = vld [vmem:[%s24629_s23 + $0x394] ss:$8 sps:$4 sm:$0xff]   ;;  %v19417_v9 = vld [vmem:[%s24629_s23 + $0x390] ss:$8 sps:$4 sm:$0xff]  }
 0xa5d   : > { %v17444_v0 = vpop.f32.mrb[197].mxu0 }
 0xa5e   : > { %18185 = vmatpush3.bf16.msra.mxu1 %v19397_v44  ;;  %v5166_v37 = vpack.c.bf16 %v17442_v56, %v17439_v45  ;;  %v17446_v4 = vpop.f32.mrb[198].mxu0  ;;  %v17445_v54 = vadd.f32 %v17444_v0, %v17443_v61 }
 0xa5f   : > { %18190 = vmatprep.subr.bf16.mxu1 %v19398_v46  ;;  %v17447_v29 = vpop.f32.mrb[199].mxu0 }
 0xa60   : > { %v17448_v47 = vadd.f32 %v17447_v29, %v17446_v4  ;;  %v17469_v58 = vpop.f32.mrb[200].mxu0  ;;  %v19418_v4 = vld [vmem:[%s24630_s24 + $0x1c0] sm:$0xff]  }
 0xa61   : > { %v17470_v2 = vpop.f32.mrb[201].mxu0 }
 0xa62   : > { %v5167_v57 = vpack.c.bf16 %v17448_v47, %v17445_v54  ;;  %v17471_v12 = vadd.f32 %v17470_v2, %v17469_v58 }
 0xa65   : > { %18187 = vmatmul.mubr.msk.bf16.vlgmr.msra.gmra.mrb[16].mxu1 %vm1370_vm0, %v4717_v5  ;;  %v19408_v5 = vld [vmem:[%s24630_s24 + $0x1a0] sm:$0xff]  }
 0xa66   : > { %18191 = vmatpush3.bf16.msra.mxu1 %v19398_v46  ;;  %18194 = vmatprep.mubr.msk.bf16.mxu1 %vm1370_vm0, %v4866_v6  ;;  %v17472_v6 = vpop.f32.mrb[202].mxu0 }
 0xa67   : > { %18192 = vmatprep.subr.bf16.mxu1 %v19399_v49  ;;  %v17473_v11 = vpop.f32.mrb[203].mxu0 }
 0xa68   : > { %v17474_v13 = vadd.f32 %v17473_v11, %v17472_v6  ;;  %v17475_v17 = vpop.f32.mrb[204].mxu0 }
 0xa69   : > { %v17476_v18 = vpop.f32.mrb[205].mxu0 }
 0xa6a   : > { %18193 = vmatpush3.bf16.msra.mxu1 %v19399_v49  ;;  %v5316_v16 = vpack.c.bf16 %v17474_v13, %v17471_v12  ;;  %v17477_v20 = vadd.f32 %v17476_v18, %v17475_v17 }
 0xa6b   : > { %17389 = vmatprep.subr.bf16.mxu1 %v20378_v27 }
 0xa71   : > { %18195 = vmatmul.mubr.msk.bf16.vlgmr.msra.gmra.mrb[16].mxu1 %vm1370_vm0, %v4867_v19  ;;  %v17478_v19 = vpop.f32.mrb[206].mxu0 }
 0xa72   : > { %17390 = vmatpush3.bf16.msra.mxu1 %v20346_v63  ;;  %4999 = vmatprep.mubr.bf16.mxu1 %v19402_v50  ;;  %v17479_v22 = vpop.f32.mrb[207].mxu0 }
 0xa73   : > { %17391 = vmatprep.subr.bf16.mxu1 %v20386_v39  ;;  %v17480_v23 = vadd.f32 %v17479_v22, %v17478_v19  ;;  %v17533_v45 = vpop.f32.mrb[208].mxu0 }
 0xa74   : > { %v17534_v56 = vpop.f32.mrb[209].mxu0 }
 0xa75   : > { %v5317_v24 = vpack.c.bf16 %v17480_v23, %v17477_v20 }
 0xa76   : > { %17392 = vmatpush3.bf16.msra.mxu1 %v20350_v10 }
 0xa77   : > { %17393 = vmatprep.subr.bf16.mxu1 %v20394_v52 }
 0xa7a   : > { %17394 = vmatpush3.bf16.msra.mxu1 %v20354_v21 }
 0xa7b   : > { %17395 = vmatprep.subr.bf16.mxu1 %v20402_v1 }
 0xa7e   : > { %17396 = vmatpush3.bf16.msra.mxu1 %v20358_v32 }
 0xa7f   : > { %17397 = vmatprep.subr.bf16.mxu1 %v20410_v14 }
 0xa82   : > { %17398 = vmatpush3.bf16.msra.mxu1 %v20362_v43 }
 0xa83   : > { %17399 = vmatprep.subr.bf16.mxu1 %v20418_v28 }
 0xa86   : > { %17400 = vmatpush3.bf16.msra.mxu1 %v20366_v55 }
 0xa87   : > { %17401 = vmatprep.subr.bf16.mxu1 %v20428_v42 }
 0xa8a   : > { %17402 = vmatpush3.bf16.msra.mxu1 %v20370_v3 }
 0xa8b   : > { %17403 = vmatprep.subr.bf16.mxu1 %v20434_v53 }
 0xa8e   : > { %17404 = vmatpush3.bf16.msra.mxu1 %v20374_v15 }
 0xa8f   : > { %18198 = vmatprep.subr.bf16.mxu1 %v19406_v38 }
 0xa91   : > { %5000 = vmatmul.mubr.bf16.vlgmr.msra.gmra.mrb[76].mxu1 %v19400_v51  ;;  %v19409_v51 = vld [vmem:[%s24630_s24 + $0x1a8] sm:$0xff]  }
 0xa92   : > { %5007 = vmatprep.mubr.bf16.mxu1 %v19403_v59  ;;  %18199 = vmatpush3.bf16.msra.mxu1 %v19406_v38  ;;  %v19410_v59 = vld [vmem:[%s24630_s24 + $0x1b0] sm:$0xff]  }
 0xa93   : > { %18200 = vmatprep.subr.bf16.mxu1 %v19407_v40 }
 0xa96   : > { %18201 = vmatpush3.bf16.msra.mxu1 %v19407_v40  ;;  %v17535_v40 = vadd.f32 %v17534_v56, %v17533_v45  ;;  %v19422_v45 = vld [vmem:[%s24630_s24 + $0x1e0] sm:$0xff]   ;;  %v19423_v56 = vld [vmem:[%s24630_s24 + $0x1e8] sm:$0xff]  }
 0xa97   : > { %18206 = vmatprep.subr.bf16.mxu1 %v19408_v5 }
 0xa99   : > { %5008 = vmatmul.mubr.bf16.gmra.mrb[80].mxu1 %v19405_v60  ;;  %v19411_v60 = vld [vmem:[%s24630_s24 + $0x1b8] sm:$0xff]  }
 0xb64   : > { %v17405_v25 = vpop.f32.mrb[76].mxu1 }
 0xb65   : > { %v17406_v26 = vpop.f32.mrb[77].mxu1 }
 0xb66   : > { %v17407_v30 = vadd.f32 %v17406_v26, %v17405_v25  ;;  %v17408_v31 = vpop.f32.mrb[78].mxu1 }
 0xb67   : > { %v17409_v33 = vpop.f32.mrb[79].mxu1 }
 0xb68   : > { %v17410_v34 = vadd.f32 %v17409_v33, %v17408_v31  ;;  %v19430_v33 = vld [vmem:[%s24629_s23 + $0x434] ss:$8 sps:$4 sm:$0xff]  }
 0xb69   : > { %6207 = vmatprep.mubr.bf16.mxu0 %v19430_v33 }
 0xb6a   : > { %v5016_v35 = vpack.c.bf16 %v17410_v34, %v17407_v30  ;;  %v19432_v34 = vld [vmem:[%s24629_s23 + $0x430] ss:$8 sps:$4 sm:$0xff]  }
 0xb6b   : > { %6208 = vmatmul.mubr.bf16.gmra.mrb[236].mxu0 %v19432_v34 }
 0xb6c   : > { %v17411_v36 = vpop.f32.mrb[80].mxu1  ;;  %18202 = vmatprep.mubr.msk.bf16.mxu1 %vm1370_vm0, %v5016_v35 }
 0xb6d   : > { %v17412_v41 = vpop.f32.mrb[81].mxu1 }
 0xb6e   : > { %v17413_v48 = vadd.f32 %v17412_v41, %v17411_v36  ;;  %v17414_v44 = vpop.f32.mrb[82].mxu1 }
 0xb6f   : > { %v17415_v46 = vpop.f32.mrb[83].mxu1 }
 0xb70   : > { %v17416_v49 = vadd.f32 %v17415_v46, %v17414_v44 }
 0xb72   : > { %v5017_v50 = vpack.c.bf16 %v17416_v49, %v17413_v48 }
 0xb74   : > { %18203 = vmatmul.mubr.msk.bf16.vlgmr.msra.gmra.mrb[16].mxu1 %vm1370_vm0, %v5017_v50 }
 0xb75   : > { %18207 = vmatpush3.bf16.msra.mxu1 %v19408_v5  ;;  %18210 = vmatprep.mubr.msk.bf16.mxu1 %vm1370_vm0, %v5166_v37  ;;  %v17536_v37 = vpop.f32.mrb[210].mxu0  ;;  %v19419_v5 = vld [vmem:[%s24630_s24 + $0x1c8] sm:$0xff]  }
 0xb76   : > { %18208 = vmatprep.subr.bf16.mxu1 %v19409_v51  ;;  %v17537_v38 = vpop.f32.mrb[211].mxu0 }
 0xb77   : > { %v17538_v61 = vadd.f32 %v17537_v38, %v17536_v37  ;;  %v17539_v29 = vpop.f32.mrb[212].mxu0  ;;  %v19426_v37 = vld [vmem:[%s24629_s23 + $0x3e4] ss:$8 sps:$4 sm:$0xff]   ;;  %v19424_v38 = vld [vmem:[%s24629_s23 + $0x3e0] ss:$8 sps:$4 sm:$0xff]  }
 0xb78   : > { %v17540_v54 = vpop.f32.mrb[213].mxu0 }
 0xb79   : > { %18209 = vmatpush3.bf16.msra.mxu1 %v19409_v51  ;;  %v5616_v0 = vpack.c.bf16 %v17538_v61, %v17535_v40  ;;  %v17542_v47 = vpop.f32.mrb[214].mxu0  ;;  %v17541_v2 = vadd.f32 %v17540_v54, %v17539_v29  ;;  %v19427_v40 = vld [vmem:[%s24629_s23 + $0x3f4] ss:$8 sps:$4 sm:$0xff]   ;;  %v19429_v61 = vld [vmem:[%s24629_s23 + $0x3f0] ss:$8 sps:$4 sm:$0xff]  }
 0xb7a   : > { %18214 = vmatprep.subr.bf16.mxu1 %v19410_v59  ;;  %v17543_v58 = vpop.f32.mrb[215].mxu0 }
 0xb7b   : > { %v17544_v6 = vadd.f32 %v17543_v58, %v17542_v47  ;;  %v17565_v12 = vpop.f32.mrb[216].mxu0  ;;  %v19433_v58 = vld [vmem:[%s24630_s24 + $0x1f0] sm:$0xff]  }
 0xb7c   : > { %v17566_v13 = vpop.f32.mrb[217].mxu0 }
 0xb7d   : > { %v5617_v11 = vpack.c.bf16 %v17544_v6, %v17541_v2  ;;  %v17567_v18 = vadd.f32 %v17566_v13, %v17565_v12  ;;  %v19434_v2 = vld [vmem:[%s24630_s24 + $0x1f8] sm:$0xff]   ;;  %v19435_v13 = vld [vmem:[%s24630_s24 + $0x200] sm:$0xff]  }
 0xb80   : > { %18211 = vmatmul.mubr.msk.bf16.vlgmr.msra.gmra.mrb[16].mxu1 %vm1370_vm0, %v5167_v57  ;;  %v19420_v57 = vld [vmem:[%s24630_s24 + $0x1d0] sm:$0xff]  }
 0xb81   : > { %18215 = vmatpush3.bf16.msra.mxu1 %v19410_v59  ;;  %18218 = vmatprep.mubr.msk.bf16.mxu1 %vm1370_vm0, %v5316_v16  ;;  %v17568_v16 = vpop.f32.mrb[218].mxu0 }
 0xb82   : > { %18216 = vmatprep.subr.bf16.mxu1 %v19411_v60  ;;  %v17569_v17 = vpop.f32.mrb[219].mxu0 }
 0xb83   : > { %v17570_v19 = vadd.f32 %v17569_v17, %v17568_v16  ;;  %v17571_v22 = vpop.f32.mrb[220].mxu0 }
 0xb84   : > { %v17572_v23 = vpop.f32.mrb[221].mxu0 }
 0xb85   : > { %18217 = vmatpush3.bf16.msra.mxu1 %v19411_v60  ;;  %v5766_v20 = vpack.c.bf16 %v17570_v19, %v17567_v18  ;;  %v17573_v25 = vadd.f32 %v17572_v23, %v17571_v22 }
 0xb86   : > { %17485 = vmatprep.subr.bf16.mxu1 %v20378_v27 }
 0xb8c   : > { %18219 = vmatmul.mubr.msk.bf16.vlgmr.msra.gmra.mrb[16].mxu1 %vm1370_vm0, %v5317_v24  ;;  %v17574_v24 = vpop.f32.mrb[222].mxu0 }
 0xb8d   : > { %17486 = vmatpush3.bf16.msra.mxu1 %v20346_v63  ;;  %5449 = vmatprep.mubr.bf16.mxu1 %v19414_v62  ;;  %v17575_v26 = vpop.f32.mrb[223].mxu0 }
 0xb8e   : > { %17487 = vmatprep.subr.bf16.mxu1 %v20386_v39  ;;  %v17576_v30 = vadd.f32 %v17575_v26, %v17574_v24 }
 0xb90   : > { %v5767_v31 = vpack.c.bf16 %v17576_v30, %v17573_v25 }
 0xb91   : > { %17488 = vmatpush3.bf16.msra.mxu1 %v20350_v10 }
 0xb92   : > { %17489 = vmatprep.subr.bf16.mxu1 %v20394_v52 }
 0xb95   : > { %17490 = vmatpush3.bf16.msra.mxu1 %v20354_v21 }
 0xb96   : > { %17491 = vmatprep.subr.bf16.mxu1 %v20402_v1 }
 0xb99   : > { %17492 = vmatpush3.bf16.msra.mxu1 %v20358_v32 }
 0xb9a   : > { %17493 = vmatprep.subr.bf16.mxu1 %v20410_v14 }
 0xb9d   : > { %17494 = vmatpush3.bf16.msra.mxu1 %v20362_v43 }
 0xb9e   : > { %17495 = vmatprep.subr.bf16.mxu1 %v20418_v28 }
 0xba1   : > { %17496 = vmatpush3.bf16.msra.mxu1 %v20366_v55 }
 0xba2   : > { %17497 = vmatprep.subr.bf16.mxu1 %v20428_v42 }
 0xba5   : > { %17498 = vmatpush3.bf16.msra.mxu1 %v20370_v3 }
 0xba6   : > { %17499 = vmatprep.subr.bf16.mxu1 %v20434_v53 }
 0xba9   : > { %17500 = vmatpush3.bf16.msra.mxu1 %v20374_v15 }
 0xbaa   : > { %18222 = vmatprep.subr.bf16.mxu1 %v19418_v4 }
 0xbac   : > { %5450 = vmatmul.mubr.bf16.vlgmr.msra.gmra.mrb[84].mxu1 %v19412_v7 }
 0xbad   : > { %5457 = vmatprep.mubr.bf16.mxu1 %v19415_v8  ;;  %18223 = vmatpush3.bf16.msra.mxu1 %v19418_v4 }
 0xbae   : > { %18224 = vmatprep.subr.bf16.mxu1 %v19419_v5 }
 0xbb1   : > { %18225 = vmatpush3.bf16.msra.mxu1 %v19419_v5 }
 0xbb2   : > { %18230 = vmatprep.subr.bf16.mxu1 %v19420_v57 }
 0xbb4   : > { %5458 = vmatmul.mubr.bf16.gmra.mrb[88].mxu1 %v19417_v9  ;;  %v19421_v9 = vld [vmem:[%s24630_s24 + $0x1d8] sm:$0xff]  }
 0xc7f   : > { %v17501_v35 = vpop.f32.mrb[84].mxu1 }
 0xc80   : > { %v17502_v36 = vpop.f32.mrb[85].mxu1 }
 0xc81   : > { %v17503_v41 = vadd.f32 %v17502_v36, %v17501_v35  ;;  %v17504_v48 = vpop.f32.mrb[86].mxu1 }
 0xc82   : > { %v17505_v44 = vpop.f32.mrb[87].mxu1 }
 0xc83   : > { %v17506_v46 = vadd.f32 %v17505_v44, %v17504_v48  ;;  %v19444_v44 = vld [vmem:[%s24629_s23 + $0x464] ss:$8 sps:$4 sm:$0xff]  }
 0xc84   : > { %6499 = vmatprep.mubr.bf16.mxu0 %v19444_v44 }
 0xc85   : > { %v5466_v49 = vpack.c.bf16 %v17506_v46, %v17503_v41  ;;  %v19442_v46 = vld [vmem:[%s24629_s23 + $0x460] ss:$8 sps:$4 sm:$0xff]  }
 0xc86   : > { %6500 = vmatmul.mubr.bf16.vlgmr.msra.gmra.mrb[240].mxu0 %v19442_v46 }
 0xc87   : > { %v17507_v50 = vpop.f32.mrb[88].mxu1  ;;  %18226 = vmatprep.mubr.msk.bf16.mxu1 %vm1370_vm0, %v5466_v49  ;;  %v19447_v49 = vld [vmem:[%s24629_s23 + $0x474] ss:$8 sps:$4 sm:$0xff]  }
 0xc88   : > { %v17508_v51 = vpop.f32.mrb[89].mxu1  ;;  %6507 = vmatprep.mubr.bf16.mxu0 %v19447_v49 }
 0xc89   : > { %v17509_v59 = vadd.f32 %v17508_v51, %v17507_v50  ;;  %v17510_v60 = vpop.f32.mrb[90].mxu1  ;;  %v19450_v50 = vld [vmem:[%s24629_s23 + $0x470] ss:$8 sps:$4 sm:$0xff]  }
 0xc8a   : > { %v17511_v62 = vpop.f32.mrb[91].mxu1 }
 0xc8b   : > { %v17512_v7 = vadd.f32 %v17511_v62, %v17510_v60 }
 0xc8d   : > { %v5467_v8 = vpack.c.bf16 %v17512_v7, %v17509_v59 }
 0xc8e   : > { %6508 = vmatmul.mubr.bf16.gmra.mrb[244].mxu0 %v19450_v50 }
 0xc8f   : > { %18227 = vmatmul.mubr.msk.bf16.vlgmr.msra.gmra.mrb[16].mxu1 %vm1370_vm0, %v5467_v8 }
 0xc90   : > { %18231 = vmatpush3.bf16.msra.mxu1 %v19420_v57  ;;  %18234 = vmatprep.mubr.msk.bf16.mxu1 %vm1370_vm0, %v5616_v0  ;;  %v17629_v0 = vpop.f32.mrb[224].mxu0 }
 0xc91   : > { %18232 = vmatprep.subr.bf16.mxu1 %v19421_v9  ;;  %v17630_v4 = vpop.f32.mrb[225].mxu0 }
 0xc92   : > { %v17632_v5 = vpop.f32.mrb[226].mxu0  ;;  %v17631_v54 = vadd.f32 %v17630_v4, %v17629_v0  ;;  %v19436_v4 = vld [vmem:[%s24630_s24 + $0x208] sm:$0xff]  }
 0xc93   : > { %v17633_v29 = vpop.f32.mrb[227].mxu0 }
 0xc94   : > { %18233 = vmatpush3.bf16.msra.mxu1 %v19421_v9  ;;  %v17634_v47 = vadd.f32 %v17633_v29, %v17632_v5  ;;  %v17635_v6 = vpop.f32.mrb[228].mxu0  ;;  %v19437_v5 = vld [vmem:[%s24630_s24 + $0x210] sm:$0xff]   ;;  %v19438_v29 = vld [vmem:[%s24630_s24 + $0x218] sm:$0xff]  }
 0xc95   : > { %18238 = vmatprep.subr.bf16.mxu1 %v19422_v45 }
 0xc96   : > { %v6066_v57 = vpack.c.bf16 %v17634_v47, %v17631_v54  ;;  %v19441_v54 = vld [vmem:[%s24629_s23 + $0x444] ss:$8 sps:$4 sm:$0xff]  }
 0xc97   : > { %v19451_v47 = vld [vmem:[%s24630_s24 + $0x220] sm:$0xff]  }
 0xc9b   : > { %18235 = vmatmul.mubr.msk.bf16.vlgmr.msra.gmra.mrb[16].mxu1 %vm1370_vm0, %v5617_v11  ;;  %v17636_v11 = vpop.f32.mrb[229].mxu0 }
 0xc9c   : > { %18239 = vmatpush3.bf16.msra.mxu1 %v19422_v45  ;;  %18242 = vmatprep.mubr.msk.bf16.mxu1 %vm1370_vm0, %v5766_v20  ;;  %v17638_v12 = vpop.f32.mrb[230].mxu0  ;;  %v17637_v17 = vadd.f32 %v17636_v11, %v17635_v6  ;;  %v19453_v6 = vld [vmem:[%s24630_s24 + $0x228] sm:$0xff]  }
 0xc9d   : > { %18240 = vmatprep.subr.bf16.mxu1 %v19423_v56  ;;  %v17639_v16 = vpop.f32.mrb[231].mxu0 }
 0xc9e   : > { %v17640_v18 = vadd.f32 %v17639_v16, %v17638_v12  ;;  %v17661_v20 = vpop.f32.mrb[232].mxu0 }
 0xc9f   : > { %v17662_v22 = vpop.f32.mrb[233].mxu0 }
 0xca0   : > { %18241 = vmatpush3.bf16.msra.mxu1 %v19423_v56  ;;  %v6067_v19 = vpack.c.bf16 %v17640_v18, %v17637_v17  ;;  %v17664_v23 = vpop.f32.mrb[234].mxu0  ;;  %v17663_v25 = vadd.f32 %v17662_v22, %v17661_v20 }
 0xca1   : > { %17581 = vmatprep.subr.bf16.mxu1 %v20378_v27  ;;  %v17665_v24 = vpop.f32.mrb[235].mxu0 }
 0xca2   : > { %v17666_v26 = vadd.f32 %v17665_v24, %v17664_v23 }
 0xca4   : > { %v6216_v30 = vpack.c.bf16 %v17666_v26, %v17663_v25 }
 0xca7   : > { %18243 = vmatmul.mubr.msk.bf16.vlgmr.msra.gmra.mrb[16].mxu1 %vm1370_vm0, %v5767_v31  ;;  %v17667_v31 = vpop.f32.mrb[236].mxu0 }
 0xca8   : > { %17582 = vmatpush3.bf16.msra.mxu1 %v20346_v63  ;;  %5899 = vmatprep.mubr.bf16.mxu1 %v19426_v37  ;;  %v17668_v33 = vpop.f32.mrb[237].mxu0 }
 0xca9   : > { %17583 = vmatprep.subr.bf16.mxu1 %v20386_v39  ;;  %v17670_v34 = vpop.f32.mrb[238].mxu0  ;;  %v17669_v35 = vadd.f32 %v17668_v33, %v17667_v31 }
 0xcaa   : > { %v17671_v36 = vpop.f32.mrb[239].mxu0 }
 0xcab   : > { %v17672_v41 = vadd.f32 %v17671_v36, %v17670_v34  ;;  %v20125_v36 = vmov 0.0  }
 0xcac   : > { %17584 = vmatpush3.bf16.msra.mxu1 %v20350_v10 }
 0xcad   : > { %17585 = vmatprep.subr.bf16.mxu1 %v20394_v52  ;;  %v6217_v48 = vpack.c.bf16 %v17672_v41, %v17669_v35 }
 0xcb0   : > { %17586 = vmatpush3.bf16.msra.mxu1 %v20354_v21 }
 0xcb1   : > { %17587 = vmatprep.subr.bf16.mxu1 %v20402_v1 }
 0xcb4   : > { %17588 = vmatpush3.bf16.msra.mxu1 %v20358_v32 }
 0xcb5   : > { %17589 = vmatprep.subr.bf16.mxu1 %v20410_v14 }
 0xcb8   : > { %17590 = vmatpush3.bf16.msra.mxu1 %v20362_v43 }
 0xcb9   : > { %17591 = vmatprep.subr.bf16.mxu1 %v20418_v28 }
 0xcbc   : > { %17592 = vmatpush3.bf16.msra.mxu1 %v20366_v55 }
 0xcbd   : > { %17593 = vmatprep.subr.bf16.mxu1 %v20428_v42 }
 0xcc0   : > { %17594 = vmatpush3.bf16.msra.mxu1 %v20370_v3 }
 0xcc1   : > { %17595 = vmatprep.subr.bf16.mxu1 %v20434_v53 }
 0xcc4   : > { %17596 = vmatpush3.bf16.msra.mxu1 %v20374_v15 }
 0xcc5   : > { %18246 = vmatprep.subr.bf16.mxu1 %v19433_v58 }
 0xcc7   : > { %5900 = vmatmul.mubr.bf16.vlgmr.msra.gmra.mrb[92].mxu1 %v19424_v38 }
 0xcc8   : > { %5907 = vmatprep.mubr.bf16.mxu1 %v19427_v40  ;;  %18247 = vmatpush3.bf16.msra.mxu1 %v19433_v58 }
 0xcc9   : > { %18248 = vmatprep.subr.bf16.mxu1 %v19434_v2 }
 0xccc   : > { %18249 = vmatpush3.bf16.msra.mxu1 %v19434_v2 }
 0xccd   : > { %18254 = vmatprep.subr.bf16.mxu1 %v19435_v13 }
 0xccf   : > { %5908 = vmatmul.mubr.bf16.gmra.mrb[96].mxu1 %v19429_v61 }
 0xd9a   : > { %v17597_v51 = vpop.f32.mrb[92].mxu1 }
 0xd9b   : > { %v17598_v59 = vpop.f32.mrb[93].mxu1 }
 0xd9c   : > { %v17599_v60 = vadd.f32 %v17598_v59, %v17597_v51  ;;  %v17600_v62 = vpop.f32.mrb[94].mxu1 }
 0xd9d   : > { %v17601_v7 = vpop.f32.mrb[95].mxu1 }
 0xd9e   : > { %v17602_v8 = vadd.f32 %v17601_v7, %v17600_v62 }
 0xda0   : > { %v5916_v9 = vpack.c.bf16 %v17602_v8, %v17599_v60 }
 0xda2   : > { %v17603_v45 = vpop.f32.mrb[96].mxu1  ;;  %18250 = vmatprep.mubr.msk.bf16.mxu1 %vm1370_vm0, %v5916_v9 }
 0xda3   : > { %v17604_v56 = vpop.f32.mrb[97].mxu1 }
 0xda4   : > { %v17605_v37 = vadd.f32 %v17604_v56, %v17603_v45  ;;  %v17606_v38 = vpop.f32.mrb[98].mxu1 }
 0xda5   : > { %v17607_v40 = vpop.f32.mrb[99].mxu1 }
 0xda6   : > { %v17608_v61 = vadd.f32 %v17607_v40, %v17606_v38 }
 0xda8   : > { %v5917_v0 = vpack.c.bf16 %v17608_v61, %v17605_v37 }
 0xdaa   : > { %18251 = vmatmul.mubr.msk.bf16.vlgmr.msra.gmra.mrb[16].mxu1 %vm1370_vm0, %v5917_v0  ;;  %v19455_v0 = vld [vmem:[%s24599_s6 + $0x8] sm:$0xff]  }
 0xdab   : > { %18255 = vmatpush3.bf16.msra.mxu1 %v19435_v13  ;;  %18258 = vmatprep.mubr.msk.bf16.mxu1 %vm1370_vm0, %v6066_v57 }
 0xdac   : > { %18256 = vmatprep.subr.bf16.mxu1 %v19436_v4 }
 0xdaf   : > { %18257 = vmatpush3.bf16.msra.mxu1 %v19436_v4  ;;  %v19456_v4 = vld [vmem:[%s24599_s6] sm:$0xff]  }
 0xdb0   : > { %18262 = vmatprep.subr.bf16.mxu1 %v19437_v5 }
 0xdb6   : > { %18259 = vmatmul.mubr.msk.bf16.vlgmr.msra.gmra.mrb[16].mxu1 %vm1370_vm0, %v6067_v19 }
 0xdb7   : > { %18263 = vmatpush3.bf16.msra.mxu1 %v19437_v5  ;;  %18266 = vmatprep.mubr.msk.bf16.mxu1 %vm1370_vm0, %v6216_v30  ;;  %v19457_v5 = vld [vmem:[%s24600_s7 + $0x20] sm:$0xff]  }
 0xdb8   : > { %18264 = vmatprep.subr.bf16.mxu1 %v19438_v29 }
 0xdbb   : > { %18265 = vmatpush3.bf16.msra.mxu1 %v19438_v29  ;;  %v19458_v29 = vld [vmem:[%s24600_s7 + $0x28] sm:$0xff]  }
 0xdbc   : > { %17677 = vmatprep.subr.bf16.mxu1 %v20378_v27  ;;  %v19452_v27 = vld [vmem:[%s24630_s24 + $0x230] sm:$0xff]  }
 0xdbd   : > { %18278 = vmatprep.subr.bf16.mxu0 %v19452_v27 }
 0xdbe   : > { %18279 = vmatpush3.bf16.msra.mxu0 %v19452_v27 }
 0xdc2   : > { %18267 = vmatmul.mubr.msk.bf16.vlgmr.msra.gmra.mrb[16].mxu1 %vm1370_vm0, %v6217_v48  ;;  %v15668_v48 = vld [vmem:[%s24631_s4] ss:$0 sm:$0xff] }
 0xdc3   : > { %17678 = vmatpush3.bf16.msra.mxu1 %v20346_v63  ;;  %6349 = vmatprep.mubr.bf16.mxu1 %v19441_v54  ;;  %v19439_v63 = vld [vmem:[%s24629_s23 + $0x440] ss:$8 sps:$4 sm:$0xff]   ;;  %v19459_v54 = vld [vmem:[%s24600_s7 + $0x30] sm:$0xff]  }
 0xdc4   : > { %17679 = vmatprep.subr.bf16.mxu1 %v20386_v39 }
 0xdc7   : > { %17680 = vmatpush3.bf16.msra.mxu1 %v20350_v10  ;;  %v19445_v10 = vld [vmem:[%s24629_s23 + $0x454] ss:$8 sps:$4 sm:$0xff]  }
 0xdc8   : > { %17681 = vmatprep.subr.bf16.mxu1 %v20394_v52 }
 0xdcb   : > { %17682 = vmatpush3.bf16.msra.mxu1 %v20354_v21  ;;  %v19449_v21 = vld [vmem:[%s24629_s23 + $0x450] ss:$8 sps:$4 sm:$0xff]  }
 0xdcc   : > { %17683 = vmatprep.subr.bf16.mxu1 %v20402_v1 }
 0xdcf   : > { %17684 = vmatpush3.bf16.msra.mxu1 %v20358_v32  ;;  %v17725_v32 = vpop.f32.mrb[240].mxu0 }
 0xdd0   : > { %17685 = vmatprep.subr.bf16.mxu1 %v20410_v14 }
 0xdd3   : > { %17686 = vmatpush3.bf16.msra.mxu1 %v20362_v43  ;;  %v17726_v43 = vpop.f32.mrb[241].mxu0 }
 0xdd4   : > { %17687 = vmatprep.subr.bf16.mxu1 %v20418_v28 }
 0xdd7   : > { %17688 = vmatpush3.bf16.msra.mxu1 %v20366_v55  ;;  %v17728_v55 = vpop.f32.mrb[242].mxu0 }
 0xdd8   : > { %17689 = vmatprep.subr.bf16.mxu1 %v20428_v42  ;;  %v19454_v42 = vld [vmem:[%s24630_s24 + $0x238] sm:$0xff]  }
 0xdd9   : > { %18280 = vmatprep.subr.bf16.mxu0 %v19454_v42 }
 0xdda   : > { %18281 = vmatpush3.bf16.msra.mxu0 %v19454_v42  ;;  %v19467_v42 = vld [vmem:[%s24600_s7 + $0x40] sm:$0xff]  }
 0xddb   : > { %17690 = vmatpush3.bf16.msra.mxu1 %v20370_v3  ;;  %v17729_v3 = vpop.f32.mrb[243].mxu0  ;;  %18286 = vmatprep.subr.bf16.mxu0 %v20125_v36 }
 0xddc   : > { %17691 = vmatprep.subr.bf16.mxu1 %v20434_v53  ;;  %v17730_v39 = vadd.f32 %v17729_v3, %v17728_v55  ;;  %v17731_v52 = vpop.f32.mrb[244].mxu0 }
 0xddd   : > { %v17732_v14 = vpop.f32.mrb[245].mxu0 }
 0xdde   : > { %v17734_v28 = vpop.f32.mrb[246].mxu0  ;;  %v17733_v57 = vadd.f32 %v17732_v14, %v17731_v52 }
 0xddf   : > { %17692 = vmatpush3.bf16.msra.mxu1 %v20374_v15  ;;  %v17727_v15 = vadd.f32 %v17726_v43, %v17725_v32  ;;  %v17735_v53 = vpop.f32.mrb[247].mxu0  ;;  %v19460_v32 = vld [vmem:[%s24600_s7 + $0x38] sm:$0xff]  }
 0xde0   : > { %v17736_v58 = vadd.f32 %v17735_v53, %v17734_v28  ;;  %18270 = vmatprep.subr.bf16.mxu1 %v19451_v47  ;;  %v19466_v43 = vld [vmem:[%s24600_s7 + $0x18] sm:$0xff]  }
 0xde1   : > { %v6516_v1 = vpack.c.bf16 %v17730_v39, %v17727_v15 }
 0xde2   : > { %6350 = vmatmul.mubr.bf16.vlgmr.msra.gmra.mrb[100].mxu1 %v19439_v63  ;;  %v6517_v2 = vpack.c.bf16 %v17736_v58, %v17733_v57  ;;  %v19461_v63 = vld [vmem:[%s24600_s7] sm:$0xff]   ;;  %v19462_v57 = vld [vmem:[%s24599_s6 + $0x10] sm:$0xff]   ;;  %v19465_v58 = vld [vmem:[%s24599_s6 + $0x18] sm:$0xff]  }
 0xde3   : > { %6357 = vmatprep.mubr.bf16.mxu1 %v19445_v10  ;;  %18282 = vmatprep.mubr.msk.bf16.mxu0 %vm1370_vm0, %v6516_v1  ;;  %v19463_v10 = vld [vmem:[%s24600_s7 + $0x8] sm:$0xff]  }
 0xde4   : > { %18271 = vmatpush3.bf16.msra.mxu1 %v19451_v47  ;;  %18283 = vmatmul.mubr.msk.bf16.vlgmr.msra.gmra.mrb[248].mxu0 %vm1370_vm0, %v6517_v2  ;;  %v19468_v47 = vld [vmem:[%s24600_s7 + $0x48] sm:$0xff]   ;;  %v19469_v2 = vld [vmem:[%s24600_s7 + $0x50] sm:$0xff]  }
 0xde5   : > { %18272 = vmatprep.subr.bf16.mxu1 %v19453_v6  ;;  %18290 = vmatprep.mubr.msk.bf16.mxu0 %vm20126_vm1, %v20125_v36 }
 0xde8   : > { %18273 = vmatpush3.bf16.msra.mxu1 %v19453_v6  ;;  %v19470_v6 = vld [vmem:[%s24600_s7 + $0x60] sm:$0xff]  }
 0xde9   : > { %18294 = vmatprep.subr.bf16.mxu1 %v20125_v36 }
 0xdea   : > { %6358 = vmatmul.mubr.bf16.gmra.mrb[104].mxu1 %v19449_v21  ;;  %v19464_v21 = vld [vmem:[%s24600_s7 + $0x10] sm:$0xff]  }
 0xeb5   : > { %v17693_v11 = vpop.f32.mrb[100].mxu1 }
 0xeb6   : > { %v17694_v12 = vpop.f32.mrb[101].mxu1 }
 0xeb7   : > { %v17695_v13 = vadd.f32 %v17694_v12, %v17693_v11  ;;  %v17696_v16 = vpop.f32.mrb[102].mxu1  ;;  %v18284_v31 = vpop.f32.mrb[248].mxu0  ;;  %v19471_v11 = vld [vmem:[%s24600_s7 + $0x58] sm:$0xff]   ;;  %v19472_v12 = vld [vmem:[%s24600_s7 + $0x68] sm:$0xff]  }
 0xeb8   : > { %v17697_v17 = vpop.f32.mrb[103].mxu1  ;;  %v6574_v33 = vpop.f32.mrb[249].mxu0 }
 0xeb9   : > { %v17698_v18 = vadd.f32 %v17697_v17, %v17696_v16  ;;  %v18285_v34 = vpop.f32.mrb[250].mxu0  ;;  %v19474_v16 = vld [vmem:[%s24600_s7 + $0x78] sm:$0xff]  }
 0xeba   : > { %v6577_v35 = vpop.f32.mrb[251].mxu0 }
 0xebb   : > { %v6366_v19 = vpack.c.bf16 %v17698_v18, %v17695_v13  ;;  %v19473_v13 = vld [vmem:[%s24600_s7 + $0x70] sm:$0xff]  }
 0xebd   : > { %v17699_v20 = vpop.f32.mrb[104].mxu1  ;;  %18274 = vmatprep.mubr.msk.bf16.mxu1 %vm1370_vm0, %v6366_v19 }
 0xebe   : > { %v17700_v22 = vpop.f32.mrb[105].mxu1 }
 0xebf   : > { %v17701_v23 = vadd.f32 %v17700_v22, %v17699_v20  ;;  %v17702_v24 = vpop.f32.mrb[106].mxu1 }
 0xec0   : > { %v17703_v25 = vpop.f32.mrb[107].mxu1 }
 0xec1   : > { %v17704_v26 = vadd.f32 %v17703_v25, %v17702_v24 }
 0xec3   : > { %v6367_v30 = vpack.c.bf16 %v17704_v26, %v17701_v23 }
 0xec5   : > { %18275 = vmatmul.mubr.msk.bf16.vlgmr.msra.gmra.mrb[16].mxu1 %vm1370_vm0, %v6367_v30 }
 0xec6   : > { %18298 = vmatprep.mubr.msk.bf16.mxu1 %vm20126_vm1, %v20125_v36 }
 0xf98   : > { %v18276_v41 = vpop.f32.mrb[16].mxu1 }
 0xf99   : > { %v18864_v44 = vadd.f32 %v18284_v31, %v18276_v41  ;;  %v6424_v46 = vpop.f32.mrb[17].mxu1 }
 0xf9a   : > { %v18865_v49 = vadd.f32 %v6574_v33, %v6424_v46  ;;  %v18277_v50 = vpop.f32.mrb[18].mxu1  ;;  %v19475_v46 = vld [vmem:[%s24599_s6 + $0x20] sm:$0xff]  }
 0xf9b   : > { %v6602_v51 = vadd.f32 %v18864_v44, %v15668_v48  ;;  %v18866_v59 = vadd.f32 %v18285_v34, %v18277_v50  ;;  %v6427_v60 = vpop.f32.mrb[19].mxu1 }
 0xf9c   : > { %v6600_v62 = vadd.f32 %v18865_v49, %v15668_v48  ;;  %v18867_v7 = vadd.f32 %v6577_v35, %v6427_v60  ;;  %v19476_v60 = vld [vmem:[%s24599_s6 + $0x28] sm:$0xff]  }
 0xf9d   : > { %v6603_v8 = vadd.f32 %v18866_v59, %v15668_v48  ;;  %v6606_v45 = vmax.f32 %v6602_v51, 0.0  ;;  %v19477_v59 = vld [vmem:[%s24600_s7 + $0x80] sm:$0xff]  }
 0xf9e   : > { %v6601_v9 = vadd.f32 %v18867_v7, %v15668_v48  ;;  %v6604_v37 = vmax.f32 %v6600_v62, 0.0  ;;  %v19478_v62 = vld [vmem:[%s24600_s7 + $0x88] sm:$0xff]   ;;  %v19479_v7 = vld [vmem:[%s24600_s7 + $0x90] sm:$0xff]  }
 0xf9f   : > { %v6607_v56 = vmax.f32 %v6603_v8, 0.0  ;;  %v19480_v8 = vld [vmem:[%s24600_s7 + $0xa0] sm:$0xff]  }
 0xfa0   : > { %v6605_v38 = vmax.f32 %v6601_v9, 0.0  ;;  %v19481_v9 = vld [vmem:[%s24600_s7 + $0x98] sm:$0xff]  }
 0xfa1   : > { %v21796_v40 = vpack.c.bf16 %v6607_v56, %v6606_v45  ;;  %v19482_v45 = vld [vmem:[%s24600_s7 + $0xa8] sm:$0xff]   ;;  %v19483_v56 = vld [vmem:[%s24600_s7 + $0xb0] sm:$0xff]  }
 0xfa2   : > { %v21798_v61 = vpack.c.bf16 %v6605_v38, %v6604_v37  ;;  %v19484_v37 = vld [vmem:[%s24600_s7 + $0xb8] sm:$0xff]  }
 0xfa4   : > { %18287 = vmatpush3.bf16.msra.mxu0 %v21798_v61  ;;  %18295 = vmatpush3.bf16.msra.mxu1 %v21798_v61 }
 0xfa5   : > { %18288 = vmatprep.subr.bf16.mxu0 %v20125_v36  ;;  %18296 = vmatprep.subr.bf16.mxu1 %v20125_v36 }
 0xfa8   : > { %18289 = vmatpush3.bf16.msra.mxu0 %v21796_v40  ;;  %18297 = vmatpush3.bf16.msra.mxu1 %v21796_v40 }
 0xfa9   : > { %18302 = vmatprep.subr.bf16.mxu0 %v20125_v36  ;;  %18314 = vmatprep.subr.bf16.mxu1 %v20125_v36 }
 0xfab   : > { %18299 = vmatmul.mubr.msk.bf16.vlgmr.msra.gmra.mrb[108].mxu1 %vm1370_vm0, %v19455_v0  ;;  %18291 = vmatmul.mubr.msk.bf16.vlgmr.msra.gmra.mrb[252].mxu0 %vm1370_vm0, %v19456_v4 }
 0xfac   : > { %18303 = vmatpush3.bf16.msra.mxu0 %v19457_v5  ;;  %18310 = vmatprep.mubr.msk.bf16.mxu0 %vm20126_vm1, %v20125_v36 }
 0xfad   : > { %18304 = vmatprep.subr.bf16.mxu0 %v20125_v36  ;;  %18322 = vmatprep.mubr.msk.bf16.mxu1 %vm20126_vm1, %v20125_v36 }
 0xfae   : > { %18315 = vmatpush3.bf16.msra.mxu1 %v19461_v63 }
 0xfaf   : > { %18316 = vmatprep.subr.bf16.mxu1 %v20125_v36 }
 0xfb0   : > { %18305 = vmatpush3.bf16.msra.mxu0 %v19458_v29 }
 0xfb1   : > { %18306 = vmatprep.subr.bf16.mxu0 %v20125_v36 }
 0xfb2   : > { %18317 = vmatpush3.bf16.msra.mxu1 %v19463_v10 }
 0xfb3   : > { %18318 = vmatprep.subr.bf16.mxu1 %v20125_v36 }
 0xfb4   : > { %18307 = vmatpush3.bf16.msra.mxu0 %v19459_v54 }
 0xfb5   : > { %18308 = vmatprep.subr.bf16.mxu0 %v20125_v36 }
 0xfb6   : > { %18319 = vmatpush3.bf16.msra.mxu1 %v19464_v21 }
 0xfb7   : > { %18320 = vmatprep.subr.bf16.mxu1 %v20125_v36 }
 0xfb8   : > { %18309 = vmatpush3.bf16.msra.mxu0 %v19460_v32 }
 0xfb9   : > { %18326 = vmatprep.subr.bf16.mxu0 %v20125_v36 }
 0xfba   : > { %18321 = vmatpush3.bf16.msra.mxu1 %v19466_v43 }
 0xfbb   : > { %18334 = vmatprep.subr.bf16.mxu1 %v20125_v36 }
0x107e   : > { %v6714_v55 = vpop.f32.mrb[108].mxu1  ;;  %v6654_v3 = vpop.f32.mrb[252].mxu0 }
0x107f   : > { %v18300_v27 = vpop.f32.mrb[109].mxu1  ;;  %v18292_v15 = vpop.f32.mrb[253].mxu0 }
0x1080   : > { %v6717_v39 = vpop.f32.mrb[110].mxu1  ;;  %v6657_v52 = vpop.f32.mrb[254].mxu0 }
0x1081   : > { %v6721_v1 = vpack.c.bf16 %v6717_v39, %v6714_v55  ;;  %v6661_v14 = vpack.c.bf16 %v6657_v52, %v6654_v3  ;;  %v18301_v28 = vpop.f32.mrb[111].mxu1  ;;  %v18293_v53 = vpop.f32.mrb[255].mxu0 }
0x1082   : > { %v19485_v28 = vld [vmem:[%s24599_s6 + $0x30] sm:$0xff]  }
0x1083   : > { %18311 = vmatmul.mubr.msk.bf16.vlgmr.msra.gmra.mrb[0].mxu0 %vm6754_vm2, %v6721_v1  ;;  %18323 = vmatmul.mubr.msk.bf16.vlgmr.msra.gmra.mrb[112].mxu1 %vm6754_vm2, %v6661_v14 }
0x1084   : > { %18327 = vmatpush3.bf16.msra.mxu0 %v21798_v61  ;;  %18330 = vmatprep.mubr.msk.bf16.mxu0 %vm20126_vm1, %v20125_v36 }
0x1085   : > { %18328 = vmatprep.subr.bf16.mxu0 %v20125_v36  ;;  %18335 = vmatpush3.bf16.msra.mxu1 %v19467_v42 }
0x1086   : > { %18336 = vmatprep.subr.bf16.mxu1 %v20125_v36  ;;  %18342 = vmatprep.mubr.msk.bf16.mxu1 %vm20126_vm1, %v20125_v36 }
0x1088   : > { %18329 = vmatpush3.bf16.msra.mxu0 %v21796_v40 }
0x1089   : > { %18346 = vmatprep.subr.bf16.mxu0 %v20125_v36  ;;  %18337 = vmatpush3.bf16.msra.mxu1 %v19468_v47 }
0x108a   : > { %18338 = vmatprep.subr.bf16.mxu1 %v20125_v36 }
0x108b   : > { %18331 = vmatmul.mubr.msk.bf16.vlgmr.msra.gmra.mrb[4].mxu0 %vm1370_vm0, %v19462_v57  ;;  %v19487_v57 = vld [vmem:[%s24600_s7 + $0xc0] sm:$0xff]  }
0x108c   : > { %18347 = vmatpush3.bf16.msra.mxu0 %v21798_v61  ;;  %18350 = vmatprep.mubr.msk.bf16.mxu0 %vm20126_vm1, %v20125_v36 }
0x108d   : > { %18348 = vmatprep.subr.bf16.mxu0 %v20125_v36  ;;  %18339 = vmatpush3.bf16.msra.mxu1 %v19469_v2  ;;  %v19488_v2 = vld [vmem:[%s24600_s7 + $0xc8] sm:$0xff]  }
0x108e   : > { %18340 = vmatprep.subr.bf16.mxu1 %v20125_v36 }
0x1090   : > { %18349 = vmatpush3.bf16.msra.mxu0 %v21796_v40 }
0x1091   : > { %18354 = vmatprep.subr.bf16.mxu0 %v20125_v36  ;;  %18341 = vmatpush3.bf16.msra.mxu1 %v19471_v11  ;;  %v19490_v11 = vld [vmem:[%s24600_s7 + $0xe0] sm:$0xff]  }
0x1092   : > { %18366 = vmatprep.subr.bf16.mxu1 %v20125_v36 }
0x1093   : > { %18351 = vmatmul.mubr.msk.bf16.vlgmr.msra.gmra.mrb[8].mxu0 %vm1370_vm0, %v19465_v58  ;;  %v19486_v58 = vld [vmem:[%s24599_s6 + $0x38] sm:$0xff]  }
0x1094   : > { %18362 = vmatprep.mubr.msk.bf16.mxu0 %vm20126_vm1, %v20125_v36  ;;  %18355 = vmatpush3.bf16.msra.mxu0 %v19470_v6  ;;  %v19489_v6 = vld [vmem:[%s24600_s7 + $0xd0] sm:$0xff]  }
0x1095   : > { %18356 = vmatprep.subr.bf16.mxu0 %v20125_v36 }
0x1098   : > { %18357 = vmatpush3.bf16.msra.mxu0 %v19472_v12  ;;  %v19491_v12 = vld [vmem:[%s24600_s7 + $0xd8] sm:$0xff]  }
0x1099   : > { %18358 = vmatprep.subr.bf16.mxu0 %v20125_v36 }
0x109c   : > { %18359 = vmatpush3.bf16.msra.mxu0 %v19473_v13  ;;  %v19492_v13 = vld [vmem:[%s24600_s7 + $0xe8] sm:$0xff]  }
0x109d   : > { %18360 = vmatprep.subr.bf16.mxu0 %v20125_v36 }
0x10a0   : > { %18361 = vmatpush3.bf16.msra.mxu0 %v19474_v16  ;;  %v19493_v16 = vld [vmem:[%s24600_s7 + $0xf0] sm:$0xff]  }
0x10a1   : > { %18386 = vmatprep.subr.bf16.mxu0 %v20125_v36 }
0x1156   : > { %v6792_v17 = vpop.f32.mrb[0].mxu0  ;;  %v6860_v18 = vpop.f32.mrb[112].mxu1 }
0x1157   : > { %v18312_v19 = vpop.f32.mrb[1].mxu0  ;;  %v6861_v20 = vadd.f32 %v6860_v18, %v6792_v17  ;;  %v18324_v22 = vpop.f32.mrb[113].mxu1  ;;  %v19494_v17 = vld [vmem:[%s24600_s7 + $0xf8] sm:$0xff]  }
0x1158   : > { %v6795_v23 = vpop.f32.mrb[2].mxu0  ;;  %v6863_v24 = vpop.f32.mrb[114].mxu1 }
0x1159   : > { %v18313_v25 = vpop.f32.mrb[3].mxu0  ;;  %v6864_v26 = vadd.f32 %v6863_v24, %v6795_v23  ;;  %v18325_v30 = vpop.f32.mrb[115].mxu1 }
0x115e   : > { %v6911_v31 = vpop.f32.mrb[4].mxu0 }
0x115f   : > { %v18332_v33 = vpop.f32.mrb[5].mxu0 }
0x1160   : > { %v6914_v34 = vpop.f32.mrb[6].mxu0 }
0x1161   : > { %v6918_v35 = vpack.c.bf16 %v6914_v34, %v6911_v31  ;;  %v18333_v41 = vpop.f32.mrb[7].mxu0 }
0x1163   : > { %18343 = vmatmul.mubr.msk.bf16.vlgmr.msra.gmra.mrb[116].mxu1 %vm6754_vm2, %v6918_v35 }
0x1164   : > { %18367 = vmatpush3.bf16.msra.mxu1 %v21798_v61  ;;  %18370 = vmatprep.mubr.msk.bf16.mxu1 %vm20126_vm1, %v20125_v36 }
0x1165   : > { %18368 = vmatprep.subr.bf16.mxu1 %v20125_v36 }
0x1166   : > { %v7041_v48 = vpop.f32.mrb[8].mxu0 }
0x1167   : > { %v18352_v44 = vpop.f32.mrb[9].mxu0 }
0x1168   : > { %18369 = vmatpush3.bf16.msra.mxu1 %v21796_v40  ;;  %v7044_v49 = vpop.f32.mrb[10].mxu0 }
0x1169   : > { %v7048_v50 = vpack.c.bf16 %v7044_v49, %v7041_v48  ;;  %v18353_v51 = vpop.f32.mrb[11].mxu0  ;;  %18374 = vmatprep.subr.bf16.mxu1 %v20125_v36 }
0x116a   : > { %v19495_v51 = vld [vmem:[%s24599_s6 + $0x40] sm:$0xff]  }
0x116b   : > { %18363 = vmatmul.mubr.msk.bf16.vlgmr.msra.gmra.mrb[12].mxu0 %vm6754_vm2, %v7048_v50  ;;  %18371 = vmatmul.mubr.msk.bf16.vlgmr.msra.gmra.mrb[120].mxu1 %vm1370_vm0, %v19475_v46 }
0x116c   : > { %18387 = vmatpush3.bf16.msra.mxu0 %v21798_v61  ;;  %18390 = vmatprep.mubr.msk.bf16.mxu0 %vm20126_vm1, %v20125_v36 }
0x116d   : > { %18388 = vmatprep.subr.bf16.mxu0 %v20125_v36  ;;  %18375 = vmatpush3.bf16.msra.mxu1 %v19477_v59 }
0x116e   : > { %18376 = vmatprep.subr.bf16.mxu1 %v20125_v36  ;;  %18382 = vmatprep.mubr.msk.bf16.mxu1 %vm20126_vm1, %v20125_v36 }
0x1170   : > { %18389 = vmatpush3.bf16.msra.mxu0 %v21796_v40 }
0x1171   : > { %18394 = vmatprep.subr.bf16.mxu0 %v20125_v36  ;;  %18377 = vmatpush3.bf16.msra.mxu1 %v19478_v62 }
0x1172   : > { %18378 = vmatprep.subr.bf16.mxu1 %v20125_v36 }
0x1173   : > { %18391 = vmatmul.mubr.msk.bf16.vlgmr.msra.gmra.mrb[16].mxu0 %vm1370_vm0, %v19476_v60 }
0x1174   : > { %18402 = vmatprep.mubr.msk.bf16.mxu0 %vm20126_vm1, %v20125_v36  ;;  %18395 = vmatpush3.bf16.msra.mxu0 %v19480_v8  ;;  %v19496_v8 = vld [vmem:[%s24599_s6 + $0x48] sm:$0xff]  }
0x1175   : > { %18379 = vmatpush3.bf16.msra.mxu1 %v19479_v7  ;;  %18396 = vmatprep.subr.bf16.mxu0 %v20125_v36  ;;  %v19497_v7 = vld [vmem:[%s24600_s7 + $0x100] sm:$0xff]  }
0x1176   : > { %18380 = vmatprep.subr.bf16.mxu1 %v20125_v36 }
0x1178   : > { %18397 = vmatpush3.bf16.msra.mxu0 %v19482_v45  ;;  %v19499_v45 = vld [vmem:[%s24600_s7 + $0x110] sm:$0xff]  }
0x1179   : > { %18381 = vmatpush3.bf16.msra.mxu1 %v19481_v9  ;;  %18398 = vmatprep.subr.bf16.mxu0 %v20125_v36  ;;  %v19498_v9 = vld [vmem:[%s24600_s7 + $0x108] sm:$0xff]  }
0x117a   : > { %18406 = vmatprep.subr.bf16.mxu1 %v20125_v36 }
0x117c   : > { %18399 = vmatpush3.bf16.msra.mxu0 %v19483_v56  ;;  %v19500_v56 = vld [vmem:[%s24600_s7 + $0x120] sm:$0xff]  }
0x117d   : > { %18400 = vmatprep.subr.bf16.mxu0 %v20125_v36 }
0x1180   : > { %18401 = vmatpush3.bf16.msra.mxu0 %v19484_v37  ;;  %v19501_v37 = vld [vmem:[%s24600_s7 + $0x118] sm:$0xff]  }
0x1181   : > { %18426 = vmatprep.subr.bf16.mxu0 %v20125_v36 }
0x1236   : > { %v6988_v38 = vpop.f32.mrb[116].mxu1 }
0x1237   : > { %v6995_v0 = vadd.f32 %v6988_v38, %v6861_v20  ;;  %v18344_v4 = vpop.f32.mrb[117].mxu1  ;;  %v19502_v38 = vld [vmem:[%s24600_s7 + $0x128] sm:$0xff]  }
0x1238   : > { %v6991_v5 = vpop.f32.mrb[118].mxu1  ;;  %v19504_v4 = vld [vmem:[%s24600_s7 + $0x138] sm:$0xff]  }
0x1239   : > { %v6996_v29 = vadd.f32 %v6991_v5, %v6864_v26  ;;  %v18345_v54 = vpop.f32.mrb[119].mxu1 }
0x123e   : > { %v7118_v63 = vpop.f32.mrb[12].mxu0  ;;  %v7171_v10 = vpop.f32.mrb[120].mxu1 }
0x123f   : > { %v7125_v21 = vadd.f32 %v7118_v63, %v6995_v0  ;;  %v18364_v32 = vpop.f32.mrb[13].mxu0  ;;  %v18372_v43 = vpop.f32.mrb[121].mxu1  ;;  %v19503_v0 = vld [vmem:[%s24600_s7 + $0x130] sm:$0xff]  }
0x1240   : > { %v7121_v55 = vpop.f32.mrb[14].mxu0  ;;  %v7174_v3 = vpop.f32.mrb[122].mxu1 }
0x1241   : > { %v7126_v27 = vadd.f32 %v7121_v55, %v6996_v29  ;;  %v7178_v15 = vpack.c.bf16 %v7174_v3, %v7171_v10  ;;  %v18365_v39 = vpop.f32.mrb[15].mxu0  ;;  %v18373_v52 = vpop.f32.mrb[123].mxu1 }
0x1243   : > { %18383 = vmatmul.mubr.msk.bf16.vlgmr.msra.gmra.mrb[124].mxu1 %vm6754_vm2, %v7178_v15 }
0x1244   : > { %18407 = vmatpush3.bf16.msra.mxu1 %v21798_v61  ;;  %18410 = vmatprep.mubr.msk.bf16.mxu1 %vm20126_vm1, %v20125_v36 }
0x1245   : > { %18408 = vmatprep.subr.bf16.mxu1 %v20125_v36 }
0x1246   : > { %v7301_v1 = vpop.f32.mrb[16].mxu0 }
0x1247   : > { %v18392_v14 = vpop.f32.mrb[17].mxu0 }
0x1248   : > { %18409 = vmatpush3.bf16.msra.mxu1 %v21796_v40  ;;  %v7304_v42 = vpop.f32.mrb[18].mxu0 }
0x1249   : > { %v7308_v53 = vpack.c.bf16 %v7304_v42, %v7301_v1  ;;  %v18393_v47 = vpop.f32.mrb[19].mxu0  ;;  %18414 = vmatprep.subr.bf16.mxu1 %v20125_v36 }
0x124a   : > { %v19505_v47 = vld [vmem:[%s24599_s6 + $0x50] sm:$0xff]  }
0x124b   : > { %18403 = vmatmul.mubr.msk.bf16.vlgmr.msra.gmra.mrb[20].mxu0 %vm6754_vm2, %v7308_v53  ;;  %18411 = vmatmul.mubr.msk.bf16.vlgmr.msra.gmra.mrb[128].mxu1 %vm1370_vm0, %v19485_v28 }
0x124c   : > { %18427 = vmatpush3.bf16.msra.mxu0 %v21798_v61  ;;  %18430 = vmatprep.mubr.msk.bf16.mxu0 %vm20126_vm1, %v20125_v36 }
0x124d   : > { %18428 = vmatprep.subr.bf16.mxu0 %v20125_v36  ;;  %18415 = vmatpush3.bf16.msra.mxu1 %v19487_v57 }
0x124e   : > { %18416 = vmatprep.subr.bf16.mxu1 %v20125_v36  ;;  %18422 = vmatprep.mubr.msk.bf16.mxu1 %vm20126_vm1, %v20125_v36 }
0x1250   : > { %18429 = vmatpush3.bf16.msra.mxu0 %v21796_v40 }
0x1251   : > { %18434 = vmatprep.subr.bf16.mxu0 %v20125_v36  ;;  %18417 = vmatpush3.bf16.msra.mxu1 %v19488_v2 }
0x1252   : > { %18418 = vmatprep.subr.bf16.mxu1 %v20125_v36 }
0x1253   : > { %18431 = vmatmul.mubr.msk.bf16.vlgmr.msra.gmra.mrb[24].mxu0 %vm1370_vm0, %v19486_v58 }
0x1254   : > { %18442 = vmatprep.mubr.msk.bf16.mxu0 %vm20126_vm1, %v20125_v36  ;;  %18435 = vmatpush3.bf16.msra.mxu0 %v19490_v11  ;;  %v19506_v11 = vld [vmem:[%s24599_s6 + $0x58] sm:$0xff]  }
0x1255   : > { %18419 = vmatpush3.bf16.msra.mxu1 %v19489_v6  ;;  %18436 = vmatprep.subr.bf16.mxu0 %v20125_v36  ;;  %v19507_v6 = vld [vmem:[%s24600_s7 + $0x140] sm:$0xff]  }
0x1256   : > { %18420 = vmatprep.subr.bf16.mxu1 %v20125_v36 }
0x1258   : > { %18437 = vmatpush3.bf16.msra.mxu0 %v19492_v13  ;;  %v19509_v13 = vld [vmem:[%s24600_s7 + $0x150] sm:$0xff]  }
0x1259   : > { %18421 = vmatpush3.bf16.msra.mxu1 %v19491_v12  ;;  %18438 = vmatprep.subr.bf16.mxu0 %v20125_v36  ;;  %v19508_v12 = vld [vmem:[%s24600_s7 + $0x148] sm:$0xff]  }
0x125a   : > { %18446 = vmatprep.subr.bf16.mxu1 %v20125_v36 }
0x125c   : > { %18439 = vmatpush3.bf16.msra.mxu0 %v19493_v16  ;;  %v19510_v16 = vld [vmem:[%s24600_s7 + $0x160] sm:$0xff]  }
0x125d   : > { %18440 = vmatprep.subr.bf16.mxu0 %v20125_v36 }
0x1260   : > { %18441 = vmatpush3.bf16.msra.mxu0 %v19494_v17  ;;  %v19511_v17 = vld [vmem:[%s24600_s7 + $0x158] sm:$0xff]  }
0x1261   : > { %18466 = vmatprep.subr.bf16.mxu0 %v20125_v36 }
0x1316   : > { %v7248_v18 = vpop.f32.mrb[124].mxu1 }
0x1317   : > { %v7255_v19 = vadd.f32 %v7248_v18, %v7125_v21  ;;  %v18384_v20 = vpop.f32.mrb[125].mxu1  ;;  %v19512_v18 = vld [vmem:[%s24600_s7 + $0x168] sm:$0xff]  }
0x1318   : > { %v7251_v22 = vpop.f32.mrb[126].mxu1  ;;  %v19514_v20 = vld [vmem:[%s24600_s7 + $0x178] sm:$0xff]  }
0x1319   : > { %v7256_v23 = vadd.f32 %v7251_v22, %v7126_v27  ;;  %v18385_v24 = vpop.f32.mrb[127].mxu1 }
0x131e   : > { %v7378_v25 = vpop.f32.mrb[20].mxu0  ;;  %v7431_v26 = vpop.f32.mrb[128].mxu1 }
0x131f   : > { %v7385_v30 = vadd.f32 %v7378_v25, %v7255_v19  ;;  %v18404_v31 = vpop.f32.mrb[21].mxu0  ;;  %v18412_v33 = vpop.f32.mrb[129].mxu1  ;;  %v19513_v19 = vld [vmem:[%s24600_s7 + $0x170] sm:$0xff]  }
0x1320   : > { %v7381_v34 = vpop.f32.mrb[22].mxu0  ;;  %v7434_v35 = vpop.f32.mrb[130].mxu1 }
0x1321   : > { %v7386_v41 = vadd.f32 %v7381_v34, %v7256_v23  ;;  %v7438_v48 = vpack.c.bf16 %v7434_v35, %v7431_v26  ;;  %v18405_v44 = vpop.f32.mrb[23].mxu0  ;;  %v18413_v46 = vpop.f32.mrb[131].mxu1 }
0x1323   : > { %18423 = vmatmul.mubr.msk.bf16.vlgmr.msra.gmra.mrb[132].mxu1 %vm6754_vm2, %v7438_v48 }
0x1324   : > { %18447 = vmatpush3.bf16.msra.mxu1 %v21798_v61  ;;  %18450 = vmatprep.mubr.msk.bf16.mxu1 %vm20126_vm1, %v20125_v36 }
0x1325   : > { %18448 = vmatprep.subr.bf16.mxu1 %v20125_v36 }
0x1326   : > { %v7561_v49 = vpop.f32.mrb[24].mxu0 }
0x1327   : > { %v18432_v50 = vpop.f32.mrb[25].mxu0 }
0x1328   : > { %18449 = vmatpush3.bf16.msra.mxu1 %v21796_v40  ;;  %v7564_v59 = vpop.f32.mrb[26].mxu0 }
0x1329   : > { %v7568_v60 = vpack.c.bf16 %v7564_v59, %v7561_v49  ;;  %v18433_v62 = vpop.f32.mrb[27].mxu0  ;;  %18454 = vmatprep.subr.bf16.mxu1 %v20125_v36 }
0x132a   : > { %v19515_v62 = vld [vmem:[%s24599_s6 + $0x60] sm:$0xff]  }
0x132b   : > { %18443 = vmatmul.mubr.msk.bf16.vlgmr.msra.gmra.mrb[28].mxu0 %vm6754_vm2, %v7568_v60  ;;  %18451 = vmatmul.mubr.msk.bf16.vlgmr.msra.gmra.mrb[136].mxu1 %vm1370_vm0, %v19495_v51 }
0x132c   : > { %18467 = vmatpush3.bf16.msra.mxu0 %v21798_v61  ;;  %18470 = vmatprep.mubr.msk.bf16.mxu0 %vm20126_vm1, %v20125_v36 }
0x132d   : > { %18468 = vmatprep.subr.bf16.mxu0 %v20125_v36  ;;  %18455 = vmatpush3.bf16.msra.mxu1 %v19497_v7 }
0x132e   : > { %18456 = vmatprep.subr.bf16.mxu1 %v20125_v36  ;;  %18462 = vmatprep.mubr.msk.bf16.mxu1 %vm20126_vm1, %v20125_v36 }
0x1330   : > { %18469 = vmatpush3.bf16.msra.mxu0 %v21796_v40 }
0x1331   : > { %18474 = vmatprep.subr.bf16.mxu0 %v20125_v36  ;;  %18457 = vmatpush3.bf16.msra.mxu1 %v19498_v9 }
0x1332   : > { %18458 = vmatprep.subr.bf16.mxu1 %v20125_v36 }
0x1333   : > { %18471 = vmatmul.mubr.msk.bf16.vlgmr.msra.gmra.mrb[32].mxu0 %vm1370_vm0, %v19496_v8 }
0x1334   : > { %18482 = vmatprep.mubr.msk.bf16.mxu0 %vm20126_vm1, %v20125_v36  ;;  %18475 = vmatpush3.bf16.msra.mxu0 %v19500_v56  ;;  %v19516_v56 = vld [vmem:[%s24599_s6 + $0x68] sm:$0xff]  }
0x1335   : > { %18459 = vmatpush3.bf16.msra.mxu1 %v19499_v45  ;;  %18476 = vmatprep.subr.bf16.mxu0 %v20125_v36  ;;  %v19517_v45 = vld [vmem:[%s24600_s7 + $0x180] sm:$0xff]  }
0x1336   : > { %18460 = vmatprep.subr.bf16.mxu1 %v20125_v36 }
0x1338   : > { %18477 = vmatpush3.bf16.msra.mxu0 %v19502_v38  ;;  %v19519_v38 = vld [vmem:[%s24600_s7 + $0x190] sm:$0xff]  }
0x1339   : > { %18461 = vmatpush3.bf16.msra.mxu1 %v19501_v37  ;;  %18478 = vmatprep.subr.bf16.mxu0 %v20125_v36  ;;  %v19518_v37 = vld [vmem:[%s24600_s7 + $0x188] sm:$0xff]  }
0x133a   : > { %18486 = vmatprep.subr.bf16.mxu1 %v20125_v36 }
0x133c   : > { %18479 = vmatpush3.bf16.msra.mxu0 %v19503_v0  ;;  %v19520_v0 = vld [vmem:[%s24600_s7 + $0x1a0] sm:$0xff]  }
0x133d   : > { %18480 = vmatprep.subr.bf16.mxu0 %v20125_v36 }
0x1340   : > { %18481 = vmatpush3.bf16.msra.mxu0 %v19504_v4  ;;  %v19521_v4 = vld [vmem:[%s24600_s7 + $0x198] sm:$0xff]  }
0x1341   : > { %18506 = vmatprep.subr.bf16.mxu0 %v20125_v36 }
0x13f6   : > { %v7508_v5 = vpop.f32.mrb[132].mxu1 }
0x13f7   : > { %v7515_v29 = vadd.f32 %v7508_v5, %v7385_v30  ;;  %v18424_v54 = vpop.f32.mrb[133].mxu1  ;;  %v19522_v5 = vld [vmem:[%s24600_s7 + $0x1a8] sm:$0xff]  }
0x13f8   : > { %v7511_v63 = vpop.f32.mrb[134].mxu1  ;;  %v19524_v54 = vld [vmem:[%s24600_s7 + $0x1b8] sm:$0xff]  }
0x13f9   : > { %v7516_v10 = vadd.f32 %v7511_v63, %v7386_v41  ;;  %v18425_v21 = vpop.f32.mrb[135].mxu1 }
0x13fe   : > { %v7638_v32 = vpop.f32.mrb[28].mxu0  ;;  %v7691_v43 = vpop.f32.mrb[136].mxu1 }
0x13ff   : > { %v7645_v55 = vadd.f32 %v7638_v32, %v7515_v29  ;;  %v18444_v3 = vpop.f32.mrb[29].mxu0  ;;  %v18452_v27 = vpop.f32.mrb[137].mxu1  ;;  %v19523_v29 = vld [vmem:[%s24600_s7 + $0x1b0] sm:$0xff]  }
0x1400   : > { %v7641_v15 = vpop.f32.mrb[30].mxu0  ;;  %v7694_v39 = vpop.f32.mrb[138].mxu1 }
0x1401   : > { %v7646_v52 = vadd.f32 %v7641_v15, %v7516_v10  ;;  %v7698_v1 = vpack.c.bf16 %v7694_v39, %v7691_v43  ;;  %v18445_v14 = vpop.f32.mrb[31].mxu0  ;;  %v18453_v28 = vpop.f32.mrb[139].mxu1 }
0x1403   : > { %18463 = vmatmul.mubr.msk.bf16.vlgmr.msra.gmra.mrb[140].mxu1 %vm6754_vm2, %v7698_v1 }
0x1404   : > { %18487 = vmatpush3.bf16.msra.mxu1 %v21798_v61  ;;  %18490 = vmatprep.mubr.msk.bf16.mxu1 %vm20126_vm1, %v20125_v36 }
0x1405   : > { %18488 = vmatprep.subr.bf16.mxu1 %v20125_v36 }
0x1406   : > { %v7821_v42 = vpop.f32.mrb[32].mxu0 }
0x1407   : > { %v18472_v53 = vpop.f32.mrb[33].mxu0 }
0x1408   : > { %18489 = vmatpush3.bf16.msra.mxu1 %v21796_v40  ;;  %v7824_v57 = vpop.f32.mrb[34].mxu0 }
0x1409   : > { %v7828_v58 = vpack.c.bf16 %v7824_v57, %v7821_v42  ;;  %v18473_v2 = vpop.f32.mrb[35].mxu0  ;;  %18494 = vmatprep.subr.bf16.mxu1 %v20125_v36 }
0x140a   : > { %v19525_v2 = vld [vmem:[%s24599_s6 + $0x70] sm:$0xff]  }
0x140b   : > { %18483 = vmatmul.mubr.msk.bf16.vlgmr.msra.gmra.mrb[36].mxu0 %vm6754_vm2, %v7828_v58  ;;  %18491 = vmatmul.mubr.msk.bf16.vlgmr.msra.gmra.mrb[144].mxu1 %vm1370_vm0, %v19505_v47 }
0x140c   : > { %18507 = vmatpush3.bf16.msra.mxu0 %v21798_v61  ;;  %18510 = vmatprep.mubr.msk.bf16.mxu0 %vm20126_vm1, %v20125_v36 }
0x140d   : > { %18508 = vmatprep.subr.bf16.mxu0 %v20125_v36  ;;  %18495 = vmatpush3.bf16.msra.mxu1 %v19507_v6 }
0x140e   : > { %18496 = vmatprep.subr.bf16.mxu1 %v20125_v36  ;;  %18502 = vmatprep.mubr.msk.bf16.mxu1 %vm20126_vm1, %v20125_v36 }
0x1410   : > { %18509 = vmatpush3.bf16.msra.mxu0 %v21796_v40 }
0x1411   : > { %18514 = vmatprep.subr.bf16.mxu0 %v20125_v36  ;;  %18497 = vmatpush3.bf16.msra.mxu1 %v19508_v12 }
0x1412   : > { %18498 = vmatprep.subr.bf16.mxu1 %v20125_v36 }
0x1413   : > { %18511 = vmatmul.mubr.msk.bf16.vlgmr.msra.gmra.mrb[40].mxu0 %vm1370_vm0, %v19506_v11 }
0x1414   : > { %18522 = vmatprep.mubr.msk.bf16.mxu0 %vm20126_vm1, %v20125_v36  ;;  %18515 = vmatpush3.bf16.msra.mxu0 %v19510_v16  ;;  %v19526_v16 = vld [vmem:[%s24599_s6 + $0x78] sm:$0xff]  }
0x1415   : > { %18499 = vmatpush3.bf16.msra.mxu1 %v19509_v13  ;;  %18516 = vmatprep.subr.bf16.mxu0 %v20125_v36  ;;  %v19527_v13 = vld [vmem:[%s24600_s7 + $0x1c0] sm:$0xff]  }
0x1416   : > { %18500 = vmatprep.subr.bf16.mxu1 %v20125_v36 }
0x1418   : > { %18517 = vmatpush3.bf16.msra.mxu0 %v19512_v18  ;;  %v19531_v18 = vld [vmem:[%s24600_s7 + $0x1d8] sm:$0xff]  }
0x1419   : > { %18501 = vmatpush3.bf16.msra.mxu1 %v19511_v17  ;;  %18518 = vmatprep.subr.bf16.mxu0 %v20125_v36  ;;  %v19529_v17 = vld [vmem:[%s24600_s7 + $0x1d0] sm:$0xff]  }
0x141a   : > { %18526 = vmatprep.subr.bf16.mxu1 %v20125_v36 }
0x141c   : > { %18519 = vmatpush3.bf16.msra.mxu0 %v19513_v19  ;;  %v19532_v19 = vld [vmem:[%s24600_s7 + $0x1e8] sm:$0xff]  }
0x141d   : > { %18520 = vmatprep.subr.bf16.mxu0 %v20125_v36 }
0x1420   : > { %18521 = vmatpush3.bf16.msra.mxu0 %v19514_v20  ;;  %v19533_v20 = vld [vmem:[%s24600_s7 + $0x1f0] sm:$0xff]  }
0x1421   : > { %18546 = vmatprep.subr.bf16.mxu0 %v20125_v36 }
0x14d6   : > { %v7768_v22 = vpop.f32.mrb[140].mxu1 }
0x14d7   : > { %v7775_v23 = vadd.f32 %v7768_v22, %v7645_v55  ;;  %v18464_v24 = vpop.f32.mrb[141].mxu1  ;;  %v19534_v22 = vld [vmem:[%s24600_s7 + $0x1f8] sm:$0xff]  }
0x14d8   : > { %v7771_v25 = vpop.f32.mrb[142].mxu1 }
0x14d9   : > { %v7776_v26 = vadd.f32 %v7771_v25, %v7646_v52  ;;  %v18465_v30 = vpop.f32.mrb[143].mxu1 }
0x14de   : > { %v7898_v31 = vpop.f32.mrb[36].mxu0  ;;  %v7951_v33 = vpop.f32.mrb[144].mxu1 }
0x14df   : > { %v7905_v34 = vadd.f32 %v7898_v31, %v7775_v23  ;;  %v18484_v35 = vpop.f32.mrb[37].mxu0  ;;  %v18492_v41 = vpop.f32.mrb[145].mxu1 }
0x14e0   : > { %v7901_v48 = vpop.f32.mrb[38].mxu0  ;;  %v7954_v44 = vpop.f32.mrb[146].mxu1 }
0x14e1   : > { %v7906_v46 = vadd.f32 %v7901_v48, %v7776_v26  ;;  %v7958_v49 = vpack.c.bf16 %v7954_v44, %v7951_v33  ;;  %v18485_v50 = vpop.f32.mrb[39].mxu0  ;;  %v18493_v51 = vpop.f32.mrb[147].mxu1 }
0x14e3   : > { %18503 = vmatmul.mubr.msk.bf16.vlgmr.msra.gmra.mrb[148].mxu1 %vm6754_vm2, %v7958_v49 }
0x14e4   : > { %18527 = vmatpush3.bf16.msra.mxu1 %v21798_v61  ;;  %18530 = vmatprep.mubr.msk.bf16.mxu1 %vm20126_vm1, %v20125_v36 }
0x14e5   : > { %18528 = vmatprep.subr.bf16.mxu1 %v20125_v36 }
0x14e6   : > { %v8081_v59 = vpop.f32.mrb[40].mxu0 }
0x14e7   : > { %v18512_v60 = vpop.f32.mrb[41].mxu0 }
0x14e8   : > { %18529 = vmatpush3.bf16.msra.mxu1 %v21796_v40  ;;  %v8084_v7 = vpop.f32.mrb[42].mxu0 }
0x14e9   : > { %v8088_v8 = vpack.c.bf16 %v8084_v7, %v8081_v59  ;;  %v18513_v9 = vpop.f32.mrb[43].mxu0  ;;  %18534 = vmatprep.subr.bf16.mxu1 %v20125_v36 }
0x14eb   : > { %18523 = vmatmul.mubr.msk.bf16.vlgmr.msra.gmra.mrb[44].mxu0 %vm6754_vm2, %v8088_v8  ;;  %18531 = vmatmul.mubr.msk.bf16.vlgmr.msra.gmra.mrb[152].mxu1 %vm1370_vm0, %v19515_v62 }
0x14ec   : > { %18547 = vmatpush3.bf16.msra.mxu0 %v21798_v61  ;;  %18550 = vmatprep.mubr.msk.bf16.mxu0 %vm20126_vm1, %v20125_v36 }
0x14ed   : > { %18548 = vmatprep.subr.bf16.mxu0 %v20125_v36  ;;  %18535 = vmatpush3.bf16.msra.mxu1 %v19517_v45  ;;  %v19537_v45 = vld [vmem:[%s24603_s10 + $0x40] sm:$0xff]  }
0x14ee   : > { %18536 = vmatprep.subr.bf16.mxu1 %v20125_v36  ;;  %18542 = vmatprep.mubr.msk.bf16.mxu1 %vm20126_vm1, %v20125_v36 }
0x14f0   : > { %18549 = vmatpush3.bf16.msra.mxu0 %v21796_v40 }
0x14f1   : > { %18554 = vmatprep.subr.bf16.mxu0 %v20125_v36  ;;  %18537 = vmatpush3.bf16.msra.mxu1 %v19518_v37  ;;  %v19539_v37 = vld [vmem:[%s24603_s10 + $0x50] sm:$0xff]  }
0x14f2   : > { %18538 = vmatprep.subr.bf16.mxu1 %v20125_v36 }
0x14f3   : > { %18551 = vmatmul.mubr.msk.bf16.vlgmr.msra.gmra.mrb[48].mxu0 %vm1370_vm0, %v19516_v56  ;;  %v19538_v56 = vld [vmem:[%s24603_s10 + $0x48] sm:$0xff]  }
0x14f4   : > { %18562 = vmatprep.mubr.msk.bf16.mxu0 %vm20126_vm1, %v20125_v36  ;;  %18555 = vmatpush3.bf16.msra.mxu0 %v19520_v0  ;;  %v19542_v0 = vld [vmem:[%s24603_s10 + $0x60] sm:$0xff]  }
0x14f5   : > { %18539 = vmatpush3.bf16.msra.mxu1 %v19519_v38  ;;  %18556 = vmatprep.subr.bf16.mxu0 %v20125_v36  ;;  %v19540_v38 = vld [vmem:[%s24603_s10 + $0x58] sm:$0xff]  }
0x14f6   : > { %18540 = vmatprep.subr.bf16.mxu1 %v20125_v36 }
0x14f8   : > { %18557 = vmatpush3.bf16.msra.mxu0 %v19522_v5 }
0x14f9   : > { %18541 = vmatpush3.bf16.msra.mxu1 %v19521_v4  ;;  %18558 = vmatprep.subr.bf16.mxu0 %v20125_v36  ;;  %v19544_v4 = vld [vmem:[%s24603_s10 + $0x68] sm:$0xff]  }
0x14fa   : > { %18566 = vmatprep.subr.bf16.mxu1 %v20125_v36 }
0x14fc   : > { %18559 = vmatpush3.bf16.msra.mxu0 %v19523_v29 }
0x14fd   : > { %18560 = vmatprep.subr.bf16.mxu0 %v20125_v36 }
0x1500   : > { %18561 = vmatpush3.bf16.msra.mxu0 %v19524_v54 }
0x1501   : > { %18586 = vmatprep.subr.bf16.mxu0 %v20125_v36 }
0x15b6   : > { %v8028_v63 = vpop.f32.mrb[148].mxu1 }
0x15b7   : > { %v8035_v10 = vadd.f32 %v8028_v63, %v7905_v34  ;;  %v18504_v21 = vpop.f32.mrb[149].mxu1 }
0x15b8   : > { %v8031_v32 = vpop.f32.mrb[150].mxu1 }
0x15b9   : > { %v8036_v43 = vadd.f32 %v8031_v32, %v7906_v46  ;;  %v18505_v55 = vpop.f32.mrb[151].mxu1 }
0x15be   : > { %v8158_v3 = vpop.f32.mrb[44].mxu0  ;;  %v8211_v27 = vpop.f32.mrb[152].mxu1 }
0x15bf   : > { %v8165_v15 = vadd.f32 %v8158_v3, %v8035_v10  ;;  %v18524_v39 = vpop.f32.mrb[45].mxu0  ;;  %v18532_v52 = vpop.f32.mrb[153].mxu1 }
0x15c0   : > { %v8161_v1 = vpop.f32.mrb[46].mxu0  ;;  %v8214_v14 = vpop.f32.mrb[154].mxu1 }
0x15c1   : > { %v8166_v28 = vadd.f32 %v8161_v1, %v8036_v43  ;;  %v8218_v42 = vpack.c.bf16 %v8214_v14, %v8211_v27  ;;  %v18525_v53 = vpop.f32.mrb[47].mxu0  ;;  %v18533_v47 = vpop.f32.mrb[155].mxu1  ;;  %v15781_v43 = vld [vmem:[%s24601_s8] ss:$0 sm:$0xff] }
0x15c2   : > { %v19535_v53 = vld [vmem:[%s24602_s9] sm:$0xff]   ;;  %v19536_v47 = vld [vmem:[%s24602_s9 + $0x8] sm:$0xff]  }
0x15c3   : > { %18543 = vmatmul.mubr.msk.bf16.vlgmr.msra.gmra.mrb[156].mxu1 %vm6754_vm2, %v8218_v42 }
0x15c4   : > { %18567 = vmatpush3.bf16.msra.mxu1 %v21798_v61  ;;  %18570 = vmatprep.mubr.msk.bf16.mxu1 %vm20126_vm1, %v20125_v36 }
0x15c5   : > { %18568 = vmatprep.subr.bf16.mxu1 %v20125_v36 }
0x15c6   : > { %v8341_v57 = vpop.f32.mrb[48].mxu0 }
0x15c7   : > { %v18552_v58 = vpop.f32.mrb[49].mxu0 }
0x15c8   : > { %18569 = vmatpush3.bf16.msra.mxu1 %v21796_v40  ;;  %v8344_v6 = vpop.f32.mrb[50].mxu0  ;;  %v19543_v58 = vld [vmem:[%s24603_s10 + $0x8] sm:$0xff]  }
0x15c9   : > { %v8348_v11 = vpack.c.bf16 %v8344_v6, %v8341_v57  ;;  %v18553_v12 = vpop.f32.mrb[51].mxu0  ;;  %18574 = vmatprep.subr.bf16.mxu1 %v20125_v36  ;;  %v19541_v57 = vld [vmem:[%s24603_s10] sm:$0xff]   ;;  %v19547_v6 = vld [vmem:[%s24603_s10 + $0x18] sm:$0xff]  }
0x15ca   : > { %v19550_v12 = vld [vmem:[%s24603_s10 + $0x28] sm:$0xff]  }
0x15cb   : > { %18563 = vmatmul.mubr.msk.bf16.vlgmr.msra.gmra.mrb[52].mxu0 %vm6754_vm2, %v8348_v11  ;;  %18571 = vmatmul.mubr.msk.bf16.vlgmr.msra.gmra.mrb[160].mxu1 %vm1370_vm0, %v19525_v2  ;;  %v19545_v2 = vld [vmem:[%s24603_s10 + $0x10] sm:$0xff]   ;;  %v19549_v11 = vld [vmem:[%s24603_s10 + $0x20] sm:$0xff]  }
0x15cc   : > { %18587 = vmatpush3.bf16.msra.mxu0 %v21798_v61  ;;  %18590 = vmatprep.mubr.msk.bf16.mxu0 %vm20126_vm1, %v20125_v36  ;;  %v19528_v61 = vld [vmem:[%s24600_s7 + $0x1c8] sm:$0xff]  }
0x15cd   : > { %18588 = vmatprep.subr.bf16.mxu0 %v20125_v36  ;;  %18575 = vmatpush3.bf16.msra.mxu1 %v19527_v13  ;;  %v19551_v13 = vld [vmem:[%s24603_s10 + $0x30] sm:$0xff]  }
0x15ce   : > { %18576 = vmatprep.subr.bf16.mxu1 %v20125_v36  ;;  %18582 = vmatprep.mubr.msk.bf16.mxu1 %vm20126_vm1, %v20125_v36 }
0x15d0   : > { %18589 = vmatpush3.bf16.msra.mxu0 %v21796_v40  ;;  %v19530_v40 = vld [vmem:[%s24600_s7 + $0x1e0] sm:$0xff]  }
0x15d1   : > { %18594 = vmatprep.subr.bf16.mxu0 %v20125_v36  ;;  %18577 = vmatpush3.bf16.msra.mxu1 %v19528_v61  ;;  %v19553_v61 = vld [vmem:[%s24603_s10 + $0x38] sm:$0xff]  }
0x15d2   : > { %18578 = vmatprep.subr.bf16.mxu1 %v20125_v36 }
0x15d3   : > { %18591 = vmatmul.mubr.msk.bf16.vlgmr.msra.gmra.mrb[56].mxu0 %vm1370_vm0, %v19526_v16  ;;  %v19546_v16 = vld [vmem:[%s24603_s10 + $0x70] sm:$0xff]  }
0x15d4   : > { %18602 = vmatprep.mubr.msk.bf16.mxu0 %vm20126_vm1, %v20125_v36  ;;  %18595 = vmatpush3.bf16.msra.mxu0 %v19530_v40 }
0x15d5   : > { %18596 = vmatprep.subr.bf16.mxu0 %v20125_v36  ;;  %18579 = vmatpush3.bf16.msra.mxu1 %v19529_v17  ;;  %v19548_v17 = vld [vmem:[%s24603_s10 + $0x78] sm:$0xff]  }
0x15d6   : > { %18580 = vmatprep.subr.bf16.mxu1 %v20125_v36 }
0x15d8   : > { %18597 = vmatpush3.bf16.msra.mxu0 %v19532_v19 }
0x15d9   : > { %18581 = vmatpush3.bf16.msra.mxu1 %v19531_v18  ;;  %18598 = vmatprep.subr.bf16.mxu0 %v20125_v36 }
0x15da   : > { %18606 = vmatprep.subr.bf16.mxu1 %v20125_v36 }
0x15dc   : > { %18599 = vmatpush3.bf16.msra.mxu0 %v19533_v20  ;;  %v19555_v20 = vld [vmem:[%s24603_s10 + $0x80] sm:$0xff]  }
0x15dd   : > { %18600 = vmatprep.subr.bf16.mxu0 %v20125_v36 }
0x15e0   : > { %18601 = vmatpush3.bf16.msra.mxu0 %v19534_v22 }
0x15e1   : > { %18618 = vmatprep.subr.bf16.mxu0 %v20125_v36 }
0x1696   : > { %v8288_v23 = vpop.f32.mrb[156].mxu1 }
0x1697   : > { %v8295_v24 = vadd.f32 %v8288_v23, %v8165_v15  ;;  %v18544_v25 = vpop.f32.mrb[157].mxu1 }
0x1698   : > { %v8291_v26 = vpop.f32.mrb[158].mxu1 }
0x1699   : > { %v8296_v30 = vadd.f32 %v8291_v26, %v8166_v28  ;;  %v18545_v31 = vpop.f32.mrb[159].mxu1 }
0x169e   : > { %v8418_v33 = vpop.f32.mrb[52].mxu0  ;;  %v8471_v34 = vpop.f32.mrb[160].mxu1 }
0x169f   : > { %v8425_v35 = vadd.f32 %v8418_v33, %v8295_v24  ;;  %v18564_v41 = vpop.f32.mrb[53].mxu0  ;;  %v18572_v48 = vpop.f32.mrb[161].mxu1  ;;  %v19556_v24 = vld [vmem:[%s24603_s10 + $0x88] sm:$0xff]  }
0x16a0   : > { %v8421_v44 = vpop.f32.mrb[54].mxu0  ;;  %v8474_v46 = vpop.f32.mrb[162].mxu1  ;;  %v19552_v41 = vld [vmem:[%s24602_s9 + $0x10] sm:$0xff]   ;;  %v19561_v48 = vld [vmem:[%s24603_s10 + $0xa0] sm:$0xff]  }
0x16a1   : > { %v8426_v49 = vadd.f32 %v8421_v44, %v8296_v30  ;;  %v8478_v50 = vpack.c.bf16 %v8474_v46, %v8471_v34  ;;  %v18565_v51 = vpop.f32.mrb[55].mxu0  ;;  %v18573_v59 = vpop.f32.mrb[163].mxu1  ;;  %v19557_v34 = vld [vmem:[%s24603_s10 + $0x90] sm:$0xff]   ;;  %v19563_v44 = vld [vmem:[%s24603_s10 + $0xa8] sm:$0xff]   ;;  %v19554_v46 = vld [vmem:[%s24602_s9 + $0x18] sm:$0xff]  }
0x16a2   : > { %v19562_v51 = vld [vmem:[%s24603_s10 + $0xd0] sm:$0xff]   ;;  %v19564_v59 = vld [vmem:[%s24603_s10 + $0xd8] sm:$0xff]  }
0x16a3   : > { %18583 = vmatmul.mubr.msk.bf16.vlgmr.msra.gmra.mrb[164].mxu1 %vm6754_vm2, %v8478_v50  ;;  %v19560_v50 = vld [vmem:[%s24603_s10 + $0xc8] sm:$0xff]  }
0x16a4   : > { %18608 = vmatprep.mubr.msk.bf16.mxu1 %vm20126_vm1, %v20125_v36 }
0x16a6   : > { %v8601_v60 = vpop.f32.mrb[56].mxu0 }
0x16a7   : > { %v18592_v62 = vpop.f32.mrb[57].mxu0 }
0x16a8   : > { %v8604_v7 = vpop.f32.mrb[58].mxu0  ;;  %v19566_v62 = vld [vmem:[%s24603_s10 + $0xe0] sm:$0xff]  }
0x16a9   : > { %v8608_v8 = vpack.c.bf16 %v8604_v7, %v8601_v60  ;;  %v18593_v9 = vpop.f32.mrb[59].mxu0  ;;  %v19565_v60 = vld [vmem:[%s24603_s10 + $0xb0] sm:$0xff]   ;;  %v19567_v7 = vld [vmem:[%s24603_s10 + $0xb8] sm:$0xff]  }
0x16aa   : > { %v19569_v9 = vld [vmem:[%s24603_s10 + $0xf0] sm:$0xff]  }
0x16ab   : > { %18603 = vmatmul.mubr.msk.bf16.vlgmr.msra.gmra.mrb[60].mxu0 %vm6754_vm2, %v8608_v8  ;;  %v19568_v8 = vld [vmem:[%s24603_s10 + $0xe8] sm:$0xff]  }
0x16ac   : > { %18634 = vmatprep.mubr.msk.bf16.mxu0 %vm20126_vm1, %v20125_v36  ;;  %18619 = vmatpush3.bf16.msra.mxu0 %v19537_v45  ;;  %v19570_v45 = vld [vmem:[%s24603_s10 + $0xf8] sm:$0xff]  }
0x16ad   : > { %18620 = vmatprep.subr.bf16.mxu0 %v20125_v36 }
0x16b0   : > { %18621 = vmatpush3.bf16.msra.mxu0 %v19538_v56 }
0x16b1   : > { %18622 = vmatprep.subr.bf16.mxu0 %v20125_v36 }
0x16b4   : > { %18623 = vmatpush3.bf16.msra.mxu0 %v19539_v37 }
0x16b5   : > { %18624 = vmatprep.subr.bf16.mxu0 %v20125_v36 }
0x16b8   : > { %18625 = vmatpush3.bf16.msra.mxu0 %v19540_v38 }
0x16b9   : > { %18626 = vmatprep.subr.bf16.mxu0 %v20125_v36 }
0x16bc   : > { %18627 = vmatpush3.bf16.msra.mxu0 %v19542_v0 }
0x16bd   : > { %18628 = vmatprep.subr.bf16.mxu0 %v20125_v36 }
0x16c0   : > { %18629 = vmatpush3.bf16.msra.mxu0 %v19544_v4 }
0x16c1   : > { %18630 = vmatprep.subr.bf16.mxu0 %v20125_v36 }
0x16c4   : > { %18631 = vmatpush3.bf16.msra.mxu0 %v19546_v16  ;;  %v19582_v16 = vld [vmem:[%s24603_s10 + $0x158] sm:$0xff]  }
0x16c5   : > { %18632 = vmatprep.subr.bf16.mxu0 %v20125_v36 }
0x16c8   : > { %18633 = vmatpush3.bf16.msra.mxu0 %v19548_v17  ;;  %v19584_v17 = vld [vmem:[%s24603_s10 + $0x160] sm:$0xff]  }
0x16c9   : > { %18658 = vmatprep.subr.bf16.mxu0 %v20125_v36 }
0x1776   : > { %v8548_v5 = vpop.f32.mrb[164].mxu1 }
0x1777   : > { %v8555_v29 = vadd.f32 %v8548_v5, %v8425_v35  ;;  %v18584_v54 = vpop.f32.mrb[165].mxu1  ;;  %v19559_v35 = vld [vmem:[%s24603_s10 + $0x98] sm:$0xff]  }
0x1778   : > { %v8551_v63 = vpop.f32.mrb[166].mxu1 }
0x1779   : > { %v8556_v10 = vadd.f32 %v8551_v63, %v8426_v49  ;;  %v18585_v21 = vpop.f32.mrb[167].mxu1  ;;  %v19558_v49 = vld [vmem:[%s24603_s10 + $0xc0] sm:$0xff]  }
0x177e   : > { %v8678_v32 = vpop.f32.mrb[60].mxu0 }
0x177f   : > { %v8685_v55 = vadd.f32 %v8678_v32, %v8555_v29  ;;  %v18604_v3 = vpop.f32.mrb[61].mxu0 }
0x1780   : > { %v8681_v27 = vpop.f32.mrb[62].mxu0 }
0x1781   : > { %v8694_v15 = vadd.f32 %v15781_v43, %v8685_v55  ;;  %v8686_v39 = vadd.f32 %v8681_v27, %v8556_v10  ;;  %v18605_v52 = vpop.f32.mrb[63].mxu0 }
0x1783   : > { %v8695_v1 = vadd.f32 %v15781_v43, %v8686_v39  ;;  %v8696_v14 = vmax.f32 %v8694_v15, 0.0  ;;  %v19571_v39 = vld [vmem:[%s24602_s9 + $0x20] sm:$0xff]  }
0x1785   : > { %v8697_v28 = vmax.f32 %v8695_v1, 0.0 }
0x1787   : > { %v22291_v42 = vpack.c.bf16 %v8697_v28, %v8696_v14  ;;  %v19573_v14 = vld [vmem:[%s24603_s10 + $0x100] sm:$0xff]  }
0x1789   : > { %18607 = vmatpush3.bf16.msra.mxu1 %v22291_v42 }
0x178a   : > { %18612 = vmatprep.subr.bf16.mxu1 %v20125_v36 }
0x178c   : > { %18609 = vmatmul.mubr.msk.bf16.vlgmr.msra.gmra.mrb[168].mxu1 %vm8706_vm3, %v19535_v53  ;;  %v19574_v53 = vld [vmem:[%s24603_s10 + $0x108] sm:$0xff]  }
0x178d   : > { %18613 = vmatpush3.bf16.msra.mxu1 %v22291_v42  ;;  %18614 = vmatprep.mubr.msk.bf16.mxu1 %vm20126_vm1, %v20125_v36 }
0x178e   : > { %18638 = vmatprep.subr.bf16.mxu1 %v20125_v36 }
0x1794   : > { %18615 = vmatmul.mubr.msk.bf16.vlgmr.msra.gmra.mrb[172].mxu1 %vm8706_vm3, %v19536_v47  ;;  %v19572_v47 = vld [vmem:[%s24602_s9 + $0x28] sm:$0xff]  }
0x1795   : > { %18639 = vmatpush3.bf16.msra.mxu1 %v19541_v57  ;;  %18654 = vmatprep.mubr.msk.bf16.mxu1 %vm20126_vm1, %v20125_v36  ;;  %v19576_v57 = vld [vmem:[%s24603_s10 + $0x140] sm:$0xff]  }
0x1796   : > { %18640 = vmatprep.subr.bf16.mxu1 %v20125_v36 }
0x1799   : > { %18641 = vmatpush3.bf16.msra.mxu1 %v19543_v58  ;;  %v19575_v58 = vld [vmem:[%s24603_s10 + $0x110] sm:$0xff]  }
0x179a   : > { %18642 = vmatprep.subr.bf16.mxu1 %v20125_v36 }
0x179d   : > { %18643 = vmatpush3.bf16.msra.mxu1 %v19545_v2  ;;  %v19578_v2 = vld [vmem:[%s24603_s10 + $0x148] sm:$0xff]  }
0x179e   : > { %18644 = vmatprep.subr.bf16.mxu1 %v20125_v36 }
0x17a1   : > { %18645 = vmatpush3.bf16.msra.mxu1 %v19547_v6  ;;  %v19577_v6 = vld [vmem:[%s24603_s10 + $0x118] sm:$0xff]  }
0x17a2   : > { %18646 = vmatprep.subr.bf16.mxu1 %v20125_v36 }
0x17a5   : > { %18647 = vmatpush3.bf16.msra.mxu1 %v19549_v11  ;;  %v19580_v11 = vld [vmem:[%s24603_s10 + $0x150] sm:$0xff]  }
0x17a6   : > { %18648 = vmatprep.subr.bf16.mxu1 %v20125_v36 }
0x17a9   : > { %18649 = vmatpush3.bf16.msra.mxu1 %v19550_v12  ;;  %v19579_v12 = vld [vmem:[%s24603_s10 + $0x120] sm:$0xff]  }
0x17aa   : > { %18650 = vmatprep.subr.bf16.mxu1 %v20125_v36 }
0x17ad   : > { %18651 = vmatpush3.bf16.msra.mxu1 %v19551_v13  ;;  %v19581_v13 = vld [vmem:[%s24603_s10 + $0x128] sm:$0xff]  }
0x17ae   : > { %18652 = vmatprep.subr.bf16.mxu1 %v20125_v36 }
0x17b1   : > { %18653 = vmatpush3.bf16.msra.mxu1 %v19553_v61  ;;  %v19583_v61 = vld [vmem:[%s24603_s10 + $0x130] sm:$0xff]  }
0x17b2   : > { %18664 = vmatprep.subr.bf16.mxu1 %v20125_v36 }
0x185f   : > { %v8744_v40 = vpop.f32.mrb[168].mxu1 }
0x1860   : > { %v18610_v18 = vpop.f32.mrb[169].mxu1 }
0x1861   : > { %v8747_v19 = vpop.f32.mrb[170].mxu1  ;;  %v19586_v18 = vld [vmem:[%s24603_s10 + $0x168] sm:$0xff]  }
0x1862   : > { %v8751_v22 = vpack.c.bf16 %v8747_v19, %v8744_v40  ;;  %v18611_v23 = vpop.f32.mrb[171].mxu1  ;;  %v19585_v40 = vld [vmem:[%s24603_s10 + $0x138] sm:$0xff]   ;;  %v19587_v19 = vld [vmem:[%s24603_s10 + $0x170] sm:$0xff]  }
0x1864   : > { %18655 = vmatmul.mubr.bf16.vlgmr.msra.gmra.mrb[176].mxu1 %v8751_v22 }
0x1865   : > { %18665 = vmatpush3.bf16.msra.mxu1 %v19555_v20  ;;  %18680 = vmatprep.mubr.msk.bf16.mxu1 %vm20126_vm1, %v20125_v36  ;;  %v19588_v20 = vld [vmem:[%s24603_s10 + $0x178] sm:$0xff]  }
0x1866   : > { %18666 = vmatprep.subr.bf16.mxu1 %v20125_v36 }
0x1867   : > { %v8812_v25 = vpop.f32.mrb[172].mxu1 }
0x1868   : > { %v18616_v26 = vpop.f32.mrb[173].mxu1 }
0x1869   : > { %v8815_v30 = vpop.f32.mrb[174].mxu1  ;;  %18667 = vmatpush3.bf16.msra.mxu1 %v19556_v24 }
0x186a   : > { %v8819_v31 = vpack.c.bf16 %v8815_v30, %v8812_v25  ;;  %v18617_v33 = vpop.f32.mrb[175].mxu1  ;;  %18668 = vmatprep.subr.bf16.mxu1 %v20125_v36 }
0x186c   : > { %18635 = vmatmul.mubr.bf16.vlgmr.msra.gmra.mrb[64].mxu0 %v8819_v31 }
0x186d   : > { %18659 = vmatpush3.bf16.msra.mxu0 %v22291_v42  ;;  %18660 = vmatprep.mubr.msk.bf16.mxu0 %vm20126_vm1, %v20125_v36 }
0x186e   : > { %18684 = vmatprep.subr.bf16.mxu0 %v20125_v36  ;;  %18669 = vmatpush3.bf16.msra.mxu1 %v19557_v34 }
0x186f   : > { %18670 = vmatprep.subr.bf16.mxu1 %v20125_v36 }
0x1872   : > { %18671 = vmatpush3.bf16.msra.mxu1 %v19559_v35 }
0x1873   : > { %18672 = vmatprep.subr.bf16.mxu1 %v20125_v36 }
0x1874   : > { %18661 = vmatmul.mubr.msk.bf16.vlgmr.msra.gmra.mrb[68].mxu0 %vm8706_vm3, %v19552_v41 }
0x1875   : > { %18685 = vmatpush3.bf16.msra.mxu0 %v22291_v42  ;;  %18686 = vmatprep.mubr.msk.bf16.mxu0 %vm20126_vm1, %v20125_v36 }
0x1876   : > { %18690 = vmatprep.subr.bf16.mxu0 %v20125_v36  ;;  %18673 = vmatpush3.bf16.msra.mxu1 %v19561_v48 }
0x1877   : > { %18674 = vmatprep.subr.bf16.mxu1 %v20125_v36 }
0x187a   : > { %18675 = vmatpush3.bf16.msra.mxu1 %v19563_v44 }
0x187b   : > { %18676 = vmatprep.subr.bf16.mxu1 %v20125_v36 }
0x187c   : > { %18687 = vmatmul.mubr.msk.bf16.vlgmr.msra.gmra.mrb[72].mxu0 %vm8706_vm3, %v19554_v46 }
0x187d   : > { %18691 = vmatpush3.bf16.msra.mxu0 %v19558_v49  ;;  %18706 = vmatprep.mubr.msk.bf16.mxu0 %vm20126_vm1, %v20125_v36 }
0x187e   : > { %18692 = vmatprep.subr.bf16.mxu0 %v20125_v36  ;;  %18677 = vmatpush3.bf16.msra.mxu1 %v19565_v60 }
0x187f   : > { %18678 = vmatprep.subr.bf16.mxu1 %v20125_v36 }
0x1881   : > { %18693 = vmatpush3.bf16.msra.mxu0 %v19560_v50 }
0x1882   : > { %18694 = vmatprep.subr.bf16.mxu0 %v20125_v36  ;;  %18679 = vmatpush3.bf16.msra.mxu1 %v19567_v7 }
0x1883   : > { %18710 = vmatprep.subr.bf16.mxu1 %v20125_v36 }
0x1885   : > { %18695 = vmatpush3.bf16.msra.mxu0 %v19562_v51 }
0x1886   : > { %18696 = vmatprep.subr.bf16.mxu0 %v20125_v36 }
0x1889   : > { %18697 = vmatpush3.bf16.msra.mxu0 %v19564_v59 }
0x188a   : > { %18698 = vmatprep.subr.bf16.mxu0 %v20125_v36 }
0x188d   : > { %18699 = vmatpush3.bf16.msra.mxu0 %v19566_v62  ;;  %v19589_v62 = vld [vmem:[%s24602_s9 + $0x30] sm:$0xff]  }
0x188e   : > { %18700 = vmatprep.subr.bf16.mxu0 %v20125_v36 }
0x1891   : > { %18701 = vmatpush3.bf16.msra.mxu0 %v19568_v8 }
0x1892   : > { %18702 = vmatprep.subr.bf16.mxu0 %v20125_v36 }
0x1895   : > { %18703 = vmatpush3.bf16.msra.mxu0 %v19569_v9  ;;  %v19591_v9 = vld [vmem:[%s24603_s10 + $0x180] sm:$0xff]  }
0x1896   : > { %18704 = vmatprep.subr.bf16.mxu0 %v20125_v36 }
0x1899   : > { %18705 = vmatpush3.bf16.msra.mxu0 %v19570_v45 }
0x189a   : > { %18736 = vmatprep.subr.bf16.mxu0 %v20125_v36 }
0x1937   : > { %v9007_v56 = vpop.f32.mrb[176].mxu1 }
0x1938   : > { %v18656_v37 = vpop.f32.mrb[177].mxu1 }
0x1939   : > { %v9010_v38 = vpop.f32.mrb[178].mxu1  ;;  %v19590_v37 = vld [vmem:[%s24602_s9 + $0x38] sm:$0xff]  }
0x193a   : > { %v18657_v0 = vpop.f32.mrb[179].mxu1 }
0x193b   : > { %v19593_v0 = vld [vmem:[%s24603_s10 + $0x190] sm:$0xff]  }
0x193f   : > { %v8918_v4 = vpop.f32.mrb[64].mxu0 }
0x1940   : > { %v18636_v5 = vpop.f32.mrb[65].mxu0  ;;  %v22433_v29 = vadd.f32 %v9007_v56, %v8918_v4  ;;  %v19592_v56 = vld [vmem:[%s24603_s10 + $0x188] sm:$0xff]  }
0x1941   : > { %v8921_v54 = vpop.f32.mrb[66].mxu0  ;;  %v19596_v4 = vld [vmem:[%s24603_s10 + $0x1c8] sm:$0xff]   ;;  %v19595_v5 = vld [vmem:[%s24603_s10 + $0x198] sm:$0xff]  }
0x1942   : > { %v18637_v63 = vpop.f32.mrb[67].mxu0  ;;  %v22435_v10 = vadd.f32 %v9010_v38, %v8921_v54  ;;  %v19594_v38 = vld [vmem:[%s24603_s10 + $0x1c0] sm:$0xff]  }
0x1943   : > { %v19597_v54 = vld [vmem:[%s24603_s10 + $0x1a0] sm:$0xff]   ;;  %v19599_v63 = vld [vmem:[%s24603_s10 + $0x1a8] sm:$0xff]  }
0x1947   : > { %v9058_v21 = vpop.f32.mrb[68].mxu0 }
0x1948   : > { %v18662_v32 = vpop.f32.mrb[69].mxu0 }
0x1949   : > { %v9061_v43 = vpop.f32.mrb[70].mxu0  ;;  %v19602_v32 = vld [vmem:[%s24603_s10 + $0x1e0] sm:$0xff]  }
0x194a   : > { %v9065_v55 = vpack.c.bf16 %v9061_v43, %v9058_v21  ;;  %v18663_v3 = vpop.f32.mrb[71].mxu0  ;;  %v19601_v21 = vld [vmem:[%s24603_s10 + $0x1b0] sm:$0xff]   ;;  %v19603_v43 = vld [vmem:[%s24603_s10 + $0x1b8] sm:$0xff]  }
0x194b   : > { %v19605_v3 = vld [vmem:[%s24603_s10 + $0x1f0] sm:$0xff]  }
0x194c   : > { %18681 = vmatmul.mubr.bf16.vlgmr.msra.gmra.mrb[180].mxu1 %v9065_v55  ;;  %v19604_v55 = vld [vmem:[%s24603_s10 + $0x1e8] sm:$0xff]  }
0x194d   : > { %18711 = vmatpush3.bf16.msra.mxu1 %v22291_v42  ;;  %18712 = vmatprep.mubr.msk.bf16.mxu1 %vm20126_vm1, %v20125_v36 }
0x194e   : > { %18716 = vmatprep.subr.bf16.mxu1 %v20125_v36 }
0x194f   : > { %v9217_v27 = vpop.f32.mrb[72].mxu0 }
0x1950   : > { %v18688_v15 = vpop.f32.mrb[73].mxu0 }
0x1951   : > { %v9220_v52 = vpop.f32.mrb[74].mxu0 }
0x1952   : > { %v9224_v1 = vpack.c.bf16 %v9220_v52, %v9217_v27  ;;  %v18689_v28 = vpop.f32.mrb[75].mxu0  ;;  %v19606_v27 = vld [vmem:[%s24603_s10 + $0x1f8] sm:$0xff]  }
0x1954   : > { %18707 = vmatmul.mubr.bf16.vlgmr.msra.gmra.mrb[76].mxu0 %v9224_v1  ;;  %18713 = vmatmul.mubr.msk.bf16.vlgmr.msra.gmra.mrb[184].mxu1 %vm8706_vm3, %v19571_v39 }
0x1955   : > { %18737 = vmatpush3.bf16.msra.mxu0 %v22291_v42  ;;  %18738 = vmatprep.mubr.msk.bf16.mxu0 %vm20126_vm1, %v20125_v36 }
0x1956   : > { %18717 = vmatpush3.bf16.msra.mxu1 %v19573_v14  ;;  %18742 = vmatprep.subr.bf16.mxu0 %v20125_v36 }
0x1957   : > { %18718 = vmatprep.subr.bf16.mxu1 %v20125_v36  ;;  %18732 = vmatprep.mubr.msk.bf16.mxu1 %vm20126_vm1, %v20125_v36 }
0x195a   : > { %18719 = vmatpush3.bf16.msra.mxu1 %v19574_v53 }
0x195b   : > { %18720 = vmatprep.subr.bf16.mxu1 %v20125_v36 }
0x195c   : > { %18739 = vmatmul.mubr.msk.bf16.vlgmr.msra.gmra.mrb[80].mxu0 %vm8706_vm3, %v19572_v47 }
0x195d   : > { %18743 = vmatpush3.bf16.msra.mxu0 %v19576_v57  ;;  %18758 = vmatprep.mubr.msk.bf16.mxu0 %vm20126_vm1, %v20125_v36 }
0x195e   : > { %18721 = vmatpush3.bf16.msra.mxu1 %v19575_v58  ;;  %18744 = vmatprep.subr.bf16.mxu0 %v20125_v36 }
0x195f   : > { %18722 = vmatprep.subr.bf16.mxu1 %v20125_v36 }
0x1961   : > { %18745 = vmatpush3.bf16.msra.mxu0 %v19578_v2 }
0x1962   : > { %18723 = vmatpush3.bf16.msra.mxu1 %v19577_v6  ;;  %18746 = vmatprep.subr.bf16.mxu0 %v20125_v36 }
0x1963   : > { %18724 = vmatprep.subr.bf16.mxu1 %v20125_v36 }
0x1965   : > { %18747 = vmatpush3.bf16.msra.mxu0 %v19580_v11 }
0x1966   : > { %18725 = vmatpush3.bf16.msra.mxu1 %v19579_v12  ;;  %18748 = vmatprep.subr.bf16.mxu0 %v20125_v36 }
0x1967   : > { %18726 = vmatprep.subr.bf16.mxu1 %v20125_v36 }
0x1969   : > { %18749 = vmatpush3.bf16.msra.mxu0 %v19582_v16 }
0x196a   : > { %18727 = vmatpush3.bf16.msra.mxu1 %v19581_v13  ;;  %18750 = vmatprep.subr.bf16.mxu0 %v20125_v36 }
0x196b   : > { %18728 = vmatprep.subr.bf16.mxu1 %v20125_v36 }
0x196d   : > { %18751 = vmatpush3.bf16.msra.mxu0 %v19584_v17 }
0x196e   : > { %18729 = vmatpush3.bf16.msra.mxu1 %v19583_v61  ;;  %18752 = vmatprep.subr.bf16.mxu0 %v20125_v36 }
0x196f   : > { %18730 = vmatprep.subr.bf16.mxu1 %v20125_v36 }
0x1971   : > { %18753 = vmatpush3.bf16.msra.mxu0 %v19586_v18  ;;  %v19607_v18 = vld [vmem:[%s24602_s9 + $0x40] sm:$0xff]  }
0x1972   : > { %18731 = vmatpush3.bf16.msra.mxu1 %v19585_v40  ;;  %18754 = vmatprep.subr.bf16.mxu0 %v20125_v36 }
0x1973   : > { %18762 = vmatprep.subr.bf16.mxu1 %v20125_v36 }
0x1975   : > { %18755 = vmatpush3.bf16.msra.mxu0 %v19587_v19 }
0x1976   : > { %18756 = vmatprep.subr.bf16.mxu0 %v20125_v36 }
0x1979   : > { %18757 = vmatpush3.bf16.msra.mxu0 %v19588_v20  ;;  %v19608_v20 = vld [vmem:[%s24603_s10 + $0x200] sm:$0xff]  }
0x197a   : > { %18788 = vmatprep.subr.bf16.mxu0 %v20125_v36 }
0x1a1f   : > { %v9164_v22 = vpop.f32.mrb[180].mxu1 }
0x1a20   : > { %v9171_v23 = vadd.f32 %v9164_v22, %v22433_v29  ;;  %v18682_v24 = vpop.f32.mrb[181].mxu1  ;;  %v19598_v29 = vld [vmem:[%s24603_s10 + $0x1d0] sm:$0xff]  }
0x1a21   : > { %v9167_v25 = vpop.f32.mrb[182].mxu1  ;;  %v19610_v24 = vld [vmem:[%s24603_s10 + $0x210] sm:$0xff]  }
0x1a22   : > { %v9172_v26 = vadd.f32 %v9167_v25, %v22435_v10  ;;  %v18683_v30 = vpop.f32.mrb[183].mxu1  ;;  %v19600_v10 = vld [vmem:[%s24603_s10 + $0x1d8] sm:$0xff]  }
0x1a23   : > { %v19611_v25 = vld [vmem:[%s24603_s10 + $0x218] sm:$0xff]   ;;  %v19613_v30 = vld [vmem:[%s24603_s10 + $0x228] sm:$0xff]  }
0x1a27   : > { %v9323_v31 = vpop.f32.mrb[76].mxu0  ;;  %v9376_v33 = vpop.f32.mrb[184].mxu1 }
0x1a28   : > { %v22523_v34 = vadd.f32 %v9323_v31, %v9171_v23  ;;  %v18708_v35 = vpop.f32.mrb[77].mxu0  ;;  %v18714_v41 = vpop.f32.mrb[185].mxu1  ;;  %v19614_v31 = vld [vmem:[%s24603_s10 + $0x230] sm:$0xff]  }
0x1a29   : > { %v9326_v48 = vpop.f32.mrb[78].mxu0  ;;  %v9379_v44 = vpop.f32.mrb[186].mxu1 }
0x1a2a   : > { %v22525_v46 = vadd.f32 %v9326_v48, %v9172_v26  ;;  %v9383_v49 = vpack.c.bf16 %v9379_v44, %v9376_v33  ;;  %v18709_v50 = vpop.f32.mrb[79].mxu0  ;;  %v18715_v51 = vpop.f32.mrb[187].mxu1  ;;  %v19612_v26 = vld [vmem:[%s24603_s10 + $0x220] sm:$0xff]   ;;  %v19615_v33 = vld [vmem:[%s24603_s10 + $0x238] sm:$0xff]  }
0x1a2c   : > { %18733 = vmatmul.mubr.bf16.vlgmr.msra.gmra.mrb[188].mxu1 %v9383_v49 }
0x1a2d   : > { %18763 = vmatpush3.bf16.msra.mxu1 %v22291_v42  ;;  %18764 = vmatprep.mubr.msk.bf16.mxu1 %vm20126_vm1, %v20125_v36 }
0x1a2e   : > { %18768 = vmatprep.subr.bf16.mxu1 %v20125_v36 }
0x1a2f   : > { %v9535_v59 = vpop.f32.mrb[80].mxu0 }
0x1a30   : > { %v18740_v60 = vpop.f32.mrb[81].mxu0 }
0x1a31   : > { %v9538_v7 = vpop.f32.mrb[82].mxu0 }
0x1a32   : > { %v9542_v8 = vpack.c.bf16 %v9538_v7, %v9535_v59  ;;  %v18741_v45 = vpop.f32.mrb[83].mxu0 }
0x1a34   : > { %18759 = vmatmul.mubr.bf16.vlgmr.msra.gmra.mrb[84].mxu0 %v9542_v8  ;;  %18765 = vmatmul.mubr.msk.bf16.vlgmr.msra.gmra.mrb[192].mxu1 %vm8706_vm3, %v19589_v62 }
0x1a35   : > { %18789 = vmatpush3.bf16.msra.mxu0 %v22291_v42  ;;  %18790 = vmatprep.mubr.msk.bf16.mxu0 %vm20126_vm1, %v20125_v36 }
0x1a36   : > { %18769 = vmatpush3.bf16.msra.mxu1 %v19591_v9  ;;  %18794 = vmatprep.subr.bf16.mxu0 %v20125_v36 }
0x1a37   : > { %18770 = vmatprep.subr.bf16.mxu1 %v20125_v36  ;;  %18784 = vmatprep.mubr.msk.bf16.mxu1 %vm20126_vm1, %v20125_v36 }
0x1a3a   : > { %18771 = vmatpush3.bf16.msra.mxu1 %v19592_v56 }
0x1a3b   : > { %18772 = vmatprep.subr.bf16.mxu1 %v20125_v36 }
0x1a3c   : > { %18791 = vmatmul.mubr.msk.bf16.vlgmr.msra.gmra.mrb[88].mxu0 %vm8706_vm3, %v19590_v37  ;;  %v10308_v37 = vld [vmem:[%s24606_s13 + $0x208] sm:$0xff] }
0x1a3d   : > { %18795 = vmatpush3.bf16.msra.mxu0 %v19594_v38  ;;  %18810 = vmatprep.mubr.msk.bf16.mxu0 %vm20126_vm1, %v20125_v36  ;;  %v10312_v38 = vld [vmem:[%s24606_s13 + $0x228] sm:$0xff] }
0x1a3e   : > { %18773 = vmatpush3.bf16.msra.mxu1 %v19593_v0  ;;  %18796 = vmatprep.subr.bf16.mxu0 %v20125_v36  ;;  %v15879_v0 = vcombine.low %v10308_v37, %v10312_v38 }
0x1a3f   : > { %18774 = vmatprep.subr.bf16.mxu1 %v20125_v36 }
0x1a41   : > { %18797 = vmatpush3.bf16.msra.mxu0 %v19596_v4  ;;  %v15880_v4 = vcombine.high %v10308_v37, %v10312_v38  ;;  %v10359_v37 = vld [vmem:[%s24606_s13 + $0x3a0] sm:$0xff]  ;;  %v10356_v38 = vld [vmem:[%s24606_s13 + $0x388] sm:$0xff] }
0x1a42   : > { %18775 = vmatpush3.bf16.msra.mxu1 %v19595_v5  ;;  %18798 = vmatprep.subr.bf16.mxu0 %v20125_v36  ;;  %v10316_v5 = vld [vmem:[%s24606_s13 + $0x248] sm:$0xff] }
0x1a43   : > { %18776 = vmatprep.subr.bf16.mxu1 %v20125_v36 }
0x1a45   : > { %18799 = vmatpush3.bf16.msra.mxu0 %v19598_v29  ;;  %v10320_v29 = vld [vmem:[%s24606_s13 + $0x268] sm:$0xff] }
0x1a46   : > { %18777 = vmatpush3.bf16.msra.mxu1 %v19597_v54  ;;  %18800 = vmatprep.subr.bf16.mxu0 %v20125_v36  ;;  %v15888_v54 = vcombine.high %v10316_v5, %v10320_v29 }
0x1a47   : > { %18778 = vmatprep.subr.bf16.mxu1 %v20125_v36 }
0x1a49   : > { %18801 = vmatpush3.bf16.msra.mxu0 %v19600_v10  ;;  %v10324_v10 = vld [vmem:[%s24606_s13 + $0x288] sm:$0xff] }
0x1a4a   : > { %18779 = vmatpush3.bf16.msra.mxu1 %v19599_v63  ;;  %18802 = vmatprep.subr.bf16.mxu0 %v20125_v36  ;;  %v15887_v63 = vcombine.low %v10316_v5, %v10320_v29  ;;  %v10360_v5 = vld [vmem:[%s24606_s13 + $0x3a8] sm:$0xff] }
0x1a4b   : > { %18780 = vmatprep.subr.bf16.mxu1 %v20125_v36  ;;  %v15927_v29 = vcombine.low %v10356_v38, %v10360_v5 }
0x1a4d   : > { %18803 = vmatpush3.bf16.msra.mxu0 %v19602_v32 }
0x1a4e   : > { %18781 = vmatpush3.bf16.msra.mxu1 %v19601_v21  ;;  %18804 = vmatprep.subr.bf16.mxu0 %v20125_v36  ;;  %v10328_v21 = vld [vmem:[%s24606_s13 + $0x2a8] sm:$0xff] }
0x1a4f   : > { %18782 = vmatprep.subr.bf16.mxu1 %v20125_v36  ;;  %v15896_v32 = vcombine.high %v10324_v10, %v10328_v21 }
0x1a51   : > { %18805 = vmatpush3.bf16.msra.mxu0 %v19604_v55  ;;  %v10332_v55 = vld [vmem:[%s24606_s13 + $0x2c8] sm:$0xff] }
0x1a52   : > { %18783 = vmatpush3.bf16.msra.mxu1 %v19603_v43  ;;  %18806 = vmatprep.subr.bf16.mxu0 %v20125_v36  ;;  %v15895_v43 = vcombine.low %v10324_v10, %v10328_v21  ;;  %v10367_v10 = vld [vmem:[%s24606_s13 + $0x3e0] sm:$0xff]  ;;  %v10364_v21 = vld [vmem:[%s24606_s13 + $0x3c8] sm:$0xff] }
0x1a53   : > { %18814 = vmatprep.subr.bf16.mxu1 %v20125_v36 }
0x1a55   : > { %18807 = vmatpush3.bf16.msra.mxu0 %v19605_v3  ;;  %v10336_v3 = vld [vmem:[%s24606_s13 + $0x2e8] sm:$0xff] }
0x1a56   : > { %18808 = vmatprep.subr.bf16.mxu0 %v20125_v36 }
0x1a59   : > { %18809 = vmatpush3.bf16.msra.mxu0 %v19606_v27  ;;  %v15904_v27 = vcombine.high %v10332_v55, %v10336_v3 }
0x1a5a   : > { %18840 = vmatprep.subr.bf16.mxu0 %v20125_v36 }
0x1aff   : > { %v9482_v15 = vpop.f32.mrb[188].mxu1 }
0x1b00   : > { %v9489_v39 = vadd.f32 %v9482_v15, %v22523_v34  ;;  %v18734_v52 = vpop.f32.mrb[189].mxu1  ;;  %v15903_v15 = vcombine.low %v10332_v55, %v10336_v3 }
0x1b01   : > { %v9485_v1 = vpop.f32.mrb[190].mxu1  ;;  %v10344_v52 = vld [vmem:[%s24606_s13 + $0x328] sm:$0xff] }
0x1b02   : > { %v9490_v14 = vadd.f32 %v9485_v1, %v22525_v46  ;;  %v18735_v28 = vpop.f32.mrb[191].mxu1 }
0x1b03   : > { %v10348_v28 = vld [vmem:[%s24606_s13 + $0x348] sm:$0xff] }
0x1b07   : > { %v9641_v53 = vpop.f32.mrb[84].mxu0  ;;  %v9694_v47 = vpop.f32.mrb[192].mxu1 }
0x1b08   : > { %v9648_v57 = vadd.f32 %v9641_v53, %v9489_v39  ;;  %v18760_v58 = vpop.f32.mrb[85].mxu0  ;;  %v18766_v2 = vpop.f32.mrb[193].mxu1  ;;  %v10340_v39 = vld [vmem:[%s24606_s13 + $0x308] sm:$0xff] }
0x1b09   : > { %v9644_v6 = vpop.f32.mrb[86].mxu0  ;;  %v9697_v11 = vpop.f32.mrb[194].mxu1  ;;  %v15912_v1 = vcombine.high %v10340_v39, %v10344_v52  ;;  %v10352_v53 = vld [vmem:[%s24606_s13 + $0x368] sm:$0xff]  ;;  %v15872_v2 = vld [vmem:[%s24604_s11] ss:$0 sm:$0xff] }
0x1b0a   : > { %v9649_v12 = vadd.f32 %v9644_v6, %v9490_v14  ;;  %v9701_v13 = vpack.c.bf16 %v9697_v11, %v9694_v47  ;;  %v18761_v16 = vpop.f32.mrb[87].mxu0  ;;  %v18767_v61 = vpop.f32.mrb[195].mxu1  ;;  %v15911_v14 = vcombine.low %v10340_v39, %v10344_v52  ;;  %v15920_v47 = vcombine.high %v10348_v28, %v10352_v53  ;;  %v10313_v39 = vld [vmem:[%s24606_s13 + $0x230] sm:$0xff]  ;;  %v10310_v52 = vld [vmem:[%s24606_s13 + $0x218] sm:$0xff] }
0x1b0c   : > { %18785 = vmatmul.mubr.bf16.vlgmr.msra.gmra.mrb[196].mxu1 %v9701_v13 }
0x1b0d   : > { %18815 = vmatpush3.bf16.msra.mxu1 %v22291_v42  ;;  %18816 = vmatprep.mubr.msk.bf16.mxu1 %vm20126_vm1, %v20125_v36  ;;  %v19609_v42 = vld [vmem:[%s24603_s10 + $0x208] sm:$0xff]  }
0x1b0e   : > { %18820 = vmatprep.subr.bf16.mxu1 %v20125_v36 }
0x1b0f   : > { %v9853_v17 = vpop.f32.mrb[88].mxu0 }
0x1b10   : > { %v18792_v40 = vpop.f32.mrb[89].mxu0 }
0x1b11   : > { %v9856_v19 = vpop.f32.mrb[90].mxu0 }
0x1b12   : > { %v9860_v22 = vpack.c.bf16 %v9856_v19, %v9853_v17  ;;  %v18793_v23 = vpop.f32.mrb[91].mxu0 }
0x1b13   : > { %v19616_v23 = vld [vmem:[%s24605_s12] sm:$0xff]  }
0x1b14   : > { %18811 = vmatmul.mubr.bf16.vlgmr.msra.gmra.mrb[92].mxu0 %v9860_v22  ;;  %18817 = vmatmul.mubr.msk.bf16.vlgmr.msra.gmra.mrb[200].mxu1 %vm8706_vm3, %v19607_v18  ;;  %v10311_v22 = vld [vmem:[%s24606_s13 + $0x220] sm:$0xff] }
0x1b15   : > { %18821 = vmatpush3.bf16.msra.mxu1 %v19608_v20  ;;  %18836 = vmatprep.mubr.msk.bf16.mxu1 %vm20126_vm1, %v20125_v36  ;;  %v10307_v20 = vld [vmem:[%s24606_s13 + $0x200] sm:$0xff] }
0x1b16   : > { %18822 = vmatprep.subr.bf16.mxu1 %v20125_v36  ;;  %18842 = vmatprep.mubr.msk.bf16.mxu0 %vm20126_vm1, %v20125_v36 }
0x1b19   : > { %18823 = vmatpush3.bf16.msra.mxu1 %v19609_v42  ;;  %v15878_v42 = vcombine.high %v10307_v20, %v10311_v22 }
0x1b1a   : > { %18824 = vmatprep.subr.bf16.mxu1 %v20125_v36 }
0x1b1d   : > { %18825 = vmatpush3.bf16.msra.mxu1 %v19610_v24  ;;  %v10315_v24 = vld [vmem:[%s24606_s13 + $0x240] sm:$0xff] }
0x1b1e   : > { %18826 = vmatprep.subr.bf16.mxu1 %v20125_v36 }
0x1b21   : > { %18827 = vmatpush3.bf16.msra.mxu1 %v19611_v25  ;;  %v10319_v25 = vld [vmem:[%s24606_s13 + $0x260] sm:$0xff] }
0x1b22   : > { %18828 = vmatprep.subr.bf16.mxu1 %v20125_v36 }
0x1b25   : > { %18829 = vmatpush3.bf16.msra.mxu1 %v19612_v26  ;;  %v19617_v26 = vld [vmem:[%s24605_s12 + $0x8] sm:$0xff]  }
0x1b26   : > { %18830 = vmatprep.subr.bf16.mxu1 %v20125_v36 }
0x1b29   : > { %18831 = vmatpush3.bf16.msra.mxu1 %v19613_v30  ;;  %v15877_v30 = vcombine.low %v10307_v20, %v10311_v22 }
0x1b2a   : > { %18832 = vmatprep.subr.bf16.mxu1 %v20125_v36 }
0x1b2d   : > { %18833 = vmatpush3.bf16.msra.mxu1 %v19614_v31  ;;  %v15886_v31 = vcombine.high %v10315_v24, %v10319_v25 }
0x1b2e   : > { %18834 = vmatprep.subr.bf16.mxu1 %v20125_v36 }
0x1b31   : > { %18835 = vmatpush3.bf16.msra.mxu1 %v19615_v33  ;;  %v10323_v33 = vld [vmem:[%s24606_s13 + $0x280] sm:$0xff] }
0x1b32   : > { %10734 = vmatprep.subr.bf16.mxu1 %v15880_v4 }
0x1bdf   : > { %v9800_v34 = vpop.f32.mrb[196].mxu1 }
0x1be0   : > { %v9807_v35 = vadd.f32 %v9800_v34, %v9648_v57  ;;  %v18786_v41 = vpop.f32.mrb[197].mxu1  ;;  %v15919_v57 = vcombine.low %v10348_v28, %v10352_v53  ;;  %v10327_v34 = vld [vmem:[%s24606_s13 + $0x2a0] sm:$0xff]  ;;  %v10314_v28 = vld [vmem:[%s24606_s13 + $0x238] sm:$0xff]  ;;  %v20127_v53 = vmov 0  }
0x1be1   : > { %v9803_v48 = vpop.f32.mrb[198].mxu1  ;;  %v15894_v41 = vcombine.high %v10323_v33, %v10327_v34 }
0x1be2   : > { %v9808_v44 = vadd.f32 %v9803_v48, %v9649_v12  ;;  %v18787_v46 = vpop.f32.mrb[199].mxu1  ;;  %v10331_v48 = vld [vmem:[%s24606_s13 + $0x2c0] sm:$0xff] }
0x1be3   : > { %v15893_v46 = vcombine.low %v10323_v33, %v10327_v34 }
0x1be7   : > { %v9959_v49 = vpop.f32.mrb[92].mxu0  ;;  %v10012_v50 = vpop.f32.mrb[200].mxu1 }
0x1be8   : > { %v9966_v51 = vadd.f32 %v9959_v49, %v9807_v35  ;;  %v18812_v59 = vpop.f32.mrb[93].mxu0  ;;  %v18818_v60 = vpop.f32.mrb[201].mxu1  ;;  %v15885_v35 = vcombine.low %v10315_v24, %v10319_v25  ;;  %v10325_v24 = vld [vmem:[%s24606_s13 + $0x290] sm:$0xff] }
0x1be9   : > { %v9962_v62 = vpop.f32.mrb[94].mxu0  ;;  %v10015_v7 = vpop.f32.mrb[202].mxu1 }
0x1bea   : > { %v9967_v8 = vadd.f32 %v9962_v62, %v9808_v44  ;;  %v10019_v9 = vpack.c.bf16 %v10015_v7, %v10012_v50  ;;  %v18819_v45 = vpop.f32.mrb[203].mxu1  ;;  %v18813_v56 = vpop.f32.mrb[95].mxu0  ;;  %v10335_v44 = vld [vmem:[%s24606_s13 + $0x2e0] sm:$0xff] }
0x1beb   : > { %v15902_v49 = vcombine.high %v10331_v48, %v10335_v44  ;;  %v10339_v50 = vld [vmem:[%s24606_s13 + $0x300] sm:$0xff]  ;;  %v15901_v59 = vcombine.low %v10331_v48, %v10335_v44  ;;  %v10333_v48 = vld [vmem:[%s24606_s13 + $0x2d0] sm:$0xff] }
0x1bec   : > { %18837 = vmatmul.mubr.bf16.vlgmr.msra.gmra.mrb[204].mxu1 %v10019_v9  ;;  %v10347_v62 = vld [vmem:[%s24606_s13 + $0x340] sm:$0xff]  ;;  %v10337_v44 = vld [vmem:[%s24606_s13 + $0x2f0] sm:$0xff] }
0x1bed   : > { %10735 = vmatpush1.bf16.msra.mxu1 %v15879_v0  ;;  %v10351_v7 = vld [vmem:[%s24606_s13 + $0x360] sm:$0xff]  ;;  %10766 = vmatprep.mubr.bf16.mxu1 %v20127_v53 }
0x1bee   : > { %10736 = vmatprep.subr.bf16.mxu1 %v15888_v54  ;;  %v15918_v9 = vcombine.high %v10347_v62, %v10351_v7  ;;  %v15917_v45 = vcombine.low %v10347_v62, %v10351_v7  ;;  %v10355_v56 = vld [vmem:[%s24606_s13 + $0x380] sm:$0xff]  ;;  %v15928_v54 = vcombine.high %v10356_v38, %v10360_v5  ;;  %v10341_v62 = vld [vmem:[%s24606_s13 + $0x310] sm:$0xff]  ;;  %v10350_v5 = vld [vmem:[%s24606_s13 + $0x358] sm:$0xff] }
0x1bef   : > { %v15925_v0 = vcombine.low %v10355_v56, %v10359_v37  ;;  %v15926_v4 = vcombine.high %v10355_v56, %v10359_v37  ;;  %v10345_v7 = vld [vmem:[%s24606_s13 + $0x330] sm:$0xff] }
0x1bf0   : > { %v15914_v37 = vcombine.high %v10341_v62, %v10345_v7 }
0x1bf1   : > { %10737 = vmatpush1.bf16.msra.mxu1 %v15887_v63  ;;  %v10363_v63 = vld [vmem:[%s24606_s13 + $0x3c0] sm:$0xff] }
0x1bf2   : > { %10738 = vmatprep.subr.bf16.mxu1 %v15896_v32  ;;  %v15934_v32 = vcombine.high %v10363_v63, %v10367_v10  ;;  %v15933_v55 = vcombine.low %v10363_v63, %v10367_v10 }
0x1bf5   : > { %10739 = vmatpush1.bf16.msra.mxu1 %v15895_v43  ;;  %v10368_v43 = vld [vmem:[%s24606_s13 + $0x3e8] sm:$0xff] }
0x1bf6   : > { %10740 = vmatprep.subr.bf16.mxu1 %v15904_v27  ;;  %v15935_v3 = vcombine.low %v10364_v21, %v10368_v43  ;;  %v15936_v27 = vcombine.high %v10364_v21, %v10368_v43  ;;  %v10361_v43 = vld [vmem:[%s24606_s13 + $0x3b0] sm:$0xff] }
0x1bf9   : > { %10741 = vmatpush1.bf16.msra.mxu1 %v15903_v15  ;;  %v10309_v15 = vld [vmem:[%s24606_s13 + $0x210] sm:$0xff] }
0x1bfa   : > { %10742 = vmatprep.subr.bf16.mxu1 %v15912_v1  ;;  %v15881_v1 = vcombine.low %v10309_v15, %v10313_v39 }
0x1bfd   : > { %10743 = vmatpush1.bf16.msra.mxu1 %v15911_v14  ;;  %v15882_v14 = vcombine.high %v10309_v15, %v10313_v39 }
0x1bfe   : > { %10744 = vmatprep.subr.bf16.mxu1 %v15920_v47  ;;  %v15883_v47 = vcombine.low %v10310_v52, %v10314_v28 }
0x1c01   : > { %10745 = vmatpush1.bf16.msra.mxu1 %v15919_v57  ;;  %v15884_v57 = vcombine.high %v10310_v52, %v10314_v28  ;;  %v10366_v28 = vld [vmem:[%s24606_s13 + $0x3d8] sm:$0xff] }
0x1c02   : > { %10746 = vmatprep.subr.bf16.mxu1 %v15928_v54  ;;  %v15913_v54 = vcombine.low %v10341_v62, %v10345_v7 }
0x1c05   : > { %10747 = vmatpush1.bf16.msra.mxu1 %v15927_v29  ;;  %v10354_v29 = vld [vmem:[%s24606_s13 + $0x378] sm:$0xff] }
0x1c06   : > { %10748 = vmatprep.subr.bf16.mxu1 %v15936_v27  ;;  %v15924_v21 = vcombine.high %v10350_v5, %v10354_v29  ;;  %v15923_v15 = vcombine.low %v10350_v5, %v10354_v29 }
0x1c09   : > { %10749 = vmatpush1.bf16.msra.mxu1 %v15935_v3  ;;  %v10362_v3 = vld [vmem:[%s24606_s13 + $0x3b8] sm:$0xff] }
0x1c0a   : > { %10820 = vmatprep.subr.bf16.mxu1 %v15884_v57 }
0x1cbf   : > { %v10118_v58 = vpop.f32.mrb[204].mxu1 }
0x1cc0   : > { %v10125_v6 = vadd.f32 %v10118_v58, %v9966_v51  ;;  %v18838_v11 = vpop.f32.mrb[205].mxu1  ;;  %v10343_v51 = vld [vmem:[%s24606_s13 + $0x320] sm:$0xff] }
0x1cc1   : > { %v10121_v12 = vpop.f32.mrb[206].mxu1  ;;  %v15910_v60 = vcombine.high %v10339_v50, %v10343_v51 }
0x1cc2   : > { %v10134_v13 = vadd.f32 %v15872_v2, %v10125_v6  ;;  %v10126_v16 = vadd.f32 %v10121_v12, %v9967_v8  ;;  %v18839_v61 = vpop.f32.mrb[207].mxu1  ;;  %v15909_v8 = vcombine.low %v10339_v50, %v10343_v51 }
0x1cc3   : > { %v10321_v61 = vld [vmem:[%s24606_s13 + $0x270] sm:$0xff] }
0x1cc4   : > { %v10135_v17 = vadd.f32 %v15872_v2, %v10126_v16  ;;  %v10136_v40 = vmax.f32 %v10134_v13, 0.0  ;;  %v10317_v13 = vld [vmem:[%s24606_s13 + $0x250] sm:$0xff] }
0x1cc5   : > { %v15889_v33 = vcombine.low %v10317_v13, %v10321_v61 }
0x1cc6   : > { %v10137_v18 = vmax.f32 %v10135_v17, 0.0  ;;  %v10318_v17 = vld [vmem:[%s24606_s13 + $0x258] sm:$0xff] }
0x1cc8   : > { %v22695_v19 = vpack.c.bf16 %v10137_v18, %v10136_v40  ;;  %v10322_v40 = vld [vmem:[%s24606_s13 + $0x278] sm:$0xff] }
0x1cc9   : > { %v15891_v34 = vcombine.low %v10318_v17, %v10322_v40 }
0x1cca   : > { %18841 = vmatpush3.bf16.msra.mxu0 %v22695_v19 }
0x1ccb   : > { %18846 = vmatprep.subr.bf16.mxu0 %v20125_v36 }
0x1ccd   : > { %18843 = vmatmul.mubr.msk.bf16.vlgmr.msra.gmra.mrb[96].mxu0 %vm8706_vm3, %v19616_v23  ;;  %v15890_v23 = vcombine.high %v10317_v13, %v10321_v61  ;;  %v10195_v13 = vld [vmem:[%s24606_s13 + $0x20] sm:$0xff]  ;;  %v10196_v61 = vld [vmem:[%s24606_s13 + $0x28] sm:$0xff] }
0x1cce   : > { %18847 = vmatpush3.bf16.msra.mxu0 %v22695_v19  ;;  %18848 = vmatprep.mubr.msk.bf16.mxu0 %vm20126_vm1, %v20125_v36 }
0x1ccf   : > { %10691 = vmatprep.subr.bf16.mxu0 %v15878_v42  ;;  %v15892_v42 = vcombine.high %v10318_v17, %v10322_v40 }
0x1cd5   : > { %18849 = vmatmul.mubr.msk.bf16.vlgmr.msra.gmra.mrb[100].mxu0 %vm8706_vm3, %v19617_v26  ;;  %v10329_v26 = vld [vmem:[%s24606_s13 + $0x2b0] sm:$0xff] }
0x1cd6   : > { %10692 = vmatpush1.bf16.msra.mxu0 %v15877_v30  ;;  %10723 = vmatprep.mubr.bf16.mxu0 %v20127_v53  ;;  %v10326_v30 = vld [vmem:[%s24606_s13 + $0x298] sm:$0xff]  ;;  %v15897_v50 = vcombine.low %v10325_v24, %v10329_v26 }
0x1cd7   : > { %10693 = vmatprep.subr.bf16.mxu0 %v15886_v31  ;;  %v10330_v31 = vld [vmem:[%s24606_s13 + $0x2b8] sm:$0xff] }
0x1cd8   : > { %v15899_v51 = vcombine.low %v10326_v30, %v10330_v31 }
0x1cda   : > { %10694 = vmatpush1.bf16.msra.mxu0 %v15885_v35  ;;  %v15898_v35 = vcombine.high %v10325_v24, %v10329_v26  ;;  %v10200_v24 = vld [vmem:[%s24606_s13 + $0x48] sm:$0xff] }
0x1cdb   : > { %10695 = vmatprep.subr.bf16.mxu0 %v15894_v41  ;;  %v15900_v41 = vcombine.high %v10326_v30, %v10330_v31 }
0x1cde   : > { %10696 = vmatpush1.bf16.msra.mxu0 %v15893_v46  ;;  %v10334_v46 = vld [vmem:[%s24606_s13 + $0x2d8] sm:$0xff] }
0x1cdf   : > { %10697 = vmatprep.subr.bf16.mxu0 %v15902_v49  ;;  %v10338_v49 = vld [vmem:[%s24606_s13 + $0x2f8] sm:$0xff] }
0x1ce0   : > { %v15907_v56 = vcombine.low %v10334_v46, %v10338_v49 }
0x1ce2   : > { %10698 = vmatpush1.bf16.msra.mxu0 %v15901_v59  ;;  %v15906_v59 = vcombine.high %v10333_v48, %v10337_v44 }
0x1ce3   : > { %10699 = vmatprep.subr.bf16.mxu0 %v15910_v60  ;;  %v15908_v60 = vcombine.high %v10334_v46, %v10338_v49 }
0x1ce6   : > { %10700 = vmatpush1.bf16.msra.mxu0 %v15909_v8  ;;  %v10342_v8 = vld [vmem:[%s24606_s13 + $0x318] sm:$0xff] }
0x1ce7   : > { %10701 = vmatprep.subr.bf16.mxu0 %v15918_v9  ;;  %v10346_v9 = vld [vmem:[%s24606_s13 + $0x338] sm:$0xff] }
0x1ce8   : > { %v15916_v38 = vcombine.high %v10342_v8, %v10346_v9  ;;  %v15915_v63 = vcombine.low %v10342_v8, %v10346_v9 }
0x1cea   : > { %10702 = vmatpush1.bf16.msra.mxu0 %v15917_v45  ;;  %v15905_v45 = vcombine.low %v10333_v48, %v10337_v44  ;;  %v10212_v48 = vld [vmem:[%s24606_s13 + $0xa8] sm:$0xff] }
0x1ceb   : > { %10703 = vmatprep.subr.bf16.mxu0 %v15926_v4  ;;  %v10353_v4 = vld [vmem:[%s24606_s13 + $0x370] sm:$0xff] }
0x1cee   : > { %10704 = vmatpush1.bf16.msra.mxu0 %v15925_v0  ;;  %v10349_v0 = vld [vmem:[%s24606_s13 + $0x350] sm:$0xff] }
0x1cef   : > { %10705 = vmatprep.subr.bf16.mxu0 %v15934_v32  ;;  %v15922_v10 = vcombine.high %v10349_v0, %v10353_v4  ;;  %v10357_v32 = vld [vmem:[%s24606_s13 + $0x390] sm:$0xff]  ;;  %v15921_v27 = vcombine.low %v10349_v0, %v10353_v4 }
0x1cf0   : > { %v15930_v39 = vcombine.high %v10357_v32, %v10361_v43  ;;  %v15929_v57 = vcombine.low %v10357_v32, %v10361_v43 }
0x1cf2   : > { %10706 = vmatpush1.bf16.msra.mxu0 %v15933_v55  ;;  %v10358_v55 = vld [vmem:[%s24606_s13 + $0x398] sm:$0xff] }
0x1cf3   : > { %10777 = vmatprep.subr.bf16.mxu0 %v15882_v14  ;;  %v15932_v52 = vcombine.high %v10358_v55, %v10362_v3  ;;  %v10369_v14 = vld [vmem:[%s24606_s13 + $0x3f0] sm:$0xff] }
0x1da0   : > { %v10183_v58 = vpop.f32.mrb[96].mxu0 }
0x1da1   : > { %v18844_v2 = vpop.f32.mrb[97].mxu0 }
0x1da2   : > { %v10186_v6 = vpop.f32.mrb[98].mxu0 }
0x1da3   : > { %v22784_v11 = vpack.c.bf16 %v10186_v6, %v10183_v58  ;;  %v18845_v12 = vpop.f32.mrb[99].mxu0  ;;  %v15931_v58 = vcombine.low %v10358_v55, %v10362_v3 }
0x1da4   : > { %v10191_v12 = vld [vmem:[%s24606_s13] sm:$0xff] }
0x1da5   : > { %v15941_v26 = vcombine.low %v10191_v12, %v10195_v13 }
0x1da8   : > { %v10299_v16 = vpop.f32.mrb[100].mxu0 }
0x1da9   : > { %v18850_v18 = vpop.f32.mrb[101].mxu0 }
0x1daa   : > { %v10302_v20 = vpop.f32.mrb[102].mxu0  ;;  %v15942_v18 = vcombine.high %v10191_v12, %v10195_v13 }
0x1dab   : > { %v22798_v22 = vpack.c.bf16 %v10302_v20, %v10299_v16  ;;  %v18851_v25 = vpop.f32.mrb[103].mxu0  ;;  %v10192_v16 = vld [vmem:[%s24606_s13 + $0x8] sm:$0xff] }
0x1dac   : > { %v15944_v20 = vcombine.high %v10192_v16, %v10196_v61  ;;  %v10204_v25 = vld [vmem:[%s24606_s13 + $0x68] sm:$0xff]  ;;  %v15943_v30 = vcombine.low %v10192_v16, %v10196_v61 }
0x1dad   : > { %10724 = vmatmul.mubr.bf16.vlgmr.msra.gmra.mrb[104].mxu0 %v22798_v22  ;;  %10767 = vmatmul.mubr.bf16.vlgmr.msra.gmra.mrb[208].mxu1 %v22798_v22  ;;  %v15951_v46 = vcombine.low %v10200_v24, %v10204_v25 }
0x1dae   : > { %10778 = vmatpush1.bf16.msra.mxu0 %v15881_v1  ;;  %10821 = vmatpush1.bf16.msra.mxu1 %v15883_v47  ;;  %v10365_v1 = vld [vmem:[%s24606_s13 + $0x3d0] sm:$0xff]  ;;  %v10370_v47 = vld [vmem:[%s24606_s13 + $0x3f8] sm:$0xff] }
0x1daf   : > { %10779 = vmatprep.subr.bf16.mxu0 %v15890_v23  ;;  %10822 = vmatprep.subr.bf16.mxu1 %v15892_v42  ;;  %v15938_v2 = vcombine.high %v10365_v1, %v10369_v14  ;;  %v15940_v6 = vcombine.high %v10366_v28, %v10370_v47  ;;  %v15937_v17 = vcombine.low %v10365_v1, %v10369_v14  ;;  %v10199_v23 = vld [vmem:[%s24606_s13 + $0x40] sm:$0xff] }
0x1db0   : > { %10809 = vmatprep.mubr.bf16.mxu0 %v20127_v53  ;;  %10852 = vmatprep.mubr.bf16.mxu1 %v20127_v53  ;;  %v15939_v40 = vcombine.low %v10366_v28, %v10370_v47  ;;  %v10203_v42 = vld [vmem:[%s24606_s13 + $0x60] sm:$0xff] }
0x1db1   : > { %v15950_v31 = vcombine.high %v10199_v23, %v10203_v42  ;;  %v15949_v44 = vcombine.low %v10199_v23, %v10203_v42 }
0x1db2   : > { %10780 = vmatpush1.bf16.msra.mxu0 %v15889_v33  ;;  %10823 = vmatpush1.bf16.msra.mxu1 %v15891_v34  ;;  %v15952_v33 = vcombine.high %v10200_v24, %v10204_v25  ;;  %v10207_v34 = vld [vmem:[%s24606_s13 + $0x80] sm:$0xff] }
0x1db3   : > { %10781 = vmatprep.subr.bf16.mxu0 %v15898_v35  ;;  %10824 = vmatprep.subr.bf16.mxu1 %v15900_v41  ;;  %v10211_v35 = vld [vmem:[%s24606_s13 + $0xa0] sm:$0xff]  ;;  %v10208_v41 = vld [vmem:[%s24606_s13 + $0x88] sm:$0xff] }
0x1db4   : > { %v15958_v49 = vcombine.high %v10207_v34, %v10211_v35  ;;  %v15957_v62 = vcombine.low %v10207_v34, %v10211_v35  ;;  %v15959_v7 = vcombine.low %v10208_v41, %v10212_v48 }
0x1db6   : > { %10782 = vmatpush1.bf16.msra.mxu0 %v15897_v50  ;;  %10825 = vmatpush1.bf16.msra.mxu1 %v15899_v51  ;;  %v15960_v50 = vcombine.high %v10208_v41, %v10212_v48  ;;  %v10215_v51 = vld [vmem:[%s24606_s13 + $0xc0] sm:$0xff] }
0x1db7   : > { %10783 = vmatprep.subr.bf16.mxu0 %v15906_v59  ;;  %10826 = vmatprep.subr.bf16.mxu1 %v15908_v60  ;;  %v10219_v59 = vld [vmem:[%s24606_s13 + $0xe0] sm:$0xff]  ;;  %v10220_v60 = vld [vmem:[%s24606_s13 + $0xe8] sm:$0xff] }
0x1db8   : > { %v15966_v8 = vcombine.high %v10215_v51, %v10219_v59  ;;  %v15965_v0 = vcombine.low %v10215_v51, %v10219_v59 }
0x1dba   : > { %10784 = vmatpush1.bf16.msra.mxu0 %v15905_v45  ;;  %10827 = vmatpush1.bf16.msra.mxu1 %v15907_v56  ;;  %v10223_v45 = vld [vmem:[%s24606_s13 + $0x100] sm:$0xff] }
0x1dbb   : > { %10785 = vmatprep.subr.bf16.mxu0 %v15914_v37  ;;  %10828 = vmatprep.subr.bf16.mxu1 %v15916_v38  ;;  %v10227_v56 = vld [vmem:[%s24606_s13 + $0x120] sm:$0xff]  ;;  %v10224_v37 = vld [vmem:[%s24606_s13 + $0x108] sm:$0xff] }
0x1dbc   : > { %v10228_v38 = vld [vmem:[%s24606_s13 + $0x128] sm:$0xff]  ;;  %v15974_v5 = vcombine.high %v10223_v45, %v10227_v56  ;;  %v15973_v32 = vcombine.low %v10223_v45, %v10227_v56 }
0x1dbd   : > { %v15976_v29 = vcombine.high %v10224_v37, %v10228_v38  ;;  %v15975_v43 = vcombine.low %v10224_v37, %v10228_v38 }
0x1dbe   : > { %10786 = vmatpush1.bf16.msra.mxu0 %v15913_v54  ;;  %10829 = vmatpush1.bf16.msra.mxu1 %v15915_v63  ;;  %v10231_v54 = vld [vmem:[%s24606_s13 + $0x140] sm:$0xff] }
0x1dbf   : > { %10787 = vmatprep.subr.bf16.mxu0 %v15922_v10  ;;  %10830 = vmatprep.subr.bf16.mxu1 %v15924_v21  ;;  %v10235_v63 = vld [vmem:[%s24606_s13 + $0x160] sm:$0xff]  ;;  %v10232_v10 = vld [vmem:[%s24606_s13 + $0x148] sm:$0xff] }
0x1dc0   : > { %v10236_v21 = vld [vmem:[%s24606_s13 + $0x168] sm:$0xff]  ;;  %v15982_v55 = vcombine.high %v10231_v54, %v10235_v63  ;;  %v15981_v1 = vcombine.low %v10231_v54, %v10235_v63 }
0x1dc1   : > { %v15984_v3 = vcombine.high %v10232_v10, %v10236_v21  ;;  %v15983_v14 = vcombine.low %v10232_v10, %v10236_v21 }
0x1dc2   : > { %10788 = vmatpush1.bf16.msra.mxu0 %v15921_v27  ;;  %10831 = vmatpush1.bf16.msra.mxu1 %v15923_v15  ;;  %v10239_v27 = vld [vmem:[%s24606_s13 + $0x180] sm:$0xff] }
0x1dc3   : > { %10789 = vmatprep.subr.bf16.mxu0 %v15930_v39  ;;  %10832 = vmatprep.subr.bf16.mxu1 %v15932_v52  ;;  %v10243_v15 = vld [vmem:[%s24606_s13 + $0x1a0] sm:$0xff]  ;;  %v10240_v39 = vld [vmem:[%s24606_s13 + $0x188] sm:$0xff] }
0x1dc4   : > { %v10244_v52 = vld [vmem:[%s24606_s13 + $0x1a8] sm:$0xff]  ;;  %v15990_v28 = vcombine.high %v10239_v27, %v10243_v15  ;;  %v15989_v12 = vcombine.low %v10239_v27, %v10243_v15 }
0x1dc5   : > { %v15992_v47 = vcombine.high %v10240_v39, %v10244_v52  ;;  %v15991_v13 = vcombine.low %v10240_v39, %v10244_v52 }
0x1dc6   : > { %10790 = vmatpush1.bf16.msra.mxu0 %v15929_v57  ;;  %10833 = vmatpush1.bf16.msra.mxu1 %v15931_v58  ;;  %v10247_v57 = vld [vmem:[%s24606_s13 + $0x1c0] sm:$0xff] }
0x1dc7   : > { %10791 = vmatprep.subr.bf16.mxu0 %v15938_v2  ;;  %10834 = vmatprep.subr.bf16.mxu1 %v15940_v6  ;;  %v10251_v58 = vld [vmem:[%s24606_s13 + $0x1e0] sm:$0xff]  ;;  %v10248_v2 = vld [vmem:[%s24606_s13 + $0x1c8] sm:$0xff] }
0x1dc8   : > { %v10252_v6 = vld [vmem:[%s24606_s13 + $0x1e8] sm:$0xff]  ;;  %v15998_v16 = vcombine.high %v10247_v57, %v10251_v58  ;;  %v15997_v23 = vcombine.low %v10247_v57, %v10251_v58 }
0x1dc9   : > { %v16000_v61 = vcombine.high %v10248_v2, %v10252_v6  ;;  %v15999_v42 = vcombine.low %v10248_v2, %v10252_v6 }
0x1dca   : > { %10792 = vmatpush1.bf16.msra.mxu0 %v15937_v17  ;;  %10835 = vmatpush1.bf16.msra.mxu1 %v15939_v40  ;;  %v10193_v17 = vld [vmem:[%s24606_s13 + $0x10] sm:$0xff] }
0x1dcb   : > { %11183 = vmatprep.subr.bf16.mxu0 %v15942_v18  ;;  %11226 = vmatprep.subr.bf16.mxu1 %v15944_v20  ;;  %v10197_v40 = vld [vmem:[%s24606_s13 + $0x30] sm:$0xff]  ;;  %v10194_v18 = vld [vmem:[%s24606_s13 + $0x18] sm:$0xff] }
0x1dcc   : > { %v10198_v20 = vld [vmem:[%s24606_s13 + $0x38] sm:$0xff]  ;;  %v15946_v24 = vcombine.high %v10193_v17, %v10197_v40  ;;  %v15945_v34 = vcombine.low %v10193_v17, %v10197_v40 }
0x1dcd   : > { %10810 = vmatmul.mubr.bf16.vlgmr.msra.gmra.mrb[108].mxu0 %v22798_v22  ;;  %10853 = vmatmul.mubr.bf16.vlgmr.msra.gmra.mrb[212].mxu1 %v22798_v22  ;;  %v10216_v22 = vld [vmem:[%s24606_s13 + $0xc8] sm:$0xff]  ;;  %v15948_v25 = vcombine.high %v10194_v18, %v10198_v20  ;;  %v15947_v35 = vcombine.low %v10194_v18, %v10198_v20 }
0x1dce   : > { %11184 = vmatpush1.bf16.msra.mxu0 %v15941_v26  ;;  %11227 = vmatpush1.bf16.msra.mxu1 %v15943_v30  ;;  %v15968_v9 = vcombine.high %v10216_v22, %v10220_v60  ;;  %v15967_v4 = vcombine.low %v10216_v22, %v10220_v60  ;;  %v10201_v26 = vld [vmem:[%s24606_s13 + $0x50] sm:$0xff] }
0x1dcf   : > { %11185 = vmatprep.subr.bf16.mxu0 %v15950_v31  ;;  %11228 = vmatprep.subr.bf16.mxu1 %v15952_v33  ;;  %v10205_v30 = vld [vmem:[%s24606_s13 + $0x70] sm:$0xff]  ;;  %v10202_v31 = vld [vmem:[%s24606_s13 + $0x58] sm:$0xff] }
0x1dd0   : > { %11215 = vmatprep.mubr.bf16.mxu0 %v20127_v53  ;;  %11258 = vmatprep.mubr.bf16.mxu1 %v20127_v53  ;;  %v10206_v33 = vld [vmem:[%s24606_s13 + $0x78] sm:$0xff]  ;;  %v15954_v41 = vcombine.high %v10201_v26, %v10205_v30  ;;  %v15953_v51 = vcombine.low %v10201_v26, %v10205_v30  ;;  %v11407_v30 = vld [vmem:[%s24606_s13 + $0x400] sm:$0xff] }
0x1dd1   : > { %v15956_v48 = vcombine.high %v10202_v31, %v10206_v33  ;;  %v15955_v59 = vcombine.low %v10202_v31, %v10206_v33  ;;  %v11411_v31 = vld [vmem:[%s24606_s13 + $0x420] sm:$0xff]  ;;  %v11416_v33 = vld [vmem:[%s24606_s13 + $0x448] sm:$0xff] }
0x1dd2   : > { %11186 = vmatpush1.bf16.msra.mxu0 %v15949_v44  ;;  %11229 = vmatpush1.bf16.msra.mxu1 %v15951_v46  ;;  %v10209_v44 = vld [vmem:[%s24606_s13 + $0x90] sm:$0xff] }
0x1dd3   : > { %11187 = vmatprep.subr.bf16.mxu0 %v15958_v49  ;;  %11230 = vmatprep.subr.bf16.mxu1 %v15960_v50  ;;  %v10213_v46 = vld [vmem:[%s24606_s13 + $0xb0] sm:$0xff]  ;;  %v10210_v49 = vld [vmem:[%s24606_s13 + $0x98] sm:$0xff] }
0x1dd4   : > { %v10214_v50 = vld [vmem:[%s24606_s13 + $0xb8] sm:$0xff]  ;;  %v15962_v22 = vcombine.high %v10209_v44, %v10213_v46  ;;  %v15961_v45 = vcombine.low %v10209_v44, %v10213_v46  ;;  %v11424_v44 = vld [vmem:[%s24606_s13 + $0x488] sm:$0xff] }
0x1dd5   : > { %v15964_v60 = vcombine.high %v10210_v49, %v10214_v50  ;;  %v15963_v56 = vcombine.low %v10210_v49, %v10214_v50  ;;  %v11428_v46 = vld [vmem:[%s24606_s13 + $0x4a8] sm:$0xff]  ;;  %v11419_v50 = vld [vmem:[%s24606_s13 + $0x460] sm:$0xff] }
0x1dd6   : > { %11188 = vmatpush1.bf16.msra.mxu0 %v15957_v62  ;;  %11231 = vmatpush1.bf16.msra.mxu1 %v15959_v7  ;;  %v10217_v62 = vld [vmem:[%s24606_s13 + $0xd0] sm:$0xff] }
0x1dd7   : > { %11189 = vmatprep.subr.bf16.mxu0 %v15966_v8  ;;  %11232 = vmatprep.subr.bf16.mxu1 %v15968_v9  ;;  %v10221_v7 = vld [vmem:[%s24606_s13 + $0xf0] sm:$0xff]  ;;  %v10218_v8 = vld [vmem:[%s24606_s13 + $0xd8] sm:$0xff] }
0x1dd8   : > { %v10222_v9 = vld [vmem:[%s24606_s13 + $0xf8] sm:$0xff]  ;;  %v15970_v37 = vcombine.high %v10217_v62, %v10221_v7  ;;  %v15969_v54 = vcombine.low %v10217_v62, %v10221_v7  ;;  %v16007_v62 = vcombine.low %v11407_v30, %v11411_v31 }
0x1dd9   : > { %v15972_v38 = vcombine.high %v10218_v8, %v10222_v9  ;;  %v15971_v63 = vcombine.low %v10218_v8, %v10222_v9  ;;  %v16025_v8 = vcombine.low %v11424_v44, %v11428_v46  ;;  %v11423_v9 = vld [vmem:[%s24606_s13 + $0x480] sm:$0xff] }
0x1dda   : > { %11190 = vmatpush1.bf16.msra.mxu0 %v15965_v0  ;;  %11233 = vmatpush1.bf16.msra.mxu1 %v15967_v4  ;;  %v10225_v0 = vld [vmem:[%s24606_s13 + $0x110] sm:$0xff] }
0x1ddb   : > { %11191 = vmatprep.subr.bf16.mxu0 %v15974_v5  ;;  %11234 = vmatprep.subr.bf16.mxu1 %v15976_v29  ;;  %v10229_v4 = vld [vmem:[%s24606_s13 + $0x130] sm:$0xff]  ;;  %v10226_v5 = vld [vmem:[%s24606_s13 + $0x118] sm:$0xff] }
0x1ddc   : > { %v10230_v29 = vld [vmem:[%s24606_s13 + $0x138] sm:$0xff]  ;;  %v15978_v10 = vcombine.high %v10225_v0, %v10229_v4  ;;  %v15977_v27 = vcombine.low %v10225_v0, %v10229_v4 }
0x1ddd   : > { %v15980_v21 = vcombine.high %v10226_v5, %v10230_v29  ;;  %v15979_v15 = vcombine.low %v10226_v5, %v10230_v29  ;;  %v11431_v29 = vld [vmem:[%s24606_s13 + $0x4c0] sm:$0xff] }
0x1dde   : > { %11192 = vmatpush1.bf16.msra.mxu0 %v15973_v32  ;;  %11235 = vmatpush1.bf16.msra.mxu1 %v15975_v43  ;;  %v10233_v32 = vld [vmem:[%s24606_s13 + $0x150] sm:$0xff] }
0x1ddf   : > { %11193 = vmatprep.subr.bf16.mxu0 %v15982_v55  ;;  %11236 = vmatprep.subr.bf16.mxu1 %v15984_v3  ;;  %v10237_v43 = vld [vmem:[%s24606_s13 + $0x170] sm:$0xff]  ;;  %v10234_v55 = vld [vmem:[%s24606_s13 + $0x158] sm:$0xff] }
0x1de0   : > { %v10238_v3 = vld [vmem:[%s24606_s13 + $0x178] sm:$0xff]  ;;  %v15986_v39 = vcombine.high %v10233_v32, %v10237_v43  ;;  %v15985_v57 = vcombine.low %v10233_v32, %v10237_v43 }
0x1de1   : > { %v15988_v52 = vcombine.high %v10234_v55, %v10238_v3  ;;  %v15987_v58 = vcombine.low %v10234_v55, %v10238_v3  ;;  %v11439_v3 = vld [vmem:[%s24606_s13 + $0x500] sm:$0xff] }
0x1de2   : > { %11194 = vmatpush1.bf16.msra.mxu0 %v15981_v1  ;;  %11237 = vmatpush1.bf16.msra.mxu1 %v15983_v14  ;;  %v10241_v1 = vld [vmem:[%s24606_s13 + $0x190] sm:$0xff] }
0x1de3   : > { %11195 = vmatprep.subr.bf16.mxu0 %v15990_v28  ;;  %11238 = vmatprep.subr.bf16.mxu1 %v15992_v47  ;;  %v10245_v14 = vld [vmem:[%s24606_s13 + $0x1b0] sm:$0xff]  ;;  %v10242_v28 = vld [vmem:[%s24606_s13 + $0x198] sm:$0xff] }
0x1de4   : > { %v10246_v47 = vld [vmem:[%s24606_s13 + $0x1b8] sm:$0xff]  ;;  %v15994_v2 = vcombine.high %v10241_v1, %v10245_v14  ;;  %v15993_v17 = vcombine.low %v10241_v1, %v10245_v14 }
0x1de5   : > { %v15996_v6 = vcombine.high %v10242_v28, %v10246_v47  ;;  %v15995_v40 = vcombine.low %v10242_v28, %v10246_v47  ;;  %v11447_v47 = vld [vmem:[%s24606_s13 + $0x540] sm:$0xff] }
0x1de6   : > { %11196 = vmatpush1.bf16.msra.mxu0 %v15989_v12  ;;  %11239 = vmatpush1.bf16.msra.mxu1 %v15991_v13  ;;  %v10249_v12 = vld [vmem:[%s24606_s13 + $0x1d0] sm:$0xff] }
0x1de7   : > { %11197 = vmatprep.subr.bf16.mxu0 %v15998_v16  ;;  %11240 = vmatprep.subr.bf16.mxu1 %v16000_v61  ;;  %v10253_v13 = vld [vmem:[%s24606_s13 + $0x1f0] sm:$0xff]  ;;  %v10250_v16 = vld [vmem:[%s24606_s13 + $0x1d8] sm:$0xff] }
0x1de8   : > { %v10254_v61 = vld [vmem:[%s24606_s13 + $0x1f8] sm:$0xff]  ;;  %v16002_v18 = vcombine.high %v10249_v12, %v10253_v13 }
0x1de9   : > { %v16004_v20 = vcombine.high %v10250_v16, %v10254_v61 }
0x1dea   : > { %11198 = vmatpush1.bf16.msra.mxu0 %v15997_v23  ;;  %11241 = vmatpush1.bf16.msra.mxu1 %v15999_v42  ;;  %v11408_v23 = vld [vmem:[%s24606_s13 + $0x408] sm:$0xff] }
0x1deb   : > { %11269 = vmatprep.subr.bf16.mxu0 %v15946_v24  ;;  %11312 = vmatprep.subr.bf16.mxu1 %v15948_v25  ;;  %v11412_v42 = vld [vmem:[%s24606_s13 + $0x428] sm:$0xff]  ;;  %v16001_v24 = vcombine.low %v10249_v12, %v10253_v13  ;;  %v16003_v25 = vcombine.low %v10250_v16, %v10254_v61  ;;  %v11455_v13 = vld [vmem:[%s24606_s13 + $0x580] sm:$0xff] }
0x1dec   : > { %v16010_v26 = vcombine.high %v11408_v23, %v11412_v42  ;;  %v11459_v16 = vld [vmem:[%s24606_s13 + $0x5a0] sm:$0xff] }
0x1ded   : > { %11216 = vmatmul.mubr.bf16.vlgmr.msra.gmra.mrb[104].mxu0 %v22784_v11  ;;  %11259 = vmatmul.mubr.bf16.vlgmr.msra.gmra.mrb[208].mxu1 %v22784_v11 }
0x1dee   : > { %11270 = vmatpush1.bf16.msra.mxu0 %v15945_v34  ;;  %11313 = vmatpush1.bf16.msra.mxu1 %v15947_v35  ;;  %v11420_v34 = vld [vmem:[%s24606_s13 + $0x468] sm:$0xff]  ;;  %v16008_v35 = vcombine.high %v11407_v30, %v11411_v31  ;;  %v11409_v31 = vld [vmem:[%s24606_s13 + $0x410] sm:$0xff] }
0x1def   : > { %11271 = vmatprep.subr.bf16.mxu0 %v15954_v41  ;;  %11314 = vmatprep.subr.bf16.mxu1 %v15956_v48  ;;  %v16009_v41 = vcombine.low %v11408_v23, %v11412_v42  ;;  %v16018_v48 = vcombine.high %v11416_v33, %v11420_v34  ;;  %v16017_v49 = vcombine.low %v11416_v33, %v11420_v34  ;;  %v11464_v23 = vld [vmem:[%s24606_s13 + $0x5c8] sm:$0xff]  ;;  %v11413_v33 = vld [vmem:[%s24606_s13 + $0x430] sm:$0xff]  ;;  %v11410_v34 = vld [vmem:[%s24606_s13 + $0x418] sm:$0xff] }
0x1df0   : > { %11301 = vmatprep.mubr.bf16.mxu0 %v20127_v53  ;;  %11344 = vmatprep.mubr.bf16.mxu1 %v20127_v53 }
0x1df2   : > { %11272 = vmatpush1.bf16.msra.mxu0 %v15953_v51  ;;  %11315 = vmatpush1.bf16.msra.mxu1 %v15955_v59  ;;  %v16026_v51 = vcombine.high %v11424_v44, %v11428_v46  ;;  %v19618_v59 = vld [vmem:[%s24605_s12 + $0x10] sm:$0xff]  }
0x1df3   : > { %11273 = vmatprep.subr.bf16.mxu0 %v15962_v22  ;;  %11316 = vmatprep.subr.bf16.mxu1 %v15964_v60  ;;  %v11432_v22 = vld [vmem:[%s24606_s13 + $0x4c8] sm:$0xff] }
0x1df4   : > { %v11436_v60 = vld [vmem:[%s24606_s13 + $0x4e8] sm:$0xff] }
0x1df5   : > { %v16033_v5 = vcombine.low %v11432_v22, %v11436_v60 }
0x1df6   : > { %11274 = vmatpush1.bf16.msra.mxu0 %v15961_v45  ;;  %11317 = vmatpush1.bf16.msra.mxu1 %v15963_v56  ;;  %v11427_v45 = vld [vmem:[%s24606_s13 + $0x4a0] sm:$0xff]  ;;  %v16034_v56 = vcombine.high %v11432_v22, %v11436_v60 }
0x1df7   : > { %11275 = vmatprep.subr.bf16.mxu0 %v15970_v37  ;;  %11318 = vmatprep.subr.bf16.mxu1 %v15972_v38  ;;  %v11440_v37 = vld [vmem:[%s24606_s13 + $0x508] sm:$0xff]  ;;  %v16024_v4 = vcombine.high %v11423_v9, %v11427_v45  ;;  %v16023_v32 = vcombine.low %v11423_v9, %v11427_v45  ;;  %v11425_v9 = vld [vmem:[%s24606_s13 + $0x490] sm:$0xff] }
0x1df8   : > { %v11444_v38 = vld [vmem:[%s24606_s13 + $0x528] sm:$0xff] }
0x1df9   : > { %v16041_v55 = vcombine.low %v11440_v37, %v11444_v38 }
0x1dfa   : > { %11276 = vmatpush1.bf16.msra.mxu0 %v15969_v54  ;;  %11319 = vmatpush1.bf16.msra.mxu1 %v15971_v63  ;;  %v11435_v54 = vld [vmem:[%s24606_s13 + $0x4e0] sm:$0xff]  ;;  %v16042_v63 = vcombine.high %v11440_v37, %v11444_v38  ;;  %v11426_v37 = vld [vmem:[%s24606_s13 + $0x498] sm:$0xff] }
0x1dfb   : > { %11277 = vmatprep.subr.bf16.mxu0 %v15978_v10  ;;  %11320 = vmatprep.subr.bf16.mxu1 %v15980_v21  ;;  %v11448_v10 = vld [vmem:[%s24606_s13 + $0x548] sm:$0xff]  ;;  %v16032_v43 = vcombine.high %v11431_v29, %v11435_v54  ;;  %v16031_v1 = vcombine.low %v11431_v29, %v11435_v54  ;;  %v11430_v38 = vld [vmem:[%s24606_s13 + $0x4b8] sm:$0xff]  ;;  %v11433_v54 = vld [vmem:[%s24606_s13 + $0x4d0] sm:$0xff] }
0x1dfc   : > { %v11452_v21 = vld [vmem:[%s24606_s13 + $0x568] sm:$0xff]  ;;  %v16030_v29 = vcombine.high %v11426_v37, %v11430_v38 }
0x1dfd   : > { %v16049_v28 = vcombine.low %v11448_v10, %v11452_v21 }
0x1dfe   : > { %11278 = vmatpush1.bf16.msra.mxu0 %v15977_v27  ;;  %11321 = vmatpush1.bf16.msra.mxu1 %v15979_v15  ;;  %v11443_v27 = vld [vmem:[%s24606_s13 + $0x520] sm:$0xff]  ;;  %v16050_v15 = vcombine.high %v11448_v10, %v11452_v21  ;;  %v11434_v10 = vld [vmem:[%s24606_s13 + $0x4d8] sm:$0xff] }
0x1dff   : > { %11279 = vmatprep.subr.bf16.mxu0 %v15986_v39  ;;  %11322 = vmatprep.subr.bf16.mxu1 %v15988_v52  ;;  %v11456_v39 = vld [vmem:[%s24606_s13 + $0x588] sm:$0xff]  ;;  %v16040_v14 = vcombine.high %v11439_v3, %v11443_v27  ;;  %v11438_v21 = vld [vmem:[%s24606_s13 + $0x4f8] sm:$0xff] }
0x1e00   : > { %v11460_v52 = vld [vmem:[%s24606_s13 + $0x5a8] sm:$0xff] }
0x1e01   : > { %v16057_v12 = vcombine.low %v11456_v39, %v11460_v52 }
0x1e02   : > { %11280 = vmatpush1.bf16.msra.mxu0 %v15985_v57  ;;  %11323 = vmatpush1.bf16.msra.mxu1 %v15987_v58  ;;  %v11451_v57 = vld [vmem:[%s24606_s13 + $0x560] sm:$0xff]  ;;  %v16058_v58 = vcombine.high %v11456_v39, %v11460_v52  ;;  %v11442_v39 = vld [vmem:[%s24606_s13 + $0x518] sm:$0xff] }
0x1e03   : > { %11281 = vmatprep.subr.bf16.mxu0 %v15994_v2  ;;  %11324 = vmatprep.subr.bf16.mxu1 %v15996_v6  ;;  %v16039_v2 = vcombine.low %v11439_v3, %v11443_v27  ;;  %v16048_v6 = vcombine.high %v11447_v47, %v11451_v57  ;;  %v16047_v61 = vcombine.low %v11447_v47, %v11451_v57  ;;  %v11441_v27 = vld [vmem:[%s24606_s13 + $0x510] sm:$0xff]  ;;  %v11446_v52 = vld [vmem:[%s24606_s13 + $0x538] sm:$0xff] }
0x1e04   : > { %v16038_v3 = vcombine.high %v11434_v10, %v11438_v21  ;;  %v16046_v47 = vcombine.high %v11442_v39, %v11446_v52  ;;  %v11449_v57 = vld [vmem:[%s24606_s13 + $0x550] sm:$0xff] }
0x1e06   : > { %11282 = vmatpush1.bf16.msra.mxu0 %v15993_v17  ;;  %11325 = vmatpush1.bf16.msra.mxu1 %v15995_v40  ;;  %v16056_v17 = vcombine.high %v11455_v13, %v11459_v16  ;;  %v16055_v40 = vcombine.low %v11455_v13, %v11459_v16  ;;  %v16045_v13 = vcombine.low %v11442_v39, %v11446_v52  ;;  %v12059_v39 = vld [vmem:[%s24606_s13 + $0x6e0] sm:$0xff] }
0x1e07   : > { %11283 = vmatprep.subr.bf16.mxu0 %v16002_v18  ;;  %11326 = vmatprep.subr.bf16.mxu1 %v16004_v20  ;;  %v11463_v18 = vld [vmem:[%s24606_s13 + $0x5c0] sm:$0xff] }
0x1e08   : > { %v11467_v20 = vld [vmem:[%s24606_s13 + $0x5e0] sm:$0xff] }
0x1e09   : > { %v16064_v42 = vcombine.high %v11463_v18, %v11467_v20 }
0x1e0a   : > { %11284 = vmatpush1.bf16.msra.mxu0 %v16001_v24  ;;  %11327 = vmatpush1.bf16.msra.mxu1 %v16003_v25  ;;  %v11468_v24 = vld [vmem:[%s24606_s13 + $0x5e8] sm:$0xff]  ;;  %v16063_v25 = vcombine.low %v11463_v18, %v11467_v20  ;;  %v11458_v18 = vld [vmem:[%s24606_s13 + $0x598] sm:$0xff] }
0x1e0b   : > { %18852 = vmatprep.subr.bf16.mxu0 %v20125_v36  ;;  %11834 = vmatprep.subr.bf16.mxu1 %v16010_v26  ;;  %v16065_v26 = vcombine.low %v11464_v23, %v11468_v24  ;;  %v16066_v30 = vcombine.high %v11464_v23, %v11468_v24  ;;  %v11462_v20 = vld [vmem:[%s24606_s13 + $0x5b8] sm:$0xff] }
0x1e0d   : > { %11302 = vmatmul.mubr.bf16.vlgmr.msra.gmra.mrb[108].mxu0 %v22784_v11  ;;  %11345 = vmatmul.mubr.bf16.vlgmr.msra.gmra.mrb[212].mxu1 %v22784_v11  ;;  %v11415_v11 = vld [vmem:[%s24606_s13 + $0x440] sm:$0xff] }
0x1e0e   : > { %18853 = vmatpush3.bf16.msra.mxu0 %v22695_v19  ;;  %18854 = vmatprep.mubr.msk.bf16.mxu0 %vm20126_vm1, %v20125_v36  ;;  %v16016_v7 = vcombine.high %v11415_v11, %v11419_v50  ;;  %v16015_v0 = vcombine.low %v11415_v11, %v11419_v50  ;;  %v11421_v50 = vld [vmem:[%s24606_s13 + $0x470] sm:$0xff] }
0x1e0f   : > { %11791 = vmatprep.subr.bf16.mxu0 %v16008_v35  ;;  %11835 = vmatpush1.bf16.msra.mxu1 %v16009_v41  ;;  %v16012_v35 = vcombine.high %v11409_v31, %v11413_v33  ;;  %v11414_v41 = vld [vmem:[%s24606_s13 + $0x438] sm:$0xff] }
0x1e10   : > { %11836 = vmatprep.subr.bf16.mxu1 %v16018_v48  ;;  %11866 = vmatprep.mubr.bf16.mxu1 %v20127_v53  ;;  %v16011_v48 = vcombine.low %v11409_v31, %v11413_v33  ;;  %v16013_v44 = vcombine.low %v11410_v34, %v11414_v41  ;;  %v16014_v46 = vcombine.high %v11410_v34, %v11414_v41  ;;  %v11466_v31 = vld [vmem:[%s24606_s13 + $0x5d8] sm:$0xff] }
0x1e11   : > { %v11470_v33 = vld [vmem:[%s24606_s13 + $0x5f8] sm:$0xff] }
0x1e13   : > { %11837 = vmatpush1.bf16.msra.mxu1 %v16017_v49  ;;  %v11417_v49 = vld [vmem:[%s24606_s13 + $0x450] sm:$0xff] }
0x1e14   : > { %11838 = vmatprep.subr.bf16.mxu1 %v16026_v51  ;;  %v11418_v51 = vld [vmem:[%s24606_s13 + $0x458] sm:$0xff] }
0x1e15   : > { %18855 = vmatmul.mubr.msk.bf16.vlgmr.msra.gmra.mrb[112].mxu0 %vm8706_vm3, %v19618_v59  ;;  %v11422_v59 = vld [vmem:[%s24606_s13 + $0x478] sm:$0xff] }
0x1e16   : > { %11792 = vmatpush1.bf16.msra.mxu0 %v16007_v62  ;;  %11823 = vmatprep.mubr.bf16.mxu0 %v20127_v53 }
0x1e17   : > { %11793 = vmatprep.subr.bf16.mxu0 %v16016_v7  ;;  %11839 = vmatpush1.bf16.msra.mxu1 %v16025_v8  ;;  %v16020_v7 = vcombine.high %v11417_v49, %v11421_v50  ;;  %v16022_v8 = vcombine.high %v11418_v51, %v11422_v59 }
0x1e18   : > { %11840 = vmatprep.subr.bf16.mxu1 %v16034_v56  ;;  %v11429_v56 = vld [vmem:[%s24606_s13 + $0x4b0] sm:$0xff] }
0x1e1a   : > { %11794 = vmatpush1.bf16.msra.mxu0 %v16015_v0  ;;  %v16019_v0 = vcombine.low %v11417_v49, %v11421_v50 }
0x1e1b   : > { %11795 = vmatprep.subr.bf16.mxu0 %v16024_v4  ;;  %11841 = vmatpush1.bf16.msra.mxu1 %v16033_v5  ;;  %v16021_v4 = vcombine.low %v11418_v51, %v11422_v59  ;;  %v16028_v5 = vcombine.high %v11425_v9, %v11429_v56  ;;  %v12031_v51 = vld [vmem:[%s24606_s13 + $0x600] sm:$0xff] }
0x1e1c   : > { %11842 = vmatprep.subr.bf16.mxu1 %v16042_v63  ;;  %v11437_v63 = vld [vmem:[%s24606_s13 + $0x4f0] sm:$0xff]  ;;  %v12035_v59 = vld [vmem:[%s24606_s13 + $0x620] sm:$0xff] }
0x1e1e   : > { %11796 = vmatpush1.bf16.msra.mxu0 %v16023_v32  ;;  %v16027_v32 = vcombine.low %v11425_v9, %v11429_v56  ;;  %v12052_v56 = vld [vmem:[%s24606_s13 + $0x6a8] sm:$0xff] }
0x1e1f   : > { %11797 = vmatprep.subr.bf16.mxu0 %v16032_v43  ;;  %11843 = vmatpush1.bf16.msra.mxu1 %v16041_v55  ;;  %v16029_v43 = vcombine.low %v11426_v37, %v11430_v38  ;;  %v16036_v55 = vcombine.high %v11433_v54, %v11437_v63  ;;  %v12043_v38 = vld [vmem:[%s24606_s13 + $0x660] sm:$0xff] }
0x1e20   : > { %11844 = vmatprep.subr.bf16.mxu1 %v16050_v15  ;;  %v11445_v15 = vld [vmem:[%s24606_s13 + $0x530] sm:$0xff] }
0x1e22   : > { %11798 = vmatpush1.bf16.msra.mxu0 %v16031_v1  ;;  %v16035_v1 = vcombine.low %v11433_v54, %v11437_v63  ;;  %v12047_v63 = vld [vmem:[%s24606_s13 + $0x680] sm:$0xff] }
0x1e23   : > { %11799 = vmatprep.subr.bf16.mxu0 %v16040_v14  ;;  %11845 = vmatpush1.bf16.msra.mxu1 %v16049_v28  ;;  %v16037_v14 = vcombine.low %v11434_v10, %v11438_v21  ;;  %v16044_v28 = vcombine.high %v11441_v27, %v11445_v15  ;;  %v12051_v10 = vld [vmem:[%s24606_s13 + $0x6a0] sm:$0xff] }
0x1e24   : > { %11846 = vmatprep.subr.bf16.mxu1 %v16058_v58  ;;  %v11453_v58 = vld [vmem:[%s24606_s13 + $0x570] sm:$0xff] }
0x1e25   : > { %v16052_v16 = vcombine.high %v11449_v57, %v11453_v58  ;;  %v16051_v23 = vcombine.low %v11449_v57, %v11453_v58  ;;  %v12063_v58 = vld [vmem:[%s24606_s13 + $0x700] sm:$0xff] }
0x1e26   : > { %11800 = vmatpush1.bf16.msra.mxu0 %v16039_v2  ;;  %v11450_v2 = vld [vmem:[%s24606_s13 + $0x558] sm:$0xff] }
0x1e27   : > { %11801 = vmatprep.subr.bf16.mxu0 %v16048_v6  ;;  %11847 = vmatpush1.bf16.msra.mxu1 %v16057_v12  ;;  %v11454_v6 = vld [vmem:[%s24606_s13 + $0x578] sm:$0xff]  ;;  %v16043_v12 = vcombine.low %v11441_v27, %v11445_v15  ;;  %v12055_v15 = vld [vmem:[%s24606_s13 + $0x6c0] sm:$0xff] }
0x1e28   : > { %11848 = vmatprep.subr.bf16.mxu1 %v16066_v30  ;;  %v11469_v30 = vld [vmem:[%s24606_s13 + $0x5f0] sm:$0xff] }
0x1e2a   : > { %11802 = vmatpush1.bf16.msra.mxu0 %v16047_v61  ;;  %v16054_v61 = vcombine.high %v11450_v2, %v11454_v6 }
0x1e2b   : > { %11803 = vmatprep.subr.bf16.mxu0 %v16056_v17  ;;  %11849 = vmatpush1.bf16.msra.mxu1 %v16065_v26  ;;  %v11457_v17 = vld [vmem:[%s24606_s13 + $0x590] sm:$0xff] }
0x1e2c   : > { %11920 = vmatprep.subr.bf16.mxu1 %v16014_v46  ;;  %v11465_v26 = vld [vmem:[%s24606_s13 + $0x5d0] sm:$0xff]  ;;  %v12036_v46 = vld [vmem:[%s24606_s13 + $0x628] sm:$0xff] }
0x1e2d   : > { %v16068_v41 = vcombine.high %v11465_v26, %v11469_v30  ;;  %v16067_v49 = vcombine.low %v11465_v26, %v11469_v30  ;;  %v12083_v26 = vld [vmem:[%s24606_s13 + $0x7a0] sm:$0xff] }
0x1e2e   : > { %11804 = vmatpush1.bf16.msra.mxu0 %v16055_v40  ;;  %v11461_v40 = vld [vmem:[%s24606_s13 + $0x5b0] sm:$0xff] }
0x1e2f   : > { %11805 = vmatprep.subr.bf16.mxu0 %v16064_v42  ;;  %v16053_v42 = vcombine.low %v11450_v2, %v11454_v6  ;;  %v16060_v24 = vcombine.high %v11457_v17, %v11461_v40  ;;  %v16059_v34 = vcombine.low %v11457_v17, %v11461_v40  ;;  %v12067_v2 = vld [vmem:[%s24606_s13 + $0x720] sm:$0xff] }
0x1e30   : > { %v12071_v40 = vld [vmem:[%s24606_s13 + $0x740] sm:$0xff] }
0x1e32   : > { %11806 = vmatpush1.bf16.msra.mxu0 %v16063_v25  ;;  %v16062_v25 = vcombine.high %v11458_v18, %v11462_v20 }
0x1e33   : > { %11877 = vmatprep.subr.bf16.mxu0 %v16012_v35  ;;  %v16061_v35 = vcombine.low %v11458_v18, %v11462_v20  ;;  %v12075_v18 = vld [vmem:[%s24606_s13 + $0x760] sm:$0xff] }
0x1e34   : > { %v16113_v30 = vcombine.low %v12071_v40, %v12075_v18 }
0x1ee8   : > { %v11399_v11 = vpop.f32.mrb[112].mxu0 }
0x1ee9   : > { %v18856_v22 = vpop.f32.mrb[113].mxu0 }
0x1eea   : > { %v11402_v60 = vpop.f32.mrb[114].mxu0  ;;  %v12040_v22 = vld [vmem:[%s24606_s13 + $0x648] sm:$0xff] }
0x1eeb   : > { %v23208_v62 = vpack.c.bf16 %v11402_v60, %v11399_v11  ;;  %v18857_v45 = vpop.f32.mrb[115].mxu0  ;;  %v16069_v11 = vcombine.low %v11466_v31, %v11470_v33  ;;  %v12044_v60 = vld [vmem:[%s24606_s13 + $0x668] sm:$0xff] }
0x1eec   : > { %v16084_v9 = vcombine.high %v12040_v22, %v12044_v60  ;;  %v12048_v45 = vld [vmem:[%s24606_s13 + $0x688] sm:$0xff]  ;;  %v16083_v37 = vcombine.low %v12040_v22, %v12044_v60  ;;  %v12038_v60 = vld [vmem:[%s24606_s13 + $0x638] sm:$0xff] }
0x1eed   : > { %11824 = vmatmul.mubr.bf16.vlgmr.msra.gmra.mrb[104].mxu0 %v23208_v62  ;;  %11867 = vmatmul.mubr.bf16.vlgmr.msra.gmra.mrb[208].mxu1 %v23208_v62  ;;  %v16091_v54 = vcombine.low %v12048_v45, %v12052_v56 }
0x1eee   : > { %11878 = vmatpush1.bf16.msra.mxu0 %v16011_v48  ;;  %11921 = vmatpush1.bf16.msra.mxu1 %v16013_v44  ;;  %v16070_v48 = vcombine.high %v11466_v31, %v11470_v33  ;;  %v12032_v44 = vld [vmem:[%s24606_s13 + $0x608] sm:$0xff] }
0x1eef   : > { %11879 = vmatprep.subr.bf16.mxu0 %v16020_v7  ;;  %11922 = vmatprep.subr.bf16.mxu1 %v16022_v8  ;;  %v16076_v50 = vcombine.high %v12032_v44, %v12036_v46  ;;  %v16074_v7 = vcombine.high %v12031_v51, %v12035_v59  ;;  %v16075_v8 = vcombine.low %v12032_v44, %v12036_v46  ;;  %v12092_v44 = vld [vmem:[%s24606_s13 + $0x7e8] sm:$0xff] }
0x1ef0   : > { %11909 = vmatprep.mubr.bf16.mxu0 %v20127_v53  ;;  %11952 = vmatprep.mubr.bf16.mxu1 %v20127_v53 }
0x1ef2   : > { %11880 = vmatpush1.bf16.msra.mxu0 %v16019_v0  ;;  %11923 = vmatpush1.bf16.msra.mxu1 %v16021_v4  ;;  %v16092_v0 = vcombine.high %v12048_v45, %v12052_v56  ;;  %v12060_v4 = vld [vmem:[%s24606_s13 + $0x6e8] sm:$0xff]  ;;  %v12041_v45 = vld [vmem:[%s24606_s13 + $0x650] sm:$0xff] }
0x1ef3   : > { %11881 = vmatprep.subr.bf16.mxu0 %v16028_v5  ;;  %11924 = vmatprep.subr.bf16.mxu1 %v16030_v29  ;;  %v16073_v5 = vcombine.low %v12031_v51, %v12035_v59  ;;  %v12037_v51 = vld [vmem:[%s24606_s13 + $0x630] sm:$0xff]  ;;  %v12034_v59 = vld [vmem:[%s24606_s13 + $0x618] sm:$0xff] }
0x1ef6   : > { %11882 = vmatpush1.bf16.msra.mxu0 %v16027_v32  ;;  %11925 = vmatpush1.bf16.msra.mxu1 %v16029_v43  ;;  %v12064_v32 = vld [vmem:[%s24606_s13 + $0x708] sm:$0xff] }
0x1ef7   : > { %11883 = vmatprep.subr.bf16.mxu0 %v16036_v55  ;;  %11926 = vmatprep.subr.bf16.mxu1 %v16038_v3  ;;  %v12068_v43 = vld [vmem:[%s24606_s13 + $0x728] sm:$0xff]  ;;  %v16090_v3 = vcombine.high %v12047_v63, %v12051_v10 }
0x1ef8   : > { %v16108_v52 = vcombine.high %v12064_v32, %v12068_v43  ;;  %v16107_v57 = vcombine.low %v12064_v32, %v12068_v43 }
0x1efa   : > { %11884 = vmatpush1.bf16.msra.mxu0 %v16035_v1  ;;  %11927 = vmatpush1.bf16.msra.mxu1 %v16037_v14  ;;  %v12072_v1 = vld [vmem:[%s24606_s13 + $0x748] sm:$0xff] }
0x1efb   : > { %11885 = vmatprep.subr.bf16.mxu0 %v16044_v28  ;;  %11928 = vmatprep.subr.bf16.mxu1 %v16046_v47  ;;  %v12076_v14 = vld [vmem:[%s24606_s13 + $0x768] sm:$0xff]  ;;  %v16089_v28 = vcombine.low %v12047_v63, %v12051_v10  ;;  %v16098_v47 = vcombine.high %v12055_v15, %v12059_v39  ;;  %v12053_v63 = vld [vmem:[%s24606_s13 + $0x6b0] sm:$0xff]  ;;  %v12050_v10 = vld [vmem:[%s24606_s13 + $0x698] sm:$0xff] }
0x1efc   : > { %v16116_v6 = vcombine.high %v12072_v1, %v12076_v14  ;;  %v16115_v17 = vcombine.low %v12072_v1, %v12076_v14 }
0x1efe   : > { %11886 = vmatpush1.bf16.msra.mxu0 %v16043_v12  ;;  %11929 = vmatpush1.bf16.msra.mxu1 %v16045_v13  ;;  %v12080_v12 = vld [vmem:[%s24606_s13 + $0x788] sm:$0xff] }
0x1eff   : > { %11887 = vmatprep.subr.bf16.mxu0 %v16052_v16  ;;  %11930 = vmatprep.subr.bf16.mxu1 %v16054_v61  ;;  %v12084_v13 = vld [vmem:[%s24606_s13 + $0x7a8] sm:$0xff]  ;;  %v16097_v16 = vcombine.low %v12055_v15, %v12059_v39  ;;  %v16106_v61 = vcombine.high %v12063_v58, %v12067_v2  ;;  %v12061_v15 = vld [vmem:[%s24606_s13 + $0x6f0] sm:$0xff]  ;;  %v12058_v39 = vld [vmem:[%s24606_s13 + $0x6d8] sm:$0xff] }
0x1f00   : > { %v16124_v20 = vcombine.high %v12080_v12, %v12084_v13 }
0x1f02   : > { %11888 = vmatpush1.bf16.msra.mxu0 %v16051_v23  ;;  %11931 = vmatpush1.bf16.msra.mxu1 %v16053_v42  ;;  %v16105_v23 = vcombine.low %v12063_v58, %v12067_v2  ;;  %v16114_v42 = vcombine.high %v12071_v40, %v12075_v18  ;;  %v12069_v58 = vld [vmem:[%s24606_s13 + $0x730] sm:$0xff]  ;;  %v12070_v2 = vld [vmem:[%s24606_s13 + $0x738] sm:$0xff] }
0x1f03   : > { %11889 = vmatprep.subr.bf16.mxu0 %v16060_v24  ;;  %11932 = vmatprep.subr.bf16.mxu1 %v16062_v25  ;;  %v16123_v24 = vcombine.low %v12080_v12, %v12084_v13  ;;  %v12079_v25 = vld [vmem:[%s24606_s13 + $0x780] sm:$0xff]  ;;  %v12074_v40 = vld [vmem:[%s24606_s13 + $0x758] sm:$0xff] }
0x1f04   : > { %v16122_v31 = vcombine.high %v12079_v25, %v12083_v26  ;;  %v16121_v33 = vcombine.low %v12079_v25, %v12083_v26  ;;  %v12078_v18 = vld [vmem:[%s24606_s13 + $0x778] sm:$0xff]  ;;  %v12081_v25 = vld [vmem:[%s24606_s13 + $0x790] sm:$0xff] }
0x1f05   : > { %v12085_v26 = vld [vmem:[%s24606_s13 + $0x7b0] sm:$0xff] }
0x1f06   : > { %11890 = vmatpush1.bf16.msra.mxu0 %v16059_v34  ;;  %11933 = vmatpush1.bf16.msra.mxu1 %v16061_v35  ;;  %v12087_v34 = vld [vmem:[%s24606_s13 + $0x7c0] sm:$0xff] }
0x1f07   : > { %11891 = vmatprep.subr.bf16.mxu0 %v16068_v41  ;;  %11934 = vmatprep.subr.bf16.mxu1 %v16070_v48  ;;  %v12091_v35 = vld [vmem:[%s24606_s13 + $0x7e0] sm:$0xff]  ;;  %v12088_v41 = vld [vmem:[%s24606_s13 + $0x7c8] sm:$0xff] }
0x1f08   : > { %v16130_v48 = vcombine.high %v12087_v34, %v12091_v35  ;;  %v16129_v46 = vcombine.low %v12087_v34, %v12091_v35  ;;  %v16119_v34 = vcombine.low %v12074_v40, %v12078_v18  ;;  %v16126_v35 = vcombine.high %v12081_v25, %v12085_v26 }
0x1f0a   : > { %11892 = vmatpush1.bf16.msra.mxu0 %v16067_v49  ;;  %11935 = vmatpush1.bf16.msra.mxu1 %v16069_v11  ;;  %v16131_v49 = vcombine.low %v12088_v41, %v12092_v44  ;;  %v16132_v11 = vcombine.high %v12088_v41, %v12092_v44  ;;  %v12093_v44 = vld [vmem:[%s24606_s13 + $0x7f0] sm:$0xff] }
0x1f0b   : > { %18858 = vmatprep.subr.bf16.mxu0 %v20125_v36  ;;  %12458 = vmatprep.subr.bf16.mxu1 %v16076_v50  ;;  %v12033_v50 = vld [vmem:[%s24606_s13 + $0x610] sm:$0xff] }
0x1f0c   : > { %v16078_v22 = vcombine.high %v12033_v50, %v12037_v51 }
0x1f0d   : > { %11910 = vmatmul.mubr.bf16.vlgmr.msra.gmra.mrb[108].mxu0 %v23208_v62  ;;  %11953 = vmatmul.mubr.bf16.vlgmr.msra.gmra.mrb[212].mxu1 %v23208_v62  ;;  %v12039_v62 = vld [vmem:[%s24606_s13 + $0x640] sm:$0xff] }
0x1f0e   : > { %18859 = vmatpush3.bf16.msra.mxu0 %v22695_v19  ;;  %18860 = vmatprep.mubr.msk.bf16.mxu0 %vm20126_vm1, %v20125_v36  ;;  %v19619_v19 = vld [vmem:[%s24605_s12 + $0x18] sm:$0xff]   ;;  %v12056_v36 = vld [vmem:[%s24606_s13 + $0x6c8] sm:$0xff]  ;;  %v16082_v29 = vcombine.high %v12039_v62, %v12043_v38  ;;  %v16081_v55 = vcombine.low %v12039_v62, %v12043_v38 }
0x1f0f   : > { %12415 = vmatprep.subr.bf16.mxu0 %v16074_v7  ;;  %12459 = vmatpush1.bf16.msra.mxu1 %v16075_v8  ;;  %v16100_v21 = vcombine.high %v12056_v36, %v12060_v4  ;;  %v16099_v27 = vcombine.low %v12056_v36, %v12060_v4  ;;  %v16077_v7 = vcombine.low %v12033_v50, %v12037_v51  ;;  %v12042_v62 = vld [vmem:[%s24606_s13 + $0x658] sm:$0xff] }
0x1f10   : > { %12460 = vmatprep.subr.bf16.mxu1 %v16084_v9  ;;  %12490 = vmatprep.mubr.bf16.mxu1 %v20127_v53  ;;  %v16079_v8 = vcombine.low %v12034_v59, %v12038_v60  ;;  %v16080_v9 = vcombine.high %v12034_v59, %v12038_v60  ;;  %v12046_v38 = vld [vmem:[%s24606_s13 + $0x678] sm:$0xff] }
0x1f11   : > { %v16087_v43 = vcombine.low %v12042_v62, %v12046_v38 }
0x1f13   : > { %12461 = vmatpush1.bf16.msra.mxu1 %v16083_v37  ;;  %v12045_v37 = vld [vmem:[%s24606_s13 + $0x670] sm:$0xff] }
0x1f14   : > { %12462 = vmatprep.subr.bf16.mxu1 %v16092_v0  ;;  %v16086_v4 = vcombine.high %v12041_v45, %v12045_v37  ;;  %v16085_v32 = vcombine.low %v12041_v45, %v12045_v37  ;;  %v19623_v45 = vld [vmem:[%s24608_s15 + $0x8] ss:$16 sps:$4 sm:$0xff]   ;;  %v19631_v37 = vld [vmem:[%s24608_s15 + $0x2c] ss:$16 sps:$4 sm:$0xff]  }
0x1f15   : > { %18861 = vmatmul.mubr.msk.bf16.vlgmr.msra.gmra.mrb[116].mxu0 %vm8706_vm3, %v19619_v19 }
0x1f16   : > { %12416 = vmatpush1.bf16.msra.mxu0 %v16073_v5  ;;  %12447 = vmatprep.mubr.bf16.mxu0 %v20127_v53  ;;  %v16088_v5 = vcombine.high %v12042_v62, %v12046_v38  ;;  %v19626_v62 = vld [vmem:[%s24608_s15 + $0x20] ss:$16 sps:$4 sm:$0xff]   ;;  %v19629_v38 = vld [vmem:[%s24608_s15 + $0x28] ss:$16 sps:$4 sm:$0xff]  }
0x1f17   : > { %12417 = vmatprep.subr.bf16.mxu0 %v16082_v29  ;;  %12463 = vmatpush1.bf16.msra.mxu1 %v16091_v54  ;;  %v12049_v29 = vld [vmem:[%s24606_s13 + $0x690] sm:$0xff] }
0x1f18   : > { %12464 = vmatprep.subr.bf16.mxu1 %v16100_v21  ;;  %v12054_v21 = vld [vmem:[%s24606_s13 + $0x6b8] sm:$0xff]  ;;  %v16093_v1 = vcombine.low %v12049_v29, %v12053_v63 }
0x1f19   : > { %v16095_v14 = vcombine.low %v12050_v10, %v12054_v21 }
0x1f1a   : > { %12418 = vmatpush1.bf16.msra.mxu0 %v16081_v55  ;;  %v16094_v55 = vcombine.high %v12049_v29, %v12053_v63  ;;  %v19643_v29 = vld [vmem:[%s24608_s15 + $0x6c] ss:$16 sps:$4 sm:$0xff]   ;;  %v19641_v63 = vld [vmem:[%s24608_s15 + $0x68] ss:$16 sps:$4 sm:$0xff]  }
0x1f1b   : > { %12419 = vmatprep.subr.bf16.mxu0 %v16090_v3  ;;  %12465 = vmatpush1.bf16.msra.mxu1 %v16099_v27  ;;  %v16096_v3 = vcombine.high %v12050_v10, %v12054_v21  ;;  %v12057_v27 = vld [vmem:[%s24606_s13 + $0x6d0] sm:$0xff]  ;;  %v19649_v21 = vld [vmem:[%s24608_s15 + $0x8c] ss:$16 sps:$4 sm:$0xff]  }
0x1f1c   : > { %12466 = vmatprep.subr.bf16.mxu1 %v16108_v52  ;;  %v12062_v52 = vld [vmem:[%s24606_s13 + $0x6f8] sm:$0xff]  ;;  %v19646_v10 = vld [vmem:[%s24608_s15 + $0x84] ss:$16 sps:$4 sm:$0xff]  }
0x1f1d   : > { %v16103_v12 = vcombine.low %v12058_v39, %v12062_v52 }
0x1f1e   : > { %12420 = vmatpush1.bf16.msra.mxu0 %v16089_v28  ;;  %v16102_v28 = vcombine.high %v12057_v27, %v12061_v15 }
0x1f1f   : > { %12421 = vmatprep.subr.bf16.mxu0 %v16098_v47  ;;  %12467 = vmatpush1.bf16.msra.mxu1 %v16107_v57  ;;  %v16104_v47 = vcombine.high %v12058_v39, %v12062_v52  ;;  %v12065_v57 = vld [vmem:[%s24606_s13 + $0x710] sm:$0xff]  ;;  %v19661_v52 = vld [vmem:[%s24608_s15 + $0xcc] ss:$16 sps:$4 sm:$0xff]  }
0x1f20   : > { %12468 = vmatprep.subr.bf16.mxu1 %v16116_v6  ;;  %v16101_v6 = vcombine.low %v12057_v27, %v12061_v15  ;;  %v16110_v13 = vcombine.high %v12065_v57, %v12069_v58  ;;  %v19650_v27 = vld [vmem:[%s24608_s15 + $0xa0] ss:$16 sps:$4 sm:$0xff]   ;;  %v19653_v15 = vld [vmem:[%s24608_s15 + $0xa8] ss:$16 sps:$4 sm:$0xff]   ;;  %v19658_v39 = vld [vmem:[%s24608_s15 + $0xc4] ss:$16 sps:$4 sm:$0xff]  }
0x1f22   : > { %12422 = vmatpush1.bf16.msra.mxu0 %v16097_v16 }
0x1f23   : > { %12423 = vmatprep.subr.bf16.mxu0 %v16106_v61  ;;  %12469 = vmatpush1.bf16.msra.mxu1 %v16115_v17  ;;  %v12073_v61 = vld [vmem:[%s24606_s13 + $0x750] sm:$0xff] }
0x1f24   : > { %12470 = vmatprep.subr.bf16.mxu1 %v16124_v20  ;;  %v12077_v17 = vld [vmem:[%s24606_s13 + $0x770] sm:$0xff]  ;;  %v16109_v20 = vcombine.low %v12065_v57, %v12069_v58  ;;  %v19665_v58 = vld [vmem:[%s24608_s15 + $0xe8] ss:$16 sps:$4 sm:$0xff]  }
0x1f25   : > { %v19662_v57 = vld [vmem:[%s24608_s15 + $0xe0] ss:$16 sps:$4 sm:$0xff]  }
0x1f26   : > { %12424 = vmatpush1.bf16.msra.mxu0 %v16105_v23 }
0x1f27   : > { %12425 = vmatprep.subr.bf16.mxu0 %v16114_v42  ;;  %12471 = vmatpush1.bf16.msra.mxu1 %v16123_v24  ;;  %v16118_v42 = vcombine.high %v12073_v61, %v12077_v17  ;;  %v16120_v24 = vcombine.high %v12074_v40, %v12078_v18  ;;  %v19682_v40 = vld [vmem:[%s24608_s15 + $0x144] ss:$16 sps:$4 sm:$0xff]   ;;  %v19685_v18 = vld [vmem:[%s24608_s15 + $0x14c] ss:$16 sps:$4 sm:$0xff]  }
0x1f28   : > { %12472 = vmatprep.subr.bf16.mxu1 %v16132_v11  ;;  %v16125_v11 = vcombine.low %v12081_v25, %v12085_v26  ;;  %v19686_v25 = vld [vmem:[%s24608_s15 + $0x160] ss:$16 sps:$4 sm:$0xff]   ;;  %v19689_v26 = vld [vmem:[%s24608_s15 + $0x168] ss:$16 sps:$4 sm:$0xff]  }
0x1f2a   : > { %12426 = vmatpush1.bf16.msra.mxu0 %v16113_v30  ;;  %v12082_v30 = vld [vmem:[%s24606_s13 + $0x798] sm:$0xff] }
0x1f2b   : > { %12427 = vmatprep.subr.bf16.mxu0 %v16122_v31  ;;  %12473 = vmatpush1.bf16.msra.mxu1 %v16131_v49  ;;  %v12086_v31 = vld [vmem:[%s24606_s13 + $0x7b8] sm:$0xff] }
0x1f2c   : > { %12544 = vmatprep.subr.bf16.mxu1 %v16080_v9  ;;  %v16128_v41 = vcombine.high %v12082_v30, %v12086_v31  ;;  %v12094_v49 = vld [vmem:[%s24606_s13 + $0x7f8] sm:$0xff]  ;;  %v16127_v50 = vcombine.low %v12082_v30, %v12086_v31  ;;  %v19620_v9 = vld [vmem:[%s24608_s15] ss:$16 sps:$4 sm:$0xff]   ;;  %v19694_v30 = vld [vmem:[%s24608_s15 + $0x184] ss:$16 sps:$4 sm:$0xff]  }
0x1f2d   : > { %v19697_v31 = vld [vmem:[%s24608_s15 + $0x18c] ss:$16 sps:$4 sm:$0xff]  }
0x1f2e   : > { %12428 = vmatpush1.bf16.msra.mxu0 %v16121_v33  ;;  %v16117_v33 = vcombine.low %v12073_v61, %v12077_v17  ;;  %v19674_v61 = vld [vmem:[%s24608_s15 + $0x120] ss:$16 sps:$4 sm:$0xff]   ;;  %v19677_v17 = vld [vmem:[%s24608_s15 + $0x128] ss:$16 sps:$4 sm:$0xff]  }
0x1f2f   : > { %12429 = vmatprep.subr.bf16.mxu0 %v16130_v48  ;;  %v12089_v48 = vld [vmem:[%s24606_s13 + $0x7d0] sm:$0xff] }
0x1f30   : > { %v16134_v51 = vcombine.high %v12089_v48, %v12093_v44 }
0x1f32   : > { %12430 = vmatpush1.bf16.msra.mxu0 %v16129_v46  ;;  %v12090_v46 = vld [vmem:[%s24606_s13 + $0x7d8] sm:$0xff] }
0x1f33   : > { %12501 = vmatprep.subr.bf16.mxu0 %v16078_v22  ;;  %v16136_v59 = vcombine.high %v12090_v46, %v12094_v49  ;;  %v16133_v22 = vcombine.low %v12089_v48, %v12093_v44  ;;  %v16135_v60 = vcombine.low %v12090_v46, %v12094_v49  ;;  %v19698_v48 = vld [vmem:[%s24608_s15 + $0x1a0] ss:$16 sps:$4 sm:$0xff]   ;;  %v19701_v44 = vld [vmem:[%s24608_s15 + $0x1a8] ss:$16 sps:$4 sm:$0xff]   ;;  %v19706_v46 = vld [vmem:[%s24608_s15 + $0x1c4] ss:$16 sps:$4 sm:$0xff]  }
0x1f34   : > { %v19709_v49 = vld [vmem:[%s24608_s15 + $0x1cc] ss:$16 sps:$4 sm:$0xff]  }
0x1fe8   : > { %v12023_v56 = vpop.f32.mrb[116].mxu0 }
0x1fe9   : > { %v18862_v0 = vpop.f32.mrb[117].mxu0 }
0x1fea   : > { %v12026_v19 = vpop.f32.mrb[118].mxu0  ;;  %v19634_v0 = vld [vmem:[%s24608_s15 + $0x44] ss:$16 sps:$4 sm:$0xff]  }
0x1feb   : > { %v23418_v36 = vpack.c.bf16 %v12026_v19, %v12023_v56  ;;  %v18863_v54 = vpop.f32.mrb[119].mxu0  ;;  %v19628_v56 = vld [vmem:[%s24608_s15 + $0x24] ss:$16 sps:$4 sm:$0xff]   ;;  %v19637_v19 = vld [vmem:[%s24608_s15 + $0x4c] ss:$16 sps:$4 sm:$0xff]  }
0x1fec   : > { %v19638_v54 = vld [vmem:[%s24608_s15 + $0x60] ss:$16 sps:$4 sm:$0xff]  }
0x1fed   : > { %12448 = vmatmul.mubr.bf16.vlgmr.msra.gmra.mrb[104].mxu0 %v23418_v36  ;;  %12491 = vmatmul.mubr.bf16.vlgmr.msra.gmra.mrb[208].mxu1 %v23418_v36 }
0x1fee   : > { %12502 = vmatpush1.bf16.msra.mxu0 %v16077_v7  ;;  %12545 = vmatpush1.bf16.msra.mxu1 %v16079_v8  ;;  %v19622_v7 = vld [vmem:[%s24608_s15 + $0x4] ss:$16 sps:$4 sm:$0xff]   ;;  %v19625_v8 = vld [vmem:[%s24608_s15 + $0xc] ss:$16 sps:$4 sm:$0xff]  }
0x1fef   : > { %12503 = vmatprep.subr.bf16.mxu0 %v16086_v4  ;;  %12546 = vmatprep.subr.bf16.mxu1 %v16088_v5  ;;  %v19635_v4 = vld [vmem:[%s24608_s15 + $0x48] ss:$16 sps:$4 sm:$0xff]   ;;  %v19640_v5 = vld [vmem:[%s24608_s15 + $0x64] ss:$16 sps:$4 sm:$0xff]  }
0x1ff0   : > { %12533 = vmatprep.mubr.bf16.mxu0 %v20127_v53  ;;  %12576 = vmatprep.mubr.bf16.mxu1 %v20127_v53  ;;  %v12066_v53 = vld [vmem:[%s24606_s13 + $0x718] sm:$0xff] }
0x1ff1   : > { %v16112_v16 = vcombine.high %v12066_v53, %v12070_v2  ;;  %v16111_v23 = vcombine.low %v12066_v53, %v12070_v2  ;;  %v19670_v53 = vld [vmem:[%s24608_s15 + $0x104] ss:$16 sps:$4 sm:$0xff]   ;;  %v19673_v2 = vld [vmem:[%s24608_s15 + $0x10c] ss:$16 sps:$4 sm:$0xff]  }
0x1ff2   : > { %12504 = vmatpush1.bf16.msra.mxu0 %v16085_v32  ;;  %12547 = vmatpush1.bf16.msra.mxu1 %v16087_v43  ;;  %v19644_v32 = vld [vmem:[%s24608_s15 + $0x80] ss:$16 sps:$4 sm:$0xff]   ;;  %v19647_v43 = vld [vmem:[%s24608_s15 + $0x88] ss:$16 sps:$4 sm:$0xff]  }
0x1ff3   : > { %12505 = vmatprep.subr.bf16.mxu0 %v16094_v55  ;;  %12548 = vmatprep.subr.bf16.mxu1 %v16096_v3  ;;  %v19652_v55 = vld [vmem:[%s24608_s15 + $0xa4] ss:$16 sps:$4 sm:$0xff]   ;;  %v19655_v3 = vld [vmem:[%s24608_s15 + $0xac] ss:$16 sps:$4 sm:$0xff]  }
0x1ff6   : > { %12506 = vmatpush1.bf16.msra.mxu0 %v16093_v1  ;;  %12549 = vmatpush1.bf16.msra.mxu1 %v16095_v14  ;;  %v19656_v1 = vld [vmem:[%s24608_s15 + $0xc0] ss:$16 sps:$4 sm:$0xff]   ;;  %v19659_v14 = vld [vmem:[%s24608_s15 + $0xc8] ss:$16 sps:$4 sm:$0xff]  }
0x1ff7   : > { %12507 = vmatprep.subr.bf16.mxu0 %v16102_v28  ;;  %12550 = vmatprep.subr.bf16.mxu1 %v16104_v47  ;;  %v19664_v28 = vld [vmem:[%s24608_s15 + $0xe4] ss:$16 sps:$4 sm:$0xff]   ;;  %v19667_v47 = vld [vmem:[%s24608_s15 + $0xec] ss:$16 sps:$4 sm:$0xff]  }
0x1ffa   : > { %12508 = vmatpush1.bf16.msra.mxu0 %v16101_v6  ;;  %12551 = vmatpush1.bf16.msra.mxu1 %v16103_v12  ;;  %v19668_v6 = vld [vmem:[%s24608_s15 + $0x100] ss:$16 sps:$4 sm:$0xff]   ;;  %v19671_v12 = vld [vmem:[%s24608_s15 + $0x108] ss:$16 sps:$4 sm:$0xff]  }
0x1ffb   : > { %12509 = vmatprep.subr.bf16.mxu0 %v16110_v13  ;;  %12552 = vmatprep.subr.bf16.mxu1 %v16112_v16  ;;  %v19676_v13 = vld [vmem:[%s24608_s15 + $0x124] ss:$16 sps:$4 sm:$0xff]   ;;  %v19679_v16 = vld [vmem:[%s24608_s15 + $0x12c] ss:$16 sps:$4 sm:$0xff]  }
0x1ffe   : > { %12510 = vmatpush1.bf16.msra.mxu0 %v16109_v20  ;;  %12553 = vmatpush1.bf16.msra.mxu1 %v16111_v23  ;;  %v19680_v20 = vld [vmem:[%s24608_s15 + $0x140] ss:$16 sps:$4 sm:$0xff]   ;;  %v19683_v23 = vld [vmem:[%s24608_s15 + $0x148] ss:$16 sps:$4 sm:$0xff]  }
0x1fff   : > { %12511 = vmatprep.subr.bf16.mxu0 %v16118_v42  ;;  %12554 = vmatprep.subr.bf16.mxu1 %v16120_v24  ;;  %v19688_v42 = vld [vmem:[%s24608_s15 + $0x164] ss:$16 sps:$4 sm:$0xff]   ;;  %v19691_v24 = vld [vmem:[%s24608_s15 + $0x16c] ss:$16 sps:$4 sm:$0xff]  }
0x2002   : > { %12512 = vmatpush1.bf16.msra.mxu0 %v16117_v33  ;;  %12555 = vmatpush1.bf16.msra.mxu1 %v16119_v34  ;;  %v19692_v33 = vld [vmem:[%s24608_s15 + $0x180] ss:$16 sps:$4 sm:$0xff]   ;;  %v19695_v34 = vld [vmem:[%s24608_s15 + $0x188] ss:$16 sps:$4 sm:$0xff]  }
0x2003   : > { %12513 = vmatprep.subr.bf16.mxu0 %v16126_v35  ;;  %12556 = vmatprep.subr.bf16.mxu1 %v16128_v41  ;;  %v19700_v35 = vld [vmem:[%s24608_s15 + $0x1a4] ss:$16 sps:$4 sm:$0xff]   ;;  %v19703_v41 = vld [vmem:[%s24608_s15 + $0x1ac] ss:$16 sps:$4 sm:$0xff]  }
0x2006   : > { %12514 = vmatpush1.bf16.msra.mxu0 %v16125_v11  ;;  %12557 = vmatpush1.bf16.msra.mxu1 %v16127_v50  ;;  %v19704_v11 = vld [vmem:[%s24608_s15 + $0x1c0] ss:$16 sps:$4 sm:$0xff]   ;;  %v19707_v50 = vld [vmem:[%s24608_s15 + $0x1c8] ss:$16 sps:$4 sm:$0xff]  }
0x2007   : > { %12515 = vmatprep.subr.bf16.mxu0 %v16134_v51  ;;  %12558 = vmatprep.subr.bf16.mxu1 %v16136_v59  ;;  %v19712_v51 = vld [vmem:[%s24608_s15 + $0x1e4] ss:$16 sps:$4 sm:$0xff]   ;;  %v19715_v59 = vld [vmem:[%s24608_s15 + $0x1ec] ss:$16 sps:$4 sm:$0xff]  }
0x200a   : > { %12516 = vmatpush1.bf16.msra.mxu0 %v16133_v22  ;;  %12559 = vmatpush1.bf16.msra.mxu1 %v16135_v60  ;;  %v19710_v22 = vld [vmem:[%s24608_s15 + $0x1e0] ss:$16 sps:$4 sm:$0xff]   ;;  %v19713_v60 = vld [vmem:[%s24608_s15 + $0x1e8] ss:$16 sps:$4 sm:$0xff]  }
0x200b   : > { %14243 = vmatprep.subr.bf16.mxu1 %v19622_v7  ;;  %14415 = vmatprep.subr.bf16.mxu0 %v19625_v8  ;;  %v19718_v7 = vld [vmem:[%s24608_s15 + $0x204] ss:$16 sps:$4 sm:$0xff]   ;;  %v19721_v8 = vld [vmem:[%s24608_s15 + $0x20c] ss:$16 sps:$4 sm:$0xff]  }
0x200d   : > { %12534 = vmatmul.mubr.bf16.vlgmr.msra.gmra.mrb[108].mxu0 %v23418_v36  ;;  %12577 = vmatmul.mubr.bf16.vlgmr.msra.gmra.mrb[212].mxu1 %v23418_v36  ;;  %v19632_v36 = vld [vmem:[%s24608_s15 + $0x40] ss:$16 sps:$4 sm:$0xff]  }
0x200e   : > { %14244 = vmatpush1.bf16.msra.mxu1 %v19620_v9  ;;  %14416 = vmatpush1.bf16.msra.mxu0 %v19623_v45  ;;  %v12605_v9 = vlaneseq }
0x200f   : > { %14245 = vmatprep.subr.bf16.mxu1 %v19628_v56  ;;  %14417 = vmatprep.subr.bf16.mxu0 %v19631_v37 }
0x2010   : > { %v23696_v45 = vshrl.u32 %v12605_v9, 7  ;;  %v19743_v9 = vld [vmem:[%s24608_s15 + $0x288] ss:$16 sps:$4 sm:$0xff]  }
0x2012   : > { %14246 = vmatpush1.bf16.msra.mxu1 %v19626_v62  ;;  %14418 = vmatpush1.bf16.msra.mxu0 %v19629_v38  ;;  %v12623_v56 = vsub.s32 4, %v23696_v45  ;;  %v12631_v37 = vsub.s32 6, %v23696_v45  ;;  %v12603_v62 = vld [vmem:[%s24607_s14] sm:$0xff]  ;;  %v12627_v38 = vsub.s32 5, %v23696_v45 }
0x2013   : > { %14247 = vmatprep.subr.bf16.mxu1 %v19634_v0  ;;  %14419 = vmatprep.subr.bf16.mxu0 %v19637_v19  ;;  %v12635_v0 = vsub.s32 7, %v23696_v45 }
0x2014   : > { %v23705_v19 = vrot.slane %v12603_v62, %v12623_v56  ;;  %v19748_v56 = vld [vmem:[%s24608_s15 + $0x2a4] ss:$16 sps:$4 sm:$0xff]  }
0x2016   : > { %14248 = vmatpush1.bf16.msra.mxu1 %v19632_v36  ;;  %14420 = vmatpush1.bf16.msra.mxu0 %v19635_v4  ;;  %v23707_v36 = vrot.slane %v12603_v62, %v12631_v37  ;;  %v23709_v4 = vrot.slane %v12603_v62, %v12627_v38  ;;  %v19751_v37 = vld [vmem:[%s24608_s15 + $0x2ac] ss:$16 sps:$4 sm:$0xff]   ;;  %v19749_v38 = vld [vmem:[%s24608_s15 + $0x2a8] ss:$16 sps:$4 sm:$0xff]  }
0x2017   : > { %14249 = vmatprep.subr.bf16.mxu1 %v19640_v5  ;;  %14421 = vmatprep.subr.bf16.mxu0 %v19643_v29  ;;  %v23711_v5 = vrot.slane %v12603_v62, %v12635_v0  ;;  %v23714_v29 = vsub.s32 0, %v23696_v45  ;;  %v19754_v0 = vld [vmem:[%s24608_s15 + $0x2c4] ss:$16 sps:$4 sm:$0xff]  }
0x201a   : > { %14250 = vmatpush1.bf16.msra.mxu1 %v19638_v54  ;;  %14422 = vmatpush1.bf16.msra.mxu0 %v19641_v63  ;;  %v12615_v54 = vsub.s32 2, %v23696_v45  ;;  %v23718_v63 = vsub.s32 1, %v23696_v45 }
0x201b   : > { %14251 = vmatprep.subr.bf16.mxu1 %v19646_v10  ;;  %14423 = vmatprep.subr.bf16.mxu0 %v19649_v21  ;;  %v12619_v10 = vsub.s32 3, %v23696_v45  ;;  %v12608_v21 = vrot.slane %v12603_v62, %v23714_v29 }
0x201e   : > { %14252 = vmatpush1.bf16.msra.mxu1 %v19644_v32  ;;  %14424 = vmatpush1.bf16.msra.mxu0 %v19647_v43  ;;  %v12616_v32 = vrot.slane %v12603_v62, %v12615_v54  ;;  %v12612_v43 = vrot.slane %v12603_v62, %v23718_v63 }
0x201f   : > { %14253 = vmatprep.subr.bf16.mxu1 %v19652_v55  ;;  %14425 = vmatprep.subr.bf16.mxu0 %v19655_v3  ;;  %v12620_v55 = vrot.slane %v12603_v62, %v12619_v10  ;;  %v19746_v62 = vld [vmem:[%s24608_s15 + $0x2a0] ss:$16 sps:$4 sm:$0xff]  }
0x2022   : > { %14254 = vmatpush1.bf16.msra.mxu1 %v19650_v27  ;;  %14426 = vmatpush1.bf16.msra.mxu0 %v19653_v15 }
0x2023   : > { %14255 = vmatprep.subr.bf16.mxu1 %v19658_v39  ;;  %14427 = vmatprep.subr.bf16.mxu0 %v19661_v52 }
0x2026   : > { %14256 = vmatpush1.bf16.msra.mxu1 %v19656_v1  ;;  %14428 = vmatpush1.bf16.msra.mxu0 %v19659_v14 }
0x2027   : > { %14257 = vmatprep.subr.bf16.mxu1 %v19664_v28  ;;  %14429 = vmatprep.subr.bf16.mxu0 %v19667_v47 }
0x202a   : > { %14258 = vmatpush1.bf16.msra.mxu1 %v19662_v57  ;;  %14430 = vmatpush1.bf16.msra.mxu0 %v19665_v58 }
0x202b   : > { %14259 = vmatprep.subr.bf16.mxu1 %v19670_v53  ;;  %14431 = vmatprep.subr.bf16.mxu0 %v19673_v2 }
0x202e   : > { %14260 = vmatpush1.bf16.msra.mxu1 %v19668_v6  ;;  %14432 = vmatpush1.bf16.msra.mxu0 %v19671_v12 }
0x202f   : > { %14261 = vmatprep.subr.bf16.mxu1 %v19676_v13  ;;  %14433 = vmatprep.subr.bf16.mxu0 %v19679_v16 }
0x2032   : > { %14262 = vmatpush1.bf16.msra.mxu1 %v19674_v61  ;;  %14434 = vmatpush1.bf16.msra.mxu0 %v19677_v17 }
0x2033   : > { %14263 = vmatprep.subr.bf16.mxu1 %v19682_v40  ;;  %14435 = vmatprep.subr.bf16.mxu0 %v19685_v18 }
0x2036   : > { %14264 = vmatpush1.bf16.msra.mxu1 %v19680_v20  ;;  %14436 = vmatpush1.bf16.msra.mxu0 %v19683_v23 }
0x2037   : > { %14265 = vmatprep.subr.bf16.mxu1 %v19688_v42  ;;  %14437 = vmatprep.subr.bf16.mxu0 %v19691_v24 }
0x203a   : > { %14266 = vmatpush1.bf16.msra.mxu1 %v19686_v25  ;;  %14438 = vmatpush1.bf16.msra.mxu0 %v19689_v26 }
0x203b   : > { %14267 = vmatprep.subr.bf16.mxu1 %v19694_v30  ;;  %14439 = vmatprep.subr.bf16.mxu0 %v19697_v31  ;;  %v19716_v31 = vld [vmem:[%s24608_s15 + $0x200] ss:$16 sps:$4 sm:$0xff]  }
0x203e   : > { %14268 = vmatpush1.bf16.msra.mxu1 %v19692_v33  ;;  %14440 = vmatpush1.bf16.msra.mxu0 %v19695_v34  ;;  %v19719_v33 = vld [vmem:[%s24608_s15 + $0x208] ss:$16 sps:$4 sm:$0xff]   ;;  %v19724_v34 = vld [vmem:[%s24608_s15 + $0x224] ss:$16 sps:$4 sm:$0xff]  }
0x203f   : > { %14269 = vmatprep.subr.bf16.mxu1 %v19700_v35  ;;  %14441 = vmatprep.subr.bf16.mxu0 %v19703_v41  ;;  %v19727_v35 = vld [vmem:[%s24608_s15 + $0x22c] ss:$16 sps:$4 sm:$0xff]   ;;  %v19722_v41 = vld [vmem:[%s24608_s15 + $0x220] ss:$16 sps:$4 sm:$0xff]  }
0x2042   : > { %14270 = vmatpush1.bf16.msra.mxu1 %v19698_v48  ;;  %14442 = vmatpush1.bf16.msra.mxu0 %v19701_v44  ;;  %v19725_v48 = vld [vmem:[%s24608_s15 + $0x228] ss:$16 sps:$4 sm:$0xff]   ;;  %v19730_v44 = vld [vmem:[%s24608_s15 + $0x244] ss:$16 sps:$4 sm:$0xff]  }
0x2043   : > { %14271 = vmatprep.subr.bf16.mxu1 %v19706_v46  ;;  %14443 = vmatprep.subr.bf16.mxu0 %v19709_v49  ;;  %v19733_v46 = vld [vmem:[%s24608_s15 + $0x24c] ss:$16 sps:$4 sm:$0xff]   ;;  %v19728_v49 = vld [vmem:[%s24608_s15 + $0x240] ss:$16 sps:$4 sm:$0xff]  }
0x2046   : > { %14272 = vmatpush1.bf16.msra.mxu1 %v19704_v11  ;;  %14444 = vmatpush1.bf16.msra.mxu0 %v19707_v50  ;;  %v19731_v11 = vld [vmem:[%s24608_s15 + $0x248] ss:$16 sps:$4 sm:$0xff]   ;;  %v19736_v50 = vld [vmem:[%s24608_s15 + $0x264] ss:$16 sps:$4 sm:$0xff]  }
0x2047   : > { %14273 = vmatprep.subr.bf16.mxu1 %v19712_v51  ;;  %14445 = vmatprep.subr.bf16.mxu0 %v19715_v59  ;;  %v19739_v51 = vld [vmem:[%s24608_s15 + $0x26c] ss:$16 sps:$4 sm:$0xff]   ;;  %v19734_v59 = vld [vmem:[%s24608_s15 + $0x260] ss:$16 sps:$4 sm:$0xff]  }
0x204a   : > { %14274 = vmatpush1.bf16.msra.mxu1 %v19710_v22  ;;  %14446 = vmatpush1.bf16.msra.mxu0 %v19713_v60  ;;  %v19737_v22 = vld [vmem:[%s24608_s15 + $0x268] ss:$16 sps:$4 sm:$0xff]   ;;  %v19742_v60 = vld [vmem:[%s24608_s15 + $0x284] ss:$16 sps:$4 sm:$0xff]  }
0x204b   : > { %14286 = vmatprep.subr.bf16.mxu1 %v19718_v7  ;;  %14458 = vmatprep.subr.bf16.mxu0 %v19721_v8  ;;  %v19745_v7 = vld [vmem:[%s24608_s15 + $0x28c] ss:$16 sps:$4 sm:$0xff]   ;;  %v19740_v8 = vld [vmem:[%s24608_s15 + $0x280] ss:$16 sps:$4 sm:$0xff]  }
0x20c0   : > { %v12449_v3 = vpop.f32.mrb[104].mxu0  ;;  %v12492_v27 = vpop.f32.mrb[208].mxu1 }
0x20c1   : > { %v12645_v15 = vadd.f32 %v12608_v21, %v12449_v3  ;;  %v12647_v39 = vadd.f32 %v12616_v32, %v12492_v27  ;;  %v12451_v52 = vpop.f32.mrb[105].mxu0  ;;  %v12494_v1 = vpop.f32.mrb[209].mxu1  ;;  %v19755_v3 = vld [vmem:[%s24608_s15 + $0x2c8] ss:$16 sps:$4 sm:$0xff]  }
0x20c2   : > { %v12646_v14 = vadd.f32 %v12612_v43, %v12451_v52  ;;  %v12648_v28 = vadd.f32 %v12620_v55, %v12494_v1  ;;  %v12453_v47 = vpop.f32.mrb[106].mxu0  ;;  %v12496_v57 = vpop.f32.mrb[210].mxu1  ;;  %v19760_v1 = vld [vmem:[%s24608_s15 + $0x2e4] ss:$16 sps:$4 sm:$0xff]  }
0x20c3   : > { %v12653_v58 = vadd.f32 %v12608_v21, %v12453_v47  ;;  %v12655_v53 = vadd.f32 %v12616_v32, %v12496_v57  ;;  %v12455_v2 = vpop.f32.mrb[107].mxu0  ;;  %v12498_v6 = vpop.f32.mrb[211].mxu1  ;;  %v12661_v16 = vmax.f32 %v12645_v15, 0.0  ;;  %v12663_v61 = vmax.f32 %v12647_v39, 0.0  ;;  %v19757_v21 = vld [vmem:[%s24608_s15 + $0x2cc] ss:$16 sps:$4 sm:$0xff]  }
0x20c4   : > { %v12654_v12 = vadd.f32 %v12612_v43, %v12455_v2  ;;  %v12656_v13 = vadd.f32 %v12620_v55, %v12498_v6  ;;  %v12662_v18 = vmax.f32 %v12646_v14, 0.0  ;;  %v12664_v20 = vmax.f32 %v12648_v28, 0.0  ;;  %v19752_v55 = vld [vmem:[%s24608_s15 + $0x2c0] ss:$16 sps:$4 sm:$0xff]   ;;  %v19763_v14 = vld [vmem:[%s24608_s15 + $0x2ec] ss:$16 sps:$4 sm:$0xff]  }
0x20c5   : > { %v12669_v17 = vmax.f32 %v12653_v58, 0.0  ;;  %v12671_v40 = vmax.f32 %v12655_v53, 0.0 }
0x20c6   : > { %v12670_v23 = vmax.f32 %v12654_v12, 0.0  ;;  %v12672_v42 = vmax.f32 %v12656_v13, 0.0 }
0x20c7   : > { %v12677_v24 = vpack.c.bf16 %v12669_v17, %v12661_v16  ;;  %v23727_v25 = vpack.c.bf16 %v12671_v40, %v12663_v61  ;;  %v19758_v61 = vld [vmem:[%s24608_s15 + $0x2e0] ss:$16 sps:$4 sm:$0xff]   ;;  %v19761_v17 = vld [vmem:[%s24608_s15 + $0x2e8] ss:$16 sps:$4 sm:$0xff]  }
0x20c8   : > { %v12678_v26 = vpack.c.bf16 %v12670_v23, %v12662_v18  ;;  %v12680_v30 = vpack.c.bf16 %v12672_v42, %v12664_v20 }
0x20ca   : > { %14275 = vmatprep.mubr.bf16.mxu1 %v12678_v26  ;;  %14447 = vmatprep.mubr.bf16.mxu0 %v12678_v26 }
0x20cb   : > { %14276 = vmatmul.mubr.bf16.vlgmr.msra.gmra.mrb[216].mxu1 %v12677_v24  ;;  %14448 = vmatmul.mubr.bf16.vlgmr.msra.gmra.mrb[120].mxu0 %v12677_v24 }
0x20cc   : > { %14287 = vmatpush1.bf16.msra.mxu1 %v19716_v31  ;;  %14459 = vmatpush1.bf16.msra.mxu0 %v19719_v33 }
0x20cd   : > { %14318 = vmatprep.mubr.bf16.mxu1 %v12680_v30  ;;  %14490 = vmatprep.mubr.bf16.mxu0 %v12680_v30 }
0x20ce   : > { %14288 = vmatprep.subr.bf16.mxu1 %v19724_v34  ;;  %14460 = vmatprep.subr.bf16.mxu0 %v19727_v35  ;;  %v19764_v34 = vld [vmem:[%s24608_s15 + $0x300] ss:$16 sps:$4 sm:$0xff]   ;;  %v19767_v35 = vld [vmem:[%s24608_s15 + $0x308] ss:$16 sps:$4 sm:$0xff]  }
0x20d0   : > { %14289 = vmatpush1.bf16.msra.mxu1 %v19722_v41  ;;  %14461 = vmatpush1.bf16.msra.mxu0 %v19725_v48  ;;  %v19772_v41 = vld [vmem:[%s24608_s15 + $0x324] ss:$16 sps:$4 sm:$0xff]   ;;  %v19775_v48 = vld [vmem:[%s24608_s15 + $0x32c] ss:$16 sps:$4 sm:$0xff]  }
0x20d1   : > { %14290 = vmatprep.subr.bf16.mxu1 %v19730_v44  ;;  %14462 = vmatprep.subr.bf16.mxu0 %v19733_v46  ;;  %v19770_v44 = vld [vmem:[%s24608_s15 + $0x320] ss:$16 sps:$4 sm:$0xff]   ;;  %v19773_v46 = vld [vmem:[%s24608_s15 + $0x328] ss:$16 sps:$4 sm:$0xff]  }
0x20d4   : > { %14291 = vmatpush1.bf16.msra.mxu1 %v19728_v49  ;;  %14463 = vmatpush1.bf16.msra.mxu0 %v19731_v11  ;;  %v19778_v49 = vld [vmem:[%s24608_s15 + $0x344] ss:$16 sps:$4 sm:$0xff]   ;;  %v19781_v11 = vld [vmem:[%s24608_s15 + $0x34c] ss:$16 sps:$4 sm:$0xff]  }
0x20d5   : > { %14292 = vmatprep.subr.bf16.mxu1 %v19736_v50  ;;  %14464 = vmatprep.subr.bf16.mxu0 %v19739_v51  ;;  %v19776_v50 = vld [vmem:[%s24608_s15 + $0x340] ss:$16 sps:$4 sm:$0xff]   ;;  %v19779_v51 = vld [vmem:[%s24608_s15 + $0x348] ss:$16 sps:$4 sm:$0xff]  }
0x20d8   : > { %14293 = vmatpush1.bf16.msra.mxu1 %v19734_v59  ;;  %14465 = vmatpush1.bf16.msra.mxu0 %v19737_v22  ;;  %v19784_v59 = vld [vmem:[%s24608_s15 + $0x364] ss:$16 sps:$4 sm:$0xff]   ;;  %v19787_v22 = vld [vmem:[%s24608_s15 + $0x36c] ss:$16 sps:$4 sm:$0xff]  }
0x20d9   : > { %14294 = vmatprep.subr.bf16.mxu1 %v19742_v60  ;;  %14466 = vmatprep.subr.bf16.mxu0 %v19745_v7  ;;  %v19782_v60 = vld [vmem:[%s24608_s15 + $0x360] ss:$16 sps:$4 sm:$0xff]   ;;  %v19785_v7 = vld [vmem:[%s24608_s15 + $0x368] ss:$16 sps:$4 sm:$0xff]  }
0x20dc   : > { %14295 = vmatpush1.bf16.msra.mxu1 %v19740_v8  ;;  %14467 = vmatpush1.bf16.msra.mxu0 %v19743_v9  ;;  %v19790_v8 = vld [vmem:[%s24608_s15 + $0x384] ss:$16 sps:$4 sm:$0xff]   ;;  %v19793_v9 = vld [vmem:[%s24608_s15 + $0x38c] ss:$16 sps:$4 sm:$0xff]  }
0x20dd   : > { %14296 = vmatprep.subr.bf16.mxu1 %v19748_v56  ;;  %14468 = vmatprep.subr.bf16.mxu0 %v19751_v37  ;;  %v19788_v56 = vld [vmem:[%s24608_s15 + $0x380] ss:$16 sps:$4 sm:$0xff]   ;;  %v19791_v37 = vld [vmem:[%s24608_s15 + $0x388] ss:$16 sps:$4 sm:$0xff]  }
0x20e0   : > { %v12535_v32 = vpop.f32.mrb[108].mxu0  ;;  %v12578_v43 = vpop.f32.mrb[212].mxu1  ;;  %14297 = vmatpush1.bf16.msra.mxu1 %v19746_v62  ;;  %14469 = vmatpush1.bf16.msra.mxu0 %v19749_v38  ;;  %v19796_v62 = vld [vmem:[%s24608_s15 + $0x3a4] ss:$16 sps:$4 sm:$0xff]   ;;  %v19799_v38 = vld [vmem:[%s24608_s15 + $0x3ac] ss:$16 sps:$4 sm:$0xff]  }
0x20e1   : > { %v12649_v27 = vadd.f32 %v23705_v19, %v12535_v32  ;;  %v12651_v15 = vadd.f32 %v23707_v36, %v12578_v43  ;;  %v12537_v39 = vpop.f32.mrb[109].mxu0  ;;  %v12580_v52 = vpop.f32.mrb[213].mxu1  ;;  %14298 = vmatprep.subr.bf16.mxu1 %v19754_v0  ;;  %14470 = vmatprep.subr.bf16.mxu0 %v19757_v21  ;;  %v19794_v0 = vld [vmem:[%s24608_s15 + $0x3a0] ss:$16 sps:$4 sm:$0xff]   ;;  %v19797_v21 = vld [vmem:[%s24608_s15 + $0x3a8] ss:$16 sps:$4 sm:$0xff]  }
0x20e2   : > { %v12650_v28 = vadd.f32 %v23709_v4, %v12537_v39  ;;  %v12652_v47 = vadd.f32 %v23711_v5, %v12580_v52  ;;  %v12539_v57 = vpop.f32.mrb[110].mxu0  ;;  %v12582_v58 = vpop.f32.mrb[214].mxu1  ;;  %v19802_v32 = vld [vmem:[%s24608_s15 + $0x3c4] ss:$16 sps:$4 sm:$0xff]   ;;  %v19805_v43 = vld [vmem:[%s24608_s15 + $0x3cc] ss:$16 sps:$4 sm:$0xff]  }
0x20e3   : > { %v12657_v53 = vadd.f32 %v23705_v19, %v12539_v57  ;;  %v12659_v2 = vadd.f32 %v23707_v36, %v12582_v58  ;;  %v12541_v6 = vpop.f32.mrb[111].mxu0  ;;  %v12584_v12 = vpop.f32.mrb[215].mxu1  ;;  %v19766_v19 = vld [vmem:[%s24608_s15 + $0x304] ss:$16 sps:$4 sm:$0xff]   ;;  %v12665_v36 = vmax.f32 %v12649_v27, 0.0  ;;  %v12667_v40 = vmax.f32 %v12651_v15, 0.0 }
0x20e4   : > { %v12658_v13 = vadd.f32 %v23709_v4, %v12541_v6  ;;  %v12660_v16 = vadd.f32 %v23711_v5, %v12584_v12  ;;  %14299 = vmatpush1.bf16.msra.mxu1 %v19752_v55  ;;  %14471 = vmatpush1.bf16.msra.mxu0 %v19755_v3  ;;  %v19769_v5 = vld [vmem:[%s24608_s15 + $0x30c] ss:$16 sps:$4 sm:$0xff]   ;;  %v12666_v20 = vmax.f32 %v12650_v28, 0.0  ;;  %v12668_v23 = vmax.f32 %v12652_v47, 0.0  ;;  %v19800_v55 = vld [vmem:[%s24608_s15 + $0x3c0] ss:$16 sps:$4 sm:$0xff]  }
0x20e5   : > { %v12673_v18 = vmax.f32 %v12657_v53, 0.0  ;;  %v12675_v4 = vmax.f32 %v12659_v2, 0.0  ;;  %14300 = vmatprep.subr.bf16.mxu1 %v19760_v1  ;;  %14472 = vmatprep.subr.bf16.mxu0 %v19763_v14  ;;  %v19803_v3 = vld [vmem:[%s24608_s15 + $0x3c8] ss:$16 sps:$4 sm:$0xff]   ;;  %v19808_v27 = vld [vmem:[%s24608_s15 + $0x3e4] ss:$16 sps:$4 sm:$0xff]  }
0x20e6   : > { %v12674_v42 = vmax.f32 %v12658_v13, 0.0  ;;  %v12676_v24 = vmax.f32 %v12660_v16, 0.0  ;;  %v19811_v15 = vld [vmem:[%s24608_s15 + $0x3ec] ss:$16 sps:$4 sm:$0xff]   ;;  %v19806_v39 = vld [vmem:[%s24608_s15 + $0x3e0] ss:$16 sps:$4 sm:$0xff]  }
0x20e7   : > { %v23833_v26 = vpack.c.bf16 %v12673_v18, %v12665_v36  ;;  %v23835_v30 = vpack.c.bf16 %v12675_v4, %v12667_v40  ;;  %v19809_v52 = vld [vmem:[%s24608_s15 + $0x3e8] ss:$16 sps:$4 sm:$0xff]   ;;  %v19814_v1 = vld [vmem:[%s24608_s15 + $0x404] ss:$16 sps:$4 sm:$0xff]   ;;  %v19817_v14 = vld [vmem:[%s24608_s15 + $0x40c] ss:$16 sps:$4 sm:$0xff]  }
0x20e8   : > { %v23837_v31 = vpack.c.bf16 %v12674_v42, %v12666_v20  ;;  %v23839_v33 = vpack.c.bf16 %v12676_v24, %v12668_v23  ;;  %14301 = vmatpush1.bf16.msra.mxu1 %v19758_v61  ;;  %14473 = vmatpush1.bf16.msra.mxu0 %v19761_v17  ;;  %v19812_v28 = vld [vmem:[%s24608_s15 + $0x400] ss:$16 sps:$4 sm:$0xff]   ;;  %v19815_v47 = vld [vmem:[%s24608_s15 + $0x408] ss:$16 sps:$4 sm:$0xff]   ;;  %v19820_v57 = vld [vmem:[%s24608_s15 + $0x424] ss:$16 sps:$4 sm:$0xff]  }
0x20e9   : > { %14302 = vmatprep.subr.bf16.mxu1 %v19766_v19  ;;  %14474 = vmatprep.subr.bf16.mxu0 %v19769_v5  ;;  %v19823_v58 = vld [vmem:[%s24608_s15 + $0x42c] ss:$16 sps:$4 sm:$0xff]   ;;  %v19818_v53 = vld [vmem:[%s24608_s15 + $0x420] ss:$16 sps:$4 sm:$0xff]   ;;  %v19821_v2 = vld [vmem:[%s24608_s15 + $0x428] ss:$16 sps:$4 sm:$0xff]  }
0x20ea   : > { %v19826_v6 = vld [vmem:[%s24608_s15 + $0x444] ss:$16 sps:$4 sm:$0xff]   ;;  %v19824_v12 = vld [vmem:[%s24608_s15 + $0x440] ss:$16 sps:$4 sm:$0xff]   ;;  %v19827_v13 = vld [vmem:[%s24608_s15 + $0x448] ss:$16 sps:$4 sm:$0xff]  }
0x20eb   : > { %v19832_v16 = vld [vmem:[%s24608_s15 + $0x464] ss:$16 sps:$4 sm:$0xff]   ;;  %v19835_v61 = vld [vmem:[%s24608_s15 + $0x46c] ss:$16 sps:$4 sm:$0xff]   ;;  %v19830_v17 = vld [vmem:[%s24608_s15 + $0x460] ss:$16 sps:$4 sm:$0xff]  }
0x20ec   : > { %14303 = vmatpush1.bf16.msra.mxu1 %v19764_v34  ;;  %14475 = vmatpush1.bf16.msra.mxu0 %v19767_v35  ;;  %v19833_v19 = vld [vmem:[%s24608_s15 + $0x468] ss:$16 sps:$4 sm:$0xff]   ;;  %v19838_v36 = vld [vmem:[%s24608_s15 + $0x484] ss:$16 sps:$4 sm:$0xff]   ;;  %v19841_v40 = vld [vmem:[%s24608_s15 + $0x48c] ss:$16 sps:$4 sm:$0xff]  }
0x20ed   : > { %14304 = vmatprep.subr.bf16.mxu1 %v19772_v41  ;;  %14476 = vmatprep.subr.bf16.mxu0 %v19775_v48  ;;  %v19836_v18 = vld [vmem:[%s24608_s15 + $0x480] ss:$16 sps:$4 sm:$0xff]   ;;  %v19839_v4 = vld [vmem:[%s24608_s15 + $0x488] ss:$16 sps:$4 sm:$0xff]   ;;  %v19844_v5 = vld [vmem:[%s24608_s15 + $0x4a4] ss:$16 sps:$4 sm:$0xff]  }
0x20ee   : > { %v19847_v20 = vld [vmem:[%s24608_s15 + $0x4ac] ss:$16 sps:$4 sm:$0xff]   ;;  %v19842_v23 = vld [vmem:[%s24608_s15 + $0x4a0] ss:$16 sps:$4 sm:$0xff]   ;;  %v19845_v42 = vld [vmem:[%s24608_s15 + $0x4a8] ss:$16 sps:$4 sm:$0xff]  }
0x20ef   : > { %v19850_v24 = vld [vmem:[%s24608_s15 + $0x4c4] ss:$16 sps:$4 sm:$0xff]   ;;  %v19848_v34 = vld [vmem:[%s24608_s15 + $0x4c0] ss:$16 sps:$4 sm:$0xff]   ;;  %v19851_v35 = vld [vmem:[%s24608_s15 + $0x4c8] ss:$16 sps:$4 sm:$0xff]  }
0x20f0   : > { %14305 = vmatpush1.bf16.msra.mxu1 %v19770_v44  ;;  %14477 = vmatpush1.bf16.msra.mxu0 %v19773_v46  ;;  %v19856_v41 = vld [vmem:[%s24608_s15 + $0x4e4] ss:$16 sps:$4 sm:$0xff]   ;;  %v19859_v48 = vld [vmem:[%s24608_s15 + $0x4ec] ss:$16 sps:$4 sm:$0xff]   ;;  %v19854_v44 = vld [vmem:[%s24608_s15 + $0x4e0] ss:$16 sps:$4 sm:$0xff]  }
0x20f1   : > { %14306 = vmatprep.subr.bf16.mxu1 %v19778_v49  ;;  %14478 = vmatprep.subr.bf16.mxu0 %v19781_v11  ;;  %v19857_v46 = vld [vmem:[%s24608_s15 + $0x4e8] ss:$16 sps:$4 sm:$0xff]   ;;  %v19862_v49 = vld [vmem:[%s24608_s15 + $0x504] ss:$16 sps:$4 sm:$0xff]   ;;  %v19865_v11 = vld [vmem:[%s24608_s15 + $0x50c] ss:$16 sps:$4 sm:$0xff]  }
0x20f4   : > { %14307 = vmatpush1.bf16.msra.mxu1 %v19776_v50  ;;  %14479 = vmatpush1.bf16.msra.mxu0 %v19779_v51  ;;  %v19860_v50 = vld [vmem:[%s24608_s15 + $0x500] ss:$16 sps:$4 sm:$0xff]   ;;  %v19863_v51 = vld [vmem:[%s24608_s15 + $0x508] ss:$16 sps:$4 sm:$0xff]  }
0x20f5   : > { %14308 = vmatprep.subr.bf16.mxu1 %v19784_v59  ;;  %14480 = vmatprep.subr.bf16.mxu0 %v19787_v22  ;;  %v19868_v59 = vld [vmem:[%s24608_s15 + $0x524] ss:$16 sps:$4 sm:$0xff]   ;;  %v19871_v22 = vld [vmem:[%s24608_s15 + $0x52c] ss:$16 sps:$4 sm:$0xff]  }
0x20f8   : > { %14309 = vmatpush1.bf16.msra.mxu1 %v19782_v60  ;;  %14481 = vmatpush1.bf16.msra.mxu0 %v19785_v7  ;;  %v19866_v60 = vld [vmem:[%s24608_s15 + $0x520] ss:$16 sps:$4 sm:$0xff]   ;;  %v19869_v7 = vld [vmem:[%s24608_s15 + $0x528] ss:$16 sps:$4 sm:$0xff]  }
0x20f9   : > { %14310 = vmatprep.subr.bf16.mxu1 %v19790_v8  ;;  %14482 = vmatprep.subr.bf16.mxu0 %v19793_v9  ;;  %v19874_v8 = vld [vmem:[%s24608_s15 + $0x544] ss:$16 sps:$4 sm:$0xff]   ;;  %v19877_v9 = vld [vmem:[%s24608_s15 + $0x54c] ss:$16 sps:$4 sm:$0xff]  }
0x20fc   : > { %14311 = vmatpush1.bf16.msra.mxu1 %v19788_v56  ;;  %14483 = vmatpush1.bf16.msra.mxu0 %v19791_v37  ;;  %v19872_v56 = vld [vmem:[%s24608_s15 + $0x540] ss:$16 sps:$4 sm:$0xff]   ;;  %v19875_v37 = vld [vmem:[%s24608_s15 + $0x548] ss:$16 sps:$4 sm:$0xff]  }
0x20fd   : > { %14312 = vmatprep.subr.bf16.mxu1 %v19796_v62  ;;  %14484 = vmatprep.subr.bf16.mxu0 %v19799_v38  ;;  %v19880_v62 = vld [vmem:[%s24608_s15 + $0x564] ss:$16 sps:$4 sm:$0xff]   ;;  %v19883_v38 = vld [vmem:[%s24608_s15 + $0x56c] ss:$16 sps:$4 sm:$0xff]  }
0x2100   : > { %14313 = vmatpush1.bf16.msra.mxu1 %v19794_v0  ;;  %14485 = vmatpush1.bf16.msra.mxu0 %v19797_v21  ;;  %v19878_v0 = vld [vmem:[%s24608_s15 + $0x560] ss:$16 sps:$4 sm:$0xff]   ;;  %v19881_v21 = vld [vmem:[%s24608_s15 + $0x568] ss:$16 sps:$4 sm:$0xff]  }
0x2101   : > { %14314 = vmatprep.subr.bf16.mxu1 %v19802_v32  ;;  %14486 = vmatprep.subr.bf16.mxu0 %v19805_v43  ;;  %v19886_v32 = vld [vmem:[%s24608_s15 + $0x584] ss:$16 sps:$4 sm:$0xff]   ;;  %v19889_v43 = vld [vmem:[%s24608_s15 + $0x58c] ss:$16 sps:$4 sm:$0xff]  }
0x2104   : > { %14315 = vmatpush1.bf16.msra.mxu1 %v19800_v55  ;;  %14487 = vmatpush1.bf16.msra.mxu0 %v19803_v3  ;;  %v19884_v55 = vld [vmem:[%s24608_s15 + $0x580] ss:$16 sps:$4 sm:$0xff]   ;;  %v19887_v3 = vld [vmem:[%s24608_s15 + $0x588] ss:$16 sps:$4 sm:$0xff]  }
0x2105   : > { %14316 = vmatprep.subr.bf16.mxu1 %v19808_v27  ;;  %14488 = vmatprep.subr.bf16.mxu0 %v19811_v15  ;;  %v19892_v27 = vld [vmem:[%s24608_s15 + $0x5a4] ss:$16 sps:$4 sm:$0xff]   ;;  %v19895_v15 = vld [vmem:[%s24608_s15 + $0x5ac] ss:$16 sps:$4 sm:$0xff]  }
0x2108   : > { %14317 = vmatpush1.bf16.msra.mxu1 %v19806_v39  ;;  %14489 = vmatpush1.bf16.msra.mxu0 %v19809_v52  ;;  %v19890_v39 = vld [vmem:[%s24608_s15 + $0x5a0] ss:$16 sps:$4 sm:$0xff]   ;;  %v19893_v52 = vld [vmem:[%s24608_s15 + $0x5a8] ss:$16 sps:$4 sm:$0xff]  }
0x2109   : > { %14329 = vmatprep.subr.bf16.mxu1 %v19814_v1  ;;  %14501 = vmatprep.subr.bf16.mxu0 %v19817_v14  ;;  %v19898_v1 = vld [vmem:[%s24608_s15 + $0x5c4] ss:$16 sps:$4 sm:$0xff]   ;;  %v19901_v14 = vld [vmem:[%s24608_s15 + $0x5cc] ss:$16 sps:$4 sm:$0xff]  }
0x210b   : > { %14319 = vmatmul.mubr.bf16.vlgmr.msra.gmra.mrb[216].mxu1 %v23727_v25  ;;  %14491 = vmatmul.mubr.bf16.vlgmr.msra.gmra.mrb[120].mxu0 %v23727_v25  ;;  %v19829_v25 = vld [vmem:[%s24608_s15 + $0x44c] ss:$16 sps:$4 sm:$0xff]  }
0x210c   : > { %14330 = vmatpush1.bf16.msra.mxu1 %v19812_v28  ;;  %14361 = vmatprep.mubr.bf16.mxu1 %v23837_v31  ;;  %v19896_v28 = vld [vmem:[%s24608_s15 + $0x5c0] ss:$16 sps:$4 sm:$0xff]  }
0x210d   : > { %14502 = vmatpush1.bf16.msra.mxu0 %v19815_v47  ;;  %14533 = vmatprep.mubr.bf16.mxu0 %v23837_v31  ;;  %v19853_v31 = vld [vmem:[%s24608_s15 + $0x4cc] ss:$16 sps:$4 sm:$0xff]   ;;  %v19899_v47 = vld [vmem:[%s24608_s15 + $0x5c8] ss:$16 sps:$4 sm:$0xff]  }
0x210e   : > { %14331 = vmatprep.subr.bf16.mxu1 %v19820_v57  ;;  %14503 = vmatprep.subr.bf16.mxu0 %v19823_v58  ;;  %v19904_v57 = vld [vmem:[%s24608_s15 + $0x5e4] ss:$16 sps:$4 sm:$0xff]   ;;  %v19907_v58 = vld [vmem:[%s24608_s15 + $0x5ec] ss:$16 sps:$4 sm:$0xff]  }
0x2110   : > { %14332 = vmatpush1.bf16.msra.mxu1 %v19818_v53  ;;  %v19902_v53 = vld [vmem:[%s24608_s15 + $0x5e0] ss:$16 sps:$4 sm:$0xff]  }
0x2111   : > { %14504 = vmatpush1.bf16.msra.mxu0 %v19821_v2  ;;  %14333 = vmatprep.subr.bf16.mxu1 %v19826_v6  ;;  %v19905_v2 = vld [vmem:[%s24608_s15 + $0x5e8] ss:$16 sps:$4 sm:$0xff]   ;;  %v19910_v6 = vld [vmem:[%s24608_s15 + $0x604] ss:$16 sps:$4 sm:$0xff]  }
0x2112   : > { %14505 = vmatprep.subr.bf16.mxu0 %v19829_v25  ;;  %v19913_v25 = vld [vmem:[%s24608_s15 + $0x60c] ss:$16 sps:$4 sm:$0xff]  }
0x2114   : > { %14334 = vmatpush1.bf16.msra.mxu1 %v19824_v12  ;;  %v19908_v12 = vld [vmem:[%s24608_s15 + $0x600] ss:$16 sps:$4 sm:$0xff]  }
0x2115   : > { %14506 = vmatpush1.bf16.msra.mxu0 %v19827_v13  ;;  %14335 = vmatprep.subr.bf16.mxu1 %v19832_v16  ;;  %v19911_v13 = vld [vmem:[%s24608_s15 + $0x608] ss:$16 sps:$4 sm:$0xff]   ;;  %v19916_v16 = vld [vmem:[%s24608_s15 + $0x624] ss:$16 sps:$4 sm:$0xff]  }
0x2116   : > { %14507 = vmatprep.subr.bf16.mxu0 %v19835_v61  ;;  %v19919_v61 = vld [vmem:[%s24608_s15 + $0x62c] ss:$16 sps:$4 sm:$0xff]  }
0x2118   : > { %14336 = vmatpush1.bf16.msra.mxu1 %v19830_v17  ;;  %v19914_v17 = vld [vmem:[%s24608_s15 + $0x620] ss:$16 sps:$4 sm:$0xff]  }
0x2119   : > { %14508 = vmatpush1.bf16.msra.mxu0 %v19833_v19  ;;  %14337 = vmatprep.subr.bf16.mxu1 %v19838_v36  ;;  %v19917_v19 = vld [vmem:[%s24608_s15 + $0x628] ss:$16 sps:$4 sm:$0xff]   ;;  %v19922_v36 = vld [vmem:[%s24608_s15 + $0x644] ss:$16 sps:$4 sm:$0xff]  }
0x211a   : > { %14509 = vmatprep.subr.bf16.mxu0 %v19841_v40  ;;  %v19920_v40 = vld [vmem:[%s24608_s15 + $0x640] ss:$16 sps:$4 sm:$0xff]  }
0x211c   : > { %14338 = vmatpush1.bf16.msra.mxu1 %v19836_v18  ;;  %v19923_v18 = vld [vmem:[%s24608_s15 + $0x648] ss:$16 sps:$4 sm:$0xff]  }
0x211d   : > { %14510 = vmatpush1.bf16.msra.mxu0 %v19839_v4  ;;  %14339 = vmatprep.subr.bf16.mxu1 %v19844_v5  ;;  %v19931_v4 = vld [vmem:[%s24608_s15 + $0x66c] ss:$16 sps:$4 sm:$0xff]   ;;  %v19926_v5 = vld [vmem:[%s24608_s15 + $0x660] ss:$16 sps:$4 sm:$0xff]  }
0x211e   : > { %14511 = vmatprep.subr.bf16.mxu0 %v19847_v20  ;;  %v19929_v20 = vld [vmem:[%s24608_s15 + $0x668] ss:$16 sps:$4 sm:$0xff]  }
0x2120   : > { %14340 = vmatpush1.bf16.msra.mxu1 %v19842_v23  ;;  %v19934_v23 = vld [vmem:[%s24608_s15 + $0x684] ss:$16 sps:$4 sm:$0xff]  }
0x2121   : > { %14512 = vmatpush1.bf16.msra.mxu0 %v19845_v42  ;;  %14341 = vmatprep.subr.bf16.mxu1 %v19850_v24  ;;  %v19937_v42 = vld [vmem:[%s24608_s15 + $0x68c] ss:$16 sps:$4 sm:$0xff]   ;;  %v19932_v24 = vld [vmem:[%s24608_s15 + $0x680] ss:$16 sps:$4 sm:$0xff]  }
0x2122   : > { %14513 = vmatprep.subr.bf16.mxu0 %v19853_v31  ;;  %v19935_v31 = vld [vmem:[%s24608_s15 + $0x688] ss:$16 sps:$4 sm:$0xff]  }
0x2124   : > { %14342 = vmatpush1.bf16.msra.mxu1 %v19848_v34  ;;  %v19940_v34 = vld [vmem:[%s24608_s15 + $0x6a4] ss:$16 sps:$4 sm:$0xff]  }
0x2125   : > { %14514 = vmatpush1.bf16.msra.mxu0 %v19851_v35  ;;  %14343 = vmatprep.subr.bf16.mxu1 %v19856_v41  ;;  %v19943_v35 = vld [vmem:[%s24608_s15 + $0x6ac] ss:$16 sps:$4 sm:$0xff]   ;;  %v19938_v41 = vld [vmem:[%s24608_s15 + $0x6a0] ss:$16 sps:$4 sm:$0xff]  }
0x2126   : > { %14515 = vmatprep.subr.bf16.mxu0 %v19859_v48  ;;  %v19941_v48 = vld [vmem:[%s24608_s15 + $0x6a8] ss:$16 sps:$4 sm:$0xff]  }
0x2128   : > { %14344 = vmatpush1.bf16.msra.mxu1 %v19854_v44  ;;  %v19946_v44 = vld [vmem:[%s24608_s15 + $0x6c4] ss:$16 sps:$4 sm:$0xff]  }
0x2129   : > { %14516 = vmatpush1.bf16.msra.mxu0 %v19857_v46  ;;  %14345 = vmatprep.subr.bf16.mxu1 %v19862_v49  ;;  %v19949_v46 = vld [vmem:[%s24608_s15 + $0x6cc] ss:$16 sps:$4 sm:$0xff]   ;;  %v19944_v49 = vld [vmem:[%s24608_s15 + $0x6c0] ss:$16 sps:$4 sm:$0xff]  }
0x212a   : > { %14517 = vmatprep.subr.bf16.mxu0 %v19865_v11  ;;  %v19947_v11 = vld [vmem:[%s24608_s15 + $0x6c8] ss:$16 sps:$4 sm:$0xff]  }
0x212c   : > { %14346 = vmatpush1.bf16.msra.mxu1 %v19860_v50  ;;  %v19952_v50 = vld [vmem:[%s24608_s15 + $0x6e4] ss:$16 sps:$4 sm:$0xff]  }
0x212d   : > { %14518 = vmatpush1.bf16.msra.mxu0 %v19863_v51  ;;  %14347 = vmatprep.subr.bf16.mxu1 %v19868_v59  ;;  %v19955_v51 = vld [vmem:[%s24608_s15 + $0x6ec] ss:$16 sps:$4 sm:$0xff]   ;;  %v19950_v59 = vld [vmem:[%s24608_s15 + $0x6e0] ss:$16 sps:$4 sm:$0xff]  }
0x212e   : > { %14519 = vmatprep.subr.bf16.mxu0 %v19871_v22  ;;  %v19953_v22 = vld [vmem:[%s24608_s15 + $0x6e8] ss:$16 sps:$4 sm:$0xff]  }
0x2130   : > { %14348 = vmatpush1.bf16.msra.mxu1 %v19866_v60  ;;  %v19958_v60 = vld [vmem:[%s24608_s15 + $0x704] ss:$16 sps:$4 sm:$0xff]  }
0x2131   : > { %14520 = vmatpush1.bf16.msra.mxu0 %v19869_v7  ;;  %14349 = vmatprep.subr.bf16.mxu1 %v19874_v8  ;;  %v19961_v7 = vld [vmem:[%s24608_s15 + $0x70c] ss:$16 sps:$4 sm:$0xff]   ;;  %v19956_v8 = vld [vmem:[%s24608_s15 + $0x700] ss:$16 sps:$4 sm:$0xff]  }
0x2132   : > { %14521 = vmatprep.subr.bf16.mxu0 %v19877_v9  ;;  %v19959_v9 = vld [vmem:[%s24608_s15 + $0x708] ss:$16 sps:$4 sm:$0xff]  }
0x2134   : > { %14350 = vmatpush1.bf16.msra.mxu1 %v19872_v56  ;;  %v19964_v56 = vld [vmem:[%s24608_s15 + $0x724] ss:$16 sps:$4 sm:$0xff]  }
0x2135   : > { %14522 = vmatpush1.bf16.msra.mxu0 %v19875_v37  ;;  %14351 = vmatprep.subr.bf16.mxu1 %v19880_v62  ;;  %v19967_v37 = vld [vmem:[%s24608_s15 + $0x72c] ss:$16 sps:$4 sm:$0xff]   ;;  %v19962_v62 = vld [vmem:[%s24608_s15 + $0x720] ss:$16 sps:$4 sm:$0xff]  }
0x2136   : > { %14523 = vmatprep.subr.bf16.mxu0 %v19883_v38  ;;  %v19965_v38 = vld [vmem:[%s24608_s15 + $0x728] ss:$16 sps:$4 sm:$0xff]  }
0x2138   : > { %14352 = vmatpush1.bf16.msra.mxu1 %v19878_v0  ;;  %v19970_v0 = vld [vmem:[%s24608_s15 + $0x744] ss:$16 sps:$4 sm:$0xff]  }
0x2139   : > { %14524 = vmatpush1.bf16.msra.mxu0 %v19881_v21  ;;  %14353 = vmatprep.subr.bf16.mxu1 %v19886_v32  ;;  %v19973_v21 = vld [vmem:[%s24608_s15 + $0x74c] ss:$16 sps:$4 sm:$0xff]   ;;  %v19968_v32 = vld [vmem:[%s24608_s15 + $0x740] ss:$16 sps:$4 sm:$0xff]  }
0x213a   : > { %14525 = vmatprep.subr.bf16.mxu0 %v19889_v43  ;;  %v19971_v43 = vld [vmem:[%s24608_s15 + $0x748] ss:$16 sps:$4 sm:$0xff]  }
0x213c   : > { %14354 = vmatpush1.bf16.msra.mxu1 %v19884_v55  ;;  %v19976_v55 = vld [vmem:[%s24608_s15 + $0x764] ss:$16 sps:$4 sm:$0xff]  }
0x213d   : > { %14526 = vmatpush1.bf16.msra.mxu0 %v19887_v3  ;;  %14355 = vmatprep.subr.bf16.mxu1 %v19892_v27  ;;  %v19979_v3 = vld [vmem:[%s24608_s15 + $0x76c] ss:$16 sps:$4 sm:$0xff]   ;;  %v19974_v27 = vld [vmem:[%s24608_s15 + $0x760] ss:$16 sps:$4 sm:$0xff]  }
0x213e   : > { %14527 = vmatprep.subr.bf16.mxu0 %v19895_v15  ;;  %v19977_v15 = vld [vmem:[%s24608_s15 + $0x768] ss:$16 sps:$4 sm:$0xff]  }
0x2140   : > { %14356 = vmatpush1.bf16.msra.mxu1 %v19890_v39  ;;  %v19982_v39 = vld [vmem:[%s24608_s15 + $0x784] ss:$16 sps:$4 sm:$0xff]  }
0x2141   : > { %14528 = vmatpush1.bf16.msra.mxu0 %v19893_v52  ;;  %14357 = vmatprep.subr.bf16.mxu1 %v19898_v1  ;;  %v19985_v52 = vld [vmem:[%s24608_s15 + $0x78c] ss:$16 sps:$4 sm:$0xff]   ;;  %v19980_v1 = vld [vmem:[%s24608_s15 + $0x780] ss:$16 sps:$4 sm:$0xff]  }
0x2142   : > { %14529 = vmatprep.subr.bf16.mxu0 %v19901_v14  ;;  %v19983_v14 = vld [vmem:[%s24608_s15 + $0x788] ss:$16 sps:$4 sm:$0xff]  }
0x2144   : > { %14358 = vmatpush1.bf16.msra.mxu1 %v19896_v28  ;;  %v19988_v28 = vld [vmem:[%s24608_s15 + $0x7a4] ss:$16 sps:$4 sm:$0xff]  }
0x2145   : > { %14530 = vmatpush1.bf16.msra.mxu0 %v19899_v47  ;;  %14359 = vmatprep.subr.bf16.mxu1 %v19904_v57  ;;  %v19991_v47 = vld [vmem:[%s24608_s15 + $0x7ac] ss:$16 sps:$4 sm:$0xff]   ;;  %v19986_v57 = vld [vmem:[%s24608_s15 + $0x7a0] ss:$16 sps:$4 sm:$0xff]  }
0x2146   : > { %14531 = vmatprep.subr.bf16.mxu0 %v19907_v58  ;;  %v19989_v58 = vld [vmem:[%s24608_s15 + $0x7a8] ss:$16 sps:$4 sm:$0xff]  }
0x2148   : > { %14360 = vmatpush1.bf16.msra.mxu1 %v19902_v53  ;;  %v19994_v53 = vld [vmem:[%s24608_s15 + $0x7c4] ss:$16 sps:$4 sm:$0xff]  }
0x2149   : > { %14532 = vmatpush1.bf16.msra.mxu0 %v19905_v2  ;;  %14372 = vmatprep.subr.bf16.mxu1 %v19910_v6  ;;  %v19997_v2 = vld [vmem:[%s24608_s15 + $0x7cc] ss:$16 sps:$4 sm:$0xff]   ;;  %v19992_v6 = vld [vmem:[%s24608_s15 + $0x7c0] ss:$16 sps:$4 sm:$0xff]  }
0x214a   : > { %14544 = vmatprep.subr.bf16.mxu0 %v19913_v25  ;;  %v19995_v25 = vld [vmem:[%s24608_s15 + $0x7c8] ss:$16 sps:$4 sm:$0xff]  }
0x214b   : > { %14362 = vmatmul.mubr.bf16.vlgmr.msra.gmra.mrb[216].mxu1 %v23833_v26 }
0x214c   : > { %14534 = vmatmul.mubr.bf16.vlgmr.msra.gmra.mrb[120].mxu0 %v23833_v26  ;;  %14373 = vmatpush1.bf16.msra.mxu1 %v19908_v12  ;;  %v19925_v26 = vld [vmem:[%s24608_s15 + $0x64c] ss:$16 sps:$4 sm:$0xff]   ;;  %v20000_v12 = vld [vmem:[%s24608_s15 + $0x7e4] ss:$16 sps:$4 sm:$0xff]  }
0x214d   : > { %14404 = vmatprep.mubr.bf16.mxu1 %v23839_v33  ;;  %14545 = vmatpush1.bf16.msra.mxu0 %v19911_v13  ;;  %v20003_v13 = vld [vmem:[%s24608_s15 + $0x7ec] ss:$16 sps:$4 sm:$0xff]  }
0x214e   : > { %14576 = vmatprep.mubr.bf16.mxu0 %v23839_v33  ;;  %14374 = vmatprep.subr.bf16.mxu1 %v19916_v16  ;;  %v19928_v33 = vld [vmem:[%s24608_s15 + $0x664] ss:$16 sps:$4 sm:$0xff]   ;;  %v19998_v16 = vld [vmem:[%s24608_s15 + $0x7e0] ss:$16 sps:$4 sm:$0xff]  }
0x214f   : > { %14546 = vmatprep.subr.bf16.mxu0 %v19919_v61  ;;  %v20001_v61 = vld [vmem:[%s24608_s15 + $0x7e8] ss:$16 sps:$4 sm:$0xff]  }
0x2150   : > { %14375 = vmatpush1.bf16.msra.mxu1 %v19914_v17  ;;  %v20006_v17 = vld [vmem:[%s24610_s17 + $0x4] ss:$8 sps:$4 sm:$0xff]  }
0x2151   : > { %14547 = vmatpush1.bf16.msra.mxu0 %v19917_v19  ;;  %14376 = vmatprep.subr.bf16.mxu1 %v19922_v36  ;;  %v20004_v19 = vld [vmem:[%s24610_s17] ss:$8 sps:$4 sm:$0xff]   ;;  %v20009_v36 = vld [vmem:[%s24610_s17 + $0x14] ss:$8 sps:$4 sm:$0xff]  }
0x2152   : > { %14548 = vmatprep.subr.bf16.mxu0 %v19925_v26  ;;  %v20007_v26 = vld [vmem:[%s24610_s17 + $0x10] ss:$8 sps:$4 sm:$0xff]  }
0x2154   : > { %14377 = vmatpush1.bf16.msra.mxu1 %v19920_v40  ;;  %v20012_v40 = vld [vmem:[%s24610_s17 + $0x24] ss:$8 sps:$4 sm:$0xff]  }
0x2155   : > { %14549 = vmatpush1.bf16.msra.mxu0 %v19923_v18  ;;  %14378 = vmatprep.subr.bf16.mxu1 %v19928_v33  ;;  %v20010_v18 = vld [vmem:[%s24610_s17 + $0x20] ss:$8 sps:$4 sm:$0xff]   ;;  %v20013_v33 = vld [vmem:[%s24610_s17 + $0x30] ss:$8 sps:$4 sm:$0xff]  }
0x2156   : > { %14550 = vmatprep.subr.bf16.mxu0 %v19931_v4  ;;  %v20018_v4 = vld [vmem:[%s24610_s17 + $0x44] ss:$8 sps:$4 sm:$0xff]  }
0x2158   : > { %14379 = vmatpush1.bf16.msra.mxu1 %v19926_v5  ;;  %v20016_v5 = vld [vmem:[%s24610_s17 + $0x40] ss:$8 sps:$4 sm:$0xff]  }
0x2159   : > { %14551 = vmatpush1.bf16.msra.mxu0 %v19929_v20  ;;  %14380 = vmatprep.subr.bf16.mxu1 %v19934_v23  ;;  %v20021_v20 = vld [vmem:[%s24610_s17 + $0x54] ss:$8 sps:$4 sm:$0xff]   ;;  %v20019_v23 = vld [vmem:[%s24610_s17 + $0x50] ss:$8 sps:$4 sm:$0xff]  }
0x215a   : > { %14552 = vmatprep.subr.bf16.mxu0 %v19937_v42  ;;  %v20024_v42 = vld [vmem:[%s24610_s17 + $0x64] ss:$8 sps:$4 sm:$0xff]  }
0x215c   : > { %14381 = vmatpush1.bf16.msra.mxu1 %v19932_v24  ;;  %v20022_v24 = vld [vmem:[%s24610_s17 + $0x60] ss:$8 sps:$4 sm:$0xff]  }
0x215d   : > { %14553 = vmatpush1.bf16.msra.mxu0 %v19935_v31  ;;  %14382 = vmatprep.subr.bf16.mxu1 %v19940_v34  ;;  %v20027_v31 = vld [vmem:[%s24610_s17 + $0x74] ss:$8 sps:$4 sm:$0xff]   ;;  %v20025_v34 = vld [vmem:[%s24610_s17 + $0x70] ss:$8 sps:$4 sm:$0xff]  }
0x215e   : > { %14554 = vmatprep.subr.bf16.mxu0 %v19943_v35  ;;  %v20030_v35 = vld [vmem:[%s24610_s17 + $0x84] ss:$8 sps:$4 sm:$0xff]  }
0x2160   : > { %14383 = vmatpush1.bf16.msra.mxu1 %v19938_v41  ;;  %v20028_v41 = vld [vmem:[%s24610_s17 + $0x80] ss:$8 sps:$4 sm:$0xff]  }
0x2161   : > { %14555 = vmatpush1.bf16.msra.mxu0 %v19941_v48  ;;  %14384 = vmatprep.subr.bf16.mxu1 %v19946_v44  ;;  %v20033_v48 = vld [vmem:[%s24610_s17 + $0x94] ss:$8 sps:$4 sm:$0xff]   ;;  %v20031_v44 = vld [vmem:[%s24610_s17 + $0x90] ss:$8 sps:$4 sm:$0xff]  }
0x2162   : > { %14556 = vmatprep.subr.bf16.mxu0 %v19949_v46  ;;  %v20036_v46 = vld [vmem:[%s24610_s17 + $0xa4] ss:$8 sps:$4 sm:$0xff]  }
0x2164   : > { %14385 = vmatpush1.bf16.msra.mxu1 %v19944_v49  ;;  %v20034_v49 = vld [vmem:[%s24610_s17 + $0xa0] ss:$8 sps:$4 sm:$0xff]  }
0x2165   : > { %14557 = vmatpush1.bf16.msra.mxu0 %v19947_v11  ;;  %14386 = vmatprep.subr.bf16.mxu1 %v19952_v50  ;;  %v20039_v11 = vld [vmem:[%s24610_s17 + $0xb4] ss:$8 sps:$4 sm:$0xff]   ;;  %v20037_v50 = vld [vmem:[%s24610_s17 + $0xb0] ss:$8 sps:$4 sm:$0xff]  }
0x2166   : > { %14558 = vmatprep.subr.bf16.mxu0 %v19955_v51  ;;  %v20042_v51 = vld [vmem:[%s24610_s17 + $0xc4] ss:$8 sps:$4 sm:$0xff]  }
0x2168   : > { %14387 = vmatpush1.bf16.msra.mxu1 %v19950_v59  ;;  %v20040_v59 = vld [vmem:[%s24610_s17 + $0xc0] ss:$8 sps:$4 sm:$0xff]  }
0x2169   : > { %14559 = vmatpush1.bf16.msra.mxu0 %v19953_v22  ;;  %14388 = vmatprep.subr.bf16.mxu1 %v19958_v60  ;;  %v20045_v22 = vld [vmem:[%s24610_s17 + $0xd4] ss:$8 sps:$4 sm:$0xff]   ;;  %v20043_v60 = vld [vmem:[%s24610_s17 + $0xd0] ss:$8 sps:$4 sm:$0xff]  }
0x216a   : > { %14560 = vmatprep.subr.bf16.mxu0 %v19961_v7  ;;  %v20048_v7 = vld [vmem:[%s24610_s17 + $0xe4] ss:$8 sps:$4 sm:$0xff]  }
0x216c   : > { %14389 = vmatpush1.bf16.msra.mxu1 %v19956_v8  ;;  %v20046_v8 = vld [vmem:[%s24610_s17 + $0xe0] ss:$8 sps:$4 sm:$0xff]  }
0x216d   : > { %14561 = vmatpush1.bf16.msra.mxu0 %v19959_v9  ;;  %14390 = vmatprep.subr.bf16.mxu1 %v19964_v56  ;;  %v20051_v9 = vld [vmem:[%s24610_s17 + $0xf4] ss:$8 sps:$4 sm:$0xff]   ;;  %v20049_v56 = vld [vmem:[%s24610_s17 + $0xf0] ss:$8 sps:$4 sm:$0xff]  }
0x216e   : > { %14562 = vmatprep.subr.bf16.mxu0 %v19967_v37  ;;  %v20054_v37 = vld [vmem:[%s24610_s17 + $0x104] ss:$8 sps:$4 sm:$0xff]  }
0x2170   : > { %14391 = vmatpush1.bf16.msra.mxu1 %v19962_v62  ;;  %v20100_v62 = vld [vmem:[%s24612_s19 + $0x40] sm:$0xff]  }
0x2171   : > { %14563 = vmatpush1.bf16.msra.mxu0 %v19965_v38  ;;  %14392 = vmatprep.subr.bf16.mxu1 %v19970_v0  ;;  %v20101_v38 = vld [vmem:[%s24612_s19] sm:$0xff]   ;;  %v20102_v0 = vld [vmem:[%s24612_s19 + $0x48] sm:$0xff]  }
0x2172   : > { %14564 = vmatprep.subr.bf16.mxu0 %v19973_v21  ;;  %v20103_v21 = vld [vmem:[%s24612_s19 + $0x8] sm:$0xff]  }
0x2174   : > { %14393 = vmatpush1.bf16.msra.mxu1 %v19968_v32  ;;  %v20104_v32 = vld [vmem:[%s24612_s19 + $0x50] sm:$0xff]  }
0x2175   : > { %14565 = vmatpush1.bf16.msra.mxu0 %v19971_v43  ;;  %14394 = vmatprep.subr.bf16.mxu1 %v19976_v55  ;;  %v20105_v43 = vld [vmem:[%s24612_s19 + $0x10] sm:$0xff]   ;;  %v20106_v55 = vld [vmem:[%s24612_s19 + $0x58] sm:$0xff]  }
0x2176   : > { %14566 = vmatprep.subr.bf16.mxu0 %v19979_v3  ;;  %v20107_v3 = vld [vmem:[%s24612_s19 + $0x18] sm:$0xff]  }
0x2178   : > { %14395 = vmatpush1.bf16.msra.mxu1 %v19974_v27  ;;  %v20108_v27 = vld [vmem:[%s24612_s19 + $0x60] sm:$0xff]  }
0x2179   : > { %14567 = vmatpush1.bf16.msra.mxu0 %v19977_v15  ;;  %14396 = vmatprep.subr.bf16.mxu1 %v19982_v39  ;;  %v20109_v15 = vld [vmem:[%s24612_s19 + $0x20] sm:$0xff]   ;;  %v20110_v39 = vld [vmem:[%s24612_s19 + $0x68] sm:$0xff]  }
0x217a   : > { %14568 = vmatprep.subr.bf16.mxu0 %v19985_v52  ;;  %v12941_v52 = vld [vmem:[%s24609_s16] sm:$0xf] }
0x217c   : > { %14397 = vmatpush1.bf16.msra.mxu1 %v19980_v1  ;;  %v12946_v1 = vrot.slane %v12941_v52, %v23714_v29 }
0x217d   : > { %14569 = vmatpush1.bf16.msra.mxu0 %v19983_v14  ;;  %14398 = vmatprep.subr.bf16.mxu1 %v19988_v28  ;;  %v12954_v14 = vrot.slane %v12941_v52, %v12615_v54  ;;  %v12950_v28 = vrot.slane %v12941_v52, %v23718_v63 }
0x217e   : > { %14570 = vmatprep.subr.bf16.mxu0 %v19991_v47  ;;  %v12958_v47 = vrot.slane %v12941_v52, %v12619_v10  ;;  %v20099_v52 = vld [vmem:[%s24610_s17 + $0x1f4] ss:$8 sps:$4 sm:$0xff]  }
0x2180   : > { %14399 = vmatpush1.bf16.msra.mxu1 %v19986_v57 }
0x2181   : > { %14571 = vmatpush1.bf16.msra.mxu0 %v19989_v58  ;;  %14400 = vmatprep.subr.bf16.mxu1 %v19994_v53 }
0x2182   : > { %14572 = vmatprep.subr.bf16.mxu0 %v19997_v2 }
0x2184   : > { %14401 = vmatpush1.bf16.msra.mxu1 %v19992_v6 }
0x2185   : > { %14573 = vmatpush1.bf16.msra.mxu0 %v19995_v25  ;;  %14402 = vmatprep.subr.bf16.mxu1 %v20000_v12 }
0x2186   : > { %14574 = vmatprep.subr.bf16.mxu0 %v20003_v13 }
0x2188   : > { %14403 = vmatpush1.bf16.msra.mxu1 %v19998_v16 }
0x2189   : > { %14575 = vmatpush1.bf16.msra.mxu0 %v20001_v61  ;;  %14995 = vmatprep.subr.bf16.mxu1 %v20006_v17 }
0x218a   : > { %17976 = vmatprep.subr.bf16.mxu0 %v20100_v62  ;;  %v20079_v62 = vld [vmem:[%s24610_s17 + $0x190] ss:$8 sps:$4 sm:$0xff]  }
0x218b   : > { %14405 = vmatmul.mubr.bf16.vlgmr.msra.gmra.mrb[216].mxu1 %v23835_v30 }
0x218c   : > { %14577 = vmatmul.mubr.bf16.vlgmr.msra.gmra.mrb[120].mxu0 %v23835_v30  ;;  %14996 = vmatpush1.bf16.msra.mxu1 %v20004_v19  ;;  %v20015_v30 = vld [vmem:[%s24610_s17 + $0x34] ss:$8 sps:$4 sm:$0xff]  }
0x218d   : > { %14997 = vmatprep.subr.bf16.mxu1 %v20009_v36  ;;  %17977 = vmatpush3.bf16.msra.mxu0 %v20101_v38  ;;  %v20084_v38 = vld [vmem:[%s24610_s17 + $0x1a4] ss:$8 sps:$4 sm:$0xff]  }
0x218e   : > { %17978 = vmatprep.subr.bf16.mxu0 %v20102_v0  ;;  %v20082_v0 = vld [vmem:[%s24610_s17 + $0x1a0] ss:$8 sps:$4 sm:$0xff]  }
0x2190   : > { %14998 = vmatpush1.bf16.msra.mxu1 %v20007_v26 }
0x2191   : > { %14999 = vmatprep.subr.bf16.mxu1 %v20012_v40  ;;  %17979 = vmatpush3.bf16.msra.mxu0 %v20103_v21  ;;  %v20087_v21 = vld [vmem:[%s24610_s17 + $0x1b4] ss:$8 sps:$4 sm:$0xff]  }
0x2192   : > { %17980 = vmatprep.subr.bf16.mxu0 %v20104_v32  ;;  %v20085_v32 = vld [vmem:[%s24610_s17 + $0x1b0] ss:$8 sps:$4 sm:$0xff]  }
0x2194   : > { %15000 = vmatpush1.bf16.msra.mxu1 %v20010_v18 }
0x2195   : > { %15001 = vmatprep.subr.bf16.mxu1 %v20015_v30  ;;  %17981 = vmatpush3.bf16.msra.mxu0 %v20105_v43  ;;  %v20090_v43 = vld [vmem:[%s24610_s17 + $0x1c4] ss:$8 sps:$4 sm:$0xff]  }
0x2196   : > { %17982 = vmatprep.subr.bf16.mxu0 %v20106_v55  ;;  %v20088_v55 = vld [vmem:[%s24610_s17 + $0x1c0] ss:$8 sps:$4 sm:$0xff]  }
0x2198   : > { %15002 = vmatpush1.bf16.msra.mxu1 %v20013_v33 }
0x2199   : > { %15003 = vmatprep.subr.bf16.mxu1 %v20018_v4  ;;  %17983 = vmatpush3.bf16.msra.mxu0 %v20107_v3  ;;  %v20093_v3 = vld [vmem:[%s24610_s17 + $0x1d4] ss:$8 sps:$4 sm:$0xff]  }
0x219a   : > { %17984 = vmatprep.subr.bf16.mxu0 %v20108_v27  ;;  %v20091_v27 = vld [vmem:[%s24610_s17 + $0x1d0] ss:$8 sps:$4 sm:$0xff]  }
0x219c   : > { %15004 = vmatpush1.bf16.msra.mxu1 %v20016_v5 }
0x219d   : > { %15005 = vmatprep.subr.bf16.mxu1 %v20021_v20  ;;  %17985 = vmatpush3.bf16.msra.mxu0 %v20109_v15  ;;  %v20096_v15 = vld [vmem:[%s24610_s17 + $0x1e4] ss:$8 sps:$4 sm:$0xff]  }
0x219e   : > { %17986 = vmatprep.subr.bf16.mxu0 %v20110_v39  ;;  %v20094_v39 = vld [vmem:[%s24610_s17 + $0x1e0] ss:$8 sps:$4 sm:$0xff]  }
0x21a0   : > { %15006 = vmatpush1.bf16.msra.mxu1 %v20019_v23 }
0x21a1   : > { %15007 = vmatprep.subr.bf16.mxu1 %v20024_v42 }
0x21a4   : > { %15008 = vmatpush1.bf16.msra.mxu1 %v20022_v24 }
0x21a5   : > { %15009 = vmatprep.subr.bf16.mxu1 %v20027_v31  ;;  %v20052_v31 = vld [vmem:[%s24610_s17 + $0x100] ss:$8 sps:$4 sm:$0xff]  }
0x21a8   : > { %15010 = vmatpush1.bf16.msra.mxu1 %v20025_v34 }
0x21a9   : > { %15011 = vmatprep.subr.bf16.mxu1 %v20030_v35  ;;  %v20057_v35 = vld [vmem:[%s24610_s17 + $0x114] ss:$8 sps:$4 sm:$0xff]  }
0x21ac   : > { %15012 = vmatpush1.bf16.msra.mxu1 %v20028_v41  ;;  %v20055_v41 = vld [vmem:[%s24610_s17 + $0x110] ss:$8 sps:$4 sm:$0xff]  }
0x21ad   : > { %15013 = vmatprep.subr.bf16.mxu1 %v20033_v48  ;;  %v20060_v48 = vld [vmem:[%s24610_s17 + $0x124] ss:$8 sps:$4 sm:$0xff]  }
0x21b0   : > { %15014 = vmatpush1.bf16.msra.mxu1 %v20031_v44  ;;  %v20058_v44 = vld [vmem:[%s24610_s17 + $0x120] ss:$8 sps:$4 sm:$0xff]  }
0x21b1   : > { %15015 = vmatprep.subr.bf16.mxu1 %v20036_v46  ;;  %v20063_v46 = vld [vmem:[%s24610_s17 + $0x134] ss:$8 sps:$4 sm:$0xff]  }
0x21b4   : > { %15016 = vmatpush1.bf16.msra.mxu1 %v20034_v49  ;;  %v20061_v49 = vld [vmem:[%s24610_s17 + $0x130] ss:$8 sps:$4 sm:$0xff]  }
0x21b5   : > { %15017 = vmatprep.subr.bf16.mxu1 %v20039_v11  ;;  %v20066_v11 = vld [vmem:[%s24610_s17 + $0x144] ss:$8 sps:$4 sm:$0xff]  }
0x21b8   : > { %15018 = vmatpush1.bf16.msra.mxu1 %v20037_v50  ;;  %v20064_v50 = vld [vmem:[%s24610_s17 + $0x140] ss:$8 sps:$4 sm:$0xff]  }
0x21b9   : > { %15019 = vmatprep.subr.bf16.mxu1 %v20042_v51  ;;  %v20069_v51 = vld [vmem:[%s24610_s17 + $0x154] ss:$8 sps:$4 sm:$0xff]  }
0x21bc   : > { %15020 = vmatpush1.bf16.msra.mxu1 %v20040_v59  ;;  %v20067_v59 = vld [vmem:[%s24610_s17 + $0x150] ss:$8 sps:$4 sm:$0xff]  }
0x21bd   : > { %15021 = vmatprep.subr.bf16.mxu1 %v20045_v22  ;;  %v20072_v22 = vld [vmem:[%s24610_s17 + $0x164] ss:$8 sps:$4 sm:$0xff]  }
0x21c0   : > { %15022 = vmatpush1.bf16.msra.mxu1 %v20043_v60  ;;  %v20070_v60 = vld [vmem:[%s24610_s17 + $0x160] ss:$8 sps:$4 sm:$0xff]  }
0x21c1   : > { %15023 = vmatprep.subr.bf16.mxu1 %v20048_v7  ;;  %v20075_v7 = vld [vmem:[%s24610_s17 + $0x174] ss:$8 sps:$4 sm:$0xff]  }
0x21c4   : > { %15024 = vmatpush1.bf16.msra.mxu1 %v20046_v8  ;;  %v20073_v8 = vld [vmem:[%s24610_s17 + $0x170] ss:$8 sps:$4 sm:$0xff]  }
0x21c5   : > { %15025 = vmatprep.subr.bf16.mxu1 %v20051_v9  ;;  %v20078_v9 = vld [vmem:[%s24610_s17 + $0x184] ss:$8 sps:$4 sm:$0xff]  }
0x21c8   : > { %15026 = vmatpush1.bf16.msra.mxu1 %v20049_v56  ;;  %v20076_v56 = vld [vmem:[%s24610_s17 + $0x180] ss:$8 sps:$4 sm:$0xff]  }
0x21c9   : > { %15038 = vmatprep.subr.bf16.mxu1 %v20054_v37  ;;  %v20081_v37 = vld [vmem:[%s24610_s17 + $0x194] ss:$8 sps:$4 sm:$0xff]  }
0x225e   : > { %v14406_v57 = vpop.f32.mrb[216].mxu1 }
0x225f   : > { %v18868_v58 = vadd.f32 %v14406_v57, %v12946_v1  ;;  %v14578_v53 = vpop.f32.mrb[120].mxu0  ;;  %v14408_v2 = vpop.f32.mrb[217].mxu1  ;;  %v20114_v57 = vld [vmem:[%s24612_s19 + $0x78] sm:$0xff]  }
0x2260   : > { %v18872_v6 = vadd.f32 %v14578_v53, %v12954_v14  ;;  %v18869_v25 = vadd.f32 %v14408_v2, %v12950_v28  ;;  %v14580_v12 = vpop.f32.mrb[121].mxu0  ;;  %v14410_v13 = vpop.f32.mrb[218].mxu1  ;;  %v14663_v53 = vld [vmem:[%s24611_s18] sm:$0x3] }
0x2261   : > { %v18873_v16 = vadd.f32 %v14580_v12, %v12958_v47  ;;  %v18870_v61 = vadd.f32 %v14410_v13, %v12946_v1  ;;  %v14582_v17 = vpop.f32.mrb[122].mxu0  ;;  %v14412_v19 = vpop.f32.mrb[219].mxu1  ;;  %v14587_v40 = vmax.f32 %v18868_v58, 0.0  ;;  %v20097_v1 = vld [vmem:[%s24610_s17 + $0x1f0] ss:$8 sps:$4 sm:$0xff]   ;;  %v14668_v2 = vrot.slane %v14663_v53, %v23714_v29 }
0x2262   : > { %v18874_v36 = vadd.f32 %v14582_v17, %v12954_v14  ;;  %v18871_v26 = vadd.f32 %v14412_v19, %v12950_v28  ;;  %v14584_v54 = vpop.f32.mrb[123].mxu0  ;;  %v14589_v45 = vmax.f32 %v18872_v6, 0.0  ;;  %v14588_v10 = vmax.f32 %v18869_v25, 0.0  ;;  %v20111_v14 = vld [vmem:[%s24612_s19 + $0x28] sm:$0xff]   ;;  %v20112_v28 = vld [vmem:[%s24612_s19 + $0x70] sm:$0xff]   ;;  %v20115_v58 = vld [vmem:[%s24612_s19 + $0x38] sm:$0xff]  }
0x2263   : > { %v14591_v18 = vmax.f32 %v18870_v61, 0.0  ;;  %v18875_v30 = vadd.f32 %v14584_v54, %v12958_v47  ;;  %v14590_v5 = vmax.f32 %v18873_v16, 0.0  ;;  %17987 = vmatpush3.bf16.msra.mxu0 %v20111_v14  ;;  %v20113_v47 = vld [vmem:[%s24612_s19 + $0x30] sm:$0xff]   ;;  %v14672_v6 = vrot.slane %v14663_v53, %v23718_v63  ;;  %v16457_v63 = vld [vmem:[%s24613_s20] ss:$0 sm:$0xff] }
0x2264   : > { %v14593_v33 = vmax.f32 %v18874_v36, 0.0  ;;  %v14592_v4 = vmax.f32 %v18871_v26, 0.0  ;;  %17988 = vmatprep.subr.bf16.mxu0 %v20112_v28 }
0x2265   : > { %v14595_v20 = vpack.c.bf16 %v14591_v18, %v14587_v40  ;;  %v14594_v23 = vmax.f32 %v18875_v30, 0.0 }
0x2266   : > { %v24466_v42 = vpack.c.bf16 %v14593_v33, %v14589_v45  ;;  %v14596_v24 = vpack.c.bf16 %v14592_v4, %v14588_v10 }
0x2267   : > { %v14598_v34 = vpack.c.bf16 %v14594_v23, %v14590_v5  ;;  %17989 = vmatpush3.bf16.msra.mxu0 %v20113_v47 }
0x2268   : > { %15027 = vmatprep.mubr.bf16.mxu1 %v14596_v24  ;;  %17990 = vmatprep.subr.bf16.mxu0 %v20114_v57 }
0x2269   : > { %15028 = vmatmul.mubr.bf16.vlgmr.msra.gmra.mrb[220].mxu1 %v14595_v20 }
0x226a   : > { %15039 = vmatpush1.bf16.msra.mxu1 %v20052_v31  ;;  %15070 = vmatprep.mubr.bf16.mxu1 %v14598_v34 }
0x226b   : > { %15040 = vmatprep.subr.bf16.mxu1 %v20057_v35  ;;  %17991 = vmatpush3.bf16.msra.mxu0 %v20115_v58 }
0x226e   : > { %15041 = vmatpush1.bf16.msra.mxu1 %v20055_v41 }
0x226f   : > { %15042 = vmatprep.subr.bf16.mxu1 %v20060_v48 }
0x2272   : > { %15043 = vmatpush1.bf16.msra.mxu1 %v20058_v44 }
0x2273   : > { %15044 = vmatprep.subr.bf16.mxu1 %v20063_v46 }
0x2276   : > { %15045 = vmatpush1.bf16.msra.mxu1 %v20061_v49 }
0x2277   : > { %15046 = vmatprep.subr.bf16.mxu1 %v20066_v11 }
0x227a   : > { %15047 = vmatpush1.bf16.msra.mxu1 %v20064_v50 }
0x227b   : > { %15048 = vmatprep.subr.bf16.mxu1 %v20069_v51 }
0x227e   : > { %15049 = vmatpush1.bf16.msra.mxu1 %v20067_v59 }
0x227f   : > { %15050 = vmatprep.subr.bf16.mxu1 %v20072_v22 }
0x2282   : > { %15051 = vmatpush1.bf16.msra.mxu1 %v20070_v60 }
0x2283   : > { %15052 = vmatprep.subr.bf16.mxu1 %v20075_v7 }
0x2286   : > { %15053 = vmatpush1.bf16.msra.mxu1 %v20073_v8 }
0x2287   : > { %15054 = vmatprep.subr.bf16.mxu1 %v20078_v9 }
0x228a   : > { %15055 = vmatpush1.bf16.msra.mxu1 %v20076_v56 }
0x228b   : > { %15056 = vmatprep.subr.bf16.mxu1 %v20081_v37 }
0x228e   : > { %15057 = vmatpush1.bf16.msra.mxu1 %v20079_v62 }
0x228f   : > { %15058 = vmatprep.subr.bf16.mxu1 %v20084_v38 }
0x2292   : > { %15059 = vmatpush1.bf16.msra.mxu1 %v20082_v0 }
0x2293   : > { %15060 = vmatprep.subr.bf16.mxu1 %v20087_v21 }
0x2296   : > { %15061 = vmatpush1.bf16.msra.mxu1 %v20085_v32 }
0x2297   : > { %15062 = vmatprep.subr.bf16.mxu1 %v20090_v43 }
0x229a   : > { %15063 = vmatpush1.bf16.msra.mxu1 %v20088_v55 }
0x229b   : > { %15064 = vmatprep.subr.bf16.mxu1 %v20093_v3 }
0x229e   : > { %15065 = vmatpush1.bf16.msra.mxu1 %v20091_v27 }
0x229f   : > { %15066 = vmatprep.subr.bf16.mxu1 %v20096_v15 }
0x22a2   : > { %15067 = vmatpush1.bf16.msra.mxu1 %v20094_v39 }
0x22a3   : > { %15068 = vmatprep.subr.bf16.mxu1 %v20099_v52 }
0x22a6   : > { %15069 = vmatpush1.bf16.msra.mxu1 %v20097_v1 }
0x22a9   : > { %15071 = vmatmul.mubr.bf16.vlgmr.msra.gmra.mrb[220].mxu1 %v24466_v42 }
0x237c   : > { %v15072_v25 = vpop.f32.mrb[220].mxu1 }
0x237d   : > { %v18876_v12 = vadd.f32 %v15072_v25, %v14668_v2  ;;  %v15074_v13 = vpop.f32.mrb[221].mxu1 }
0x237e   : > { %v18877_v16 = vadd.f32 %v15074_v13, %v14672_v6  ;;  %v15076_v61 = vpop.f32.mrb[222].mxu1 }
0x237f   : > { %v18878_v17 = vadd.f32 %v15076_v61, %v14668_v2  ;;  %v15078_v19 = vpop.f32.mrb[223].mxu1  ;;  %v15081_v26 = vmax.f32 %v18876_v12, 0.0 }
0x2380   : > { %v18879_v36 = vadd.f32 %v15078_v19, %v14672_v6  ;;  %v15082_v40 = vmax.f32 %v18877_v16, 0.0 }
0x2381   : > { %v15083_v54 = vmax.f32 %v18878_v17, 0.0 }
0x2382   : > { %v15084_v18 = vmax.f32 %v18879_v36, 0.0 }
0x2383   : > { %v15085_v30 = vpack.c.bf16 %v15083_v54, %v15081_v26 }
0x2384   : > { %v15086_v45 = vpack.c.bf16 %v15084_v18, %v15082_v40 }
0x2386   : > { %15254 = vmatprep.mubr.bf16.mxu0 %v15086_v45 }
0x2387   : > { %15255 = vmatmul.mubr.bf16.vlgmr.msra.gmra.mrb[124].mxu0 %v15085_v30 }
0x245a   : > { %v17992_v29 = vpop.f32.mrb[124].mxu0 }
0x245b   : > { %v17993_v10 = vpop.f32.mrb[125].mxu0 }
0x245c   : > { %v17994_v33 = vadd.f32 %v17993_v10, %v17992_v29  ;;  %v17995_v4 = vpop.f32.mrb[126].mxu0 }
0x245d   : > { %v17996_v5 = vpop.f32.mrb[127].mxu0 }
0x245e   : > { %v15257_v20 = vadd.f32 %v17994_v33, %v16457_v63  ;;  %v17997_v23 = vadd.f32 %v17996_v5, %v17995_v4 }
0x2460   : > { %15263 = vst [vmem:[%s661_s30] sm:$0xff] %v15257_v20  ;;  %v15260_v42 = vadd.f32 %v17997_v23, %v16457_v63 }
0x2462   : > { %15264 = vst [vmem:[%s661_s30 + $0x8] sm:$0xff] %v15260_v42 }
0x2463 PF: > { %s31_s2 = sadd.s32 1, %s20123_s2  }
0x2464   : > { %p28_p5 = scmp.ge.s32.totalorder %s31_s2, 4  }
0x2466   :  { %30 = sbr.rel (!%p28_p5) target bundleno = 7 (0x7), region = 134 }

</bundles_post_ra>
